<compile_context>
chip_gen: v7x
topology: tpu7x:2x2x1
jax: 0.10.0
libtpu: 0.0.40
codegen_flags: <defaults>
</compile_context>

<pallas_src>
import functools

import jax
import jax.numpy as jnp
from jax.experimental import pallas as pl
from jax.experimental.pallas import tpu as pltpu


# ----------------------------------------------------------------------------
# Fused whole-network kernel (one grid step == `B` images)
# ----------------------------------------------------------------------------
def _fused_residual_cnn_kernel(*refs, depth, B, H, W):
    # refs layout:
    #   [0]                x_ref   (B, H, W, Cin)                 f32
    #   [1..2]             stem:   w (9, Cin, hid) bf16 (BN scale folded), bias (1, hid) f32
    #   [3 .. 3+4*depth)   per block: c1_w, c1_b, c2_w, c2_b
    #   [n_in-2, n_in-1]   fc_w (hid, classes) f32, fc_b (1, classes) f32
    #   [n_in]             o_ref   (1, B, classes)                f32
    #   [n_in+1]           pad_ref VMEM (B, H+2, W+2, hid)        f32 scratch (zero-haloed)
    n_in = 1 + 2 + 4 * depth + 2
    x_ref = refs[0]
    stem_w, stem_b = refs[1], refs[2]
    blocks = [refs[3 + 4 * i: 3 + 4 * (i + 1)] for i in range(depth)]
    fcw_ref, fcb_ref = refs[n_in - 2], refs[n_in - 1]
    o_ref = refs[n_in]
    pad_ref = refs[n_in + 1]

    HW = H * W
    M = B * HW
    hidden = stem_w.shape[2]

    # Zero ONLY the 1-pixel halo ring (cheaper than a full-buffer memset).
    # The interior [:, 1:H+1, 1:W+1, :cin] is rewritten before every conv and
    # every read slices ':cin', so interior channels >= cin (stale data from
    # earlier layers) are never observed.  Do NOT widen those reads.
    zero_row = jnp.zeros((B, 1, W + 2, hidden), jnp.float32)
    zero_col = jnp.zeros((B, H, 1, hidden), jnp.float32)
    pad_ref[:, 0:1, :, :] = zero_row
    pad_ref[:, H + 1:H + 2, :, :] = zero_row
    pad_ref[:, 1:H + 1, 0:1, :] = zero_col
    pad_ref[:, 1:H + 1, W + 1:W + 2, :] = zero_col

    def set_interior(act, cin):
        """Write the (B, H, W, cin) layer input into the haloed buffer."""
        pad_ref[:, 1:H + 1, 1:W + 1, :cin] = act

    def conv3x3_bias_relu(cin, w_ref, b_ref, residual=None):
        """3x3 conv (stride 1, pad 1) on the buffered activation as 9 shifted-window
        accumulating matmuls (no im2col staging), + bias (BN scale pre-folded into w)
        (+ optional residual) + ReLU.  Returns (M, cout) f32."""
        acc = None
        for kh in range(3):
            for kw in range(3):
                patches = pad_ref[:, kh:kh + H, kw:kw + W, :cin]        # (B, H, W, cin)
                patches = patches.reshape(M, cin).astype(jnp.bfloat16)
                part = jnp.dot(patches, w_ref[kh * 3 + kw],             # bf16 x bf16 -> f32 MXU
                               preferred_element_type=jnp.float32)
                acc = part if acc is None else acc + part
            # (accumulation stays in vregs; on v7x the MRB accumulates in place)
        y = acc + b_ref[...]                                            # folded BN bias
        if residual is not None:
            y = y + residual
        return jnp.maximum(y, 0.0)                                      # ReLU

    # --- stem ConvBlock + ReLU ------------------------------------------------
    cin0 = x_ref.shape[-1]
    set_interior(x_ref[...], cin0)
    h = conv3x3_bias_relu(cin0, stem_w, stem_b)                         # (M, hidden) f32

    # --- ResidualBlocks ---------------------------------------------------------
    for (c1w, c1b, c2w, c2b) in blocks:
        res_c = c1w.shape[2]
        set_interior(h.reshape(B, H, W, hidden), hidden)
        y = conv3x3_bias_relu(hidden, c1w, c1b)                         # relu(bn1(conv1(h)))
        set_interior(y.reshape(B, H, W, res_c), res_c)
        h = conv3x3_bias_relu(res_c, c2w, c2b, residual=h)              # relu(bn2(conv2(.)) + h)

    # --- AdaptiveAvgPool2d((1,1)) + flatten + Dropout(eval: identity) + Linear --
    pooled = jnp.sum(h.reshape(B, HW, hidden), axis=1) * (1.0 / HW)     # (B, hidden)
    logits = jnp.dot(pooled, fcw_ref[...],
                     preferred_element_type=jnp.float32) + fcb_ref[...]
    o_ref[0] = logits


def _pick_block_n(n):
    """Images per grid step: batch-tile to raise the matmul M dimension, but keep
    >= 2 grid steps when possible so both v7x TensorCores get work (no-op on
    single-TC v5e/v6e)."""
    for b in (8, 4, 2):
        if n % b == 0 and n // b >= 2:
            return b
    return 1


def _const_index_map(rank):
    def imap(n):
        return (0,) * rank
    return imap


def residual_cnn_forward(x_nchw, params, *, block_n=None):
    """NCHW input -> (N, classes) logits, one fused pallas_call."""
    x = jnp.transpose(x_nchw, (0, 2, 3, 1)).astype(jnp.float32)         # NCHW -> NHWC
    N, H, W, Cin = x.shape
    depth = len(params["blocks"])
    hidden = params["stem"]["w"].shape[2]
    classes = params["fc_w"].shape[1]

    if block_n is None:
        block_n = _pick_block_n(N)
    assert N % block_n == 0, (N, block_n)
    grid_n = N // block_n

    inputs = [x, params["stem"]["w"], params["stem"]["bias"]]
    for blk in params["blocks"]:
        for name in ("conv1", "conv2"):
            inputs += [blk[name]["w"], blk[name]["bias"]]
    inputs += [params["fc_w"], params["fc_b"]]

    in_specs = [pl.BlockSpec((block_n, H, W, Cin), lambda n: (n, 0, 0, 0))]
    in_specs += [pl.BlockSpec(a.shape, _const_index_map(a.ndim)) for a in inputs[1:]]

    kernel = functools.partial(_fused_residual_cnn_kernel,
                               depth=depth, B=block_n, H=H, W=W)

    out = pl.pallas_call(
        kernel,
        out_shape=jax.ShapeDtypeStruct((grid_n, block_n, classes), jnp.float32),
        grid_spec=pltpu.PrefetchScalarGridSpec(
            num_scalar_prefetch=0,
            grid=(grid_n,),
            in_specs=in_specs,
            out_specs=pl.BlockSpec((1, block_n, classes), lambda n: (n, 0, 0)),
            scratch_shapes=[
                # zero-haloed activation buffer: the only VMEM scratch left after
                # dropping the (HW, 9*hidden) im2col patch matrix
                pltpu.VMEM((block_n, H + 2, W + 2, hidden), jnp.float32),
            ],
        ),
        compiler_params=pltpu.CompilerParams(
            dimension_semantics=("parallel",),      # batch axis -> v7x's 2 TensorCores
            vmem_limit_bytes=32 * 1024 * 1024,      # explicit budget; << v7x 64 MiB/TC
        ),
    )(*inputs)
    return out.reshape(N, classes)


# ----------------------------------------------------------------------------
# Parameter construction (deterministic, synthetic, BN pre-folded for eval)
# ----------------------------------------------------------------------------
def _conv_bn_params(key_it, cin, cout, eps=1e-5):
    """Synthetic Conv2d(3x3) + BatchNorm2d params folded for inference:
    BN scale folded into the conv weight, BN shift + conv bias into one bias."""
    w = jax.random.normal(next(key_it), (3, 3, cin, cout), jnp.float32) * (9 * cin) ** -0.5
    conv_b = 0.1 * jax.random.normal(next(key_it), (cout,), jnp.float32)
    gamma = 1.0 + 0.1 * jax.random.normal(next(key_it), (cout,), jnp.float32)
    beta = 0.1 * jax.random.normal(next(key_it), (cout,), jnp.float32)
    mean = 0.1 * jax.random.normal(next(key_it), (cout,), jnp.float32)
    var = 1.0 + 0.1 * jnp.abs(jax.random.normal(next(key_it), (cout,), jnp.float32))
    scale = gamma / jnp.sqrt(var + eps)                      # (cout,)
    bias = beta + scale * (conv_b - mean)                    # (cout,)
    return {
        # tap-major (9, cin, cout) bf16 with BN scale folded in (MXU dtype)
        "w": (w * scale).reshape(9, cin, cout).astype(jnp.bfloat16),
        "bias": bias.reshape(1, cout).astype(jnp.float32),
    }


def init_params(key, in_ch, hidden, classes, depth):
    keys = iter(jax.random.split(key, 6 * (1 + 2 * depth) + 2))
    params = {"stem": _conv_bn_params(keys, in_ch, hidden), "blocks": []}
    res_ch = hidden // 4
    for _ in range(depth):
        params["blocks"].append({
            "conv1": _conv_bn_params(keys, hidden, res_ch),
            "conv2": _conv_bn_params(keys, res_ch, hidden),
        })
    params["fc_w"] = jax.random.normal(next(keys), (hidden, classes), jnp.float32) * hidden ** -0.5
    params["fc_b"] = 0.1 * jax.random.normal(next(keys), (1, classes), jnp.float32)
    return params


# ----------------------------------------------------------------------------
# Pure-JAX reference (same folded params) for a correctness sanity check
# ----------------------------------------------------------------------------
def _reference_forward(x_nchw, params):
    x = jnp.transpose(x_nchw, (0, 2, 3, 1)).astype(jnp.float32)

    def conv_bn_relu(x, p, residual=None):
        _, cin, cout = p["w"].shape
        w = p["w"].astype(jnp.float32).reshape(3, 3, cin, cout)
        y = jax.lax.conv_general_dilated(
            x, w, window_strides=(1, 1), padding=((1, 1), (1, 1)),
            dimension_numbers=("NHWC", "HWIO", "NHWC"),
            precision=jax.lax.Precision.HIGHEST)
        y = y + p["bias"].reshape(-1)
        if residual is not None:
            y = y + residual
        return jnp.maximum(y, 0.0)

    h = conv_bn_relu(x, params["stem"])
    for blk in params["blocks"]:
        y = conv_bn_relu(h, blk["conv1"])
        h = conv_bn_relu(y, blk["conv2"], residual=h)
    pooled = jnp.mean(h, axis=(1, 2))
    return jnp.dot(pooled, params["fc_w"],
                   precision=jax.lax.Precision.HIGHEST) + params["fc_b"]


if __name__ == "__main__":
    key = jax.random.PRNGKey(0)
    k_x, k_p = jax.random.split(key)

    N, C_IN, S = 2, 4, 16          # input_shape = (4, 16, 16)
    HIDDEN, CLASSES, DEPTH = 32, 10, 2

    x = jax.random.normal(k_x, (N, C_IN, S, S), jnp.float32)
    params = init_params(k_p, C_IN, HIDDEN, CLASSES, DEPTH)

    fwd = jax.jit(residual_cnn_forward)
    out = fwd(x, params)
    jax.block_until_ready(out)
    assert out.shape == (N, CLASSES), out.shape

    ref = jax.jit(_reference_forward)(x, params)
    err = float(jnp.max(jnp.abs(out - ref)))
    scale = float(jnp.max(jnp.abs(ref)))
    # Relative + absolute tolerance (tighter than the old 0.15 absolute check);
    # remaining difference comes from bf16 MXU operands vs the f32 reference conv.
    assert err <= 0.05 * scale + 0.05, f"max abs err {err} vs ref scale {scale}"

    print("KERNEL_OK")
</pallas_src>

<mosaic_0001>
module attributes {stable_mosaic.version = 11 : i64} {
  func.func @_fused_residual_cnn_kernel(%arg0: i32, %arg1: memref<1x16x16x4xf32, #tpu.memory_space<vmem>>, %arg2: memref<9x4x32xbf16, #tpu.memory_space<vmem>>, %arg3: memref<1x32xf32, #tpu.memory_space<vmem>>, %arg4: memref<9x32x8xbf16, #tpu.memory_space<vmem>>, %arg5: memref<1x8xf32, #tpu.memory_space<vmem>>, %arg6: memref<9x8x32xbf16, #tpu.memory_space<vmem>>, %arg7: memref<1x32xf32, #tpu.memory_space<vmem>>, %arg8: memref<9x32x8xbf16, #tpu.memory_space<vmem>>, %arg9: memref<1x8xf32, #tpu.memory_space<vmem>>, %arg10: memref<9x8x32xbf16, #tpu.memory_space<vmem>>, %arg11: memref<1x32xf32, #tpu.memory_space<vmem>>, %arg12: memref<32x10xf32, #tpu.memory_space<vmem>>, %arg13: memref<1x10xf32, #tpu.memory_space<vmem>>, %arg14: memref<1x1x10xf32, #tpu.memory_space<vmem>>, %arg15: memref<1x18x18x32xf32, #tpu.memory_space<vmem>>) attributes {dimension_semantics = [#tpu.dimension_semantics<parallel>], iteration_bounds = array<i64: 2>, scalar_prefetch = 0 : i64, scratch_operands = 1 : i64, tpu.core_type = #tpu.core_type<tc>, window_params = [{transform_indices = @transform_0, window_bounds = array<i64: 1, 16, 16, 4>}, {pipeline_mode = #tpu.pipeline_mode<synchronous>, transform_indices = @transform_1, window_bounds = array<i64: 9, 4, 32>}, {pipeline_mode = #tpu.pipeline_mode<synchronous>, transform_indices = @transform_2, window_bounds = array<i64: 1, 32>}, {pipeline_mode = #tpu.pipeline_mode<synchronous>, transform_indices = @transform_3, window_bounds = array<i64: 9, 32, 8>}, {pipeline_mode = #tpu.pipeline_mode<synchronous>, transform_indices = @transform_4, window_bounds = array<i64: 1, 8>}, {pipeline_mode = #tpu.pipeline_mode<synchronous>, transform_indices = @transform_5, window_bounds = array<i64: 9, 8, 32>}, {pipeline_mode = #tpu.pipeline_mode<synchronous>, transform_indices = @transform_6, window_bounds = array<i64: 1, 32>}, {pipeline_mode = #tpu.pipeline_mode<synchronous>, transform_indices = @transform_7, window_bounds = array<i64: 9, 32, 8>}, {pipeline_mode = #tpu.pipeline_mode<synchronous>, transform_indices = @transform_8, window_bounds = array<i64: 1, 8>}, {pipeline_mode = #tpu.pipeline_mode<synchronous>, transform_indices = @transform_9, window_bounds = array<i64: 9, 8, 32>}, {pipeline_mode = #tpu.pipeline_mode<synchronous>, transform_indices = @transform_10, window_bounds = array<i64: 1, 32>}, {pipeline_mode = #tpu.pipeline_mode<synchronous>, transform_indices = @transform_11, window_bounds = array<i64: 32, 10>}, {pipeline_mode = #tpu.pipeline_mode<synchronous>, transform_indices = @transform_12, window_bounds = array<i64: 1, 10>}, {transform_indices = @transform_13, window_bounds = array<i64: 1, 1, 10>}]} {
    %cst = arith.constant 0.000000e+00 : f32
    %0 = vector.broadcast %cst : f32 to vector<1x1x18x32xf32>
    %cst_0 = arith.constant 0.000000e+00 : f32
    %1 = vector.broadcast %cst_0 : f32 to vector<1x16x1x32xf32>
    %c0 = arith.constant 0 : index
    %c0_1 = arith.constant 0 : index
    %c0_2 = arith.constant 0 : index
    %c0_3 = arith.constant 0 : index
    %2 = vector.load %arg15[%c0, %c0_1, %c0_2, %c0_3] : memref<1x18x18x32xf32, #tpu.memory_space<vmem>>, vector<1x1x18x32xf32>
    tpu.vector_store %arg15[%c0, %c0_1, %c0_2, %c0_3], %0 {strides = array<i32>} : memref<1x18x18x32xf32, #tpu.memory_space<vmem>>, vector<1x1x18x32xf32>,
    %c0_4 = arith.constant 0 : index
    %c17 = arith.constant 17 : index
    %c0_5 = arith.constant 0 : index
    %c0_6 = arith.constant 0 : index
    %3 = vector.load %arg15[%c0_4, %c17, %c0_5, %c0_6] : memref<1x18x18x32xf32, #tpu.memory_space<vmem>>, vector<1x1x18x32xf32>
    tpu.vector_store %arg15[%c0_4, %c17, %c0_5, %c0_6], %0 {strides = array<i32>} : memref<1x18x18x32xf32, #tpu.memory_space<vmem>>, vector<1x1x18x32xf32>,
    %c0_7 = arith.constant 0 : index
    %c1 = arith.constant 1 : index
    %c0_8 = arith.constant 0 : index
    %c0_9 = arith.constant 0 : index
    %4 = vector.load %arg15[%c0_7, %c1, %c0_8, %c0_9] : memref<1x18x18x32xf32, #tpu.memory_space<vmem>>, vector<1x16x1x32xf32>
    tpu.vector_store %arg15[%c0_7, %c1, %c0_8, %c0_9], %1 {strides = array<i32>} : memref<1x18x18x32xf32, #tpu.memory_space<vmem>>, vector<1x16x1x32xf32>,
    %c0_10 = arith.constant 0 : index
    %c1_11 = arith.constant 1 : index
    %c17_12 = arith.constant 17 : index
    %c0_13 = arith.constant 0 : index
    %5 = vector.load %arg15[%c0_10, %c1_11, %c17_12, %c0_13] : memref<1x18x18x32xf32, #tpu.memory_space<vmem>>, vector<1x16x1x32xf32>
    tpu.vector_store %arg15[%c0_10, %c1_11, %c17_12, %c0_13], %1 {strides = array<i32>} : memref<1x18x18x32xf32, #tpu.memory_space<vmem>>, vector<1x16x1x32xf32>,
    %c0_14 = arith.constant 0 : index
    %c0_15 = arith.constant 0 : index
    %c0_16 = arith.constant 0 : index
    %c0_17 = arith.constant 0 : index
    %6 = vector.load %arg1[%c0_14, %c0_15, %c0_16, %c0_17] : memref<1x16x16x4xf32, #tpu.memory_space<vmem>>, vector<1x16x16x4xf32>
    %c0_18 = arith.constant 0 : index
    %c1_19 = arith.constant 1 : index
    %c1_20 = arith.constant 1 : index
    %c0_21 = arith.constant 0 : index
    %7 = vector.load %arg15[%c0_18, %c1_19, %c1_20, %c0_21] : memref<1x18x18x32xf32, #tpu.memory_space<vmem>>, vector<1x16x16x4xf32>
    tpu.vector_store %arg15[%c0_18, %c1_19, %c1_20, %c0_21], %6 {strides = array<i32>} : memref<1x18x18x32xf32, #tpu.memory_space<vmem>>, vector<1x16x16x4xf32>,
    %c0_22 = arith.constant 0 : index
    %c0_23 = arith.constant 0 : index
    %c0_24 = arith.constant 0 : index
    %c0_25 = arith.constant 0 : index
    %8 = vector.load %arg15[%c0_22, %c0_23, %c0_24, %c0_25] : memref<1x18x18x32xf32, #tpu.memory_space<vmem>>, vector<1x16x16x4xf32>
    %9 = vector.shape_cast %8 : vector<1x16x16x4xf32> to vector<256x4xf32>
    %10 = arith.truncf %9 : vector<256x4xf32> to vector<256x4xbf16>
    %c0_26 = arith.constant 0 : index
    %c0_27 = arith.constant 0 : index
    %c0_28 = arith.constant 0 : index
    %11 = vector.load %arg2[%c0_26, %c0_27, %c0_28] : memref<9x4x32xbf16, #tpu.memory_space<vmem>>, vector<1x4x32xbf16>
    %12 = vector.shape_cast %11 : vector<1x4x32xbf16> to vector<4x32xbf16>
    %cst_29 = arith.constant dense<0.000000e+00> : vector<256x32xf32>
    %13 = tpu.matmul %10, %12, %cst_29 {dimension_numbers = #tpu.dot_dimension_numbers<[1], [0], [0], [1], [0, 0, 1, 1], [], []>} : vector<256x4xbf16>, vector<4x32xbf16>, vector<256x32xf32> -> vector<256x32xf32>
    %c0_30 = arith.constant 0 : index
    %c0_31 = arith.constant 0 : index
    %c1_32 = arith.constant 1 : index
    %c0_33 = arith.constant 0 : index
    %14 = vector.load %arg15[%c0_30, %c0_31, %c1_32, %c0_33] : memref<1x18x18x32xf32, #tpu.memory_space<vmem>>, vector<1x16x16x4xf32>
    %15 = vector.shape_cast %14 : vector<1x16x16x4xf32> to vector<256x4xf32>
    %16 = arith.truncf %15 : vector<256x4xf32> to vector<256x4xbf16>
    %c1_34 = arith.constant 1 : index
    %c0_35 = arith.constant 0 : index
    %c0_36 = arith.constant 0 : index
    %17 = vector.load %arg2[%c1_34, %c0_35, %c0_36] : memref<9x4x32xbf16, #tpu.memory_space<vmem>>, vector<1x4x32xbf16>
    %18 = vector.shape_cast %17 : vector<1x4x32xbf16> to vector<4x32xbf16>
    %cst_37 = arith.constant dense<0.000000e+00> : vector<256x32xf32>
    %19 = tpu.matmul %16, %18, %cst_37 {dimension_numbers = #tpu.dot_dimension_numbers<[1], [0], [0], [1], [0, 0, 1, 1], [], []>} : vector<256x4xbf16>, vector<4x32xbf16>, vector<256x32xf32> -> vector<256x32xf32>
    %20 = arith.addf %13, %19 : vector<256x32xf32>
    %c0_38 = arith.constant 0 : index
    %c0_39 = arith.constant 0 : index
    %c2 = arith.constant 2 : index
    %c0_40 = arith.constant 0 : index
    %21 = vector.load %arg15[%c0_38, %c0_39, %c2, %c0_40] : memref<1x18x18x32xf32, #tpu.memory_space<vmem>>, vector<1x16x16x4xf32>
    %22 = vector.shape_cast %21 : vector<1x16x16x4xf32> to vector<256x4xf32>
    %23 = arith.truncf %22 : vector<256x4xf32> to vector<256x4xbf16>
    %c2_41 = arith.constant 2 : index
    %c0_42 = arith.constant 0 : index
    %c0_43 = arith.constant 0 : index
    %24 = vector.load %arg2[%c2_41, %c0_42, %c0_43] : memref<9x4x32xbf16, #tpu.memory_space<vmem>>, vector<1x4x32xbf16>
    %25 = vector.shape_cast %24 : vector<1x4x32xbf16> to vector<4x32xbf16>
    %cst_44 = arith.constant dense<0.000000e+00> : vector<256x32xf32>
    %26 = tpu.matmul %23, %25, %cst_44 {dimension_numbers = #tpu.dot_dimension_numbers<[1], [0], [0], [1], [0, 0, 1, 1], [], []>} : vector<256x4xbf16>, vector<4x32xbf16>, vector<256x32xf32> -> vector<256x32xf32>
    %27 = arith.addf %20, %26 : vector<256x32xf32>
    %c0_45 = arith.constant 0 : index
    %c1_46 = arith.constant 1 : index
    %c0_47 = arith.constant 0 : index
    %c0_48 = arith.constant 0 : index
    %28 = vector.load %arg15[%c0_45, %c1_46, %c0_47, %c0_48] : memref<1x18x18x32xf32, #tpu.memory_space<vmem>>, vector<1x16x16x4xf32>
    %29 = vector.shape_cast %28 : vector<1x16x16x4xf32> to vector<256x4xf32>
    %30 = arith.truncf %29 : vector<256x4xf32> to vector<256x4xbf16>
    %c3 = arith.constant 3 : index
    %c0_49 = arith.constant 0 : index
    %c0_50 = arith.constant 0 : index
    %31 = vector.load %arg2[%c3, %c0_49, %c0_50] : memref<9x4x32xbf16, #tpu.memory_space<vmem>>, vector<1x4x32xbf16>
    %32 = vector.shape_cast %31 : vector<1x4x32xbf16> to vector<4x32xbf16>
    %cst_51 = arith.constant dense<0.000000e+00> : vector<256x32xf32>
    %33 = tpu.matmul %30, %32, %cst_51 {dimension_numbers = #tpu.dot_dimension_numbers<[1], [0], [0], [1], [0, 0, 1, 1], [], []>} : vector<256x4xbf16>, vector<4x32xbf16>, vector<256x32xf32> -> vector<256x32xf32>
    %34 = arith.addf %27, %33 : vector<256x32xf32>
    %c0_52 = arith.constant 0 : index
    %c1_53 = arith.constant 1 : index
    %c1_54 = arith.constant 1 : index
    %c0_55 = arith.constant 0 : index
    %35 = vector.load %arg15[%c0_52, %c1_53, %c1_54, %c0_55] : memref<1x18x18x32xf32, #tpu.memory_space<vmem>>, vector<1x16x16x4xf32>
    %36 = vector.shape_cast %35 : vector<1x16x16x4xf32> to vector<256x4xf32>
    %37 = arith.truncf %36 : vector<256x4xf32> to vector<256x4xbf16>
    %c4 = arith.constant 4 : index
    %c0_56 = arith.constant 0 : index
    %c0_57 = arith.constant 0 : index
    %38 = vector.load %arg2[%c4, %c0_56, %c0_57] : memref<9x4x32xbf16, #tpu.memory_space<vmem>>, vector<1x4x32xbf16>
    %39 = vector.shape_cast %38 : vector<1x4x32xbf16> to vector<4x32xbf16>
    %cst_58 = arith.constant dense<0.000000e+00> : vector<256x32xf32>
    %40 = tpu.matmul %37, %39, %cst_58 {dimension_numbers = #tpu.dot_dimension_numbers<[1], [0], [0], [1], [0, 0, 1, 1], [], []>} : vector<256x4xbf16>, vector<4x32xbf16>, vector<256x32xf32> -> vector<256x32xf32>
    %41 = arith.addf %34, %40 : vector<256x32xf32>
    %c0_59 = arith.constant 0 : index
    %c1_60 = arith.constant 1 : index
    %c2_61 = arith.constant 2 : index
    %c0_62 = arith.constant 0 : index
    %42 = vector.load %arg15[%c0_59, %c1_60, %c2_61, %c0_62] : memref<1x18x18x32xf32, #tpu.memory_space<vmem>>, vector<1x16x16x4xf32>
    %43 = vector.shape_cast %42 : vector<1x16x16x4xf32> to vector<256x4xf32>
    %44 = arith.truncf %43 : vector<256x4xf32> to vector<256x4xbf16>
    %c5 = arith.constant 5 : index
    %c0_63 = arith.constant 0 : index
    %c0_64 = arith.constant 0 : index
    %45 = vector.load %arg2[%c5, %c0_63, %c0_64] : memref<9x4x32xbf16, #tpu.memory_space<vmem>>, vector<1x4x32xbf16>
    %46 = vector.shape_cast %45 : vector<1x4x32xbf16> to vector<4x32xbf16>
    %cst_65 = arith.constant dense<0.000000e+00> : vector<256x32xf32>
    %47 = tpu.matmul %44, %46, %cst_65 {dimension_numbers = #tpu.dot_dimension_numbers<[1], [0], [0], [1], [0, 0, 1, 1], [], []>} : vector<256x4xbf16>, vector<4x32xbf16>, vector<256x32xf32> -> vector<256x32xf32>
    %48 = arith.addf %41, %47 : vector<256x32xf32>
    %c0_66 = arith.constant 0 : index
    %c2_67 = arith.constant 2 : index
    %c0_68 = arith.constant 0 : index
    %c0_69 = arith.constant 0 : index
    %49 = vector.load %arg15[%c0_66, %c2_67, %c0_68, %c0_69] : memref<1x18x18x32xf32, #tpu.memory_space<vmem>>, vector<1x16x16x4xf32>
    %50 = vector.shape_cast %49 : vector<1x16x16x4xf32> to vector<256x4xf32>
    %51 = arith.truncf %50 : vector<256x4xf32> to vector<256x4xbf16>
    %c6 = arith.constant 6 : index
    %c0_70 = arith.constant 0 : index
    %c0_71 = arith.constant 0 : index
    %52 = vector.load %arg2[%c6, %c0_70, %c0_71] : memref<9x4x32xbf16, #tpu.memory_space<vmem>>, vector<1x4x32xbf16>
    %53 = vector.shape_cast %52 : vector<1x4x32xbf16> to vector<4x32xbf16>
    %cst_72 = arith.constant dense<0.000000e+00> : vector<256x32xf32>
    %54 = tpu.matmul %51, %53, %cst_72 {dimension_numbers = #tpu.dot_dimension_numbers<[1], [0], [0], [1], [0, 0, 1, 1], [], []>} : vector<256x4xbf16>, vector<4x32xbf16>, vector<256x32xf32> -> vector<256x32xf32>
    %55 = arith.addf %48, %54 : vector<256x32xf32>
    %c0_73 = arith.constant 0 : index
    %c2_74 = arith.constant 2 : index
    %c1_75 = arith.constant 1 : index
    %c0_76 = arith.constant 0 : index
    %56 = vector.load %arg15[%c0_73, %c2_74, %c1_75, %c0_76] : memref<1x18x18x32xf32, #tpu.memory_space<vmem>>, vector<1x16x16x4xf32>
    %57 = vector.shape_cast %56 : vector<1x16x16x4xf32> to vector<256x4xf32>
    %58 = arith.truncf %57 : vector<256x4xf32> to vector<256x4xbf16>
    %c7 = arith.constant 7 : index
    %c0_77 = arith.constant 0 : index
    %c0_78 = arith.constant 0 : index
    %59 = vector.load %arg2[%c7, %c0_77, %c0_78] : memref<9x4x32xbf16, #tpu.memory_space<vmem>>, vector<1x4x32xbf16>
    %60 = vector.shape_cast %59 : vector<1x4x32xbf16> to vector<4x32xbf16>
    %cst_79 = arith.constant dense<0.000000e+00> : vector<256x32xf32>
    %61 = tpu.matmul %58, %60, %cst_79 {dimension_numbers = #tpu.dot_dimension_numbers<[1], [0], [0], [1], [0, 0, 1, 1], [], []>} : vector<256x4xbf16>, vector<4x32xbf16>, vector<256x32xf32> -> vector<256x32xf32>
    %62 = arith.addf %55, %61 : vector<256x32xf32>
    %c0_80 = arith.constant 0 : index
    %c2_81 = arith.constant 2 : index
    %c2_82 = arith.constant 2 : index
    %c0_83 = arith.constant 0 : index
    %63 = vector.load %arg15[%c0_80, %c2_81, %c2_82, %c0_83] : memref<1x18x18x32xf32, #tpu.memory_space<vmem>>, vector<1x16x16x4xf32>
    %64 = vector.shape_cast %63 : vector<1x16x16x4xf32> to vector<256x4xf32>
    %65 = arith.truncf %64 : vector<256x4xf32> to vector<256x4xbf16>
    %c8 = arith.constant 8 : index
    %c0_84 = arith.constant 0 : index
    %c0_85 = arith.constant 0 : index
    %66 = vector.load %arg2[%c8, %c0_84, %c0_85] : memref<9x4x32xbf16, #tpu.memory_space<vmem>>, vector<1x4x32xbf16>
    %67 = vector.shape_cast %66 : vector<1x4x32xbf16> to vector<4x32xbf16>
    %cst_86 = arith.constant dense<0.000000e+00> : vector<256x32xf32>
    %68 = tpu.matmul %65, %67, %cst_86 {dimension_numbers = #tpu.dot_dimension_numbers<[1], [0], [0], [1], [0, 0, 1, 1], [], []>} : vector<256x4xbf16>, vector<4x32xbf16>, vector<256x32xf32> -> vector<256x32xf32>
    %69 = arith.addf %62, %68 : vector<256x32xf32>
    %c0_87 = arith.constant 0 : index
    %c0_88 = arith.constant 0 : index
    %70 = vector.load %arg3[%c0_87, %c0_88] : memref<1x32xf32, #tpu.memory_space<vmem>>, vector<1x32xf32>
    %71 = vector.broadcast %70 : vector<1x32xf32> to vector<256x32xf32>
    %72 = arith.addf %69, %71 : vector<256x32xf32>
    %cst_89 = arith.constant 0.000000e+00 : f32
    %73 = vector.broadcast %cst_89 : f32 to vector<256x32xf32>
    %74 = arith.maximumf %72, %73 : vector<256x32xf32>
    %75 = vector.shape_cast %74 : vector<256x32xf32> to vector<1x16x16x32xf32>
    %c0_90 = arith.constant 0 : index
    %c1_91 = arith.constant 1 : index
    %c1_92 = arith.constant 1 : index
    %c0_93 = arith.constant 0 : index
    %76 = vector.load %arg15[%c0_90, %c1_91, %c1_92, %c0_93] : memref<1x18x18x32xf32, #tpu.memory_space<vmem>>, vector<1x16x16x32xf32>
    tpu.vector_store %arg15[%c0_90, %c1_91, %c1_92, %c0_93], %75 {strides = array<i32>} : memref<1x18x18x32xf32, #tpu.memory_space<vmem>>, vector<1x16x16x32xf32>,
    %c0_94 = arith.constant 0 : index
    %c0_95 = arith.constant 0 : index
    %c0_96 = arith.constant 0 : index
    %c0_97 = arith.constant 0 : index
    %77 = vector.load %arg15[%c0_94, %c0_95, %c0_96, %c0_97] : memref<1x18x18x32xf32, #tpu.memory_space<vmem>>, vector<1x16x16x32xf32>
    %78 = vector.shape_cast %77 : vector<1x16x16x32xf32> to vector<256x32xf32>
    %79 = arith.truncf %78 : vector<256x32xf32> to vector<256x32xbf16>
    %c0_98 = arith.constant 0 : index
    %c0_99 = arith.constant 0 : index
    %c0_100 = arith.constant 0 : index
    %80 = vector.load %arg4[%c0_98, %c0_99, %c0_100] : memref<9x32x8xbf16, #tpu.memory_space<vmem>>, vector<1x32x8xbf16>
    %81 = vector.shape_cast %80 : vector<1x32x8xbf16> to vector<32x8xbf16>
    %cst_101 = arith.constant dense<0.000000e+00> : vector<256x8xf32>
    %82 = tpu.matmul %79, %81, %cst_101 {dimension_numbers = #tpu.dot_dimension_numbers<[1], [0], [0], [1], [0, 0, 1, 1], [], []>} : vector<256x32xbf16>, vector<32x8xbf16>, vector<256x8xf32> -> vector<256x8xf32>
    %c0_102 = arith.constant 0 : index
    %c0_103 = arith.constant 0 : index
    %c1_104 = arith.constant 1 : index
    %c0_105 = arith.constant 0 : index
    %83 = vector.load %arg15[%c0_102, %c0_103, %c1_104, %c0_105] : memref<1x18x18x32xf32, #tpu.memory_space<vmem>>, vector<1x16x16x32xf32>
    %84 = vector.shape_cast %83 : vector<1x16x16x32xf32> to vector<256x32xf32>
    %85 = arith.truncf %84 : vector<256x32xf32> to vector<256x32xbf16>
    %c1_106 = arith.constant 1 : index
    %c0_107 = arith.constant 0 : index
    %c0_108 = arith.constant 0 : index
    %86 = vector.load %arg4[%c1_106, %c0_107, %c0_108] : memref<9x32x8xbf16, #tpu.memory_space<vmem>>, vector<1x32x8xbf16>
    %87 = vector.shape_cast %86 : vector<1x32x8xbf16> to vector<32x8xbf16>
    %cst_109 = arith.constant dense<0.000000e+00> : vector<256x8xf32>
    %88 = tpu.matmul %85, %87, %cst_109 {dimension_numbers = #tpu.dot_dimension_numbers<[1], [0], [0], [1], [0, 0, 1, 1], [], []>} : vector<256x32xbf16>, vector<32x8xbf16>, vector<256x8xf32> -> vector<256x8xf32>
    %89 = arith.addf %82, %88 : vector<256x8xf32>
    %c0_110 = arith.constant 0 : index
    %c0_111 = arith.constant 0 : index
    %c2_112 = arith.constant 2 : index
    %c0_113 = arith.constant 0 : index
    %90 = vector.load %arg15[%c0_110, %c0_111, %c2_112, %c0_113] : memref<1x18x18x32xf32, #tpu.memory_space<vmem>>, vector<1x16x16x32xf32>
    %91 = vector.shape_cast %90 : vector<1x16x16x32xf32> to vector<256x32xf32>
    %92 = arith.truncf %91 : vector<256x32xf32> to vector<256x32xbf16>
    %c2_114 = arith.constant 2 : index
    %c0_115 = arith.constant 0 : index
    %c0_116 = arith.constant 0 : index
    %93 = vector.load %arg4[%c2_114, %c0_115, %c0_116] : memref<9x32x8xbf16, #tpu.memory_space<vmem>>, vector<1x32x8xbf16>
    %94 = vector.shape_cast %93 : vector<1x32x8xbf16> to vector<32x8xbf16>
    %cst_117 = arith.constant dense<0.000000e+00> : vector<256x8xf32>
    %95 = tpu.matmul %92, %94, %cst_117 {dimension_numbers = #tpu.dot_dimension_numbers<[1], [0], [0], [1], [0, 0, 1, 1], [], []>} : vector<256x32xbf16>, vector<32x8xbf16>, vector<256x8xf32> -> vector<256x8xf32>
    %96 = arith.addf %89, %95 : vector<256x8xf32>
    %c0_118 = arith.constant 0 : index
    %c1_119 = arith.constant 1 : index
    %c0_120 = arith.constant 0 : index
    %c0_121 = arith.constant 0 : index
    %97 = vector.load %arg15[%c0_118, %c1_119, %c0_120, %c0_121] : memref<1x18x18x32xf32, #tpu.memory_space<vmem>>, vector<1x16x16x32xf32>
    %98 = vector.shape_cast %97 : vector<1x16x16x32xf32> to vector<256x32xf32>
    %99 = arith.truncf %98 : vector<256x32xf32> to vector<256x32xbf16>
    %c3_122 = arith.constant 3 : index
    %c0_123 = arith.constant 0 : index
    %c0_124 = arith.constant 0 : index
    %100 = vector.load %arg4[%c3_122, %c0_123, %c0_124] : memref<9x32x8xbf16, #tpu.memory_space<vmem>>, vector<1x32x8xbf16>
    %101 = vector.shape_cast %100 : vector<1x32x8xbf16> to vector<32x8xbf16>
    %cst_125 = arith.constant dense<0.000000e+00> : vector<256x8xf32>
    %102 = tpu.matmul %99, %101, %cst_125 {dimension_numbers = #tpu.dot_dimension_numbers<[1], [0], [0], [1], [0, 0, 1, 1], [], []>} : vector<256x32xbf16>, vector<32x8xbf16>, vector<256x8xf32> -> vector<256x8xf32>
    %103 = arith.addf %96, %102 : vector<256x8xf32>
    %c0_126 = arith.constant 0 : index
    %c1_127 = arith.constant 1 : index
    %c1_128 = arith.constant 1 : index
    %c0_129 = arith.constant 0 : index
    %104 = vector.load %arg15[%c0_126, %c1_127, %c1_128, %c0_129] : memref<1x18x18x32xf32, #tpu.memory_space<vmem>>, vector<1x16x16x32xf32>
    %105 = vector.shape_cast %104 : vector<1x16x16x32xf32> to vector<256x32xf32>
    %106 = arith.truncf %105 : vector<256x32xf32> to vector<256x32xbf16>
    %c4_130 = arith.constant 4 : index
    %c0_131 = arith.constant 0 : index
    %c0_132 = arith.constant 0 : index
    %107 = vector.load %arg4[%c4_130, %c0_131, %c0_132] : memref<9x32x8xbf16, #tpu.memory_space<vmem>>, vector<1x32x8xbf16>
    %108 = vector.shape_cast %107 : vector<1x32x8xbf16> to vector<32x8xbf16>
    %cst_133 = arith.constant dense<0.000000e+00> : vector<256x8xf32>
    %109 = tpu.matmul %106, %108, %cst_133 {dimension_numbers = #tpu.dot_dimension_numbers<[1], [0], [0], [1], [0, 0, 1, 1], [], []>} : vector<256x32xbf16>, vector<32x8xbf16>, vector<256x8xf32> -> vector<256x8xf32>
    %110 = arith.addf %103, %109 : vector<256x8xf32>
    %c0_134 = arith.constant 0 : index
    %c1_135 = arith.constant 1 : index
    %c2_136 = arith.constant 2 : index
    %c0_137 = arith.constant 0 : index
    %111 = vector.load %arg15[%c0_134, %c1_135, %c2_136, %c0_137] : memref<1x18x18x32xf32, #tpu.memory_space<vmem>>, vector<1x16x16x32xf32>
    %112 = vector.shape_cast %111 : vector<1x16x16x32xf32> to vector<256x32xf32>
    %113 = arith.truncf %112 : vector<256x32xf32> to vector<256x32xbf16>
    %c5_138 = arith.constant 5 : index
    %c0_139 = arith.constant 0 : index
    %c0_140 = arith.constant 0 : index
    %114 = vector.load %arg4[%c5_138, %c0_139, %c0_140] : memref<9x32x8xbf16, #tpu.memory_space<vmem>>, vector<1x32x8xbf16>
    %115 = vector.shape_cast %114 : vector<1x32x8xbf16> to vector<32x8xbf16>
    %cst_141 = arith.constant dense<0.000000e+00> : vector<256x8xf32>
    %116 = tpu.matmul %113, %115, %cst_141 {dimension_numbers = #tpu.dot_dimension_numbers<[1], [0], [0], [1], [0, 0, 1, 1], [], []>} : vector<256x32xbf16>, vector<32x8xbf16>, vector<256x8xf32> -> vector<256x8xf32>
    %117 = arith.addf %110, %116 : vector<256x8xf32>
    %c0_142 = arith.constant 0 : index
    %c2_143 = arith.constant 2 : index
    %c0_144 = arith.constant 0 : index
    %c0_145 = arith.constant 0 : index
    %118 = vector.load %arg15[%c0_142, %c2_143, %c0_144, %c0_145] : memref<1x18x18x32xf32, #tpu.memory_space<vmem>>, vector<1x16x16x32xf32>
    %119 = vector.shape_cast %118 : vector<1x16x16x32xf32> to vector<256x32xf32>
    %120 = arith.truncf %119 : vector<256x32xf32> to vector<256x32xbf16>
    %c6_146 = arith.constant 6 : index
    %c0_147 = arith.constant 0 : index
    %c0_148 = arith.constant 0 : index
    %121 = vector.load %arg4[%c6_146, %c0_147, %c0_148] : memref<9x32x8xbf16, #tpu.memory_space<vmem>>, vector<1x32x8xbf16>
    %122 = vector.shape_cast %121 : vector<1x32x8xbf16> to vector<32x8xbf16>
    %cst_149 = arith.constant dense<0.000000e+00> : vector<256x8xf32>
    %123 = tpu.matmul %120, %122, %cst_149 {dimension_numbers = #tpu.dot_dimension_numbers<[1], [0], [0], [1], [0, 0, 1, 1], [], []>} : vector<256x32xbf16>, vector<32x8xbf16>, vector<256x8xf32> -> vector<256x8xf32>
    %124 = arith.addf %117, %123 : vector<256x8xf32>
    %c0_150 = arith.constant 0 : index
    %c2_151 = arith.constant 2 : index
    %c1_152 = arith.constant 1 : index
    %c0_153 = arith.constant 0 : index
    %125 = vector.load %arg15[%c0_150, %c2_151, %c1_152, %c0_153] : memref<1x18x18x32xf32, #tpu.memory_space<vmem>>, vector<1x16x16x32xf32>
    %126 = vector.shape_cast %125 : vector<1x16x16x32xf32> to vector<256x32xf32>
    %127 = arith.truncf %126 : vector<256x32xf32> to vector<256x32xbf16>
    %c7_154 = arith.constant 7 : index
    %c0_155 = arith.constant 0 : index
    %c0_156 = arith.constant 0 : index
    %128 = vector.load %arg4[%c7_154, %c0_155, %c0_156] : memref<9x32x8xbf16, #tpu.memory_space<vmem>>, vector<1x32x8xbf16>
    %129 = vector.shape_cast %128 : vector<1x32x8xbf16> to vector<32x8xbf16>
    %cst_157 = arith.constant dense<0.000000e+00> : vector<256x8xf32>
    %130 = tpu.matmul %127, %129, %cst_157 {dimension_numbers = #tpu.dot_dimension_numbers<[1], [0], [0], [1], [0, 0, 1, 1], [], []>} : vector<256x32xbf16>, vector<32x8xbf16>, vector<256x8xf32> -> vector<256x8xf32>
    %131 = arith.addf %124, %130 : vector<256x8xf32>
    %c0_158 = arith.constant 0 : index
    %c2_159 = arith.constant 2 : index
    %c2_160 = arith.constant 2 : index
    %c0_161 = arith.constant 0 : index
    %132 = vector.load %arg15[%c0_158, %c2_159, %c2_160, %c0_161] : memref<1x18x18x32xf32, #tpu.memory_space<vmem>>, vector<1x16x16x32xf32>
    %133 = vector.shape_cast %132 : vector<1x16x16x32xf32> to vector<256x32xf32>
    %134 = arith.truncf %133 : vector<256x32xf32> to vector<256x32xbf16>
    %c8_162 = arith.constant 8 : index
    %c0_163 = arith.constant 0 : index
    %c0_164 = arith.constant 0 : index
    %135 = vector.load %arg4[%c8_162, %c0_163, %c0_164] : memref<9x32x8xbf16, #tpu.memory_space<vmem>>, vector<1x32x8xbf16>
    %136 = vector.shape_cast %135 : vector<1x32x8xbf16> to vector<32x8xbf16>
    %cst_165 = arith.constant dense<0.000000e+00> : vector<256x8xf32>
    %137 = tpu.matmul %134, %136, %cst_165 {dimension_numbers = #tpu.dot_dimension_numbers<[1], [0], [0], [1], [0, 0, 1, 1], [], []>} : vector<256x32xbf16>, vector<32x8xbf16>, vector<256x8xf32> -> vector<256x8xf32>
    %138 = arith.addf %131, %137 : vector<256x8xf32>
    %c0_166 = arith.constant 0 : index
    %c0_167 = arith.constant 0 : index
    %139 = vector.load %arg5[%c0_166, %c0_167] : memref<1x8xf32, #tpu.memory_space<vmem>>, vector<1x8xf32>
    %140 = vector.broadcast %139 : vector<1x8xf32> to vector<256x8xf32>
    %141 = arith.addf %138, %140 : vector<256x8xf32>
    %cst_168 = arith.constant 0.000000e+00 : f32
    %142 = vector.broadcast %cst_168 : f32 to vector<256x8xf32>
    %143 = arith.maximumf %141, %142 : vector<256x8xf32>
    %144 = vector.shape_cast %143 : vector<256x8xf32> to vector<1x16x16x8xf32>
    %c0_169 = arith.constant 0 : index
    %c1_170 = arith.constant 1 : index
    %c1_171 = arith.constant 1 : index
    %c0_172 = arith.constant 0 : index
    %145 = vector.load %arg15[%c0_169, %c1_170, %c1_171, %c0_172] : memref<1x18x18x32xf32, #tpu.memory_space<vmem>>, vector<1x16x16x8xf32>
    tpu.vector_store %arg15[%c0_169, %c1_170, %c1_171, %c0_172], %144 {strides = array<i32>} : memref<1x18x18x32xf32, #tpu.memory_space<vmem>>, vector<1x16x16x8xf32>,
    %c0_173 = arith.constant 0 : index
    %c0_174 = arith.constant 0 : index
    %c0_175 = arith.constant 0 : index
    %c0_176 = arith.constant 0 : index
    %146 = vector.load %arg15[%c0_173, %c0_174, %c0_175, %c0_176] : memref<1x18x18x32xf32, #tpu.memory_space<vmem>>, vector<1x16x16x8xf32>
    %147 = vector.shape_cast %146 : vector<1x16x16x8xf32> to vector<256x8xf32>
    %148 = arith.truncf %147 : vector<256x8xf32> to vector<256x8xbf16>
    %c0_177 = arith.constant 0 : index
    %c0_178 = arith.constant 0 : index
    %c0_179 = arith.constant 0 : index
    %149 = vector.load %arg6[%c0_177, %c0_178, %c0_179] : memref<9x8x32xbf16, #tpu.memory_space<vmem>>, vector<1x8x32xbf16>
    %150 = vector.shape_cast %149 : vector<1x8x32xbf16> to vector<8x32xbf16>
    %cst_180 = arith.constant dense<0.000000e+00> : vector<256x32xf32>
    %151 = tpu.matmul %148, %150, %cst_180 {dimension_numbers = #tpu.dot_dimension_numbers<[1], [0], [0], [1], [0, 0, 1, 1], [], []>} : vector<256x8xbf16>, vector<8x32xbf16>, vector<256x32xf32> -> vector<256x32xf32>
    %c0_181 = arith.constant 0 : index
    %c0_182 = arith.constant 0 : index
    %c1_183 = arith.constant 1 : index
    %c0_184 = arith.constant 0 : index
    %152 = vector.load %arg15[%c0_181, %c0_182, %c1_183, %c0_184] : memref<1x18x18x32xf32, #tpu.memory_space<vmem>>, vector<1x16x16x8xf32>
    %153 = vector.shape_cast %152 : vector<1x16x16x8xf32> to vector<256x8xf32>
    %154 = arith.truncf %153 : vector<256x8xf32> to vector<256x8xbf16>
    %c1_185 = arith.constant 1 : index
    %c0_186 = arith.constant 0 : index
    %c0_187 = arith.constant 0 : index
    %155 = vector.load %arg6[%c1_185, %c0_186, %c0_187] : memref<9x8x32xbf16, #tpu.memory_space<vmem>>, vector<1x8x32xbf16>
    %156 = vector.shape_cast %155 : vector<1x8x32xbf16> to vector<8x32xbf16>
    %cst_188 = arith.constant dense<0.000000e+00> : vector<256x32xf32>
    %157 = tpu.matmul %154, %156, %cst_188 {dimension_numbers = #tpu.dot_dimension_numbers<[1], [0], [0], [1], [0, 0, 1, 1], [], []>} : vector<256x8xbf16>, vector<8x32xbf16>, vector<256x32xf32> -> vector<256x32xf32>
    %158 = arith.addf %151, %157 : vector<256x32xf32>
    %c0_189 = arith.constant 0 : index
    %c0_190 = arith.constant 0 : index
    %c2_191 = arith.constant 2 : index
    %c0_192 = arith.constant 0 : index
    %159 = vector.load %arg15[%c0_189, %c0_190, %c2_191, %c0_192] : memref<1x18x18x32xf32, #tpu.memory_space<vmem>>, vector<1x16x16x8xf32>
    %160 = vector.shape_cast %159 : vector<1x16x16x8xf32> to vector<256x8xf32>
    %161 = arith.truncf %160 : vector<256x8xf32> to vector<256x8xbf16>
    %c2_193 = arith.constant 2 : index
    %c0_194 = arith.constant 0 : index
    %c0_195 = arith.constant 0 : index
    %162 = vector.load %arg6[%c2_193, %c0_194, %c0_195] : memref<9x8x32xbf16, #tpu.memory_space<vmem>>, vector<1x8x32xbf16>
    %163 = vector.shape_cast %162 : vector<1x8x32xbf16> to vector<8x32xbf16>
    %cst_196 = arith.constant dense<0.000000e+00> : vector<256x32xf32>
    %164 = tpu.matmul %161, %163, %cst_196 {dimension_numbers = #tpu.dot_dimension_numbers<[1], [0], [0], [1], [0, 0, 1, 1], [], []>} : vector<256x8xbf16>, vector<8x32xbf16>, vector<256x32xf32> -> vector<256x32xf32>
    %165 = arith.addf %158, %164 : vector<256x32xf32>
    %c0_197 = arith.constant 0 : index
    %c1_198 = arith.constant 1 : index
    %c0_199 = arith.constant 0 : index
    %c0_200 = arith.constant 0 : index
    %166 = vector.load %arg15[%c0_197, %c1_198, %c0_199, %c0_200] : memref<1x18x18x32xf32, #tpu.memory_space<vmem>>, vector<1x16x16x8xf32>
    %167 = vector.shape_cast %166 : vector<1x16x16x8xf32> to vector<256x8xf32>
    %168 = arith.truncf %167 : vector<256x8xf32> to vector<256x8xbf16>
    %c3_201 = arith.constant 3 : index
    %c0_202 = arith.constant 0 : index
    %c0_203 = arith.constant 0 : index
    %169 = vector.load %arg6[%c3_201, %c0_202, %c0_203] : memref<9x8x32xbf16, #tpu.memory_space<vmem>>, vector<1x8x32xbf16>
    %170 = vector.shape_cast %169 : vector<1x8x32xbf16> to vector<8x32xbf16>
    %cst_204 = arith.constant dense<0.000000e+00> : vector<256x32xf32>
    %171 = tpu.matmul %168, %170, %cst_204 {dimension_numbers = #tpu.dot_dimension_numbers<[1], [0], [0], [1], [0, 0, 1, 1], [], []>} : vector<256x8xbf16>, vector<8x32xbf16>, vector<256x32xf32> -> vector<256x32xf32>
    %172 = arith.addf %165, %171 : vector<256x32xf32>
    %c0_205 = arith.constant 0 : index
    %c1_206 = arith.constant 1 : index
    %c1_207 = arith.constant 1 : index
    %c0_208 = arith.constant 0 : index
    %173 = vector.load %arg15[%c0_205, %c1_206, %c1_207, %c0_208] : memref<1x18x18x32xf32, #tpu.memory_space<vmem>>, vector<1x16x16x8xf32>
    %174 = vector.shape_cast %173 : vector<1x16x16x8xf32> to vector<256x8xf32>
    %175 = arith.truncf %174 : vector<256x8xf32> to vector<256x8xbf16>
    %c4_209 = arith.constant 4 : index
    %c0_210 = arith.constant 0 : index
    %c0_211 = arith.constant 0 : index
    %176 = vector.load %arg6[%c4_209, %c0_210, %c0_211] : memref<9x8x32xbf16, #tpu.memory_space<vmem>>, vector<1x8x32xbf16>
    %177 = vector.shape_cast %176 : vector<1x8x32xbf16> to vector<8x32xbf16>
    %cst_212 = arith.constant dense<0.000000e+00> : vector<256x32xf32>
    %178 = tpu.matmul %175, %177, %cst_212 {dimension_numbers = #tpu.dot_dimension_numbers<[1], [0], [0], [1], [0, 0, 1, 1], [], []>} : vector<256x8xbf16>, vector<8x32xbf16>, vector<256x32xf32> -> vector<256x32xf32>
    %179 = arith.addf %172, %178 : vector<256x32xf32>
    %c0_213 = arith.constant 0 : index
    %c1_214 = arith.constant 1 : index
    %c2_215 = arith.constant 2 : index
    %c0_216 = arith.constant 0 : index
    %180 = vector.load %arg15[%c0_213, %c1_214, %c2_215, %c0_216] : memref<1x18x18x32xf32, #tpu.memory_space<vmem>>, vector<1x16x16x8xf32>
    %181 = vector.shape_cast %180 : vector<1x16x16x8xf32> to vector<256x8xf32>
    %182 = arith.truncf %181 : vector<256x8xf32> to vector<256x8xbf16>
    %c5_217 = arith.constant 5 : index
    %c0_218 = arith.constant 0 : index
    %c0_219 = arith.constant 0 : index
    %183 = vector.load %arg6[%c5_217, %c0_218, %c0_219] : memref<9x8x32xbf16, #tpu.memory_space<vmem>>, vector<1x8x32xbf16>
    %184 = vector.shape_cast %183 : vector<1x8x32xbf16> to vector<8x32xbf16>
    %cst_220 = arith.constant dense<0.000000e+00> : vector<256x32xf32>
    %185 = tpu.matmul %182, %184, %cst_220 {dimension_numbers = #tpu.dot_dimension_numbers<[1], [0], [0], [1], [0, 0, 1, 1], [], []>} : vector<256x8xbf16>, vector<8x32xbf16>, vector<256x32xf32> -> vector<256x32xf32>
    %186 = arith.addf %179, %185 : vector<256x32xf32>
    %c0_221 = arith.constant 0 : index
    %c2_222 = arith.constant 2 : index
    %c0_223 = arith.constant 0 : index
    %c0_224 = arith.constant 0 : index
    %187 = vector.load %arg15[%c0_221, %c2_222, %c0_223, %c0_224] : memref<1x18x18x32xf32, #tpu.memory_space<vmem>>, vector<1x16x16x8xf32>
    %188 = vector.shape_cast %187 : vector<1x16x16x8xf32> to vector<256x8xf32>
    %189 = arith.truncf %188 : vector<256x8xf32> to vector<256x8xbf16>
    %c6_225 = arith.constant 6 : index
    %c0_226 = arith.constant 0 : index
    %c0_227 = arith.constant 0 : index
    %190 = vector.load %arg6[%c6_225, %c0_226, %c0_227] : memref<9x8x32xbf16, #tpu.memory_space<vmem>>, vector<1x8x32xbf16>
    %191 = vector.shape_cast %190 : vector<1x8x32xbf16> to vector<8x32xbf16>
    %cst_228 = arith.constant dense<0.000000e+00> : vector<256x32xf32>
    %192 = tpu.matmul %189, %191, %cst_228 {dimension_numbers = #tpu.dot_dimension_numbers<[1], [0], [0], [1], [0, 0, 1, 1], [], []>} : vector<256x8xbf16>, vector<8x32xbf16>, vector<256x32xf32> -> vector<256x32xf32>
    %193 = arith.addf %186, %192 : vector<256x32xf32>
    %c0_229 = arith.constant 0 : index
    %c2_230 = arith.constant 2 : index
    %c1_231 = arith.constant 1 : index
    %c0_232 = arith.constant 0 : index
    %194 = vector.load %arg15[%c0_229, %c2_230, %c1_231, %c0_232] : memref<1x18x18x32xf32, #tpu.memory_space<vmem>>, vector<1x16x16x8xf32>
    %195 = vector.shape_cast %194 : vector<1x16x16x8xf32> to vector<256x8xf32>
    %196 = arith.truncf %195 : vector<256x8xf32> to vector<256x8xbf16>
    %c7_233 = arith.constant 7 : index
    %c0_234 = arith.constant 0 : index
    %c0_235 = arith.constant 0 : index
    %197 = vector.load %arg6[%c7_233, %c0_234, %c0_235] : memref<9x8x32xbf16, #tpu.memory_space<vmem>>, vector<1x8x32xbf16>
    %198 = vector.shape_cast %197 : vector<1x8x32xbf16> to vector<8x32xbf16>
    %cst_236 = arith.constant dense<0.000000e+00> : vector<256x32xf32>
    %199 = tpu.matmul %196, %198, %cst_236 {dimension_numbers = #tpu.dot_dimension_numbers<[1], [0], [0], [1], [0, 0, 1, 1], [], []>} : vector<256x8xbf16>, vector<8x32xbf16>, vector<256x32xf32> -> vector<256x32xf32>
    %200 = arith.addf %193, %199 : vector<256x32xf32>
    %c0_237 = arith.constant 0 : index
    %c2_238 = arith.constant 2 : index
    %c2_239 = arith.constant 2 : index
    %c0_240 = arith.constant 0 : index
    %201 = vector.load %arg15[%c0_237, %c2_238, %c2_239, %c0_240] : memref<1x18x18x32xf32, #tpu.memory_space<vmem>>, vector<1x16x16x8xf32>
    %202 = vector.shape_cast %201 : vector<1x16x16x8xf32> to vector<256x8xf32>
    %203 = arith.truncf %202 : vector<256x8xf32> to vector<256x8xbf16>
    %c8_241 = arith.constant 8 : index
    %c0_242 = arith.constant 0 : index
    %c0_243 = arith.constant 0 : index
    %204 = vector.load %arg6[%c8_241, %c0_242, %c0_243] : memref<9x8x32xbf16, #tpu.memory_space<vmem>>, vector<1x8x32xbf16>
    %205 = vector.shape_cast %204 : vector<1x8x32xbf16> to vector<8x32xbf16>
    %cst_244 = arith.constant dense<0.000000e+00> : vector<256x32xf32>
    %206 = tpu.matmul %203, %205, %cst_244 {dimension_numbers = #tpu.dot_dimension_numbers<[1], [0], [0], [1], [0, 0, 1, 1], [], []>} : vector<256x8xbf16>, vector<8x32xbf16>, vector<256x32xf32> -> vector<256x32xf32>
    %207 = arith.addf %200, %206 : vector<256x32xf32>
    %c0_245 = arith.constant 0 : index
    %c0_246 = arith.constant 0 : index
    %208 = vector.load %arg7[%c0_245, %c0_246] : memref<1x32xf32, #tpu.memory_space<vmem>>, vector<1x32xf32>
    %209 = vector.broadcast %208 : vector<1x32xf32> to vector<256x32xf32>
    %210 = arith.addf %207, %209 : vector<256x32xf32>
    %211 = arith.addf %210, %74 : vector<256x32xf32>
    %cst_247 = arith.constant 0.000000e+00 : f32
    %212 = vector.broadcast %cst_247 : f32 to vector<256x32xf32>
    %213 = arith.maximumf %211, %212 : vector<256x32xf32>
    %214 = vector.shape_cast %213 : vector<256x32xf32> to vector<1x16x16x32xf32>
    %c0_248 = arith.constant 0 : index
    %c1_249 = arith.constant 1 : index
    %c1_250 = arith.constant 1 : index
    %c0_251 = arith.constant 0 : index
    %215 = vector.load %arg15[%c0_248, %c1_249, %c1_250, %c0_251] : memref<1x18x18x32xf32, #tpu.memory_space<vmem>>, vector<1x16x16x32xf32>
    tpu.vector_store %arg15[%c0_248, %c1_249, %c1_250, %c0_251], %214 {strides = array<i32>} : memref<1x18x18x32xf32, #tpu.memory_space<vmem>>, vector<1x16x16x32xf32>,
    %c0_252 = arith.constant 0 : index
    %c0_253 = arith.constant 0 : index
    %c0_254 = arith.constant 0 : index
    %c0_255 = arith.constant 0 : index
    %216 = vector.load %arg15[%c0_252, %c0_253, %c0_254, %c0_255] : memref<1x18x18x32xf32, #tpu.memory_space<vmem>>, vector<1x16x16x32xf32>
    %217 = vector.shape_cast %216 : vector<1x16x16x32xf32> to vector<256x32xf32>
    %218 = arith.truncf %217 : vector<256x32xf32> to vector<256x32xbf16>
    %c0_256 = arith.constant 0 : index
    %c0_257 = arith.constant 0 : index
    %c0_258 = arith.constant 0 : index
    %219 = vector.load %arg8[%c0_256, %c0_257, %c0_258] : memref<9x32x8xbf16, #tpu.memory_space<vmem>>, vector<1x32x8xbf16>
    %220 = vector.shape_cast %219 : vector<1x32x8xbf16> to vector<32x8xbf16>
    %cst_259 = arith.constant dense<0.000000e+00> : vector<256x8xf32>
    %221 = tpu.matmul %218, %220, %cst_259 {dimension_numbers = #tpu.dot_dimension_numbers<[1], [0], [0], [1], [0, 0, 1, 1], [], []>} : vector<256x32xbf16>, vector<32x8xbf16>, vector<256x8xf32> -> vector<256x8xf32>
    %c0_260 = arith.constant 0 : index
    %c0_261 = arith.constant 0 : index
    %c1_262 = arith.constant 1 : index
    %c0_263 = arith.constant 0 : index
    %222 = vector.load %arg15[%c0_260, %c0_261, %c1_262, %c0_263] : memref<1x18x18x32xf32, #tpu.memory_space<vmem>>, vector<1x16x16x32xf32>
    %223 = vector.shape_cast %222 : vector<1x16x16x32xf32> to vector<256x32xf32>
    %224 = arith.truncf %223 : vector<256x32xf32> to vector<256x32xbf16>
    %c1_264 = arith.constant 1 : index
    %c0_265 = arith.constant 0 : index
    %c0_266 = arith.constant 0 : index
    %225 = vector.load %arg8[%c1_264, %c0_265, %c0_266] : memref<9x32x8xbf16, #tpu.memory_space<vmem>>, vector<1x32x8xbf16>
    %226 = vector.shape_cast %225 : vector<1x32x8xbf16> to vector<32x8xbf16>
    %cst_267 = arith.constant dense<0.000000e+00> : vector<256x8xf32>
    %227 = tpu.matmul %224, %226, %cst_267 {dimension_numbers = #tpu.dot_dimension_numbers<[1], [0], [0], [1], [0, 0, 1, 1], [], []>} : vector<256x32xbf16>, vector<32x8xbf16>, vector<256x8xf32> -> vector<256x8xf32>
    %228 = arith.addf %221, %227 : vector<256x8xf32>
    %c0_268 = arith.constant 0 : index
    %c0_269 = arith.constant 0 : index
    %c2_270 = arith.constant 2 : index
    %c0_271 = arith.constant 0 : index
    %229 = vector.load %arg15[%c0_268, %c0_269, %c2_270, %c0_271] : memref<1x18x18x32xf32, #tpu.memory_space<vmem>>, vector<1x16x16x32xf32>
    %230 = vector.shape_cast %229 : vector<1x16x16x32xf32> to vector<256x32xf32>
    %231 = arith.truncf %230 : vector<256x32xf32> to vector<256x32xbf16>
    %c2_272 = arith.constant 2 : index
    %c0_273 = arith.constant 0 : index
    %c0_274 = arith.constant 0 : index
    %232 = vector.load %arg8[%c2_272, %c0_273, %c0_274] : memref<9x32x8xbf16, #tpu.memory_space<vmem>>, vector<1x32x8xbf16>
    %233 = vector.shape_cast %232 : vector<1x32x8xbf16> to vector<32x8xbf16>
    %cst_275 = arith.constant dense<0.000000e+00> : vector<256x8xf32>
    %234 = tpu.matmul %231, %233, %cst_275 {dimension_numbers = #tpu.dot_dimension_numbers<[1], [0], [0], [1], [0, 0, 1, 1], [], []>} : vector<256x32xbf16>, vector<32x8xbf16>, vector<256x8xf32> -> vector<256x8xf32>
    %235 = arith.addf %228, %234 : vector<256x8xf32>
    %c0_276 = arith.constant 0 : index
    %c1_277 = arith.constant 1 : index
    %c0_278 = arith.constant 0 : index
    %c0_279 = arith.constant 0 : index
    %236 = vector.load %arg15[%c0_276, %c1_277, %c0_278, %c0_279] : memref<1x18x18x32xf32, #tpu.memory_space<vmem>>, vector<1x16x16x32xf32>
    %237 = vector.shape_cast %236 : vector<1x16x16x32xf32> to vector<256x32xf32>
    %238 = arith.truncf %237 : vector<256x32xf32> to vector<256x32xbf16>
    %c3_280 = arith.constant 3 : index
    %c0_281 = arith.constant 0 : index
    %c0_282 = arith.constant 0 : index
    %239 = vector.load %arg8[%c3_280, %c0_281, %c0_282] : memref<9x32x8xbf16, #tpu.memory_space<vmem>>, vector<1x32x8xbf16>
    %240 = vector.shape_cast %239 : vector<1x32x8xbf16> to vector<32x8xbf16>
    %cst_283 = arith.constant dense<0.000000e+00> : vector<256x8xf32>
    %241 = tpu.matmul %238, %240, %cst_283 {dimension_numbers = #tpu.dot_dimension_numbers<[1], [0], [0], [1], [0, 0, 1, 1], [], []>} : vector<256x32xbf16>, vector<32x8xbf16>, vector<256x8xf32> -> vector<256x8xf32>
    %242 = arith.addf %235, %241 : vector<256x8xf32>
    %c0_284 = arith.constant 0 : index
    %c1_285 = arith.constant 1 : index
    %c1_286 = arith.constant 1 : index
    %c0_287 = arith.constant 0 : index
    %243 = vector.load %arg15[%c0_284, %c1_285, %c1_286, %c0_287] : memref<1x18x18x32xf32, #tpu.memory_space<vmem>>, vector<1x16x16x32xf32>
    %244 = vector.shape_cast %243 : vector<1x16x16x32xf32> to vector<256x32xf32>
    %245 = arith.truncf %244 : vector<256x32xf32> to vector<256x32xbf16>
    %c4_288 = arith.constant 4 : index
    %c0_289 = arith.constant 0 : index
    %c0_290 = arith.constant 0 : index
    %246 = vector.load %arg8[%c4_288, %c0_289, %c0_290] : memref<9x32x8xbf16, #tpu.memory_space<vmem>>, vector<1x32x8xbf16>
    %247 = vector.shape_cast %246 : vector<1x32x8xbf16> to vector<32x8xbf16>
    %cst_291 = arith.constant dense<0.000000e+00> : vector<256x8xf32>
    %248 = tpu.matmul %245, %247, %cst_291 {dimension_numbers = #tpu.dot_dimension_numbers<[1], [0], [0], [1], [0, 0, 1, 1], [], []>} : vector<256x32xbf16>, vector<32x8xbf16>, vector<256x8xf32> -> vector<256x8xf32>
    %249 = arith.addf %242, %248 : vector<256x8xf32>
    %c0_292 = arith.constant 0 : index
    %c1_293 = arith.constant 1 : index
    %c2_294 = arith.constant 2 : index
    %c0_295 = arith.constant 0 : index
    %250 = vector.load %arg15[%c0_292, %c1_293, %c2_294, %c0_295] : memref<1x18x18x32xf32, #tpu.memory_space<vmem>>, vector<1x16x16x32xf32>
    %251 = vector.shape_cast %250 : vector<1x16x16x32xf32> to vector<256x32xf32>
    %252 = arith.truncf %251 : vector<256x32xf32> to vector<256x32xbf16>
    %c5_296 = arith.constant 5 : index
    %c0_297 = arith.constant 0 : index
    %c0_298 = arith.constant 0 : index
    %253 = vector.load %arg8[%c5_296, %c0_297, %c0_298] : memref<9x32x8xbf16, #tpu.memory_space<vmem>>, vector<1x32x8xbf16>
    %254 = vector.shape_cast %253 : vector<1x32x8xbf16> to vector<32x8xbf16>
    %cst_299 = arith.constant dense<0.000000e+00> : vector<256x8xf32>
    %255 = tpu.matmul %252, %254, %cst_299 {dimension_numbers = #tpu.dot_dimension_numbers<[1], [0], [0], [1], [0, 0, 1, 1], [], []>} : vector<256x32xbf16>, vector<32x8xbf16>, vector<256x8xf32> -> vector<256x8xf32>
    %256 = arith.addf %249, %255 : vector<256x8xf32>
    %c0_300 = arith.constant 0 : index
    %c2_301 = arith.constant 2 : index
    %c0_302 = arith.constant 0 : index
    %c0_303 = arith.constant 0 : index
    %257 = vector.load %arg15[%c0_300, %c2_301, %c0_302, %c0_303] : memref<1x18x18x32xf32, #tpu.memory_space<vmem>>, vector<1x16x16x32xf32>
    %258 = vector.shape_cast %257 : vector<1x16x16x32xf32> to vector<256x32xf32>
    %259 = arith.truncf %258 : vector<256x32xf32> to vector<256x32xbf16>
    %c6_304 = arith.constant 6 : index
    %c0_305 = arith.constant 0 : index
    %c0_306 = arith.constant 0 : index
    %260 = vector.load %arg8[%c6_304, %c0_305, %c0_306] : memref<9x32x8xbf16, #tpu.memory_space<vmem>>, vector<1x32x8xbf16>
    %261 = vector.shape_cast %260 : vector<1x32x8xbf16> to vector<32x8xbf16>
    %cst_307 = arith.constant dense<0.000000e+00> : vector<256x8xf32>
    %262 = tpu.matmul %259, %261, %cst_307 {dimension_numbers = #tpu.dot_dimension_numbers<[1], [0], [0], [1], [0, 0, 1, 1], [], []>} : vector<256x32xbf16>, vector<32x8xbf16>, vector<256x8xf32> -> vector<256x8xf32>
    %263 = arith.addf %256, %262 : vector<256x8xf32>
    %c0_308 = arith.constant 0 : index
    %c2_309 = arith.constant 2 : index
    %c1_310 = arith.constant 1 : index
    %c0_311 = arith.constant 0 : index
    %264 = vector.load %arg15[%c0_308, %c2_309, %c1_310, %c0_311] : memref<1x18x18x32xf32, #tpu.memory_space<vmem>>, vector<1x16x16x32xf32>
    %265 = vector.shape_cast %264 : vector<1x16x16x32xf32> to vector<256x32xf32>
    %266 = arith.truncf %265 : vector<256x32xf32> to vector<256x32xbf16>
    %c7_312 = arith.constant 7 : index
    %c0_313 = arith.constant 0 : index
    %c0_314 = arith.constant 0 : index
    %267 = vector.load %arg8[%c7_312, %c0_313, %c0_314] : memref<9x32x8xbf16, #tpu.memory_space<vmem>>, vector<1x32x8xbf16>
    %268 = vector.shape_cast %267 : vector<1x32x8xbf16> to vector<32x8xbf16>
    %cst_315 = arith.constant dense<0.000000e+00> : vector<256x8xf32>
    %269 = tpu.matmul %266, %268, %cst_315 {dimension_numbers = #tpu.dot_dimension_numbers<[1], [0], [0], [1], [0, 0, 1, 1], [], []>} : vector<256x32xbf16>, vector<32x8xbf16>, vector<256x8xf32> -> vector<256x8xf32>
    %270 = arith.addf %263, %269 : vector<256x8xf32>
    %c0_316 = arith.constant 0 : index
    %c2_317 = arith.constant 2 : index
    %c2_318 = arith.constant 2 : index
    %c0_319 = arith.constant 0 : index
    %271 = vector.load %arg15[%c0_316, %c2_317, %c2_318, %c0_319] : memref<1x18x18x32xf32, #tpu.memory_space<vmem>>, vector<1x16x16x32xf32>
    %272 = vector.shape_cast %271 : vector<1x16x16x32xf32> to vector<256x32xf32>
    %273 = arith.truncf %272 : vector<256x32xf32> to vector<256x32xbf16>
    %c8_320 = arith.constant 8 : index
    %c0_321 = arith.constant 0 : index
    %c0_322 = arith.constant 0 : index
    %274 = vector.load %arg8[%c8_320, %c0_321, %c0_322] : memref<9x32x8xbf16, #tpu.memory_space<vmem>>, vector<1x32x8xbf16>
    %275 = vector.shape_cast %274 : vector<1x32x8xbf16> to vector<32x8xbf16>
    %cst_323 = arith.constant dense<0.000000e+00> : vector<256x8xf32>
    %276 = tpu.matmul %273, %275, %cst_323 {dimension_numbers = #tpu.dot_dimension_numbers<[1], [0], [0], [1], [0, 0, 1, 1], [], []>} : vector<256x32xbf16>, vector<32x8xbf16>, vector<256x8xf32> -> vector<256x8xf32>
    %277 = arith.addf %270, %276 : vector<256x8xf32>
    %c0_324 = arith.constant 0 : index
    %c0_325 = arith.constant 0 : index
    %278 = vector.load %arg9[%c0_324, %c0_325] : memref<1x8xf32, #tpu.memory_space<vmem>>, vector<1x8xf32>
    %279 = vector.broadcast %278 : vector<1x8xf32> to vector<256x8xf32>
    %280 = arith.addf %277, %279 : vector<256x8xf32>
    %cst_326 = arith.constant 0.000000e+00 : f32
    %281 = vector.broadcast %cst_326 : f32 to vector<256x8xf32>
    %282 = arith.maximumf %280, %281 : vector<256x8xf32>
    %283 = vector.shape_cast %282 : vector<256x8xf32> to vector<1x16x16x8xf32>
    %c0_327 = arith.constant 0 : index
    %c1_328 = arith.constant 1 : index
    %c1_329 = arith.constant 1 : index
    %c0_330 = arith.constant 0 : index
    %284 = vector.load %arg15[%c0_327, %c1_328, %c1_329, %c0_330] : memref<1x18x18x32xf32, #tpu.memory_space<vmem>>, vector<1x16x16x8xf32>
    tpu.vector_store %arg15[%c0_327, %c1_328, %c1_329, %c0_330], %283 {strides = array<i32>} : memref<1x18x18x32xf32, #tpu.memory_space<vmem>>, vector<1x16x16x8xf32>,
    %c0_331 = arith.constant 0 : index
    %c0_332 = arith.constant 0 : index
    %c0_333 = arith.constant 0 : index
    %c0_334 = arith.constant 0 : index
    %285 = vector.load %arg15[%c0_331, %c0_332, %c0_333, %c0_334] : memref<1x18x18x32xf32, #tpu.memory_space<vmem>>, vector<1x16x16x8xf32>
    %286 = vector.shape_cast %285 : vector<1x16x16x8xf32> to vector<256x8xf32>
    %287 = arith.truncf %286 : vector<256x8xf32> to vector<256x8xbf16>
    %c0_335 = arith.constant 0 : index
    %c0_336 = arith.constant 0 : index
    %c0_337 = arith.constant 0 : index
    %288 = vector.load %arg10[%c0_335, %c0_336, %c0_337] : memref<9x8x32xbf16, #tpu.memory_space<vmem>>, vector<1x8x32xbf16>
    %289 = vector.shape_cast %288 : vector<1x8x32xbf16> to vector<8x32xbf16>
    %cst_338 = arith.constant dense<0.000000e+00> : vector<256x32xf32>
    %290 = tpu.matmul %287, %289, %cst_338 {dimension_numbers = #tpu.dot_dimension_numbers<[1], [0], [0], [1], [0, 0, 1, 1], [], []>} : vector<256x8xbf16>, vector<8x32xbf16>, vector<256x32xf32> -> vector<256x32xf32>
    %c0_339 = arith.constant 0 : index
    %c0_340 = arith.constant 0 : index
    %c1_341 = arith.constant 1 : index
    %c0_342 = arith.constant 0 : index
    %291 = vector.load %arg15[%c0_339, %c0_340, %c1_341, %c0_342] : memref<1x18x18x32xf32, #tpu.memory_space<vmem>>, vector<1x16x16x8xf32>
    %292 = vector.shape_cast %291 : vector<1x16x16x8xf32> to vector<256x8xf32>
    %293 = arith.truncf %292 : vector<256x8xf32> to vector<256x8xbf16>
    %c1_343 = arith.constant 1 : index
    %c0_344 = arith.constant 0 : index
    %c0_345 = arith.constant 0 : index
    %294 = vector.load %arg10[%c1_343, %c0_344, %c0_345] : memref<9x8x32xbf16, #tpu.memory_space<vmem>>, vector<1x8x32xbf16>
    %295 = vector.shape_cast %294 : vector<1x8x32xbf16> to vector<8x32xbf16>
    %cst_346 = arith.constant dense<0.000000e+00> : vector<256x32xf32>
    %296 = tpu.matmul %293, %295, %cst_346 {dimension_numbers = #tpu.dot_dimension_numbers<[1], [0], [0], [1], [0, 0, 1, 1], [], []>} : vector<256x8xbf16>, vector<8x32xbf16>, vector<256x32xf32> -> vector<256x32xf32>
    %297 = arith.addf %290, %296 : vector<256x32xf32>
    %c0_347 = arith.constant 0 : index
    %c0_348 = arith.constant 0 : index
    %c2_349 = arith.constant 2 : index
    %c0_350 = arith.constant 0 : index
    %298 = vector.load %arg15[%c0_347, %c0_348, %c2_349, %c0_350] : memref<1x18x18x32xf32, #tpu.memory_space<vmem>>, vector<1x16x16x8xf32>
    %299 = vector.shape_cast %298 : vector<1x16x16x8xf32> to vector<256x8xf32>
    %300 = arith.truncf %299 : vector<256x8xf32> to vector<256x8xbf16>
    %c2_351 = arith.constant 2 : index
    %c0_352 = arith.constant 0 : index
    %c0_353 = arith.constant 0 : index
    %301 = vector.load %arg10[%c2_351, %c0_352, %c0_353] : memref<9x8x32xbf16, #tpu.memory_space<vmem>>, vector<1x8x32xbf16>
    %302 = vector.shape_cast %301 : vector<1x8x32xbf16> to vector<8x32xbf16>
    %cst_354 = arith.constant dense<0.000000e+00> : vector<256x32xf32>
    %303 = tpu.matmul %300, %302, %cst_354 {dimension_numbers = #tpu.dot_dimension_numbers<[1], [0], [0], [1], [0, 0, 1, 1], [], []>} : vector<256x8xbf16>, vector<8x32xbf16>, vector<256x32xf32> -> vector<256x32xf32>
    %304 = arith.addf %297, %303 : vector<256x32xf32>
    %c0_355 = arith.constant 0 : index
    %c1_356 = arith.constant 1 : index
    %c0_357 = arith.constant 0 : index
    %c0_358 = arith.constant 0 : index
    %305 = vector.load %arg15[%c0_355, %c1_356, %c0_357, %c0_358] : memref<1x18x18x32xf32, #tpu.memory_space<vmem>>, vector<1x16x16x8xf32>
    %306 = vector.shape_cast %305 : vector<1x16x16x8xf32> to vector<256x8xf32>
    %307 = arith.truncf %306 : vector<256x8xf32> to vector<256x8xbf16>
    %c3_359 = arith.constant 3 : index
    %c0_360 = arith.constant 0 : index
    %c0_361 = arith.constant 0 : index
    %308 = vector.load %arg10[%c3_359, %c0_360, %c0_361] : memref<9x8x32xbf16, #tpu.memory_space<vmem>>, vector<1x8x32xbf16>
    %309 = vector.shape_cast %308 : vector<1x8x32xbf16> to vector<8x32xbf16>
    %cst_362 = arith.constant dense<0.000000e+00> : vector<256x32xf32>
    %310 = tpu.matmul %307, %309, %cst_362 {dimension_numbers = #tpu.dot_dimension_numbers<[1], [0], [0], [1], [0, 0, 1, 1], [], []>} : vector<256x8xbf16>, vector<8x32xbf16>, vector<256x32xf32> -> vector<256x32xf32>
    %311 = arith.addf %304, %310 : vector<256x32xf32>
    %c0_363 = arith.constant 0 : index
    %c1_364 = arith.constant 1 : index
    %c1_365 = arith.constant 1 : index
    %c0_366 = arith.constant 0 : index
    %312 = vector.load %arg15[%c0_363, %c1_364, %c1_365, %c0_366] : memref<1x18x18x32xf32, #tpu.memory_space<vmem>>, vector<1x16x16x8xf32>
    %313 = vector.shape_cast %312 : vector<1x16x16x8xf32> to vector<256x8xf32>
    %314 = arith.truncf %313 : vector<256x8xf32> to vector<256x8xbf16>
    %c4_367 = arith.constant 4 : index
    %c0_368 = arith.constant 0 : index
    %c0_369 = arith.constant 0 : index
    %315 = vector.load %arg10[%c4_367, %c0_368, %c0_369] : memref<9x8x32xbf16, #tpu.memory_space<vmem>>, vector<1x8x32xbf16>
    %316 = vector.shape_cast %315 : vector<1x8x32xbf16> to vector<8x32xbf16>
    %cst_370 = arith.constant dense<0.000000e+00> : vector<256x32xf32>
    %317 = tpu.matmul %314, %316, %cst_370 {dimension_numbers = #tpu.dot_dimension_numbers<[1], [0], [0], [1], [0, 0, 1, 1], [], []>} : vector<256x8xbf16>, vector<8x32xbf16>, vector<256x32xf32> -> vector<256x32xf32>
    %318 = arith.addf %311, %317 : vector<256x32xf32>
    %c0_371 = arith.constant 0 : index
    %c1_372 = arith.constant 1 : index
    %c2_373 = arith.constant 2 : index
    %c0_374 = arith.constant 0 : index
    %319 = vector.load %arg15[%c0_371, %c1_372, %c2_373, %c0_374] : memref<1x18x18x32xf32, #tpu.memory_space<vmem>>, vector<1x16x16x8xf32>
    %320 = vector.shape_cast %319 : vector<1x16x16x8xf32> to vector<256x8xf32>
    %321 = arith.truncf %320 : vector<256x8xf32> to vector<256x8xbf16>
    %c5_375 = arith.constant 5 : index
    %c0_376 = arith.constant 0 : index
    %c0_377 = arith.constant 0 : index
    %322 = vector.load %arg10[%c5_375, %c0_376, %c0_377] : memref<9x8x32xbf16, #tpu.memory_space<vmem>>, vector<1x8x32xbf16>
    %323 = vector.shape_cast %322 : vector<1x8x32xbf16> to vector<8x32xbf16>
    %cst_378 = arith.constant dense<0.000000e+00> : vector<256x32xf32>
    %324 = tpu.matmul %321, %323, %cst_378 {dimension_numbers = #tpu.dot_dimension_numbers<[1], [0], [0], [1], [0, 0, 1, 1], [], []>} : vector<256x8xbf16>, vector<8x32xbf16>, vector<256x32xf32> -> vector<256x32xf32>
    %325 = arith.addf %318, %324 : vector<256x32xf32>
    %c0_379 = arith.constant 0 : index
    %c2_380 = arith.constant 2 : index
    %c0_381 = arith.constant 0 : index
    %c0_382 = arith.constant 0 : index
    %326 = vector.load %arg15[%c0_379, %c2_380, %c0_381, %c0_382] : memref<1x18x18x32xf32, #tpu.memory_space<vmem>>, vector<1x16x16x8xf32>
    %327 = vector.shape_cast %326 : vector<1x16x16x8xf32> to vector<256x8xf32>
    %328 = arith.truncf %327 : vector<256x8xf32> to vector<256x8xbf16>
    %c6_383 = arith.constant 6 : index
    %c0_384 = arith.constant 0 : index
    %c0_385 = arith.constant 0 : index
    %329 = vector.load %arg10[%c6_383, %c0_384, %c0_385] : memref<9x8x32xbf16, #tpu.memory_space<vmem>>, vector<1x8x32xbf16>
    %330 = vector.shape_cast %329 : vector<1x8x32xbf16> to vector<8x32xbf16>
    %cst_386 = arith.constant dense<0.000000e+00> : vector<256x32xf32>
    %331 = tpu.matmul %328, %330, %cst_386 {dimension_numbers = #tpu.dot_dimension_numbers<[1], [0], [0], [1], [0, 0, 1, 1], [], []>} : vector<256x8xbf16>, vector<8x32xbf16>, vector<256x32xf32> -> vector<256x32xf32>
    %332 = arith.addf %325, %331 : vector<256x32xf32>
    %c0_387 = arith.constant 0 : index
    %c2_388 = arith.constant 2 : index
    %c1_389 = arith.constant 1 : index
    %c0_390 = arith.constant 0 : index
    %333 = vector.load %arg15[%c0_387, %c2_388, %c1_389, %c0_390] : memref<1x18x18x32xf32, #tpu.memory_space<vmem>>, vector<1x16x16x8xf32>
    %334 = vector.shape_cast %333 : vector<1x16x16x8xf32> to vector<256x8xf32>
    %335 = arith.truncf %334 : vector<256x8xf32> to vector<256x8xbf16>
    %c7_391 = arith.constant 7 : index
    %c0_392 = arith.constant 0 : index
    %c0_393 = arith.constant 0 : index
    %336 = vector.load %arg10[%c7_391, %c0_392, %c0_393] : memref<9x8x32xbf16, #tpu.memory_space<vmem>>, vector<1x8x32xbf16>
    %337 = vector.shape_cast %336 : vector<1x8x32xbf16> to vector<8x32xbf16>
    %cst_394 = arith.constant dense<0.000000e+00> : vector<256x32xf32>
    %338 = tpu.matmul %335, %337, %cst_394 {dimension_numbers = #tpu.dot_dimension_numbers<[1], [0], [0], [1], [0, 0, 1, 1], [], []>} : vector<256x8xbf16>, vector<8x32xbf16>, vector<256x32xf32> -> vector<256x32xf32>
    %339 = arith.addf %332, %338 : vector<256x32xf32>
    %c0_395 = arith.constant 0 : index
    %c2_396 = arith.constant 2 : index
    %c2_397 = arith.constant 2 : index
    %c0_398 = arith.constant 0 : index
    %340 = vector.load %arg15[%c0_395, %c2_396, %c2_397, %c0_398] : memref<1x18x18x32xf32, #tpu.memory_space<vmem>>, vector<1x16x16x8xf32>
    %341 = vector.shape_cast %340 : vector<1x16x16x8xf32> to vector<256x8xf32>
    %342 = arith.truncf %341 : vector<256x8xf32> to vector<256x8xbf16>
    %c8_399 = arith.constant 8 : index
    %c0_400 = arith.constant 0 : index
    %c0_401 = arith.constant 0 : index
    %343 = vector.load %arg10[%c8_399, %c0_400, %c0_401] : memref<9x8x32xbf16, #tpu.memory_space<vmem>>, vector<1x8x32xbf16>
    %344 = vector.shape_cast %343 : vector<1x8x32xbf16> to vector<8x32xbf16>
    %cst_402 = arith.constant dense<0.000000e+00> : vector<256x32xf32>
    %345 = tpu.matmul %342, %344, %cst_402 {dimension_numbers = #tpu.dot_dimension_numbers<[1], [0], [0], [1], [0, 0, 1, 1], [], []>} : vector<256x8xbf16>, vector<8x32xbf16>, vector<256x32xf32> -> vector<256x32xf32>
    %346 = arith.addf %339, %345 : vector<256x32xf32>
    %c0_403 = arith.constant 0 : index
    %c0_404 = arith.constant 0 : index
    %347 = vector.load %arg11[%c0_403, %c0_404] : memref<1x32xf32, #tpu.memory_space<vmem>>, vector<1x32xf32>
    %348 = vector.broadcast %347 : vector<1x32xf32> to vector<256x32xf32>
    %349 = arith.addf %346, %348 : vector<256x32xf32>
    %350 = arith.addf %349, %213 : vector<256x32xf32>
    %cst_405 = arith.constant 0.000000e+00 : f32
    %351 = vector.broadcast %cst_405 : f32 to vector<256x32xf32>
    %352 = arith.maximumf %350, %351 : vector<256x32xf32>
    %353 = vector.shape_cast %352 : vector<256x32xf32> to vector<1x256x32xf32>
    %cst_406 = arith.constant dense<0.000000e+00> : vector<1x32xf32>
    %354 = vector.multi_reduction <add>, %353, %cst_406 [1] : vector<1x256x32xf32> to vector<1x32xf32>
    %cst_407 = arith.constant 3.906250e-03 : f32
    %355 = vector.broadcast %cst_407 : f32 to vector<1x32xf32>
    %356 = arith.mulf %354, %355 : vector<1x32xf32>
    %c0_408 = arith.constant 0 : index
    %c0_409 = arith.constant 0 : index
    %357 = vector.load %arg12[%c0_408, %c0_409] : memref<32x10xf32, #tpu.memory_space<vmem>>, vector<32x10xf32>
    %cst_410 = arith.constant dense<0.000000e+00> : vector<1x10xf32>
    %358 = tpu.matmul %356, %357, %cst_410 {dimension_numbers = #tpu.dot_dimension_numbers<[1], [0], [0], [1], [0, 0, 1, 1], [], []>} : vector<1x32xf32>, vector<32x10xf32>, vector<1x10xf32> -> vector<1x10xf32>
    %c0_411 = arith.constant 0 : index
    %c0_412 = arith.constant 0 : index
    %359 = vector.load %arg13[%c0_411, %c0_412] : memref<1x10xf32, #tpu.memory_space<vmem>>, vector<1x10xf32>
    %360 = arith.addf %358, %359 : vector<1x10xf32>
    %c0_413 = arith.constant 0 : index
    %c0_414 = arith.constant 0 : index
    %c0_415 = arith.constant 0 : index
    %361 = vector.load %arg14[%c0_413, %c0_414, %c0_415] : memref<1x1x10xf32, #tpu.memory_space<vmem>>, vector<1x1x10xf32>
    %362 = vector.shape_cast %361 : vector<1x1x10xf32> to vector<1x10xf32>
    %363 = vector.shape_cast %360 : vector<1x10xf32> to vector<1x1x10xf32>
    tpu.vector_store %arg14[%c0_413, %c0_414, %c0_415], %363 {strides = array<i32>} : memref<1x1x10xf32, #tpu.memory_space<vmem>>, vector<1x1x10xf32>,
    return
  }
  func.func @transform_0(%arg0: i32) -> (i32, i32, i32, i32) {
    %c0_i32 = arith.constant 0 : i32
    %c0_i32_0 = arith.constant 0 : i32
    %c0_i32_1 = arith.constant 0 : i32
    %c0_i32_2 = arith.constant 0 : i32
    return %arg0, %c0_i32, %c0_i32_0, %c0_i32_1 : i32, i32, i32, i32
  }
  func.func @transform_1(%arg0: i32) -> (i32, i32, i32) {
    %c0_i32 = arith.constant 0 : i32
    %c0_i32_0 = arith.constant 0 : i32
    %c0_i32_1 = arith.constant 0 : i32
    %c0_i32_2 = arith.constant 0 : i32
    return %c0_i32, %c0_i32_0, %c0_i32_1 : i32, i32, i32
  }
  func.func @transform_2(%arg0: i32) -> (i32, i32) {
    %c0_i32 = arith.constant 0 : i32
    %c0_i32_0 = arith.constant 0 : i32
    %c0_i32_1 = arith.constant 0 : i32
    return %c0_i32, %c0_i32_0 : i32, i32
  }
  func.func @transform_3(%arg0: i32) -> (i32, i32, i32) {
    %c0_i32 = arith.constant 0 : i32
    %c0_i32_0 = arith.constant 0 : i32
    %c0_i32_1 = arith.constant 0 : i32
    %c0_i32_2 = arith.constant 0 : i32
    return %c0_i32, %c0_i32_0, %c0_i32_1 : i32, i32, i32
  }
  func.func @transform_4(%arg0: i32) -> (i32, i32) {
    %c0_i32 = arith.constant 0 : i32
    %c0_i32_0 = arith.constant 0 : i32
    %c0_i32_1 = arith.constant 0 : i32
    return %c0_i32, %c0_i32_0 : i32, i32
  }
  func.func @transform_5(%arg0: i32) -> (i32, i32, i32) {
    %c0_i32 = arith.constant 0 : i32
    %c0_i32_0 = arith.constant 0 : i32
    %c0_i32_1 = arith.constant 0 : i32
    %c0_i32_2 = arith.constant 0 : i32
    return %c0_i32, %c0_i32_0, %c0_i32_1 : i32, i32, i32
  }
  func.func @transform_6(%arg0: i32) -> (i32, i32) {
    %c0_i32 = arith.constant 0 : i32
    %c0_i32_0 = arith.constant 0 : i32
    %c0_i32_1 = arith.constant 0 : i32
    return %c0_i32, %c0_i32_0 : i32, i32
  }
  func.func @transform_7(%arg0: i32) -> (i32, i32, i32) {
    %c0_i32 = arith.constant 0 : i32
    %c0_i32_0 = arith.constant 0 : i32
    %c0_i32_1 = arith.constant 0 : i32
    %c0_i32_2 = arith.constant 0 : i32
    return %c0_i32, %c0_i32_0, %c0_i32_1 : i32, i32, i32
  }
  func.func @transform_8(%arg0: i32) -> (i32, i32) {
    %c0_i32 = arith.constant 0 : i32
    %c0_i32_0 = arith.constant 0 : i32
    %c0_i32_1 = arith.constant 0 : i32
    return %c0_i32, %c0_i32_0 : i32, i32
  }
  func.func @transform_9(%arg0: i32) -> (i32, i32, i32) {
    %c0_i32 = arith.constant 0 : i32
    %c0_i32_0 = arith.constant 0 : i32
    %c0_i32_1 = arith.constant 0 : i32
    %c0_i32_2 = arith.constant 0 : i32
    return %c0_i32, %c0_i32_0, %c0_i32_1 : i32, i32, i32
  }
  func.func @transform_10(%arg0: i32) -> (i32, i32) {
    %c0_i32 = arith.constant 0 : i32
    %c0_i32_0 = arith.constant 0 : i32
    %c0_i32_1 = arith.constant 0 : i32
    return %c0_i32, %c0_i32_0 : i32, i32
  }
  func.func @transform_11(%arg0: i32) -> (i32, i32) {
    %c0_i32 = arith.constant 0 : i32
    %c0_i32_0 = arith.constant 0 : i32
    %c0_i32_1 = arith.constant 0 : i32
    return %c0_i32, %c0_i32_0 : i32, i32
  }
  func.func @transform_12(%arg0: i32) -> (i32, i32) {
    %c0_i32 = arith.constant 0 : i32
    %c0_i32_0 = arith.constant 0 : i32
    %c0_i32_1 = arith.constant 0 : i32
    return %c0_i32, %c0_i32_0 : i32, i32
  }
  func.func @transform_13(%arg0: i32) -> (i32, i32, i32) {
    %c0_i32 = arith.constant 0 : i32
    %c0_i32_0 = arith.constant 0 : i32
    %c0_i32_1 = arith.constant 0 : i32
    return %arg0, %c0_i32, %c0_i32_0 : i32, i32, i32
  }
}

</mosaic_0001>

<bundles_post_ra>
// kernel: residual_cnn_forward.1
= control target key start
LH: loop header
LB: loop body
LE: loop exit
PB: predicated region body
PF: predicated region fallthrough
CT: control target
= control target key end

     0   :  { %s22480_s0 = inlined_call_operand.vmem [shape: f32[2,16,16,4], index: 0, kind: input, shape index: {}]   ;;  %s22481_s1 = inlined_call_operand.vmem [shape: bf16[9,4,32], index: 1, kind: input, shape index: {}]   ;;  %s22482_s2 = inlined_call_operand.vmem [shape: f32[1,32], index: 2, kind: input, shape index: {}]   ;;  %s22483_s3 = inlined_call_operand.vmem [shape: bf16[9,32,8], index: 3, kind: input, shape index: {}]   ;;  %s22484_s4 = inlined_call_operand.vmem [shape: f32[1,8], index: 4, kind: input, shape index: {}]   ;;  %s22485_s5 = inlined_call_operand.vmem [shape: bf16[9,8,32], index: 5, kind: input, shape index: {}]   ;;  %s22486_s6 = inlined_call_operand.vmem [shape: f32[1,32], index: 6, kind: input, shape index: {}]   ;;  %s22487_s7 = inlined_call_operand.vmem [shape: bf16[9,32,8], index: 7, kind: input, shape index: {}]   ;;  %s22488_s8 = inlined_call_operand.vmem [shape: f32[1,8], index: 8, kind: input, shape index: {}]   ;;  %s22489_s9 = inlined_call_operand.vmem [shape: bf16[9,8,32], index: 9, kind: input, shape index: {}]   ;;  %s22490_s10 = inlined_call_operand.vmem [shape: f32[1,32], index: 10, kind: input, shape index: {}]   ;;  %s22491_s11 = inlined_call_operand.vmem [shape: f32[32,10], index: 11, kind: input, shape index: {}]   ;;  %s22492_s12 = inlined_call_operand.vmem [shape: f32[1,10], index: 12, kind: input, shape index: {}]   ;;  %s22493_s13 = inlined_call_operand.hbm [shape: f32[2,1,10], index: 13, kind: output, shape index: {}]  }
   0x1   :  { %22601 = sst [smem:[#allocation27_spill]] %s22480_s0 }
   0x2   :  { %22602 = sst [smem:[#allocation28_spill]] %s22481_s1 }
   0x3   :  { %22603 = sst [smem:[#allocation29_spill]] %s22482_s2 }
   0x4   :  { %18 = vsyncpa [#allocation4], 0 }
   0x5   :  { %20 = vsyncpa [#allocation4 + $0x1], 0  ;;  %s19194_s25 = smov 0   ;;  %s19196_s26 = smov 0  }
   0x6   :  { %s19198_s27 = smov 0   ;;  %s19200_s28 = smov 0  }
   0x7 LB: > { %s19215_s29 = sadd.s32 4294967295, %s19118_s28   ;;  %s14437_s30 = sadd.s32 4294967294, %s19118_s28   ;;  %s19118_s28 = sphi %s19200_s28, %s22761_s28   ;;  %s19114_s27 = sphi %s19198_s27, %s22760_s27   ;;  %s19110_s26 = sphi %s19196_s26, %s22759_s26   ;;  %s19106_s25 = sphi %s19194_s25, %s22758_s25  }
   0x8   : > { %s19219_s14 = sadd.s32 1, %s19118_s28   ;;  %s311_s15 = sadd.s32 1, %s19114_s27 }
   0x9   : > { %s308_s16 = ssub.s32 %s19118_s28, %s19219_s14  ;;  %p321_p0 = scmp.ne.s32.totalorder %s19114_s27, %s19110_s26 }
   0xa   : > { %p309_p1 = scmp.eq.s32.totalorder %s308_s16, 0  ;;  %p322_p2 = scmp.eq.s32.totalorder %s19215_s29, 1 }
   0xb   : > { %p327_p3 = scmp.ne.s32.totalorder %s19110_s26, %s19106_s25  ;;  %p328_p4 = scmp.eq.s32.totalorder %s14437_s30, 1 }
   0xc   : > { %s19230_s17 = scalar_select %p309_p1, %s19114_s27, %s311_s15  }
   0xd   : > { %p19232_p5 = por %p322_p2, %p321_p0  ;;  %p19236_p6 = por %p328_p4, %p327_p3 }
   0xe   : > { %p14440_p7 = scmp.ge.s32.totalorder %s19118_s28, 1  ;;  %p390_p8 = scmp.lt.s32.totalorder %s19118_s28, 3 }
  0x10   : > { %p391_p9 = pnand %p14440_p7, %p390_p8 }
  0x12   : > { %394 = sbr.rel (%p391_p9) target bundleno = 3784 (0xec8), region = 72 }
  0x19   : > { %s22606_s1 = sld [smem:[#allocation28_spill]]  ;;  %vm694_vm0 = vcmask 1041408   ;;  %vm439_vm1 = vcmask 261120   ;;  %vm442_vm2 = vcmask 254976   ;;  %p433_p10 = scmp.lt.s32.totalorder %s19215_s29, 1  ;;  %v22494_v4 = vmov 0.0  }
  0x1a   : > { %440 = vst.msk [vmem:[#allocation2] sm:$0xff] %vm439_vm1, %v22494_v4  ;;  %441 = vst.msk [vmem:[#allocation2 + $0x8] sm:$0xff] %vm439_vm1, %v22494_v4  ;;  %vm449_vm3 = vcmask 253952   ;;  %vm514_vm4 = vcmask 31744   ;;  %s22607_s0 = sld [smem:[#allocation27_spill]]  ;;  %s22608_s2 = sld [smem:[#allocation29_spill]] }
  0x1b   : > { %443 = vst.msk [vmem:[#allocation2 + $0x10] sm:$0x3] %vm442_vm2, %v22494_v4  ;;  %447 = vst.msk [vmem:[#allocation2 + $0x1a8] sm:$0x3] %vm442_vm2, %v22494_v4  ;;  %s19281_s20 = scalar_select %p433_p10, %s19215_s29, 1  ;;  %vm6173_vm5 = vcmask 1043456  }
  0x1c   : > { %445 = vst.msk [vmem:[#allocation2 + $0x198] sm:$0xff] %vm439_vm1, %v22494_v4  ;;  %446 = vst.msk [vmem:[#allocation2 + $0x1a0] sm:$0xff] %vm439_vm1, %v22494_v4  ;;  %vm5993_vm6 = vcmask 64512   ;;  %vm19122_vm7 = vmmov 0   ;;  %s431_s30 = sand.u32 1, %s19110_s26   ;;  %vm14367_vm8 = vcmask 73728  }
  0x1d   : > { %466 = vst.msk [vmem:[#allocation2 + $0x29] sm:$0x1] %vm449_vm3, %v22494_v4  ;;  %450 = vst.msk [vmem:[#allocation2 + $0x18] sm:$0x1] %vm449_vm3, %v22494_v4  ;;  %s15296_s21 = sshll.u32 %s19281_s20, 8  ;;  %s15293_s20 = sshll.u32 %s19215_s29, 4 }
  0x1e   : > { %451 = vst.msk [vmem:[#allocation2 + $0x30] sm:$0x1] %vm449_vm3, %v22494_v4  ;;  %452 = vst.msk [vmem:[#allocation2 + $0x48] sm:$0x1] %vm449_vm3, %v22494_v4  ;;  %s14370_s15 = scalar_lea.sflag [#allocation4], %s431_s30  ;;  %s19123_s29 = smov [#allocation3]  }
  0x1f   : > { %v14443_v0 = vld [vmem:[%s22606_s1 + $0x2] sm:$0x3]  ;;  %v19248_v1 = vld [vmem:[%s22606_s1 + $0x8] sm:$0x3]  ;;  %v19273_v5 = vld [vmem:[%s22606_s1 + $0xa] sm:$0x3] }
  0x20   : > { %18950 = vmatprep.subr.msk.bf16.mxu1 %vm694_vm0, %v14443_v0  ;;  %18954 = vmatprep.subr.msk.bf16.mxu0 %vm694_vm0, %v19248_v1  ;;  %v696_v2 = vsel %vm694_vm0, %v14443_v0, 0  ;;  %v19256_v3 = vsel %vm694_vm0, %v19248_v1, 0  ;;  %v19278_v6 = vld [vmem:[%s22606_s1] sm:$0x3]  ;;  %453 = vst.msk [vmem:[#allocation2 + $0x60] sm:$0x1] %vm449_vm3, %v22494_v4  ;;  %s19355_s24 = scalar_lea.vmem %s22607_s0, %s15296_s21  ;;  %s22438_s0 = scalar_lea.hbm %s22493_s13, %s15293_s20 }
  0x21   : > { %16086 = vmatpush3.bf16.msra.mxu1 %v696_v2  ;;  %16222 = vmatpush3.bf16.msra.mxu0 %v19256_v3  ;;  %454 = vst.msk [vmem:[#allocation2 + $0x78] sm:$0x1] %vm449_vm3, %v22494_v4  ;;  %455 = vst.msk [vmem:[#allocation2 + $0x90] sm:$0x1] %vm449_vm3, %v22494_v4  ;;  %v482_v7 = vld [vmem:[%s19355_s24] sm:$0xff]  ;;  %v483_v8 = vld [vmem:[%s19355_s24 + $0x8] sm:$0xff] }
  0x22   : > { %18956 = vmatprep.subr.msk.bf16.mxu0 %vm694_vm0, %v19273_v5  ;;  %18951 = vmatprep.subr.msk.bf16.mxu1 %vm694_vm0, %v19278_v6  ;;  %456 = vst.msk [vmem:[#allocation2 + $0xa8] sm:$0x1] %vm449_vm3, %v22494_v4  ;;  %457 = vst.msk [vmem:[#allocation2 + $0xc0] sm:$0x1] %vm449_vm3, %v22494_v4  ;;  %v484_v9 = vld [vmem:[%s19355_s24 + $0x10] sm:$0xff]  ;;  %v485_v10 = vld [vmem:[%s19355_s24 + $0x18] sm:$0xff] }
  0x23   : > { %458 = vst.msk [vmem:[#allocation2 + $0xd8] sm:$0x1] %vm449_vm3, %v22494_v4  ;;  %459 = vst.msk [vmem:[#allocation2 + $0xf0] sm:$0x1] %vm449_vm3, %v22494_v4  ;;  %v486_v11 = vld [vmem:[%s19355_s24 + $0x20] sm:$0xff]  ;;  %v487_v12 = vld [vmem:[%s19355_s24 + $0x28] sm:$0xff] }
  0x24   : > { %460 = vst.msk [vmem:[#allocation2 + $0x108] sm:$0x1] %vm449_vm3, %v22494_v4  ;;  %461 = vst.msk [vmem:[#allocation2 + $0x120] sm:$0x1] %vm449_vm3, %v22494_v4  ;;  %v596_v13 = vld [vmem:[#allocation2 + $0x1] sm:$0xff]  ;;  %v597_v14 = vld [vmem:[#allocation2 + $0x9] sm:$0xff] }
  0x25   : > { %462 = vst.msk [vmem:[#allocation2 + $0x138] sm:$0x1] %vm449_vm3, %v22494_v4  ;;  %463 = vst.msk [vmem:[#allocation2 + $0x150] sm:$0x1] %vm449_vm3, %v22494_v4  ;;  %v488_v15 = vld [vmem:[%s19355_s24 + $0x30] sm:$0xff]  ;;  %v628_v16 = vpack.c.bf16 %v597_v14, %v596_v13  ;;  %v489_v17 = vld [vmem:[%s19355_s24 + $0x38] sm:$0xff] }
  0x26   : > { %464 = vst.msk [vmem:[#allocation2 + $0x168] sm:$0x1] %vm449_vm3, %v22494_v4  ;;  %465 = vst.msk [vmem:[#allocation2 + $0x180] sm:$0x1] %vm449_vm3, %v22494_v4  ;;  %v490_v18 = vld [vmem:[%s19355_s24 + $0x40] sm:$0xff]  ;;  %v491_v19 = vld [vmem:[%s19355_s24 + $0x48] sm:$0xff] }
  0x27   : > { %467 = vst.msk [vmem:[#allocation2 + $0x41] sm:$0x1] %vm449_vm3, %v22494_v4  ;;  %468 = vst.msk [vmem:[#allocation2 + $0x59] sm:$0x1] %vm449_vm3, %v22494_v4  ;;  %v492_v20 = vld [vmem:[%s19355_s24 + $0x50] sm:$0xff]  ;;  %v493_v21 = vld [vmem:[%s19355_s24 + $0x58] sm:$0xff]  ;;  %16087 = vmatprep.mubr.msk.bf16.mxu1 %vm514_vm4, %v628_v16 }
  0x28   : > { %469 = vst.msk [vmem:[#allocation2 + $0x71] sm:$0x1] %vm449_vm3, %v22494_v4  ;;  %470 = vst.msk [vmem:[#allocation2 + $0x89] sm:$0x1] %vm449_vm3, %v22494_v4  ;;  %v494_v22 = vld [vmem:[%s19355_s24 + $0x60] sm:$0xff]  ;;  %v495_v23 = vld [vmem:[%s19355_s24 + $0x68] sm:$0xff] }
  0x29   : > { %471 = vst.msk [vmem:[#allocation2 + $0xa1] sm:$0x1] %vm449_vm3, %v22494_v4  ;;  %472 = vst.msk [vmem:[#allocation2 + $0xb9] sm:$0x1] %vm449_vm3, %v22494_v4  ;;  %v496_v24 = vld [vmem:[%s19355_s24 + $0x70] sm:$0xff]  ;;  %v497_v25 = vld [vmem:[%s19355_s24 + $0x78] sm:$0xff] }
  0x2a   : > { %473 = vst.msk [vmem:[#allocation2 + $0xd1] sm:$0x1] %vm449_vm3, %v22494_v4  ;;  %474 = vst.msk [vmem:[#allocation2 + $0xe9] sm:$0x1] %vm449_vm3, %v22494_v4  ;;  %v498_v26 = vld [vmem:[%s19355_s24 + $0x80] sm:$0xff]  ;;  %v499_v27 = vld [vmem:[%s19355_s24 + $0x88] sm:$0xff] }
  0x2b   : > { %475 = vst.msk [vmem:[#allocation2 + $0x101] sm:$0x1] %vm449_vm3, %v22494_v4  ;;  %476 = vst.msk [vmem:[#allocation2 + $0x119] sm:$0x1] %vm449_vm3, %v22494_v4  ;;  %v500_v28 = vld [vmem:[%s19355_s24 + $0x90] sm:$0xff]  ;;  %v501_v29 = vld [vmem:[%s19355_s24 + $0x98] sm:$0xff] }
  0x2c   : > { %477 = vst.msk [vmem:[#allocation2 + $0x131] sm:$0x1] %vm449_vm3, %v22494_v4  ;;  %478 = vst.msk [vmem:[#allocation2 + $0x149] sm:$0x1] %vm449_vm3, %v22494_v4  ;;  %v502_v30 = vld [vmem:[%s19355_s24 + $0xa0] sm:$0xff]  ;;  %v503_v31 = vld [vmem:[%s19355_s24 + $0xa8] sm:$0xff] }
  0x2d   : > { %479 = vst.msk [vmem:[#allocation2 + $0x161] sm:$0x1] %vm449_vm3, %v22494_v4  ;;  %480 = vst.msk [vmem:[#allocation2 + $0x179] sm:$0x1] %vm449_vm3, %v22494_v4  ;;  %v2052_v40 = vsel %vm694_vm0, %v19273_v5, 0  ;;  %v908_v42 = vsel %vm694_vm0, %v19278_v6, 0 }
  0x2e   : > { %481 = vst.msk [vmem:[#allocation2 + $0x191] sm:$0x1] %vm449_vm3, %v22494_v4  ;;  %v19415_v43 = vld [vmem:[%s22606_s1 + $0xc] sm:$0x3]  ;;  %v19424_v44 = vld [vmem:[%s22606_s1 + $0x4] sm:$0x3] }
  0x2f   : > { %515 = vst.msk [vmem:[#allocation2 + $0x19] sm:$0xff] %vm514_vm4, %v482_v7  ;;  %516 = vst.msk [vmem:[#allocation2 + $0x21] sm:$0xff] %vm514_vm4, %v483_v8  ;;  %v504_v50 = vld [vmem:[%s19355_s24 + $0xb0] sm:$0xff]  ;;  %v505_v52 = vld [vmem:[%s19355_s24 + $0xb8] sm:$0xff]  ;;  %s432_s21 = scalar_lea.vmem [#allocation3], %s431_s30 }
  0x30   : > { %517 = vst.msk [vmem:[#allocation2 + $0x31] sm:$0xff] %vm514_vm4, %v484_v9  ;;  %518 = vst.msk [vmem:[#allocation2 + $0x39] sm:$0xff] %vm514_vm4, %v485_v10  ;;  %v506_v53 = vld [vmem:[%s19355_s24 + $0xc0] sm:$0xff]  ;;  %v507_v54 = vld [vmem:[%s19355_s24 + $0xc8] sm:$0xff]  ;;  %s14382_s22 = sshll.u32 %s432_s21, 4  ;;  %s22440_s22 = int_to_ptr.vmem [resolvable:$true] %s14382_s22 }
  0x31   : > { %519 = vst.msk [vmem:[#allocation2 + $0x49] sm:$0xff] %vm514_vm4, %v486_v11  ;;  %520 = vst.msk [vmem:[#allocation2 + $0x51] sm:$0xff] %vm514_vm4, %v487_v12  ;;  %v508_v55 = vld [vmem:[%s19355_s24 + $0xd0] sm:$0xff]  ;;  %v509_v56 = vld [vmem:[%s19355_s24 + $0xd8] sm:$0xff]  ;;  %s19056_s16 = scalar_lea.vmem %s22440_s22, 16 }
  0x32   : > { %521 = vst.msk [vmem:[#allocation2 + $0x61] sm:$0xff] %vm514_vm4, %v488_v15  ;;  %522 = vst.msk [vmem:[#allocation2 + $0x69] sm:$0xff] %vm514_vm4, %v489_v17  ;;  %v510_v57 = vld [vmem:[%s19355_s24 + $0xe0] sm:$0xff]  ;;  %v511_v58 = vld [vmem:[%s19355_s24 + $0xe8] sm:$0xff]  ;;  %p19057_p11 = scmp.ne.s32.totalorder %s22440_s22, %s19056_s16 }
  0x33   : > { %523 = vst.msk [vmem:[#allocation2 + $0x79] sm:$0xff] %vm514_vm4, %v490_v18  ;;  %524 = vst.msk [vmem:[#allocation2 + $0x81] sm:$0xff] %vm514_vm4, %v491_v19  ;;  %v512_v12 = vld [vmem:[%s19355_s24 + $0xf0] sm:$0xff]  ;;  %v513_v13 = vld [vmem:[%s19355_s24 + $0xf8] sm:$0xff] }
  0x34   : > { %525 = vst.msk [vmem:[#allocation2 + $0x91] sm:$0xff] %vm514_vm4, %v492_v20  ;;  %526 = vst.msk [vmem:[#allocation2 + $0x99] sm:$0xff] %vm514_vm4, %v493_v21  ;;  %p19058_p12 = pnand %p19057_p11, %p19232_p5 }
  0x35   : > { %527 = vst.msk [vmem:[#allocation2 + $0xa9] sm:$0xff] %vm514_vm4, %v494_v22  ;;  %528 = vst.msk [vmem:[#allocation2 + $0xb1] sm:$0xff] %vm514_vm4, %v495_v23 }
  0x36   : > { %529 = vst.msk [vmem:[#allocation2 + $0xc1] sm:$0xff] %vm514_vm4, %v496_v24  ;;  %530 = vst.msk [vmem:[#allocation2 + $0xc9] sm:$0xff] %vm514_vm4, %v497_v25  ;;  %v598_v32 = vld [vmem:[#allocation2 + $0x19] sm:$0xff]  ;;  %v599_v33 = vld [vmem:[#allocation2 + $0x21] sm:$0xff]  ;;  %v2347_v25 = vsel %vm694_vm0, %v19415_v43, 0  ;;  %p19059_p13 = pneg %p19058_p12 }
  0x37   : > { %531 = vst.msk [vmem:[#allocation2 + $0xd9] sm:$0xff] %vm514_vm4, %v498_v26  ;;  %532 = vst.msk [vmem:[#allocation2 + $0xe1] sm:$0xff] %vm514_vm4, %v499_v27  ;;  %v1661_v34 = vld [vmem:[#allocation2 + $0x31] sm:$0xff]  ;;  %v629_v35 = vpack.c.bf16 %v599_v33, %v598_v32  ;;  %v1662_v36 = vld [vmem:[#allocation2 + $0x39] sm:$0xff] }
  0x38   : > { %533 = vst.msk [vmem:[#allocation2 + $0xf1] sm:$0xff] %vm514_vm4, %v500_v28  ;;  %534 = vst.msk [vmem:[#allocation2 + $0xf9] sm:$0xff] %vm514_vm4, %v501_v29  ;;  %v602_v37 = vld [vmem:[#allocation2 + $0x49] sm:$0xff]  ;;  %v603_v38 = vld [vmem:[#allocation2 + $0x51] sm:$0xff]  ;;  %v19402_v39 = vpack.c.bf16 %v1662_v36, %v1661_v34 }
  0x39   : > { %535 = vst.msk [vmem:[#allocation2 + $0x109] sm:$0xff] %vm514_vm4, %v502_v30  ;;  %536 = vst.msk [vmem:[#allocation2 + $0x111] sm:$0xff] %vm514_vm4, %v503_v31  ;;  %v19406_v41 = vpack.c.bf16 %v603_v38, %v602_v37  ;;  %16088 = vmatmul.mubr.msk.bf16.vlgmr.msra.gmra.mrb[0].mxu1 %vm514_vm4, %v629_v35  ;;  %16223 = vmatprep.mubr.msk.bf16.mxu0 %vm514_vm4, %v629_v35  ;;  %v1665_v45 = vld [vmem:[#allocation2 + $0x61] sm:$0xff]  ;;  %v1666_v46 = vld [vmem:[#allocation2 + $0x69] sm:$0xff] }
  0x3a   : > { %16224 = vmatmul.mubr.msk.bf16.vlgmr.msra.gmra.mrb[0].mxu0 %vm514_vm4, %v19402_v39  ;;  %16091 = vmatprep.mubr.msk.bf16.mxu1 %vm514_vm4, %v19402_v39  ;;  %v606_v47 = vld [vmem:[#allocation2 + $0x79] sm:$0xff]  ;;  %v607_v48 = vld [vmem:[#allocation2 + $0x81] sm:$0xff]  ;;  %v19432_v49 = vpack.c.bf16 %v1666_v46, %v1665_v45  ;;  %537 = vst.msk [vmem:[#allocation2 + $0x121] sm:$0xff] %vm514_vm4, %v504_v50  ;;  %538 = vst.msk [vmem:[#allocation2 + $0x129] sm:$0xff] %vm514_vm4, %v505_v52 }
  0x3b   : > { %16256 = vmatpush3.bf16.msra.mxu0 %v2052_v40  ;;  %16227 = vmatprep.mubr.msk.bf16.mxu0 %vm514_vm4, %v19406_v41  ;;  %v19435_v51 = vpack.c.bf16 %v607_v48, %v606_v47  ;;  %539 = vst.msk [vmem:[#allocation2 + $0x139] sm:$0xff] %vm514_vm4, %v506_v53  ;;  %540 = vst.msk [vmem:[#allocation2 + $0x141] sm:$0xff] %vm514_vm4, %v507_v54  ;;  %v1669_v59 = vld [vmem:[#allocation2 + $0x91] sm:$0xff]  ;;  %v1670_v60 = vld [vmem:[#allocation2 + $0x99] sm:$0xff] }
  0x3c   : > { %16120 = vmatpush3.bf16.msra.mxu1 %v908_v42  ;;  %18957 = vmatprep.subr.msk.bf16.mxu0 %vm694_vm0, %v19415_v43  ;;  %541 = vst.msk [vmem:[#allocation2 + $0x151] sm:$0xff] %vm514_vm4, %v508_v55  ;;  %542 = vst.msk [vmem:[#allocation2 + $0x159] sm:$0xff] %vm514_vm4, %v509_v56  ;;  %v610_v61 = vld [vmem:[#allocation2 + $0xa9] sm:$0xff]  ;;  %v611_v62 = vld [vmem:[#allocation2 + $0xb1] sm:$0xff]  ;;  %v19460_v63 = vpack.c.bf16 %v1670_v60, %v1669_v59 }
  0x3d   : > { %18952 = vmatprep.subr.msk.bf16.mxu1 %vm694_vm0, %v19424_v44  ;;  %543 = vst.msk [vmem:[#allocation2 + $0x169] sm:$0xff] %vm514_vm4, %v510_v57  ;;  %544 = vst.msk [vmem:[#allocation2 + $0x171] sm:$0xff] %vm514_vm4, %v511_v58  ;;  %v19462_v0 = vpack.c.bf16 %v611_v62, %v610_v61  ;;  %v1673_v2 = vld [vmem:[#allocation2 + $0xc1] sm:$0xff]  ;;  %v1674_v5 = vld [vmem:[#allocation2 + $0xc9] sm:$0xff] }
  0x3e   : > { %v614_v6 = vld [vmem:[#allocation2 + $0xd9] sm:$0xff]  ;;  %v615_v7 = vld [vmem:[#allocation2 + $0xe1] sm:$0xff]  ;;  %v19472_v8 = vpack.c.bf16 %v1674_v5, %v1673_v2  ;;  %545 = vst.msk [vmem:[#allocation2 + $0x181] sm:$0xff] %vm514_vm4, %v512_v12  ;;  %546 = vst.msk [vmem:[#allocation2 + $0x189] sm:$0xff] %vm514_vm4, %v513_v13 }
  0x3f   : > { %v19474_v9 = vpack.c.bf16 %v615_v7, %v614_v6  ;;  %v1677_v10 = vld [vmem:[#allocation2 + $0xf1] sm:$0xff]  ;;  %v1678_v11 = vld [vmem:[#allocation2 + $0xf9] sm:$0xff]  ;;  %v1954_v15 = vld [vmem:[#allocation2 + $0x22] sm:$0xff] }
  0x40   : > { %v1953_v14 = vld [vmem:[#allocation2 + $0x1a] sm:$0xff]  ;;  %v19488_v16 = vpack.c.bf16 %v1678_v11, %v1677_v10  ;;  %v618_v18 = vld [vmem:[#allocation2 + $0x109] sm:$0xff]  ;;  %v619_v19 = vld [vmem:[#allocation2 + $0x111] sm:$0xff] }
  0x41   : > { %16092 = vmatmul.mubr.msk.bf16.gmra.mrb[4].mxu1 %vm514_vm4, %v19406_v41  ;;  %v19490_v17 = vpack.c.bf16 %v1954_v15, %v1953_v14  ;;  %v1955_v20 = vld [vmem:[#allocation2 + $0x32] sm:$0xff]  ;;  %v1956_v21 = vld [vmem:[#allocation2 + $0x3a] sm:$0xff]  ;;  %v621_v23 = vld [vmem:[#allocation2 + $0x129] sm:$0xff]  ;;  %v19502_v27 = vpack.c.bf16 %v619_v19, %v618_v18  ;;  %v1170_v18 = vsel %vm694_vm0, %v19424_v44, 0 }
  0x42   : > { %16228 = vmatmul.mubr.msk.bf16.gmra.mrb[4].mxu0 %vm514_vm4, %v19432_v49  ;;  %16095 = vmatprep.mubr.msk.bf16.mxu1 %vm514_vm4, %v19432_v49  ;;  %v620_v22 = vld [vmem:[#allocation2 + $0x121] sm:$0xff]  ;;  %v1957_v24 = vld [vmem:[#allocation2 + $0x4a] sm:$0xff]  ;;  %v1958_v26 = vld [vmem:[#allocation2 + $0x52] sm:$0xff]  ;;  %v19504_v28 = vpack.c.bf16 %v1956_v21, %v1955_v20 }
  0x43   : > { %16231 = vmatprep.mubr.msk.bf16.mxu0 %vm514_vm4, %v19435_v51  ;;  %v19506_v29 = vpack.c.bf16 %v621_v23, %v620_v22  ;;  %v19508_v30 = vpack.c.bf16 %v1958_v26, %v1957_v24  ;;  %v19513_v31 = vld [vmem:[%s22606_s1 + $0xe] sm:$0x3]  ;;  %v622_v32 = vld [vmem:[#allocation2 + $0x139] sm:$0xff]  ;;  %v623_v33 = vld [vmem:[#allocation2 + $0x141] sm:$0xff] }
  0x44   : > { %v1959_v34 = vld [vmem:[#allocation2 + $0x62] sm:$0xff]  ;;  %v1960_v35 = vld [vmem:[#allocation2 + $0x6a] sm:$0xff]  ;;  %v625_v37 = vld [vmem:[#allocation2 + $0x159] sm:$0xff]  ;;  %v19525_v42 = vpack.c.bf16 %v623_v33, %v622_v32 }
  0x45   : > { %v624_v36 = vld [vmem:[#allocation2 + $0x151] sm:$0xff]  ;;  %v1961_v38 = vld [vmem:[#allocation2 + $0x7a] sm:$0xff]  ;;  %v1962_v40 = vld [vmem:[#allocation2 + $0x82] sm:$0xff]  ;;  %v19527_v43 = vpack.c.bf16 %v1960_v35, %v1959_v34 }
  0x46   : > { %v19529_v45 = vpack.c.bf16 %v625_v37, %v624_v36  ;;  %v19531_v46 = vpack.c.bf16 %v1962_v40, %v1961_v38  ;;  %v626_v47 = vld [vmem:[#allocation2 + $0x169] sm:$0xff]  ;;  %v627_v48 = vld [vmem:[#allocation2 + $0x171] sm:$0xff]  ;;  %v1964_v52 = vld [vmem:[#allocation2 + $0x9a] sm:$0xff] }
  0x47   : > { %v1963_v50 = vld [vmem:[#allocation2 + $0x92] sm:$0xff]  ;;  %v547_v53 = vld [vmem:[#allocation2] sm:$0xff]  ;;  %v548_v54 = vld [vmem:[#allocation2 + $0x8] sm:$0xff]  ;;  %v19541_v57 = vpack.c.bf16 %v627_v48, %v626_v47 }
  0x48   : > { %v1965_v55 = vld [vmem:[#allocation2 + $0xaa] sm:$0xff]  ;;  %v1966_v56 = vld [vmem:[#allocation2 + $0xb2] sm:$0xff]  ;;  %v19543_v58 = vpack.c.bf16 %v1964_v52, %v1963_v50  ;;  %v579_v59 = vpack.c.bf16 %v548_v54, %v547_v53  ;;  %v550_v62 = vld [vmem:[#allocation2 + $0x20] sm:$0xff] }
  0x49   : > { %16096 = vmatmul.mubr.msk.bf16.gmra.mrb[8].mxu1 %vm514_vm4, %v19435_v51  ;;  %v19545_v60 = vpack.c.bf16 %v1966_v56, %v1965_v55  ;;  %v549_v61 = vld [vmem:[#allocation2 + $0x18] sm:$0xff]  ;;  %v1967_v2 = vld [vmem:[#allocation2 + $0xc2] sm:$0xff]  ;;  %v1968_v5 = vld [vmem:[#allocation2 + $0xca] sm:$0xff] }
  0x4a   : > { %16232 = vmatmul.mubr.msk.bf16.gmra.mrb[8].mxu0 %vm514_vm4, %v19460_v63  ;;  %16099 = vmatprep.mubr.msk.bf16.mxu1 %vm514_vm4, %v19460_v63  ;;  %v551_v6 = vld [vmem:[#allocation2 + $0x30] sm:$0xff]  ;;  %v552_v7 = vld [vmem:[#allocation2 + $0x38] sm:$0xff]  ;;  %v1970_v11 = vld [vmem:[#allocation2 + $0xe2] sm:$0xff]  ;;  %v19554_v12 = vpack.c.bf16 %v550_v62, %v549_v61  ;;  %v19556_v13 = vpack.c.bf16 %v1968_v5, %v1967_v2 }
  0x4b   : > { %16235 = vmatprep.mubr.msk.bf16.mxu0 %vm514_vm4, %v19462_v0  ;;  %v1969_v10 = vld [vmem:[#allocation2 + $0xda] sm:$0xff]  ;;  %v19558_v14 = vpack.c.bf16 %v552_v7, %v551_v6  ;;  %v19569_v19 = vld [vmem:[%s22606_s1 + $0x6] sm:$0x3]  ;;  %v553_v20 = vld [vmem:[#allocation2 + $0x48] sm:$0xff] }
  0x4c   : > { %v19560_v15 = vpack.c.bf16 %v1970_v11, %v1969_v10  ;;  %v554_v21 = vld [vmem:[#allocation2 + $0x50] sm:$0xff]  ;;  %v1972_v44 = vld [vmem:[#allocation2 + $0xfa] sm:$0xff]  ;;  %v556_v24 = vld [vmem:[#allocation2 + $0x68] sm:$0xff] }
  0x4d   : > { %v1971_v22 = vld [vmem:[#allocation2 + $0xf2] sm:$0xff]  ;;  %v555_v23 = vld [vmem:[#allocation2 + $0x60] sm:$0xff]  ;;  %v19579_v32 = vpack.c.bf16 %v554_v21, %v553_v20  ;;  %v1976_v40 = vld [vmem:[#allocation2 + $0x12a] sm:$0xff] }
  0x4e   : > { %v1974_v26 = vld [vmem:[#allocation2 + $0x112] sm:$0xff]  ;;  %v19581_v33 = vpack.c.bf16 %v1972_v44, %v1971_v22  ;;  %v19583_v34 = vpack.c.bf16 %v556_v24, %v555_v23  ;;  %v558_v37 = vld [vmem:[#allocation2 + $0x80] sm:$0xff]  ;;  %v564_v6 = vld [vmem:[#allocation2 + $0xc8] sm:$0xff] }
  0x4f   : > { %v557_v36 = vld [vmem:[#allocation2 + $0x78] sm:$0xff]  ;;  %v1975_v38 = vld [vmem:[#allocation2 + $0x122] sm:$0xff]  ;;  %v559_v47 = vld [vmem:[#allocation2 + $0x90] sm:$0xff] }
  0x50   : > { %v560_v48 = vld [vmem:[#allocation2 + $0x98] sm:$0xff]  ;;  %v1978_v52 = vld [vmem:[#allocation2 + $0x142] sm:$0xff]  ;;  %v19595_v53 = vpack.c.bf16 %v558_v37, %v557_v36  ;;  %v19597_v54 = vpack.c.bf16 %v1976_v40, %v1975_v38  ;;  %v562_v61 = vld [vmem:[#allocation2 + $0xb0] sm:$0xff] }
  0x51   : > { %16100 = vmatmul.mubr.msk.bf16.gmra.mrb[12].mxu1 %vm514_vm4, %v19462_v0  ;;  %v1977_v50 = vld [vmem:[#allocation2 + $0x13a] sm:$0xff]  ;;  %v19599_v55 = vpack.c.bf16 %v560_v48, %v559_v47  ;;  %v1979_v62 = vld [vmem:[#allocation2 + $0x152] sm:$0xff]  ;;  %v1981_v7 = vld [vmem:[#allocation2 + $0x16a] sm:$0xff] }
  0x52   : > { %16236 = vmatmul.mubr.msk.bf16.gmra.mrb[12].mxu0 %vm514_vm4, %v19472_v8  ;;  %16103 = vmatprep.mubr.msk.bf16.mxu1 %vm514_vm4, %v19472_v8  ;;  %v19601_v56 = vpack.c.bf16 %v1978_v52, %v1977_v50  ;;  %v1980_v2 = vld [vmem:[#allocation2 + $0x15a] sm:$0xff]  ;;  %v1982_v10 = vld [vmem:[#allocation2 + $0x172] sm:$0xff]  ;;  %v1983_v24 = vld [vmem:[#allocation2 + $0x182] sm:$0xff] }
  0x53   : > { %16239 = vmatprep.mubr.msk.bf16.mxu0 %vm514_vm4, %v19474_v9  ;;  %v563_v5 = vld [vmem:[#allocation2 + $0xc0] sm:$0xff]  ;;  %v19617_v21 = vpack.c.bf16 %v1982_v10, %v1981_v7  ;;  %v565_v22 = vld [vmem:[#allocation2 + $0xd8] sm:$0xff]  ;;  %v567_v23 = vld [vmem:[#allocation2 + $0xf0] sm:$0xff] }
  0x54   : > { %v19615_v20 = vpack.c.bf16 %v564_v6, %v563_v5  ;;  %v566_v44 = vld [vmem:[#allocation2 + $0xe0] sm:$0xff]  ;;  %v569_v40 = vld [vmem:[#allocation2 + $0x108] sm:$0xff]  ;;  %v570_v47 = vld [vmem:[#allocation2 + $0x110] sm:$0xff] }
  0x55   : > { %v19627_v36 = vpack.c.bf16 %v566_v44, %v565_v22  ;;  %v571_v48 = vld [vmem:[#allocation2 + $0x120] sm:$0xff]  ;;  %v572_v50 = vld [vmem:[#allocation2 + $0x128] sm:$0xff]  ;;  %v19641_v52 = vpack.c.bf16 %v570_v47, %v569_v40  ;;  %v576_v6 = vld [vmem:[#allocation2 + $0x158] sm:$0xff]  ;;  %v1464_v40 = vsel %vm694_vm0, %v19569_v19, 0 }
  0x56   : > { %v574_v5 = vld [vmem:[#allocation2 + $0x140] sm:$0xff]  ;;  %v577_v22 = vld [vmem:[#allocation2 + $0x168] sm:$0xff]  ;;  %v578_v44 = vld [vmem:[#allocation2 + $0x170] sm:$0xff] }
  0x57   : > { %v2278_v47 = vld [vmem:[#allocation2 + $0x198] sm:$0xff] }
  0x59   : > { %16104 = vmatmul.mubr.msk.bf16.gmra.mrb[16].mxu1 %vm514_vm4, %v19474_v9 }
  0x5a   : > { %16240 = vmatmul.mubr.msk.bf16.gmra.mrb[16].mxu0 %vm514_vm4, %v19488_v16  ;;  %16107 = vmatprep.mubr.msk.bf16.mxu1 %vm514_vm4, %v19488_v16 }
  0x5b   : > { %16257 = vmatprep.mubr.msk.bf16.mxu0 %vm514_vm4, %v19490_v17 }
  0x61   : > { %16108 = vmatmul.mubr.msk.bf16.gmra.mrb[20].mxu1 %vm514_vm4, %v19502_v27 }
  0x62   : > { %16258 = vmatmul.mubr.msk.bf16.vlgmr.msra.gmra.mrb[0].mxu0 %vm514_vm4, %v19504_v28  ;;  %16111 = vmatprep.mubr.msk.bf16.mxu1 %vm514_vm4, %v19506_v29 }
  0x63   : > { %16290 = vmatpush3.bf16.msra.mxu0 %v2347_v25  ;;  %16261 = vmatprep.mubr.msk.bf16.mxu0 %vm514_vm4, %v19508_v30  ;;  %v1973_v25 = vld [vmem:[#allocation2 + $0x10a] sm:$0xff] }
  0x64   : > { %18958 = vmatprep.subr.msk.bf16.mxu0 %vm694_vm0, %v19513_v31  ;;  %v19585_v35 = vpack.c.bf16 %v1974_v26, %v1973_v25  ;;  %v1984_v25 = vld [vmem:[#allocation2 + $0x18a] sm:$0xff]  ;;  %v568_v26 = vld [vmem:[#allocation2 + $0xf8] sm:$0xff] }
  0x65   : > { %v19629_v37 = vpack.c.bf16 %v1984_v25, %v1983_v24  ;;  %v19631_v38 = vpack.c.bf16 %v568_v26, %v567_v23  ;;  %v1071_v23 = vld [vmem:[#allocation2 + $0x2] sm:$0xff]  ;;  %v1072_v24 = vld [vmem:[#allocation2 + $0xa] sm:$0xff]  ;;  %v19671_v25 = vpack.c.bf16 %v578_v44, %v577_v22 }
  0x66   : > { %v1103_v26 = vpack.c.bf16 %v1072_v24, %v1071_v23 }
  0x69   : > { %16112 = vmatmul.mubr.msk.bf16.gmra.mrb[24].mxu1 %vm514_vm4, %v19525_v42 }
  0x6a   : > { %16262 = vmatmul.mubr.msk.bf16.gmra.mrb[4].mxu0 %vm514_vm4, %v19527_v43  ;;  %16115 = vmatprep.mubr.msk.bf16.mxu1 %vm514_vm4, %v19529_v45 }
  0x6b   : > { %16265 = vmatprep.mubr.msk.bf16.mxu0 %vm514_vm4, %v19531_v46 }
  0x71   : > { %16116 = vmatmul.mubr.msk.bf16.gmra.mrb[28].mxu1 %vm514_vm4, %v19541_v57 }
  0x72   : > { %16266 = vmatmul.mubr.msk.bf16.gmra.mrb[8].mxu0 %vm514_vm4, %v19543_v58  ;;  %16121 = vmatprep.mubr.msk.bf16.mxu1 %vm514_vm4, %v579_v59  ;;  %v561_v59 = vld [vmem:[#allocation2 + $0xa8] sm:$0xff] }
  0x73   : > { %16269 = vmatprep.mubr.msk.bf16.mxu0 %vm514_vm4, %v19545_v60  ;;  %v19611_v11 = vpack.c.bf16 %v562_v61, %v561_v59  ;;  %v19643_v59 = vpack.c.bf16 %v572_v50, %v571_v48  ;;  %v2641_v61 = vsel %vm694_vm0, %v19513_v31, 0  ;;  %v575_v31 = vld [vmem:[#allocation2 + $0x150] sm:$0xff]  ;;  %v2279_v48 = vld [vmem:[#allocation2 + $0x1a0] sm:$0xff] }
  0x74   : > { %v19661_v10 = vpack.c.bf16 %v576_v6, %v575_v31  ;;  %v2295_v50 = vpack.c.bf16 %v2279_v48, %v2278_v47 }
  0x79   : > { %16122 = vmatmul.mubr.msk.bf16.vlgmr.msra.gmra.mrb[0].mxu1 %vm514_vm4, %v19554_v12 }
  0x7a   : > { %16270 = vmatmul.mubr.msk.bf16.gmra.mrb[12].mxu0 %vm514_vm4, %v19556_v13  ;;  %16125 = vmatprep.mubr.msk.bf16.mxu1 %vm514_vm4, %v19558_v14 }
  0x7b   : > { %16273 = vmatprep.mubr.msk.bf16.mxu0 %vm514_vm4, %v19560_v15  ;;  %16154 = vmatpush3.bf16.msra.mxu1 %v1170_v18  ;;  %v19613_v18 = vpack.c.bf16 %v1980_v2, %v1979_v62  ;;  %v14578_v62 = vld [vmem:[%s22606_s1 + $0x10] sm:$0x3]  ;;  %v573_v2 = vld [vmem:[#allocation2 + $0x138] sm:$0xff]  ;;  %s19060_s1 = sshll.u32 %s19123_s29, 4  ;;  %s19061_s1 = int_to_ptr.vmem [resolvable:$false] %s19060_s1 }
  0x7c   : > { %18953 = vmatprep.subr.msk.bf16.mxu1 %vm694_vm0, %v19569_v19  ;;  %v19659_v7 = vpack.c.bf16 %v574_v5, %v573_v2  ;;  %p19063_p0 = scmp.lt.s32.totalorder %s22440_s22, %s19061_s1 }
  0x81   : > { %16126 = vmatmul.mubr.msk.bf16.gmra.mrb[4].mxu1 %vm514_vm4, %v19579_v32 }
  0x82   : > { %16274 = vmatmul.mubr.msk.bf16.gmra.mrb[16].mxu0 %vm514_vm4, %v19581_v33  ;;  %16129 = vmatprep.mubr.msk.bf16.mxu1 %vm514_vm4, %v19583_v34 }
  0x83   : > { %16277 = vmatprep.mubr.msk.bf16.mxu0 %vm514_vm4, %v19585_v35 }
  0x89   : > { %16130 = vmatmul.mubr.msk.bf16.gmra.mrb[8].mxu1 %vm514_vm4, %v19595_v53 }
  0x8a   : > { %16278 = vmatmul.mubr.msk.bf16.gmra.mrb[20].mxu0 %vm514_vm4, %v19597_v54  ;;  %16133 = vmatprep.mubr.msk.bf16.mxu1 %vm514_vm4, %v19599_v55 }
  0x8b   : > { %16281 = vmatprep.mubr.msk.bf16.mxu0 %vm514_vm4, %v19601_v56 }
  0x91   : > { %16134 = vmatmul.mubr.msk.bf16.gmra.mrb[12].mxu1 %vm514_vm4, %v19611_v11 }
  0x92   : > { %16282 = vmatmul.mubr.msk.bf16.gmra.mrb[24].mxu0 %vm514_vm4, %v19613_v18  ;;  %16137 = vmatprep.mubr.msk.bf16.mxu1 %vm514_vm4, %v19615_v20 }
  0x93   : > { %16285 = vmatprep.mubr.msk.bf16.mxu0 %vm514_vm4, %v19617_v21 }
  0x99   : > { %16138 = vmatmul.mubr.msk.bf16.gmra.mrb[16].mxu1 %vm514_vm4, %v19627_v36 }
  0x9a   : > { %16286 = vmatmul.mubr.msk.bf16.gmra.mrb[28].mxu0 %vm514_vm4, %v19629_v37  ;;  %16141 = vmatprep.mubr.msk.bf16.mxu1 %vm514_vm4, %v19631_v38 }
  0x9b   : > { %16291 = vmatprep.mubr.msk.bf16.mxu0 %vm514_vm4, %v19558_v14 }
  0xa1   : > { %16142 = vmatmul.mubr.msk.bf16.gmra.mrb[20].mxu1 %vm514_vm4, %v19641_v52 }
  0xa2   : > { %16292 = vmatmul.mubr.msk.bf16.vlgmr.msra.gmra.mrb[0].mxu0 %vm514_vm4, %v19579_v32  ;;  %16145 = vmatprep.mubr.msk.bf16.mxu1 %vm514_vm4, %v19643_v59 }
  0xa3   : > { %16324 = vmatpush3.bf16.msra.mxu0 %v2641_v61  ;;  %16295 = vmatprep.mubr.msk.bf16.mxu0 %vm514_vm4, %v19583_v34  ;;  %v2935_v61 = vsel %vm694_vm0, %v14578_v62, 0 }
  0xa4   : > { %18959 = vmatprep.subr.msk.bf16.mxu0 %vm694_vm0, %v14578_v62 }
  0xa9   : > { %16146 = vmatmul.mubr.msk.bf16.gmra.mrb[24].mxu1 %vm514_vm4, %v19659_v7 }
  0xaa   : > { %16296 = vmatmul.mubr.msk.bf16.gmra.mrb[4].mxu0 %vm514_vm4, %v19595_v53  ;;  %16149 = vmatprep.mubr.msk.bf16.mxu1 %vm514_vm4, %v19661_v10 }
  0xab   : > { %16299 = vmatprep.mubr.msk.bf16.mxu0 %vm514_vm4, %v19599_v55 }
  0xb1   : > { %16150 = vmatmul.mubr.msk.bf16.gmra.mrb[28].mxu1 %vm514_vm4, %v19671_v25 }
  0xb2   : > { %16300 = vmatmul.mubr.msk.bf16.gmra.mrb[8].mxu0 %vm514_vm4, %v19611_v11  ;;  %16155 = vmatprep.mubr.msk.bf16.mxu1 %vm514_vm4, %v1103_v26 }
  0xb3   : > { %16303 = vmatprep.mubr.msk.bf16.mxu0 %vm514_vm4, %v19615_v20 }
  0xb9   : > { %16156 = vmatmul.mubr.msk.bf16.vlgmr.msra.gmra.mrb[0].mxu1 %vm514_vm4, %v19490_v17  ;;  %v2277_v17 = vld [vmem:[#allocation2 + $0x188] sm:$0xff] }
  0xba   : > { %16304 = vmatmul.mubr.msk.bf16.gmra.mrb[12].mxu0 %vm514_vm4, %v19627_v36  ;;  %16159 = vmatprep.mubr.msk.bf16.mxu1 %vm514_vm4, %v19504_v28 }
  0xbb   : > { %16307 = vmatprep.mubr.msk.bf16.mxu0 %vm514_vm4, %v19631_v38  ;;  %16188 = vmatpush3.bf16.msra.mxu1 %v1464_v40 }
  0xbc   : > { %18955 = vmatprep.subr.msk.bf16.mxu1 %vm694_vm0, %v19248_v1  ;;  %v2276_v1 = vld [vmem:[#allocation2 + $0x180] sm:$0xff] }
  0xbd   : > { %v2294_v19 = vpack.c.bf16 %v2277_v17, %v2276_v1 }
  0xc1   : > { %16160 = vmatmul.mubr.msk.bf16.gmra.mrb[4].mxu1 %vm514_vm4, %v19508_v30 }
  0xc2   : > { %16308 = vmatmul.mubr.msk.bf16.gmra.mrb[16].mxu0 %vm514_vm4, %v19641_v52  ;;  %16163 = vmatprep.mubr.msk.bf16.mxu1 %vm514_vm4, %v19527_v43 }
  0xc3   : > { %16311 = vmatprep.mubr.msk.bf16.mxu0 %vm514_vm4, %v19643_v59 }
  0xc9   : > { %16164 = vmatmul.mubr.msk.bf16.gmra.mrb[8].mxu1 %vm514_vm4, %v19531_v46 }
  0xca   : > { %16312 = vmatmul.mubr.msk.bf16.gmra.mrb[20].mxu0 %vm514_vm4, %v19659_v7  ;;  %16167 = vmatprep.mubr.msk.bf16.mxu1 %vm514_vm4, %v19543_v58 }
  0xcb   : > { %16315 = vmatprep.mubr.msk.bf16.mxu0 %vm514_vm4, %v19661_v10 }
  0xd1   : > { %16168 = vmatmul.mubr.msk.bf16.gmra.mrb[12].mxu1 %vm514_vm4, %v19545_v60 }
  0xd2   : > { %16316 = vmatmul.mubr.msk.bf16.gmra.mrb[24].mxu0 %vm514_vm4, %v19671_v25  ;;  %16171 = vmatprep.mubr.msk.bf16.mxu1 %vm514_vm4, %v19556_v13 }
  0xd3   : > { %16319 = vmatprep.mubr.msk.bf16.mxu0 %vm514_vm4, %v2294_v19 }
  0xd9   : > { %16172 = vmatmul.mubr.msk.bf16.gmra.mrb[16].mxu1 %vm514_vm4, %v19560_v15 }
  0xda   : > { %16320 = vmatmul.mubr.msk.bf16.gmra.mrb[28].mxu0 %vm514_vm4, %v2295_v50  ;;  %16175 = vmatprep.mubr.msk.bf16.mxu1 %vm514_vm4, %v19581_v33 }
  0xdb   : > { %16325 = vmatprep.mubr.msk.bf16.mxu0 %vm514_vm4, %v19402_v39  ;;  %v2571_v39 = vld [vmem:[#allocation2 + $0x189] sm:$0xff] }
  0xe1   : > { %16176 = vmatmul.mubr.msk.bf16.gmra.mrb[20].mxu1 %vm514_vm4, %v19585_v35 }
  0xe2   : > { %16326 = vmatmul.mubr.msk.bf16.vlgmr.msra.gmra.mrb[0].mxu0 %vm514_vm4, %v19406_v41  ;;  %16179 = vmatprep.mubr.msk.bf16.mxu1 %vm514_vm4, %v19597_v54 }
  0xe3   : > { %16358 = vmatpush3.bf16.msra.mxu0 %v2935_v61  ;;  %16329 = vmatprep.mubr.msk.bf16.mxu0 %vm514_vm4, %v19432_v49  ;;  %v2572_v49 = vld [vmem:[#allocation2 + $0x199] sm:$0xff] }
  0xe9   : > { %16180 = vmatmul.mubr.msk.bf16.gmra.mrb[24].mxu1 %vm514_vm4, %v19601_v56 }
  0xea   : > { %16330 = vmatmul.mubr.msk.bf16.gmra.mrb[4].mxu0 %vm514_vm4, %v19435_v51  ;;  %16183 = vmatprep.mubr.msk.bf16.mxu1 %vm514_vm4, %v19613_v18  ;;  %v2573_v51 = vld [vmem:[#allocation2 + $0x1a1] sm:$0xff] }
  0xeb   : > { %16333 = vmatprep.mubr.msk.bf16.mxu0 %vm514_vm4, %v19460_v63  ;;  %v2589_v63 = vpack.c.bf16 %v2573_v51, %v2572_v49 }
  0xf1   : > { %16184 = vmatmul.mubr.msk.bf16.gmra.mrb[28].mxu1 %vm514_vm4, %v19617_v21 }
  0xf2   : > { %16334 = vmatmul.mubr.msk.bf16.gmra.mrb[8].mxu0 %vm514_vm4, %v19462_v0  ;;  %16189 = vmatprep.mubr.msk.bf16.mxu1 %vm514_vm4, %v19554_v12  ;;  %v2866_v0 = vld [vmem:[#allocation2 + $0x19a] sm:$0xff] }
  0xf3   : > { %16337 = vmatprep.mubr.msk.bf16.mxu0 %vm514_vm4, %v19472_v8  ;;  %v2867_v8 = vld [vmem:[#allocation2 + $0x1a2] sm:$0xff] }
  0xf9   : > { %16190 = vmatmul.mubr.msk.bf16.vlgmr.msra.gmra.mrb[0].mxu1 %vm514_vm4, %v19558_v14 }
  0xfa   : > { %16338 = vmatmul.mubr.msk.bf16.gmra.mrb[12].mxu0 %vm514_vm4, %v19474_v9  ;;  %16193 = vmatprep.mubr.msk.bf16.mxu1 %vm514_vm4, %v19579_v32  ;;  %v2883_v9 = vpack.c.bf16 %v2867_v8, %v2866_v0 }
  0xfb   : > { %16341 = vmatprep.mubr.msk.bf16.mxu0 %vm514_vm4, %v19488_v16  ;;  %17669 = vmatpush3.bf16.msra.mxu1 %v19256_v3  ;;  %v2570_v3 = vld [vmem:[#allocation2 + $0x181] sm:$0xff]  ;;  %v19020_v16 = vld [vmem:[%s22483_s3 + $0x10] sm:$0xff]  }
  0xfc   : > { %v2588_v41 = vpack.c.bf16 %v2571_v39, %v2570_v3  ;;  %16391 = vmatprep.subr.bf16.mxu1 %v19020_v16 }
 0x101   : > { %16194 = vmatmul.mubr.msk.bf16.gmra.mrb[4].mxu1 %vm514_vm4, %v19583_v34 }
 0x102   : > { %16342 = vmatmul.mubr.msk.bf16.gmra.mrb[16].mxu0 %vm514_vm4, %v19502_v27  ;;  %16197 = vmatprep.mubr.msk.bf16.mxu1 %vm514_vm4, %v19595_v53 }
 0x103   : > { %16345 = vmatprep.mubr.msk.bf16.mxu0 %vm514_vm4, %v19506_v29 }
 0x109   : > { %16198 = vmatmul.mubr.msk.bf16.gmra.mrb[8].mxu1 %vm514_vm4, %v19599_v55 }
 0x10a   : > { %16346 = vmatmul.mubr.msk.bf16.gmra.mrb[20].mxu0 %vm514_vm4, %v19525_v42  ;;  %16201 = vmatprep.mubr.msk.bf16.mxu1 %vm514_vm4, %v19611_v11 }
 0x10b   : > { %16349 = vmatprep.mubr.msk.bf16.mxu0 %vm514_vm4, %v19529_v45 }
 0x111   : > { %16202 = vmatmul.mubr.msk.bf16.gmra.mrb[12].mxu1 %vm514_vm4, %v19615_v20 }
 0x112   : > { %16350 = vmatmul.mubr.msk.bf16.gmra.mrb[24].mxu0 %vm514_vm4, %v19541_v57  ;;  %16205 = vmatprep.mubr.msk.bf16.mxu1 %vm514_vm4, %v19627_v36 }
 0x113   : > { %16353 = vmatprep.mubr.msk.bf16.mxu0 %vm514_vm4, %v2588_v41 }
 0x119   : > { %16206 = vmatmul.mubr.msk.bf16.gmra.mrb[16].mxu1 %vm514_vm4, %v19631_v38 }
 0x11a   : > { %16354 = vmatmul.mubr.msk.bf16.gmra.mrb[28].mxu0 %vm514_vm4, %v2589_v63  ;;  %16209 = vmatprep.mubr.msk.bf16.mxu1 %vm514_vm4, %v19641_v52 }
 0x11b   : > { %16359 = vmatprep.mubr.msk.bf16.mxu0 %vm514_vm4, %v19504_v28  ;;  %v3285_v28 = vld [vmem:[#allocation2 + $0x1] sm:$0xff] }
 0x121   : > { %16210 = vmatmul.mubr.msk.bf16.gmra.mrb[20].mxu1 %vm514_vm4, %v19643_v59 }
 0x122   : > { %16360 = vmatmul.mubr.msk.bf16.vlgmr.msra.gmra.mrb[0].mxu0 %vm514_vm4, %v19508_v30  ;;  %16213 = vmatprep.mubr.msk.bf16.mxu1 %vm514_vm4, %v19659_v7 }
 0x123   : > { %16363 = vmatprep.mubr.msk.bf16.mxu0 %vm514_vm4, %v19527_v43 }
 0x129   : > { %16214 = vmatmul.mubr.msk.bf16.gmra.mrb[24].mxu1 %vm514_vm4, %v19661_v10 }
 0x12a   : > { %16364 = vmatmul.mubr.msk.bf16.gmra.mrb[4].mxu0 %vm514_vm4, %v19531_v46  ;;  %16217 = vmatprep.mubr.msk.bf16.mxu1 %vm514_vm4, %v19671_v25 }
 0x12b   : > { %16367 = vmatprep.mubr.msk.bf16.mxu0 %vm514_vm4, %v19543_v58 }
 0x131   : > { %16218 = vmatmul.mubr.msk.bf16.gmra.mrb[28].mxu1 %vm514_vm4, %v2294_v19 }
 0x132   : > { %16368 = vmatmul.mubr.msk.bf16.gmra.mrb[8].mxu0 %vm514_vm4, %v19545_v60  ;;  %16243 = vmatprep.mubr.msk.bf16.mxu1 %vm514_vm4, %v19502_v27  ;;  %v19021_v27 = vld [vmem:[%s22483_s3 + $0x18] sm:$0xff]  }
 0x133   : > { %16371 = vmatprep.mubr.msk.bf16.mxu0 %vm514_vm4, %v19556_v13 }
 0x139   : > { %16244 = vmatmul.mubr.msk.bf16.vlgmr.msra.gmra.mrb[20].mxu1 %vm514_vm4, %v19506_v29  ;;  %v3286_v29 = vld [vmem:[#allocation2 + $0x9] sm:$0xff] }
 0x13a   : > { %16372 = vmatmul.mubr.msk.bf16.gmra.mrb[12].mxu0 %vm514_vm4, %v19560_v15  ;;  %16247 = vmatprep.mubr.msk.bf16.mxu1 %vm514_vm4, %v19525_v42  ;;  %v3317_v30 = vpack.c.bf16 %v3286_v29, %v3285_v28  ;;  %v19845_v42 = vld [vmem:[%s22483_s3] sm:$0xff]  }
 0x13b   : > { %16375 = vmatprep.mubr.msk.bf16.mxu0 %vm514_vm4, %v19581_v33  ;;  %16392 = vmatpush3.bf16.msra.mxu1 %v19020_v16 }
 0x13c   : > { %16393 = vmatprep.subr.bf16.mxu1 %v19021_v27 }
 0x13f   : > { %16394 = vmatpush3.bf16.msra.mxu1 %v19021_v27 }
 0x140   : > { %16427 = vmatprep.subr.bf16.mxu1 %v19845_v42 }
 0x141   : > { %16248 = vmatmul.mubr.msk.bf16.gmra.mrb[24].mxu1 %vm514_vm4, %v19529_v45 }
 0x142   : > { %16376 = vmatmul.mubr.msk.bf16.gmra.mrb[16].mxu0 %vm514_vm4, %v19585_v35  ;;  %16251 = vmatprep.mubr.msk.bf16.mxu1 %vm514_vm4, %v19541_v57 }
 0x143   : > { %16379 = vmatprep.mubr.msk.bf16.mxu0 %vm514_vm4, %v19597_v54 }
 0x149   : > { %16252 = vmatmul.mubr.msk.bf16.gmra.mrb[28].mxu1 %vm514_vm4, %v2588_v41 }
 0x14a   : > { %16380 = vmatmul.mubr.msk.bf16.gmra.mrb[20].mxu0 %vm514_vm4, %v19601_v56  ;;  %16395 = vmatprep.mubr.msk.bf16.mxu1 %vm439_vm1, %v3317_v30 }
 0x14b   : > { %16383 = vmatprep.mubr.msk.bf16.mxu0 %vm514_vm4, %v19613_v18 }
 0x152   : > { %16384 = vmatmul.mubr.msk.bf16.gmra.mrb[24].mxu0 %vm514_vm4, %v19617_v21  ;;  %v19871_v21 = vld [vmem:[%s22608_s2] ss:$0 sm:$0xff]  ;;  %s19062_s2 = scalar_lea.vmem %s19061_s1, 32 }
 0x153   : > { %16387 = vmatprep.mubr.msk.bf16.mxu0 %vm514_vm4, %v19629_v37  ;;  %p19064_p1 = scmp.lt.s32.totalorder %s19062_s2, %s19056_s16 }
 0x155   : > { %p19065_p2 = por %p19064_p1, %p19063_p0 }
 0x157   : > { %p19066_p3 = pnand %p19065_p2, %p19059_p13 }
 0x15a   : > { %16388 = vmatmul.mubr.msk.bf16.gmra.mrb[28].mxu0 %vm514_vm4, %v2883_v9 }
 0x1cc   : > { %v16191_v43 = vpop.f32.mrb[0].mxu1 }
 0x1cd   : > { %v1500_v45 = vpop.f32.mrb[1].mxu1 }
 0x1ce   : > { %v16192_v46 = vpop.f32.mrb[2].mxu1 }
 0x1cf   : > { %v1503_v57 = vpop.f32.mrb[3].mxu1 }
 0x1d4   : > { %v16195_v58 = vpop.f32.mrb[4].mxu1 }
 0x1d5   : > { %v1516_v60 = vpop.f32.mrb[5].mxu1 }
 0x1d6   : > { %v16196_v12 = vpop.f32.mrb[6].mxu1 }
 0x1d7   : > { %v1519_v13 = vpop.f32.mrb[7].mxu1 }
 0x1dc   : > { %v16199_v14 = vpop.f32.mrb[8].mxu1 }
 0x1dd   : > { %v1532_v15 = vpop.f32.mrb[9].mxu1 }
 0x1de   : > { %v19848_v32 = vpop.f32.mrb[10].mxu1 }
 0x1df   : > { %v19850_v33 = vpop.f32.mrb[11].mxu1 }
 0x1e4   : > { %v19852_v34 = vpop.f32.mrb[12].mxu1 }
 0x1e5   : > { %v19854_v35 = vpop.f32.mrb[13].mxu1 }
 0x1e6   : > { %v19856_v53 = vpop.f32.mrb[14].mxu1 }
 0x1e7   : > { %v19858_v54 = vpop.f32.mrb[15].mxu1 }
 0x1ec   : > { %v19860_v55 = vpop.f32.mrb[16].mxu1 }
 0x1ed   : > { %v19862_v56 = vpop.f32.mrb[17].mxu1 }
 0x1ee   : > { %v19864_v11 = vpop.f32.mrb[18].mxu1 }
 0x1ef   : > { %v19866_v18 = vpop.f32.mrb[19].mxu1 }
 0x1f5   : > { %v16361_v20 = vpop.f32.mrb[0].mxu0 }
 0x1f6   : > { %v17670_v36 = vadd.f32 %v16361_v20, %v16191_v43  ;;  %v2971_v37 = vpop.f32.mrb[1].mxu0 }
 0x1f7   : > { %v17671_v38 = vadd.f32 %v2971_v37, %v1500_v45  ;;  %v16362_v52 = vpop.f32.mrb[2].mxu0  ;;  %v19023_v45 = vld [vmem:[%s22483_s3 + $0x8] sm:$0xff]  }
 0x1f8   : > { %v19874_v59 = vadd.f32 %v17670_v36, %v19871_v21  ;;  %v17672_v62 = vadd.f32 %v16362_v52, %v16192_v46  ;;  %v2974_v2 = vpop.f32.mrb[3].mxu0 }
 0x1f9   : > { %v19877_v5 = vadd.f32 %v17671_v38, %v19871_v21  ;;  %v17673_v31 = vadd.f32 %v2974_v2, %v1503_v57 }
 0x1fa   : > { %v22526_v6 = vmax.f32 %v19874_v59, 0.0  ;;  %v19881_v7 = vadd.f32 %v17672_v62, %v19871_v21 }
 0x1fb   : > { %v22525_v10 = vmax.f32 %v19877_v5, 0.0  ;;  %v19885_v22 = vadd.f32 %v17673_v31, %v19871_v21 }
 0x1fc   : > { %3203 = vst.msk [vmem:[#allocation2 + $0x31] sm:$0xff] %vm439_vm1, %v22526_v6  ;;  %v22524_v44 = vmax.f32 %v19881_v7, 0.0 }
 0x1fd   : > { %3201 = vst.msk [vmem:[#allocation2 + $0x19] sm:$0xff] %vm439_vm1, %v22525_v10  ;;  %v22523_v23 = vmax.f32 %v19885_v22, 0.0  ;;  %v16365_v24 = vpop.f32.mrb[4].mxu0 }
 0x1fe   : > { %3204 = vst.msk [vmem:[#allocation2 + $0x39] sm:$0xff] %vm439_vm1, %v22524_v44  ;;  %v17674_v25 = vadd.f32 %v16365_v24, %v16195_v58  ;;  %v2987_v26 = vpop.f32.mrb[5].mxu0 }
 0x1ff   : > { %3202 = vst.msk [vmem:[#allocation2 + $0x21] sm:$0xff] %vm439_vm1, %v22523_v23  ;;  %v17675_v40 = vadd.f32 %v2987_v26, %v1516_v60  ;;  %v16366_v1 = vpop.f32.mrb[6].mxu0 }
 0x200   : > { %v19902_v17 = vadd.f32 %v17674_v25, %v19871_v21  ;;  %v17676_v19 = vadd.f32 %v16366_v1, %v16196_v12  ;;  %v2990_v47 = vpop.f32.mrb[7].mxu0 }
 0x201   : > { %v19905_v48 = vadd.f32 %v17675_v40, %v19871_v21  ;;  %v17677_v50 = vadd.f32 %v2990_v47, %v1519_v13 }
 0x202   : > { %v22522_v61 = vmax.f32 %v19902_v17, 0.0  ;;  %v19909_v3 = vadd.f32 %v17676_v19, %v19871_v21 }
 0x203   : > { %v22516_v39 = vmax.f32 %v19905_v48, 0.0  ;;  %v19913_v41 = vadd.f32 %v17677_v50, %v19871_v21  ;;  %v3289_v43 = vld [vmem:[#allocation2 + $0x31] sm:$0xff] }
 0x204   : > { %3207 = vst.msk [vmem:[#allocation2 + $0x61] sm:$0xff] %vm439_vm1, %v22522_v61  ;;  %v22515_v49 = vmax.f32 %v19909_v3, 0.0  ;;  %v3287_v16 = vld [vmem:[#allocation2 + $0x19] sm:$0xff] }
 0x205   : > { %3205 = vst.msk [vmem:[#allocation2 + $0x49] sm:$0xff] %vm439_vm1, %v22516_v39  ;;  %v22510_v51 = vmax.f32 %v19913_v41, 0.0  ;;  %v16369_v63 = vpop.f32.mrb[8].mxu0  ;;  %v3290_v0 = vld [vmem:[#allocation2 + $0x39] sm:$0xff] }
 0x206   : > { %3208 = vst.msk [vmem:[#allocation2 + $0x69] sm:$0xff] %vm439_vm1, %v22515_v49  ;;  %v17678_v8 = vadd.f32 %v16369_v63, %v16199_v14  ;;  %v3003_v9 = vpop.f32.mrb[9].mxu0  ;;  %v3288_v27 = vld [vmem:[#allocation2 + $0x21] sm:$0xff]  ;;  %v19938_v60 = vpack.c.bf16 %v3290_v0, %v3289_v43 }
 0x207   : > { %3206 = vst.msk [vmem:[#allocation2 + $0x51] sm:$0xff] %vm439_vm1, %v22510_v51  ;;  %v17679_v28 = vadd.f32 %v3003_v9, %v1532_v15  ;;  %v16370_v29 = vpop.f32.mrb[10].mxu0  ;;  %v19929_v30 = vpack.c.bf16 %v3288_v27, %v3287_v16 }
 0x208   : > { %v19935_v46 = vadd.f32 %v17678_v8, %v19871_v21  ;;  %v17680_v57 = vadd.f32 %v16370_v29, %v19848_v32  ;;  %v3006_v58 = vpop.f32.mrb[11].mxu0 }
 0x209   : > { %v19941_v12 = vadd.f32 %v17679_v28, %v19871_v21  ;;  %v17681_v13 = vadd.f32 %v3006_v58, %v19850_v33  ;;  %16396 = vmatmul.mubr.msk.bf16.vlgmr.msra.gmra.mrb[32].mxu1 %vm439_vm1, %v19929_v30  ;;  %v19960_v33 = vld [vmem:[%s22483_s3 + $0x20] sm:$0xff]  }
 0x20a   : > { %v22509_v14 = vmax.f32 %v19935_v46, 0.0  ;;  %v19948_v15 = vadd.f32 %v17680_v57, %v19871_v21  ;;  %16428 = vmatpush3.bf16.msra.mxu1 %v19845_v42  ;;  %16399 = vmatprep.mubr.msk.bf16.mxu1 %vm439_vm1, %v19938_v60 }
 0x20b   : > { %v22507_v32 = vmax.f32 %v19941_v12, 0.0  ;;  %v19955_v20 = vadd.f32 %v17681_v13, %v19871_v21  ;;  %16429 = vmatprep.subr.bf16.mxu1 %v19023_v45  ;;  %v3293_v50 = vld [vmem:[#allocation2 + $0x61] sm:$0xff] }
 0x20c   : > { %3211 = vst.msk [vmem:[#allocation2 + $0x91] sm:$0xff] %vm439_vm1, %v22509_v14  ;;  %v22503_v42 = vmax.f32 %v19948_v15, 0.0  ;;  %v19966_v36 = vpop.f32.mrb[20].mxu1  ;;  %v3291_v25 = vld [vmem:[#allocation2 + $0x49] sm:$0xff] }
 0x20d   : > { %22609 = vst [vmem:[#allocation6_spill] sm:$0xff] %v19955_v20  ;;  %3209 = vst.msk [vmem:[#allocation2 + $0x79] sm:$0xff] %vm439_vm1, %v22507_v32  ;;  %v22502_v37 = vmax.f32 %v19955_v20, 0.0  ;;  %v19972_v38 = vpop.f32.mrb[21].mxu1  ;;  %v16373_v52 = vpop.f32.mrb[12].mxu0  ;;  %v3294_v62 = vld [vmem:[#allocation2 + $0x69] sm:$0xff] }
 0x20e   : > { %3212 = vst.msk [vmem:[#allocation2 + $0x99] sm:$0xff] %vm439_vm1, %v22503_v42  ;;  %v17682_v2 = vadd.f32 %v16373_v52, %v19852_v34  ;;  %v19978_v31 = vpop.f32.mrb[22].mxu1  ;;  %v3019_v24 = vpop.f32.mrb[13].mxu0  ;;  %v3292_v26 = vld [vmem:[#allocation2 + $0x51] sm:$0xff]  ;;  %16430 = vmatpush3.bf16.msra.mxu1 %v19023_v45  ;;  %v19993_v8 = vpack.c.bf16 %v3294_v62, %v3293_v50 }
 0x20f   : > { %3210 = vst.msk [vmem:[#allocation2 + $0x81] sm:$0xff] %vm439_vm1, %v22502_v37  ;;  %v17683_v40 = vadd.f32 %v3019_v24, %v19854_v35  ;;  %v19984_v1 = vpop.f32.mrb[23].mxu1  ;;  %v16374_v19 = vpop.f32.mrb[14].mxu0  ;;  %v19986_v47 = vpack.c.bf16 %v3292_v26, %v3291_v25  ;;  %16463 = vmatprep.subr.bf16.mxu1 %v19960_v33 }
 0x210   : > { %v19990_v34 = vadd.f32 %v17682_v2, %v19871_v21  ;;  %v17684_v63 = vadd.f32 %v16374_v19, %v19856_v53  ;;  %v3022_v0 = vpop.f32.mrb[15].mxu0 }
 0x211   : > { %v19996_v9 = vadd.f32 %v17683_v40, %v19871_v21  ;;  %v17685_v35 = vadd.f32 %v3022_v0, %v19858_v54  ;;  %16400 = vmatmul.mubr.msk.bf16.gmra.mrb[36].mxu1 %vm439_vm1, %v19986_v47 }
 0x212   : > { %22610 = vst [vmem:[#allocation7_spill] sm:$0xff] %v19990_v34  ;;  %v22500_v16 = vmax.f32 %v19990_v34, 0.0  ;;  %v20003_v27 = vadd.f32 %v17684_v63, %v19871_v21  ;;  %16403 = vmatprep.mubr.msk.bf16.mxu1 %vm439_vm1, %v19993_v8 }
 0x213   : > { %22611 = vst [vmem:[#allocation8_spill] sm:$0xff] %v19996_v9  ;;  %v22499_v53 = vmax.f32 %v19996_v9, 0.0  ;;  %v20009_v28 = vadd.f32 %v17685_v35, %v19871_v21  ;;  %v3297_v50 = vld [vmem:[#allocation2 + $0x91] sm:$0xff] }
 0x214   : > { %22612 = vst [vmem:[#allocation9_spill] sm:$0xff] %v20003_v27  ;;  %3215 = vst.msk [vmem:[#allocation2 + $0xc1] sm:$0xff] %vm439_vm1, %v22500_v16  ;;  %v22498_v54 = vmax.f32 %v20003_v27, 0.0  ;;  %v20015_v29 = vpop.f32.mrb[24].mxu1  ;;  %v3295_v2 = vld [vmem:[#allocation2 + $0x79] sm:$0xff]  ;;  %v3245_v44 = vld [vmem:[#allocation2 + $0x90] sm:$0xff] }
 0x215   : > { %22613 = vst [vmem:[#allocation10_spill] sm:$0xff] %v20009_v28  ;;  %3213 = vst.msk [vmem:[#allocation2 + $0xa9] sm:$0xff] %vm439_vm1, %v22499_v53  ;;  %v22497_v43 = vmax.f32 %v20009_v28, 0.0  ;;  %v20021_v45 = vpop.f32.mrb[25].mxu1  ;;  %v16377_v57 = vpop.f32.mrb[16].mxu0  ;;  %v3298_v58 = vld [vmem:[#allocation2 + $0x99] sm:$0xff] }
 0x216   : > { %3216 = vst.msk [vmem:[#allocation2 + $0xc9] sm:$0xff] %vm439_vm1, %v22498_v54  ;;  %v17686_v13 = vadd.f32 %v16377_v57, %v19860_v55  ;;  %v20027_v52 = vpop.f32.mrb[26].mxu1  ;;  %v3035_v62 = vpop.f32.mrb[17].mxu0  ;;  %v3296_v24 = vld [vmem:[#allocation2 + $0x81] sm:$0xff]  ;;  %v20041_v35 = vpack.c.bf16 %v3298_v58, %v3297_v50 }
 0x217   : > { %3214 = vst.msk [vmem:[#allocation2 + $0xb1] sm:$0xff] %vm439_vm1, %v22497_v43  ;;  %v17687_v25 = vadd.f32 %v3035_v62, %v19862_v56  ;;  %v20033_v26 = vpop.f32.mrb[27].mxu1  ;;  %v16378_v40 = vpop.f32.mrb[18].mxu0  ;;  %v20035_v19 = vpack.c.bf16 %v3296_v24, %v3295_v2 }
 0x218   : > { %v20038_v63 = vadd.f32 %v17686_v13, %v19871_v21  ;;  %v17688_v55 = vadd.f32 %v16378_v40, %v19864_v11  ;;  %v3038_v0 = vpop.f32.mrb[19].mxu0 }
 0x219   : > { %v20044_v57 = vadd.f32 %v17687_v25, %v19871_v21  ;;  %v17689_v4 = vadd.f32 %v3038_v0, %v19866_v18  ;;  %16404 = vmatmul.mubr.msk.bf16.gmra.mrb[40].mxu1 %vm439_vm1, %v20035_v19 }
 0x21a   : > { %22614 = vst [vmem:[#allocation11_spill] sm:$0xff] %v20038_v63  ;;  %v22495_v56 = vmax.f32 %v20038_v63, 0.0  ;;  %v20051_v62 = vadd.f32 %v17688_v55, %v19871_v21  ;;  %16407 = vmatprep.mubr.msk.bf16.mxu1 %vm439_vm1, %v20041_v35 }
 0x21b   : > { %22615 = vst [vmem:[#allocation12_spill] sm:$0xff] %v20044_v57  ;;  %v22496_v11 = vmax.f32 %v20044_v57, 0.0  ;;  %v20057_v58 = vadd.f32 %v17689_v4, %v19871_v21  ;;  %v3301_v16 = vld [vmem:[#allocation2 + $0xc1] sm:$0xff] }
 0x21c   : > { %22616 = vst [vmem:[#allocation13_spill] sm:$0xff] %v20051_v62  ;;  %3219 = vst.msk [vmem:[#allocation2 + $0xf1] sm:$0xff] %vm439_vm1, %v22495_v56  ;;  %v22501_v18 = vmax.f32 %v20051_v62, 0.0  ;;  %v20063_v13 = vpop.f32.mrb[28].mxu1  ;;  %v3299_v0 = vld [vmem:[#allocation2 + $0xa9] sm:$0xff]  ;;  %v3249_v10 = vld [vmem:[#allocation2 + $0xc0] sm:$0xff] }
 0x21d   : > { %22617 = vst [vmem:[#allocation14_spill] sm:$0xff] %v20057_v58  ;;  %3217 = vst.msk [vmem:[#allocation2 + $0xd9] sm:$0xff] %vm439_vm1, %v22496_v11  ;;  %v22504_v2 = vmax.f32 %v20057_v58, 0.0  ;;  %v20069_v24 = vpop.f32.mrb[29].mxu1  ;;  %v16381_v25 = vpop.f32.mrb[20].mxu0  ;;  %v3302_v40 = vld [vmem:[#allocation2 + $0xc9] sm:$0xff] }
 0x21e   : > { %3220 = vst.msk [vmem:[#allocation2 + $0xf9] sm:$0xff] %vm439_vm1, %v22501_v18  ;;  %v17690_v4 = vadd.f32 %v16381_v25, %v19966_v36  ;;  %v20075_v50 = vpop.f32.mrb[30].mxu1  ;;  %v3051_v55 = vpop.f32.mrb[21].mxu0  ;;  %v3300_v56 = vld [vmem:[#allocation2 + $0xb1] sm:$0xff]  ;;  %v20089_v37 = vpack.c.bf16 %v3302_v40, %v3301_v16 }
 0x21f   : > { %3218 = vst.msk [vmem:[#allocation2 + $0xe1] sm:$0xff] %vm439_vm1, %v22504_v2  ;;  %v17691_v11 = vadd.f32 %v3051_v55, %v19972_v38  ;;  %v20081_v43 = vpop.f32.mrb[31].mxu1  ;;  %v16382_v54 = vpop.f32.mrb[22].mxu0  ;;  %v20083_v53 = vpack.c.bf16 %v3300_v56, %v3299_v0 }
 0x220   : > { %v20086_v18 = vadd.f32 %v17690_v4, %v19871_v21  ;;  %v17692_v36 = vadd.f32 %v16382_v54, %v19978_v31  ;;  %v3054_v25 = vpop.f32.mrb[23].mxu0 }
 0x221   : > { %v20092_v42 = vadd.f32 %v17691_v11, %v19871_v21  ;;  %v17693_v2 = vadd.f32 %v3054_v25, %v19984_v1  ;;  %16408 = vmatmul.mubr.msk.bf16.gmra.mrb[44].mxu1 %vm439_vm1, %v20083_v53 }
 0x222   : > { %22618 = vst [vmem:[#allocation15_spill] sm:$0xff] %v20086_v18  ;;  %v22506_v38 = vmax.f32 %v20086_v18, 0.0  ;;  %v20099_v56 = vadd.f32 %v17692_v36, %v19871_v21  ;;  %16411 = vmatprep.mubr.msk.bf16.mxu1 %vm439_vm1, %v20089_v37  ;;  %v3793_v18 = vld [vmem:[#allocation2 + $0x9a] sm:$0xff] }
 0x223   : > { %22619 = vst [vmem:[#allocation16_spill] sm:$0xff] %v20092_v42  ;;  %v22505_v31 = vmax.f32 %v20092_v42, 0.0  ;;  %v20105_v16 = vadd.f32 %v17693_v2, %v19871_v21 }
 0x224   : > { %22620 = vst [vmem:[#allocation17_spill] sm:$0xff] %v20099_v56  ;;  %3223 = vst.msk [vmem:[#allocation2 + $0x121] sm:$0xff] %vm439_vm1, %v22506_v38  ;;  %v22508_v1 = vmax.f32 %v20099_v56, 0.0  ;;  %v3303_v55 = vld [vmem:[#allocation2 + $0xd9] sm:$0xff]  ;;  %v3305_v38 = vld [vmem:[#allocation2 + $0xf1] sm:$0xff] }
 0x225   : > { %22621 = vst [vmem:[#allocation18_spill] sm:$0xff] %v20105_v16  ;;  %3221 = vst.msk [vmem:[#allocation2 + $0x109] sm:$0xff] %vm439_vm1, %v22505_v31  ;;  %v22513_v54 = vmax.f32 %v20105_v16, 0.0  ;;  %v16385_v11 = vpop.f32.mrb[24].mxu0  ;;  %v3306_v40 = vld [vmem:[#allocation2 + $0xf9] sm:$0xff] }
 0x226   : > { %3224 = vst.msk [vmem:[#allocation2 + $0x129] sm:$0xff] %vm439_vm1, %v22508_v1  ;;  %v17694_v2 = vadd.f32 %v16385_v11, %v20015_v29  ;;  %v3067_v4 = vpop.f32.mrb[25].mxu0  ;;  %v3304_v0 = vld [vmem:[#allocation2 + $0xe1] sm:$0xff]  ;;  %v20129_v29 = vpack.c.bf16 %v3306_v40, %v3305_v38  ;;  %v19027_v56 = vld [vmem:[%s22483_s3 + $0x38] sm:$0xff]  }
 0x227   : > { %3222 = vst.msk [vmem:[#allocation2 + $0x111] sm:$0xff] %vm439_vm1, %v22513_v54  ;;  %v17695_v36 = vadd.f32 %v3067_v4, %v20021_v45  ;;  %v16386_v25 = vpop.f32.mrb[26].mxu0  ;;  %v20123_v31 = vpack.c.bf16 %v3304_v0, %v3303_v55 }
 0x228   : > { %v20126_v32 = vadd.f32 %v17694_v2, %v19871_v21  ;;  %v17696_v1 = vadd.f32 %v16386_v25, %v20027_v52  ;;  %v3070_v14 = vpop.f32.mrb[27].mxu0 }
 0x229   : > { %v20132_v11 = vadd.f32 %v17695_v36, %v19871_v21  ;;  %v17697_v51 = vadd.f32 %v3070_v14, %v20033_v26  ;;  %16412 = vmatmul.mubr.msk.bf16.gmra.mrb[48].mxu1 %vm439_vm1, %v20123_v31 }
 0x22a   : > { %22622 = vst [vmem:[#allocation19_spill] sm:$0xff] %v20126_v32  ;;  %v22512_v45 = vmax.f32 %v20126_v32, 0.0  ;;  %v20139_v4 = vadd.f32 %v17696_v1, %v19871_v21  ;;  %16415 = vmatprep.mubr.msk.bf16.mxu1 %vm439_vm1, %v20129_v29 }
 0x22b   : > { %22623 = vst [vmem:[#allocation20_spill] sm:$0xff] %v20132_v11  ;;  %v22511_v52 = vmax.f32 %v20132_v11, 0.0  ;;  %v20145_v38 = vadd.f32 %v17697_v51, %v19871_v21 }
 0x22c   : > { %22624 = vst [vmem:[#allocation21_spill] sm:$0xff] %v20139_v4  ;;  %3227 = vst.msk [vmem:[#allocation2 + $0x151] sm:$0xff] %vm439_vm1, %v22512_v45  ;;  %v22514_v14 = vmax.f32 %v20139_v4, 0.0  ;;  %v3307_v55 = vld [vmem:[#allocation2 + $0x109] sm:$0xff]  ;;  %v3309_v45 = vld [vmem:[#allocation2 + $0x121] sm:$0xff] }
 0x22d   : > { %22625 = vst [vmem:[#allocation22_spill] sm:$0xff] %v20145_v38  ;;  %3225 = vst.msk [vmem:[#allocation2 + $0x139] sm:$0xff] %vm439_vm1, %v22511_v52  ;;  %v22521_v26 = vmax.f32 %v20145_v38, 0.0  ;;  %v16389_v1 = vpop.f32.mrb[28].mxu0  ;;  %v3310_v40 = vld [vmem:[#allocation2 + $0x129] sm:$0xff] }
 0x22e   : > { %3228 = vst.msk [vmem:[#allocation2 + $0x159] sm:$0xff] %vm439_vm1, %v22514_v14  ;;  %v17698_v51 = vadd.f32 %v16389_v1, %v20063_v13  ;;  %v3083_v2 = vpop.f32.mrb[29].mxu0  ;;  %v3308_v0 = vld [vmem:[#allocation2 + $0x111] sm:$0xff]  ;;  %v20169_v13 = vpack.c.bf16 %v3310_v40, %v3309_v45 }
 0x22f   : > { %3226 = vst.msk [vmem:[#allocation2 + $0x141] sm:$0xff] %vm439_vm1, %v22521_v26  ;;  %v17699_v36 = vadd.f32 %v3083_v2, %v20069_v24  ;;  %v16390_v25 = vpop.f32.mrb[30].mxu0  ;;  %v20163_v52 = vpack.c.bf16 %v3308_v0, %v3307_v55  ;;  %v3233_v0 = vld [vmem:[#allocation2] sm:$0xff]  ;;  %v19025_v26 = vld [vmem:[%s22483_s3 + $0x28] sm:$0xff]  }
 0x230   : > { %v20166_v54 = vadd.f32 %v17698_v51, %v19871_v21  ;;  %v17700_v14 = vadd.f32 %v16390_v25, %v20075_v50  ;;  %v3086_v49 = vpop.f32.mrb[31].mxu0 }
 0x231   : > { %v20172_v1 = vadd.f32 %v17699_v36, %v19871_v21  ;;  %v17701_v39 = vadd.f32 %v3086_v49, %v20081_v43  ;;  %16416 = vmatmul.mubr.msk.bf16.gmra.mrb[52].mxu1 %vm439_vm1, %v20163_v52  ;;  %v3234_v36 = vld [vmem:[#allocation2 + $0x8] sm:$0xff] }
 0x232   : > { %22626 = vst [vmem:[#allocation23_spill] sm:$0xff] %v20166_v54  ;;  %v22519_v24 = vmax.f32 %v20166_v54, 0.0  ;;  %v20179_v2 = vadd.f32 %v17700_v14, %v19871_v21  ;;  %16419 = vmatprep.mubr.msk.bf16.mxu1 %vm439_vm1, %v20169_v13 }
 0x233   : > { %22627 = vst [vmem:[#allocation24_spill] sm:$0xff] %v20172_v1  ;;  %v22518_v50 = vmax.f32 %v20172_v1, 0.0  ;;  %v20185_v45 = vadd.f32 %v17701_v39, %v19871_v21  ;;  %v3313_v51 = vld [vmem:[#allocation2 + $0x151] sm:$0xff]  ;;  %v3257_v1 = vld [vmem:[#allocation2 + $0x120] sm:$0xff] }
 0x234   : > { %22628 = vst [vmem:[#allocation25_spill] sm:$0xff] %v20179_v2  ;;  %3231 = vst.msk [vmem:[#allocation2 + $0x181] sm:$0xff] %vm439_vm1, %v22519_v24  ;;  %v22517_v49 = vmax.f32 %v20179_v2, 0.0  ;;  %v3311_v40 = vld [vmem:[#allocation2 + $0x139] sm:$0xff]  ;;  %v3261_v38 = vld [vmem:[#allocation2 + $0x150] sm:$0xff] }
 0x235   : > { %22629 = vst [vmem:[#allocation26_spill] sm:$0xff] %v20185_v45  ;;  %3229 = vst.msk [vmem:[#allocation2 + $0x169] sm:$0xff] %vm439_vm1, %v22518_v50  ;;  %v22520_v43 = vmax.f32 %v20185_v45, 0.0  ;;  %v3314_v14 = vld [vmem:[#allocation2 + $0x159] sm:$0xff]  ;;  %v3265_v50 = vpack.c.bf16 %v3234_v36, %v3233_v0  ;;  %v3242_v0 = vld [vmem:[#allocation2 + $0x68] sm:$0xff] }
 0x236   : > { %3232 = vst.msk [vmem:[#allocation2 + $0x189] sm:$0xff] %vm439_vm1, %v22517_v49  ;;  %v3312_v21 = vld [vmem:[#allocation2 + $0x141] sm:$0xff]  ;;  %v20203_v55 = vpack.c.bf16 %v3314_v14, %v3313_v51  ;;  %v3253_v45 = vld [vmem:[#allocation2 + $0xf0] sm:$0xff] }
 0x237   : > { %3230 = vst.msk [vmem:[#allocation2 + $0x171] sm:$0xff] %vm439_vm1, %v22520_v43  ;;  %v20201_v39 = vpack.c.bf16 %v3312_v21, %v3311_v40  ;;  %v3236_v14 = vld [vmem:[#allocation2 + $0x20] sm:$0xff]  ;;  %v3238_v40 = vld [vmem:[#allocation2 + $0x38] sm:$0xff]  ;;  %v3237_v43 = vld [vmem:[#allocation2 + $0x30] sm:$0xff] }
 0x238   : > { %v3235_v21 = vld [vmem:[#allocation2 + $0x18] sm:$0xff]  ;;  %v20219_v61 = vpack.c.bf16 %v3238_v40, %v3237_v43  ;;  %v3239_v36 = vld [vmem:[#allocation2 + $0x48] sm:$0xff] }
 0x239   : > { %16420 = vmatmul.mubr.msk.bf16.gmra.mrb[56].mxu1 %vm439_vm1, %v20201_v39  ;;  %v20214_v51 = vpack.c.bf16 %v3236_v14, %v3235_v21  ;;  %v3246_v40 = vld [vmem:[#allocation2 + $0x98] sm:$0xff] }
 0x23a   : > { %16423 = vmatprep.mubr.msk.bf16.mxu1 %vm439_vm1, %v20203_v55  ;;  %v3243_v21 = vld [vmem:[#allocation2 + $0x78] sm:$0xff] }
 0x23c   : > { %v3315_v25 = vld [vmem:[#allocation2 + $0x169] sm:$0xff] }
 0x23e   : > { %v3316_v49 = vld [vmem:[#allocation2 + $0x171] sm:$0xff] }
 0x23f   : > { %v20209_v24 = vpack.c.bf16 %v3316_v49, %v3315_v25  ;;  %v3240_v49 = vld [vmem:[#allocation2 + $0x50] sm:$0xff]  ;;  %v3241_v25 = vld [vmem:[#allocation2 + $0x60] sm:$0xff] }
 0x240   : > { %v20231_v43 = vpack.c.bf16 %v3240_v49, %v3239_v36  ;;  %v20234_v14 = vpack.c.bf16 %v3242_v0, %v3241_v25  ;;  %v3248_v49 = vld [vmem:[#allocation2 + $0xb0] sm:$0xff]  ;;  %v3250_v0 = vld [vmem:[#allocation2 + $0xc8] sm:$0xff] }
 0x241   : > { %16424 = vmatmul.mubr.msk.bf16.gmra.mrb[60].mxu1 %vm439_vm1, %v20209_v24  ;;  %v3247_v36 = vld [vmem:[#allocation2 + $0xa8] sm:$0xff]  ;;  %v20250_v6 = vpack.c.bf16 %v3250_v0, %v3249_v10  ;;  %v3256_v10 = vld [vmem:[#allocation2 + $0x110] sm:$0xff] }
 0x242   : > { %16431 = vmatprep.mubr.msk.bf16.mxu1 %vm439_vm1, %v3265_v50  ;;  %v20229_v50 = vld [vmem:[%s22483_s3 + $0x30] sm:$0xff]   ;;  %v20248_v25 = vpack.c.bf16 %v3248_v49, %v3247_v36  ;;  %v3258_v49 = vld [vmem:[#allocation2 + $0x128] sm:$0xff] }
 0x243   : > { %v3255_v0 = vld [vmem:[#allocation2 + $0x108] sm:$0xff]  ;;  %v20266_v54 = vpack.c.bf16 %v3258_v49, %v3257_v1  ;;  %v3264_v49 = vld [vmem:[#allocation2 + $0x170] sm:$0xff] }
 0x244   : > { %v20264_v36 = vpack.c.bf16 %v3256_v10, %v3255_v0  ;;  %v3780_v1 = vld [vmem:[#allocation2 + $0x2] sm:$0xff]  ;;  %v3781_v10 = vld [vmem:[#allocation2 + $0xa] sm:$0xff] }
 0x245   : > { %v3263_v0 = vld [vmem:[#allocation2 + $0x168] sm:$0xff]  ;;  %v3812_v11 = vpack.c.bf16 %v3781_v10, %v3780_v1  ;;  %v3787_v10 = vld [vmem:[#allocation2 + $0x52] sm:$0xff] }
 0x246   : > { %v20280_v32 = vpack.c.bf16 %v3264_v49, %v3263_v0  ;;  %v3786_v1 = vld [vmem:[#allocation2 + $0x4a] sm:$0xff]  ;;  %v3788_v49 = vld [vmem:[#allocation2 + $0x62] sm:$0xff] }
 0x247   : > { %v3789_v0 = vld [vmem:[#allocation2 + $0x6a] sm:$0xff] }
 0x249   : > { %16432 = vmatmul.mubr.msk.bf16.vlgmr.msra.gmra.mrb[32].mxu1 %vm439_vm1, %v20214_v51 }
 0x24a   : > { %16464 = vmatpush3.bf16.msra.mxu1 %v19960_v33  ;;  %16435 = vmatprep.mubr.msk.bf16.mxu1 %vm439_vm1, %v20219_v61  ;;  %v3244_v33 = vld [vmem:[#allocation2 + $0x80] sm:$0xff] }
 0x24b   : > { %16465 = vmatprep.subr.bf16.mxu1 %v19025_v26  ;;  %v20240_v23 = vpack.c.bf16 %v3244_v33, %v3243_v21  ;;  %v3254_v33 = vld [vmem:[#allocation2 + $0xf8] sm:$0xff] }
 0x24c   : > { %v20258_v2 = vpack.c.bf16 %v3254_v33, %v3253_v45  ;;  %v3260_v45 = vld [vmem:[#allocation2 + $0x140] sm:$0xff]  ;;  %v3259_v33 = vld [vmem:[#allocation2 + $0x138] sm:$0xff] }
 0x24e   : > { %16466 = vmatpush3.bf16.msra.mxu1 %v19025_v26  ;;  %v20242_v26 = vpack.c.bf16 %v3246_v40, %v3245_v44  ;;  %v3252_v44 = vld [vmem:[#allocation2 + $0xe0] sm:$0xff]  ;;  %v3251_v40 = vld [vmem:[#allocation2 + $0xd8] sm:$0xff] }
 0x24f   : > { %16499 = vmatprep.subr.bf16.mxu1 %v20229_v50  ;;  %v20256_v21 = vpack.c.bf16 %v3252_v44, %v3251_v40  ;;  %v3262_v44 = vld [vmem:[#allocation2 + $0x158] sm:$0xff]  ;;  %v20272_v40 = vpack.c.bf16 %v3260_v45, %v3259_v33  ;;  %v3783_v45 = vld [vmem:[#allocation2 + $0x22] sm:$0xff] }
 0x250   : > { %v20274_v4 = vpack.c.bf16 %v3262_v44, %v3261_v38  ;;  %v3782_v38 = vld [vmem:[#allocation2 + $0x1a] sm:$0xff]  ;;  %v3784_v44 = vld [vmem:[#allocation2 + $0x32] sm:$0xff] }
 0x251   : > { %16436 = vmatmul.mubr.msk.bf16.gmra.mrb[36].mxu1 %vm439_vm1, %v20231_v43  ;;  %v3785_v33 = vld [vmem:[#allocation2 + $0x3a] sm:$0xff]  ;;  %v20285_v16 = vpack.c.bf16 %v3783_v45, %v3782_v38  ;;  %v20300_v38 = vpack.c.bf16 %v3787_v10, %v3786_v1  ;;  %v20302_v45 = vpack.c.bf16 %v3789_v0, %v3788_v49  ;;  %v3795_v1 = vld [vmem:[#allocation2 + $0xb2] sm:$0xff]  ;;  %v3796_v10 = vld [vmem:[#allocation2 + $0xc2] sm:$0xff] }
 0x252   : > { %16439 = vmatprep.mubr.msk.bf16.mxu1 %vm439_vm1, %v20234_v14  ;;  %v20290_v42 = vpack.c.bf16 %v3785_v33, %v3784_v44  ;;  %v3791_v44 = vld [vmem:[#allocation2 + $0x82] sm:$0xff]  ;;  %v3792_v33 = vld [vmem:[#allocation2 + $0x92] sm:$0xff]  ;;  %v3797_v49 = vld [vmem:[#allocation2 + $0xca] sm:$0xff] }
 0x253   : > { %v20310_v62 = vpack.c.bf16 %v3793_v18, %v3792_v33  ;;  %v20318_v57 = vpack.c.bf16 %v3797_v49, %v3796_v10  ;;  %v3798_v18 = vld [vmem:[#allocation2 + $0xda] sm:$0xff]  ;;  %v3804_v10 = vld [vmem:[#allocation2 + $0x122] sm:$0xff]  ;;  %v3805_v49 = vld [vmem:[#allocation2 + $0x12a] sm:$0xff] }
 0x254   : > { %v3801_v33 = vld [vmem:[#allocation2 + $0xfa] sm:$0xff]  ;;  %v20334_v9 = vpack.c.bf16 %v3805_v49, %v3804_v10  ;;  %v19029_v49 = vld [vmem:[%s22483_s3 + $0x48] sm:$0xff]  }
 0x259   : > { %16440 = vmatmul.mubr.msk.bf16.gmra.mrb[40].mxu1 %vm439_vm1, %v20240_v23 }
 0x25a   : > { %16443 = vmatprep.mubr.msk.bf16.mxu1 %vm439_vm1, %v20242_v26 }
 0x261   : > { %16444 = vmatmul.mubr.msk.bf16.gmra.mrb[44].mxu1 %vm439_vm1, %v20248_v25 }
 0x262   : > { %16447 = vmatprep.mubr.msk.bf16.mxu1 %vm439_vm1, %v20250_v6 }
 0x269   : > { %16448 = vmatmul.mubr.msk.bf16.gmra.mrb[48].mxu1 %vm439_vm1, %v20256_v21 }
 0x26a   : > { %16451 = vmatprep.mubr.msk.bf16.mxu1 %vm439_vm1, %v20258_v2 }
 0x271   : > { %16452 = vmatmul.mubr.msk.bf16.gmra.mrb[52].mxu1 %vm439_vm1, %v20264_v36 }
 0x272   : > { %16455 = vmatprep.mubr.msk.bf16.mxu1 %vm439_vm1, %v20266_v54 }
 0x279   : > { %16456 = vmatmul.mubr.msk.bf16.gmra.mrb[56].mxu1 %vm439_vm1, %v20272_v40 }
 0x27a   : > { %16459 = vmatprep.mubr.msk.bf16.mxu1 %vm439_vm1, %v20274_v4 }
 0x281   : > { %16460 = vmatmul.mubr.msk.bf16.gmra.mrb[60].mxu1 %vm439_vm1, %v20280_v32 }
 0x282   : > { %16467 = vmatprep.mubr.msk.bf16.mxu1 %vm439_vm1, %v3812_v11  ;;  %v19028_v11 = vld [vmem:[%s22483_s3 + $0x40] sm:$0xff]  }
 0x289   : > { %16468 = vmatmul.mubr.msk.bf16.vlgmr.msra.gmra.mrb[32].mxu1 %vm439_vm1, %v20285_v16 }
 0x28a   : > { %16500 = vmatpush3.bf16.msra.mxu1 %v20229_v50  ;;  %16471 = vmatprep.mubr.msk.bf16.mxu1 %vm439_vm1, %v20290_v42  ;;  %v3790_v50 = vld [vmem:[#allocation2 + $0x7a] sm:$0xff] }
 0x28b   : > { %16501 = vmatprep.subr.bf16.mxu1 %v19027_v56  ;;  %v20308_v58 = vpack.c.bf16 %v3791_v44, %v3790_v50  ;;  %v3799_v50 = vld [vmem:[#allocation2 + $0xe2] sm:$0xff]  ;;  %v3800_v44 = vld [vmem:[#allocation2 + $0xf2] sm:$0xff] }
 0x28c   : > { %v20324_v63 = vpack.c.bf16 %v3799_v50, %v3798_v18  ;;  %v20326_v28 = vpack.c.bf16 %v3801_v33, %v3800_v44  ;;  %v3806_v18 = vld [vmem:[#allocation2 + $0x13a] sm:$0xff]  ;;  %v3807_v50 = vld [vmem:[#allocation2 + $0x142] sm:$0xff]  ;;  %v3808_v44 = vld [vmem:[#allocation2 + $0x152] sm:$0xff] }
 0x28d   : > { %v3809_v33 = vld [vmem:[#allocation2 + $0x15a] sm:$0xff]  ;;  %v20340_v34 = vpack.c.bf16 %v3807_v50, %v3806_v18  ;;  %v19030_v18 = vld [vmem:[%s22483_s3 + $0x50] sm:$0xff]  }
 0x28e   : > { %16502 = vmatpush3.bf16.msra.mxu1 %v19027_v56  ;;  %v3794_v56 = vld [vmem:[#allocation2 + $0xaa] sm:$0xff]  ;;  %v20342_v20 = vpack.c.bf16 %v3809_v33, %v3808_v44  ;;  %v19031_v44 = vld [vmem:[%s22483_s3 + $0x58] sm:$0xff]   ;;  %v19032_v33 = vld [vmem:[%s22483_s3 + $0x60] sm:$0xff]  }
 0x28f   : > { %16535 = vmatprep.subr.bf16.mxu1 %v19028_v11  ;;  %v20316_v0 = vpack.c.bf16 %v3795_v1, %v3794_v56  ;;  %v3802_v56 = vld [vmem:[#allocation2 + $0x10a] sm:$0xff]  ;;  %v3803_v1 = vld [vmem:[#allocation2 + $0x112] sm:$0xff] }
 0x290   : > { %v20332_v27 = vpack.c.bf16 %v3803_v1, %v3802_v56  ;;  %v3810_v56 = vld [vmem:[#allocation2 + $0x16a] sm:$0xff]  ;;  %v3811_v1 = vld [vmem:[#allocation2 + $0x172] sm:$0xff] }
 0x291   : > { %16472 = vmatmul.mubr.msk.bf16.gmra.mrb[36].mxu1 %vm439_vm1, %v20300_v38  ;;  %v20348_v10 = vpack.c.bf16 %v3811_v1, %v3810_v56  ;;  %v5317_v56 = vld [vmem:[#allocation2 + $0x81] sm:$0xff]  ;;  %v5319_v1 = vld [vmem:[#allocation2 + $0x99] sm:$0xff] }
 0x292   : > { %16475 = vmatprep.mubr.msk.bf16.mxu1 %vm439_vm1, %v20302_v45 }
 0x299   : > { %16476 = vmatmul.mubr.msk.bf16.gmra.mrb[40].mxu1 %vm439_vm1, %v20308_v58 }
 0x29a   : > { %16479 = vmatprep.mubr.msk.bf16.mxu1 %vm439_vm1, %v20310_v62 }
 0x2a1   : > { %16480 = vmatmul.mubr.msk.bf16.gmra.mrb[44].mxu1 %vm439_vm1, %v20316_v0 }
 0x2a2   : > { %16483 = vmatprep.mubr.msk.bf16.mxu1 %vm439_vm1, %v20318_v57 }
 0x2a9   : > { %16484 = vmatmul.mubr.msk.bf16.gmra.mrb[48].mxu1 %vm439_vm1, %v20324_v63 }
 0x2aa   : > { %16487 = vmatprep.mubr.msk.bf16.mxu1 %vm439_vm1, %v20326_v28 }
 0x2b1   : > { %16488 = vmatmul.mubr.msk.bf16.gmra.mrb[52].mxu1 %vm439_vm1, %v20332_v27 }
 0x2b2   : > { %16491 = vmatprep.mubr.msk.bf16.mxu1 %vm439_vm1, %v20334_v9 }
 0x2b9   : > { %16492 = vmatmul.mubr.msk.bf16.gmra.mrb[56].mxu1 %vm439_vm1, %v20340_v34 }
 0x2ba   : > { %16495 = vmatprep.mubr.msk.bf16.mxu1 %vm439_vm1, %v20342_v20 }
 0x2c1   : > { %16496 = vmatmul.mubr.msk.bf16.gmra.mrb[60].mxu1 %vm439_vm1, %v20348_v10 }
 0x2c2   : > { %16503 = vmatprep.mubr.msk.bf16.mxu1 %vm439_vm1, %v20214_v51  ;;  %v4117_v51 = vld [vmem:[#allocation2 + $0x188] sm:$0xff] }
 0x2c9   : > { %16504 = vmatmul.mubr.msk.bf16.vlgmr.msra.gmra.mrb[32].mxu1 %vm439_vm1, %v20219_v61 }
 0x2ca   : > { %16536 = vmatpush3.bf16.msra.mxu1 %v19028_v11  ;;  %16507 = vmatprep.mubr.msk.bf16.mxu1 %vm439_vm1, %v20231_v43  ;;  %v4116_v11 = vld [vmem:[#allocation2 + $0x180] sm:$0xff] }
 0x2cb   : > { %16537 = vmatprep.subr.bf16.mxu1 %v19029_v49  ;;  %v20388_v50 = vpack.c.bf16 %v4117_v51, %v4116_v11  ;;  %v5318_v51 = vld [vmem:[#allocation2 + $0x91] sm:$0xff] }
 0x2cc   : > { %v5346_v11 = vpack.c.bf16 %v5319_v1, %v5318_v51 }
 0x2ce   : > { %16538 = vmatpush3.bf16.msra.mxu1 %v19029_v49  ;;  %v5316_v49 = vld [vmem:[#allocation2 + $0x79] sm:$0xff] }
 0x2cf   : > { %16571 = vmatprep.subr.bf16.mxu1 %v19030_v18 }
 0x2d1   : > { %16508 = vmatmul.mubr.msk.bf16.gmra.mrb[36].mxu1 %vm439_vm1, %v20234_v14 }
 0x2d2   : > { %16511 = vmatprep.mubr.msk.bf16.mxu1 %vm439_vm1, %v20240_v23 }
 0x2d9   : > { %16512 = vmatmul.mubr.msk.bf16.gmra.mrb[40].mxu1 %vm439_vm1, %v20242_v26 }
 0x2da   : > { %16515 = vmatprep.mubr.msk.bf16.mxu1 %vm439_vm1, %v20248_v25 }
 0x2e1   : > { %16516 = vmatmul.mubr.msk.bf16.gmra.mrb[44].mxu1 %vm439_vm1, %v20250_v6 }
 0x2e2   : > { %16519 = vmatprep.mubr.msk.bf16.mxu1 %vm439_vm1, %v20256_v21 }
 0x2e9   : > { %16520 = vmatmul.mubr.msk.bf16.gmra.mrb[48].mxu1 %vm439_vm1, %v20258_v2 }
 0x2ea   : > { %16523 = vmatprep.mubr.msk.bf16.mxu1 %vm439_vm1, %v20264_v36 }
 0x2f1   : > { %16524 = vmatmul.mubr.msk.bf16.gmra.mrb[52].mxu1 %vm439_vm1, %v20266_v54 }
 0x2f2   : > { %16527 = vmatprep.mubr.msk.bf16.mxu1 %vm439_vm1, %v20272_v40 }
 0x2f9   : > { %16528 = vmatmul.mubr.msk.bf16.gmra.mrb[56].mxu1 %vm439_vm1, %v20274_v4 }
 0x2fa   : > { %16531 = vmatprep.mubr.msk.bf16.mxu1 %vm439_vm1, %v20280_v32 }
 0x301   : > { %16532 = vmatmul.mubr.msk.bf16.gmra.mrb[60].mxu1 %vm439_vm1, %v20388_v50 }
 0x302   : > { %16539 = vmatprep.mubr.msk.bf16.mxu1 %vm439_vm1, %v19929_v30  ;;  %v4423_v30 = vld [vmem:[#allocation2 + $0x189] sm:$0xff] }
 0x309   : > { %16540 = vmatmul.mubr.msk.bf16.vlgmr.msra.gmra.mrb[32].mxu1 %vm439_vm1, %v19938_v60  ;;  %v4422_v60 = vld [vmem:[#allocation2 + $0x181] sm:$0xff] }
 0x30a   : > { %16572 = vmatpush3.bf16.msra.mxu1 %v19030_v18  ;;  %16543 = vmatprep.mubr.msk.bf16.mxu1 %vm439_vm1, %v19986_v47  ;;  %v19033_v47 = vld [vmem:[%s22483_s3 + $0x68] sm:$0xff]   ;;  %v5345_v18 = vpack.c.bf16 %v5317_v56, %v5316_v49 }
 0x30b   : > { %16573 = vmatprep.subr.bf16.mxu1 %v19031_v44 }
 0x30e   : > { %16574 = vmatpush3.bf16.msra.mxu1 %v19031_v44  ;;  %v5323_v44 = vld [vmem:[#allocation2 + $0xc9] sm:$0xff] }
 0x30f   : > { %16607 = vmatprep.subr.bf16.mxu1 %v19032_v33 }
 0x311   : > { %16544 = vmatmul.mubr.msk.bf16.gmra.mrb[36].mxu1 %vm439_vm1, %v19993_v8  ;;  %v19034_v8 = vld [vmem:[%s22483_s3 + $0x70] sm:$0xff]  }
 0x312   : > { %16547 = vmatprep.mubr.msk.bf16.mxu1 %vm439_vm1, %v20035_v19  ;;  %v4729_v19 = vld [vmem:[#allocation2 + $0x18a] sm:$0xff] }
 0x319   : > { %16548 = vmatmul.mubr.msk.bf16.gmra.mrb[40].mxu1 %vm439_vm1, %v20041_v35 }
 0x31a   : > { %16551 = vmatprep.mubr.msk.bf16.mxu1 %vm439_vm1, %v20083_v53  ;;  %v4728_v53 = vld [vmem:[#allocation2 + $0x182] sm:$0xff] }
 0x31b   : > { %v20468_v35 = vpack.c.bf16 %v4729_v19, %v4728_v53  ;;  %v5327_v53 = vld [vmem:[#allocation2 + $0xf9] sm:$0xff] }
 0x31c   : > { %v5324_v19 = vld [vmem:[#allocation2 + $0xd9] sm:$0xff] }
 0x321   : > { %16552 = vmatmul.mubr.msk.bf16.gmra.mrb[44].mxu1 %vm439_vm1, %v20089_v37  ;;  %v20428_v37 = vpack.c.bf16 %v4423_v30, %v4422_v60  ;;  %v5322_v60 = vld [vmem:[#allocation2 + $0xc1] sm:$0xff] }
 0x322   : > { %16555 = vmatprep.mubr.msk.bf16.mxu1 %vm439_vm1, %v20123_v31  ;;  %v19035_v31 = vld [vmem:[%s22483_s3 + $0x78] sm:$0xff]  }
 0x329   : > { %16556 = vmatmul.mubr.msk.bf16.gmra.mrb[48].mxu1 %vm439_vm1, %v20129_v29  ;;  %v5311_v29 = vld [vmem:[#allocation2 + $0x39] sm:$0xff] }
 0x32a   : > { %16559 = vmatprep.mubr.msk.bf16.mxu1 %vm439_vm1, %v20163_v52 }
 0x331   : > { %16560 = vmatmul.mubr.msk.bf16.gmra.mrb[52].mxu1 %vm439_vm1, %v20169_v13 }
 0x332   : > { %16563 = vmatprep.mubr.msk.bf16.mxu1 %vm439_vm1, %v20201_v39 }
 0x339   : > { %16564 = vmatmul.mubr.msk.bf16.gmra.mrb[56].mxu1 %vm439_vm1, %v20203_v55 }
 0x33a   : > { %16567 = vmatprep.mubr.msk.bf16.mxu1 %vm439_vm1, %v20209_v24 }
 0x341   : > { %16568 = vmatmul.mubr.msk.bf16.gmra.mrb[60].mxu1 %vm439_vm1, %v20428_v37 }
 0x342   : > { %16575 = vmatprep.mubr.msk.bf16.mxu1 %vm439_vm1, %v20285_v16  ;;  %v19036_v16 = vld [vmem:[%s22483_s3 + $0x80] sm:$0xff]  }
 0x349   : > { %16576 = vmatmul.mubr.msk.bf16.vlgmr.msra.gmra.mrb[32].mxu1 %vm439_vm1, %v20290_v42 }
 0x34a   : > { %16608 = vmatpush3.bf16.msra.mxu1 %v19032_v33  ;;  %16579 = vmatprep.mubr.msk.bf16.mxu1 %vm439_vm1, %v20300_v38  ;;  %v5320_v33 = vld [vmem:[#allocation2 + $0xa9] sm:$0xff] }
 0x34b   : > { %16609 = vmatprep.subr.bf16.mxu1 %v19033_v47 }
 0x34e   : > { %16610 = vmatpush3.bf16.msra.mxu1 %v19033_v47  ;;  %v5348_v47 = vpack.c.bf16 %v5323_v44, %v5322_v60  ;;  %v20605_v60 = vld [vmem:[%s22485_s5 + $0x8] sm:$0xf] }
 0x34f   : > { %16643 = vmatprep.subr.bf16.mxu1 %v19034_v8 }
 0x351   : > { %16580 = vmatmul.mubr.msk.bf16.gmra.mrb[36].mxu1 %vm439_vm1, %v20302_v45 }
 0x352   : > { %16583 = vmatprep.mubr.msk.bf16.mxu1 %vm439_vm1, %v20308_v58 }
 0x359   : > { %16584 = vmatmul.mubr.msk.bf16.gmra.mrb[40].mxu1 %vm439_vm1, %v20310_v62 }
 0x35a   : > { %16587 = vmatprep.mubr.msk.bf16.mxu1 %vm439_vm1, %v20316_v0 }
 0x361   : > { %16588 = vmatmul.mubr.msk.bf16.gmra.mrb[44].mxu1 %vm439_vm1, %v20318_v57 }
 0x362   : > { %16591 = vmatprep.mubr.msk.bf16.mxu1 %vm439_vm1, %v20324_v63 }
 0x369   : > { %16592 = vmatmul.mubr.msk.bf16.gmra.mrb[48].mxu1 %vm439_vm1, %v20326_v28 }
 0x36a   : > { %16595 = vmatprep.mubr.msk.bf16.mxu1 %vm439_vm1, %v20332_v27 }
 0x371   : > { %16596 = vmatmul.mubr.msk.bf16.gmra.mrb[52].mxu1 %vm439_vm1, %v20334_v9 }
 0x372   : > { %16599 = vmatprep.mubr.msk.bf16.mxu1 %vm439_vm1, %v20340_v34 }
 0x379   : > { %16600 = vmatmul.mubr.msk.bf16.gmra.mrb[56].mxu1 %vm439_vm1, %v20342_v20 }
 0x37a   : > { %16603 = vmatprep.mubr.msk.bf16.mxu1 %vm439_vm1, %v20348_v10 }
 0x381   : > { %16604 = vmatmul.mubr.msk.bf16.gmra.mrb[60].mxu1 %vm439_vm1, %v20468_v35 }
 0x382   : > { %16611 = vmatprep.mubr.msk.bf16.mxu1 %vm439_vm1, %v20219_v61 }
 0x389   : > { %16612 = vmatmul.mubr.msk.bf16.vlgmr.msra.gmra.mrb[32].mxu1 %vm439_vm1, %v20231_v43 }
 0x38a   : > { %16644 = vmatpush3.bf16.msra.mxu1 %v19034_v8  ;;  %16615 = vmatprep.mubr.msk.bf16.mxu1 %vm439_vm1, %v20234_v14  ;;  %v5315_v14 = vld [vmem:[#allocation2 + $0x69] sm:$0xff]  ;;  %v5325_v8 = vld [vmem:[#allocation2 + $0xe1] sm:$0xff] }
 0x38b   : > { %16645 = vmatprep.subr.bf16.mxu1 %v19035_v31 }
 0x38e   : > { %16646 = vmatpush3.bf16.msra.mxu1 %v19035_v31  ;;  %v5349_v31 = vpack.c.bf16 %v5325_v8, %v5324_v19 }
 0x38f   : > { %16679 = vmatprep.subr.bf16.mxu1 %v19036_v16 }
 0x391   : > { %16616 = vmatmul.mubr.msk.bf16.gmra.mrb[36].mxu1 %vm439_vm1, %v20240_v23  ;;  %v5035_v23 = vld [vmem:[#allocation2 + $0x1a0] sm:$0xff] }
 0x392   : > { %16619 = vmatprep.mubr.msk.bf16.mxu1 %vm439_vm1, %v20242_v26  ;;  %v5312_v26 = vld [vmem:[#allocation2 + $0x49] sm:$0xff] }
 0x399   : > { %16620 = vmatmul.mubr.msk.bf16.gmra.mrb[40].mxu1 %vm439_vm1, %v20248_v25 }
 0x39a   : > { %16623 = vmatprep.mubr.msk.bf16.mxu1 %vm439_vm1, %v20250_v6  ;;  %v5034_v6 = vld [vmem:[#allocation2 + $0x198] sm:$0xff] }
 0x39b   : > { %v5051_v61 = vpack.c.bf16 %v5035_v23, %v5034_v6  ;;  %v5340_v23 = vld [vmem:[#allocation2 + $0x199] sm:$0xff] }
 0x3a1   : > { %16624 = vmatmul.mubr.msk.bf16.gmra.mrb[44].mxu1 %vm439_vm1, %v20256_v21  ;;  %v5314_v21 = vld [vmem:[#allocation2 + $0x61] sm:$0xff] }
 0x3a2   : > { %16627 = vmatprep.mubr.msk.bf16.mxu1 %vm439_vm1, %v20258_v2  ;;  %v5310_v2 = vld [vmem:[#allocation2 + $0x31] sm:$0xff] }
 0x3a3   : > { %v5342_v43 = vpack.c.bf16 %v5311_v29, %v5310_v2 }
 0x3a9   : > { %16628 = vmatmul.mubr.msk.bf16.gmra.mrb[48].mxu1 %vm439_vm1, %v20264_v36  ;;  %v19037_v36 = vld [vmem:[%s22483_s3 + $0x88] sm:$0xff]  }
 0x3aa   : > { %16631 = vmatprep.mubr.msk.bf16.mxu1 %vm439_vm1, %v20266_v54  ;;  %v14791_v54 = vld [vmem:[%s22485_s5 + $0x4] sm:$0xf] }
 0x3ab   : > { %18960 = vmatprep.subr.msk.bf16.mxu0 %vm6173_vm5, %v14791_v54 }
 0x3b1   : > { %16632 = vmatmul.mubr.msk.bf16.gmra.mrb[52].mxu1 %vm439_vm1, %v20272_v40  ;;  %v5344_v40 = vpack.c.bf16 %v5315_v14, %v5314_v21 }
 0x3b2   : > { %16635 = vmatprep.mubr.msk.bf16.mxu1 %vm439_vm1, %v20274_v4  ;;  %v5313_v4 = vld [vmem:[#allocation2 + $0x51] sm:$0xff] }
 0x3b3   : > { %v5343_v25 = vpack.c.bf16 %v5313_v4, %v5312_v26 }
 0x3b9   : > { %16636 = vmatmul.mubr.msk.bf16.gmra.mrb[56].mxu1 %vm439_vm1, %v20280_v32  ;;  %v6175_v32 = vsel %vm6173_vm5, %v14791_v54, 0 }
 0x3ba   : > { %16639 = vmatprep.mubr.msk.bf16.mxu1 %vm439_vm1, %v20388_v50  ;;  %16716 = vmatpush3.bf16.msra.mxu0 %v6175_v32  ;;  %v5321_v50 = vld [vmem:[#allocation2 + $0xb1] sm:$0xff] }
 0x3bb   : > { %v5347_v30 = vpack.c.bf16 %v5321_v50, %v5320_v33 }
 0x3c1   : > { %16640 = vmatmul.mubr.msk.bf16.gmra.mrb[60].mxu1 %vm439_vm1, %v5051_v61  ;;  %v5341_v61 = vld [vmem:[#allocation2 + $0x1a1] sm:$0xff] }
 0x3c2   : > { %16647 = vmatprep.mubr.msk.bf16.mxu1 %vm439_vm1, %v5342_v43  ;;  %v5357_v29 = vpack.c.bf16 %v5341_v61, %v5340_v23 }
 0x3c9   : > { %16648 = vmatmul.mubr.msk.bf16.vlgmr.msra.gmra.mrb[32].mxu1 %vm439_vm1, %v5343_v25 }
 0x3ca   : > { %16680 = vmatpush3.bf16.msra.mxu1 %v19036_v16  ;;  %16651 = vmatprep.mubr.msk.bf16.mxu1 %vm439_vm1, %v5344_v40  ;;  %v5326_v16 = vld [vmem:[#allocation2 + $0xf1] sm:$0xff] }
 0x3cb   : > { %16681 = vmatprep.subr.bf16.mxu1 %v19037_v36  ;;  %v5350_v6 = vpack.c.bf16 %v5327_v53, %v5326_v16 }
 0x3ce   : > { %16682 = vmatpush3.bf16.msra.mxu1 %v19037_v36 }
 0x3d1   : > { %16652 = vmatmul.mubr.msk.bf16.gmra.mrb[36].mxu1 %vm439_vm1, %v5345_v18 }
 0x3d2   : > { %16655 = vmatprep.mubr.msk.bf16.mxu1 %vm439_vm1, %v5346_v11 }
 0x3d9   : > { %16656 = vmatmul.mubr.msk.bf16.gmra.mrb[40].mxu1 %vm439_vm1, %v5347_v30 }
 0x3da   : > { %16659 = vmatprep.mubr.msk.bf16.mxu1 %vm439_vm1, %v5348_v47 }
 0x3e1   : > { %16660 = vmatmul.mubr.msk.bf16.gmra.mrb[44].mxu1 %vm439_vm1, %v5349_v31 }
 0x3e2   : > { %16663 = vmatprep.mubr.msk.bf16.mxu1 %vm439_vm1, %v5350_v6 }
 0x3e9   : > { %16664 = vmatmul.mubr.msk.bf16.gmra.mrb[48].mxu1 %vm439_vm1, %v20163_v52 }
 0x3ea   : > { %16667 = vmatprep.mubr.msk.bf16.mxu1 %vm439_vm1, %v20169_v13 }
 0x3f1   : > { %16668 = vmatmul.mubr.msk.bf16.gmra.mrb[52].mxu1 %vm439_vm1, %v20201_v39 }
 0x3f2   : > { %16671 = vmatprep.mubr.msk.bf16.mxu1 %vm439_vm1, %v20203_v55 }
 0x3f9   : > { %16672 = vmatmul.mubr.msk.bf16.gmra.mrb[56].mxu1 %vm439_vm1, %v20209_v24 }
 0x3fa   : > { %16675 = vmatprep.mubr.msk.bf16.mxu1 %vm439_vm1, %v20428_v37 }
 0x401   : > { %16676 = vmatmul.mubr.msk.bf16.gmra.mrb[60].mxu1 %vm439_vm1, %v5357_v29 }
 0x402   : > { %16683 = vmatprep.mubr.msk.bf16.mxu1 %vm439_vm1, %v20290_v42  ;;  %v5646_v42 = vld [vmem:[#allocation2 + $0x19a] sm:$0xff] }
 0x409   : > { %16684 = vmatmul.mubr.msk.bf16.vlgmr.msra.gmra.mrb[32].mxu1 %vm439_vm1, %v20300_v38 }
 0x40a   : > { %16687 = vmatprep.mubr.msk.bf16.mxu1 %vm439_vm1, %v20302_v45 }
 0x411   : > { %16688 = vmatmul.mubr.msk.bf16.gmra.mrb[36].mxu1 %vm439_vm1, %v20308_v58 }
 0x412   : > { %16691 = vmatprep.mubr.msk.bf16.mxu1 %vm439_vm1, %v20310_v62 }
 0x419   : > { %16692 = vmatmul.mubr.msk.bf16.gmra.mrb[40].mxu1 %vm439_vm1, %v20316_v0 }
 0x41a   : > { %16695 = vmatprep.mubr.msk.bf16.mxu1 %vm439_vm1, %v20318_v57  ;;  %v6076_v57 = vld [vmem:[#allocation2 + $0x9] sm:$0xff] }
 0x421   : > { %16696 = vmatmul.mubr.msk.bf16.gmra.mrb[44].mxu1 %vm439_vm1, %v20324_v63 }
 0x422   : > { %16699 = vmatprep.mubr.msk.bf16.mxu1 %vm439_vm1, %v20326_v28  ;;  %v5647_v28 = vld [vmem:[#allocation2 + $0x1a2] sm:$0xff] }
 0x423   : > { %v5663_v63 = vpack.c.bf16 %v5647_v28, %v5646_v42 }
 0x429   : > { %16700 = vmatmul.mubr.msk.bf16.gmra.mrb[48].mxu1 %vm439_vm1, %v20332_v27  ;;  %v6075_v27 = vld [vmem:[#allocation2 + $0x1] sm:$0xff] }
 0x42a   : > { %16703 = vmatprep.mubr.msk.bf16.mxu1 %vm439_vm1, %v20334_v9  ;;  %v6107_v9 = vpack.c.bf16 %v6076_v57, %v6075_v27 }
 0x42c   : > { %16717 = vmatprep.mubr.msk.bf16.mxu0 %vm5993_vm6, %v6107_v9 }
 0x431   : > { %16704 = vmatmul.mubr.msk.bf16.gmra.mrb[52].mxu1 %vm439_vm1, %v20340_v34  ;;  %v20578_v34 = vld [vmem:[%s22484_s4] ss:$0 sm:$0xff] }
 0x432   : > { %16707 = vmatprep.mubr.msk.bf16.mxu1 %vm439_vm1, %v20342_v20  ;;  %v6074_v20 = vld [vmem:[%s22485_s5] sm:$0xf] }
 0x433   : > { %18961 = vmatprep.subr.msk.bf16.mxu0 %vm6173_vm5, %v6074_v20  ;;  %v6387_v11 = vsel %vm6173_vm5, %v6074_v20, 0 }
 0x439   : > { %16708 = vmatmul.mubr.msk.bf16.gmra.mrb[56].mxu1 %vm439_vm1, %v20348_v10 }
 0x43a   : > { %16711 = vmatprep.mubr.msk.bf16.mxu1 %vm439_vm1, %v20468_v35 }
 0x441   : > { %16712 = vmatmul.mubr.msk.bf16.gmra.mrb[60].mxu1 %vm439_vm1, %v5663_v63 }
 0x4dc   : > { %v16685_v62 = vpop.f32.mrb[32].mxu1 }
 0x4dd   : > { %v5931_v58 = vadd.f32 %v16685_v62, %v20578_v34  ;;  %v5763_v52 = vpop.f32.mrb[33].mxu1 }
 0x4de   : > { %v5929_v13 = vadd.f32 %v20578_v34, %v5763_v52  ;;  %v16686_v24 = vpop.f32.mrb[34].mxu1 }
 0x4df   : > { %v5963_v39 = vmax.f32 %v5931_v58, 0.0  ;;  %v5932_v55 = vadd.f32 %v16686_v24, %v20578_v34  ;;  %v5766_v38 = vpop.f32.mrb[35].mxu1 }
 0x4e0   : > { %v5961_v45 = vmax.f32 %v5929_v13, 0.0  ;;  %v5930_v0 = vadd.f32 %v20578_v34, %v5766_v38 }
 0x4e1   : > { %v5964_v10 = vmax.f32 %v5932_v55, 0.0  ;;  %5996 = vst.msk [vmem:[#allocation2 + $0x31] sm:$0xff] %vm5993_vm6, %v5963_v39 }
 0x4e2   : > { %v5962_v37 = vmax.f32 %v5930_v0, 0.0  ;;  %5994 = vst.msk [vmem:[#allocation2 + $0x19] sm:$0xff] %vm5993_vm6, %v5961_v45 }
 0x4e3   : > { %5997 = vst.msk [vmem:[#allocation2 + $0x39] sm:$0xff] %vm5993_vm6, %v5964_v10 }
 0x4e4   : > { %v16689_v35 = vpop.f32.mrb[36].mxu1  ;;  %5995 = vst.msk [vmem:[#allocation2 + $0x21] sm:$0xff] %vm5993_vm6, %v5962_v37 }
 0x4e5   : > { %v5935_v2 = vadd.f32 %v16689_v35, %v20578_v34  ;;  %v5779_v43 = vpop.f32.mrb[37].mxu1 }
 0x4e6   : > { %v5933_v54 = vadd.f32 %v20578_v34, %v5779_v43  ;;  %v16690_v32 = vpop.f32.mrb[38].mxu1 }
 0x4e7   : > { %v5967_v4 = vmax.f32 %v5935_v2, 0.0  ;;  %v5936_v14 = vadd.f32 %v16690_v32, %v20578_v34  ;;  %v5782_v26 = vpop.f32.mrb[39].mxu1 }
 0x4e8   : > { %v5965_v25 = vmax.f32 %v5933_v54, 0.0  ;;  %v5934_v21 = vadd.f32 %v20578_v34, %v5782_v26  ;;  %v6079_v50 = vld [vmem:[#allocation2 + $0x31] sm:$0xff] }
 0x4e9   : > { %v5968_v36 = vmax.f32 %v5936_v14, 0.0  ;;  %6000 = vst.msk [vmem:[#allocation2 + $0x61] sm:$0xff] %vm5993_vm6, %v5967_v4  ;;  %v6077_v1 = vld [vmem:[#allocation2 + $0x19] sm:$0xff] }
 0x4ea   : > { %v5966_v40 = vmax.f32 %v5934_v21, 0.0  ;;  %5998 = vst.msk [vmem:[#allocation2 + $0x49] sm:$0xff] %vm5993_vm6, %v5965_v25  ;;  %v6080_v56 = vld [vmem:[#allocation2 + $0x39] sm:$0xff] }
 0x4eb   : > { %6001 = vst.msk [vmem:[#allocation2 + $0x69] sm:$0xff] %vm5993_vm6, %v5968_v36  ;;  %v6078_v49 = vld [vmem:[#allocation2 + $0x21] sm:$0xff]  ;;  %v20600_v30 = vpack.c.bf16 %v6080_v56, %v6079_v50 }
 0x4ec   : > { %v16693_v18 = vpop.f32.mrb[40].mxu1  ;;  %5999 = vst.msk [vmem:[#allocation2 + $0x51] sm:$0xff] %vm5993_vm6, %v5966_v40  ;;  %v20596_v51 = vpack.c.bf16 %v6078_v49, %v6077_v1 }
 0x4ed   : > { %v5939_v44 = vadd.f32 %v16693_v18, %v20578_v34  ;;  %v5795_v33 = vpop.f32.mrb[41].mxu1 }
 0x4ee   : > { %v5937_v47 = vadd.f32 %v20578_v34, %v5795_v33  ;;  %v16694_v8 = vpop.f32.mrb[42].mxu1  ;;  %16718 = vmatmul.mubr.msk.bf16.vlgmr.msra.gmra.mrb[32].mxu0 %vm5993_vm6, %v20596_v51 }
 0x4ef   : > { %v5971_v53 = vmax.f32 %v5939_v44, 0.0  ;;  %v5940_v19 = vadd.f32 %v16694_v8, %v20578_v34  ;;  %16750 = vmatpush3.bf16.msra.mxu0 %v6387_v11  ;;  %v5798_v31 = vpop.f32.mrb[43].mxu1  ;;  %16721 = vmatprep.mubr.msk.bf16.mxu0 %vm5993_vm6, %v20600_v30 }
 0x4f0   : > { %v5969_v16 = vmax.f32 %v5937_v47, 0.0  ;;  %v5938_v6 = vadd.f32 %v20578_v34, %v5798_v31  ;;  %18962 = vmatprep.subr.msk.bf16.mxu0 %vm6173_vm5, %v20605_v60  ;;  %v6083_v57 = vld [vmem:[#allocation2 + $0x61] sm:$0xff] }
 0x4f1   : > { %6004 = vst.msk [vmem:[#allocation2 + $0x91] sm:$0xff] %vm5993_vm6, %v5971_v53  ;;  %v5972_v23 = vmax.f32 %v5940_v19, 0.0  ;;  %v6081_v42 = vld [vmem:[#allocation2 + $0x49] sm:$0xff] }
 0x4f2   : > { %6002 = vst.msk [vmem:[#allocation2 + $0x79] sm:$0xff] %vm5993_vm6, %v5969_v16  ;;  %v5970_v61 = vmax.f32 %v5938_v6, 0.0  ;;  %v6084_v29 = vld [vmem:[#allocation2 + $0x69] sm:$0xff] }
 0x4f3   : > { %6005 = vst.msk [vmem:[#allocation2 + $0x99] sm:$0xff] %vm5993_vm6, %v5972_v23  ;;  %v6082_v28 = vld [vmem:[#allocation2 + $0x51] sm:$0xff]  ;;  %v20623_v62 = vpack.c.bf16 %v6084_v29, %v6083_v57 }
 0x4f4   : > { %6003 = vst.msk [vmem:[#allocation2 + $0x81] sm:$0xff] %vm5993_vm6, %v5970_v61  ;;  %v16697_v63 = vpop.f32.mrb[44].mxu1  ;;  %v20620_v27 = vpack.c.bf16 %v6082_v28, %v6081_v42 }
 0x4f5   : > { %v5943_v9 = vadd.f32 %v16697_v63, %v20578_v34  ;;  %v5811_v20 = vpop.f32.mrb[45].mxu1 }
 0x4f6   : > { %v5941_v58 = vadd.f32 %v20578_v34, %v5811_v20  ;;  %v16698_v52 = vpop.f32.mrb[46].mxu1  ;;  %16722 = vmatmul.mubr.msk.bf16.gmra.mrb[36].mxu0 %vm5993_vm6, %v20620_v27 }
 0x4f7   : > { %v5975_v13 = vmax.f32 %v5943_v9, 0.0  ;;  %v5944_v24 = vadd.f32 %v16698_v52, %v20578_v34  ;;  %v5814_v39 = vpop.f32.mrb[47].mxu1  ;;  %16725 = vmatprep.mubr.msk.bf16.mxu0 %vm5993_vm6, %v20623_v62 }
 0x4f8   : > { %v5973_v55 = vmax.f32 %v5941_v58, 0.0  ;;  %v5942_v38 = vadd.f32 %v20578_v34, %v5814_v39  ;;  %v6087_v54 = vld [vmem:[#allocation2 + $0x91] sm:$0xff] }
 0x4f9   : > { %6008 = vst.msk [vmem:[#allocation2 + $0xc1] sm:$0xff] %vm5993_vm6, %v5975_v13  ;;  %v5976_v45 = vmax.f32 %v5944_v24, 0.0  ;;  %v6085_v37 = vld [vmem:[#allocation2 + $0x79] sm:$0xff] }
 0x4fa   : > { %6006 = vst.msk [vmem:[#allocation2 + $0xa9] sm:$0xff] %vm5993_vm6, %v5973_v55  ;;  %v5974_v0 = vmax.f32 %v5942_v38, 0.0  ;;  %v6088_v10 = vld [vmem:[#allocation2 + $0x99] sm:$0xff] }
 0x4fb   : > { %6009 = vst.msk [vmem:[#allocation2 + $0xc9] sm:$0xff] %vm5993_vm6, %v5976_v45  ;;  %v6086_v35 = vld [vmem:[#allocation2 + $0x81] sm:$0xff]  ;;  %v20639_v14 = vpack.c.bf16 %v6088_v10, %v6087_v54 }
 0x4fc   : > { %6007 = vst.msk [vmem:[#allocation2 + $0xb1] sm:$0xff] %vm5993_vm6, %v5974_v0  ;;  %v16701_v2 = vpop.f32.mrb[48].mxu1  ;;  %v20636_v43 = vpack.c.bf16 %v6086_v35, %v6085_v37 }
 0x4fd   : > { %v5947_v32 = vadd.f32 %v16701_v2, %v20578_v34  ;;  %v5827_v4 = vpop.f32.mrb[49].mxu1 }
 0x4fe   : > { %v5945_v26 = vadd.f32 %v20578_v34, %v5827_v4  ;;  %v16702_v25 = vpop.f32.mrb[50].mxu1  ;;  %16726 = vmatmul.mubr.msk.bf16.gmra.mrb[40].mxu0 %vm5993_vm6, %v20636_v43 }
 0x4ff   : > { %v5979_v21 = vmax.f32 %v5947_v32, 0.0  ;;  %v5948_v36 = vadd.f32 %v16702_v25, %v20578_v34  ;;  %v5830_v40 = vpop.f32.mrb[51].mxu1  ;;  %16729 = vmatprep.mubr.msk.bf16.mxu0 %vm5993_vm6, %v20639_v14 }
 0x500   : > { %v5977_v56 = vmax.f32 %v5945_v26, 0.0  ;;  %v5946_v1 = vadd.f32 %v20578_v34, %v5830_v40  ;;  %v6091_v8 = vld [vmem:[#allocation2 + $0xc1] sm:$0xff] }
 0x501   : > { %6012 = vst.msk [vmem:[#allocation2 + $0xf1] sm:$0xff] %vm5993_vm6, %v5979_v21  ;;  %v5980_v49 = vmax.f32 %v5948_v36, 0.0  ;;  %v6089_v50 = vld [vmem:[#allocation2 + $0xa9] sm:$0xff] }
 0x502   : > { %6010 = vst.msk [vmem:[#allocation2 + $0xd9] sm:$0xff] %vm5993_vm6, %v5977_v56  ;;  %v5978_v18 = vmax.f32 %v5946_v1, 0.0  ;;  %v6092_v11 = vld [vmem:[#allocation2 + $0xc9] sm:$0xff] }
 0x503   : > { %6013 = vst.msk [vmem:[#allocation2 + $0xf9] sm:$0xff] %vm5993_vm6, %v5980_v49  ;;  %v6090_v44 = vld [vmem:[#allocation2 + $0xb1] sm:$0xff]  ;;  %v20655_v31 = vpack.c.bf16 %v6092_v11, %v6091_v8 }
 0x504   : > { %6011 = vst.msk [vmem:[#allocation2 + $0xe1] sm:$0xff] %vm5993_vm6, %v5978_v18  ;;  %v16705_v33 = vpop.f32.mrb[52].mxu1  ;;  %v20652_v47 = vpack.c.bf16 %v6090_v44, %v6089_v50 }
 0x505   : > { %v5951_v53 = vadd.f32 %v16705_v33, %v20578_v34  ;;  %v5843_v19 = vpop.f32.mrb[53].mxu1 }
 0x506   : > { %v5949_v16 = vadd.f32 %v20578_v34, %v5843_v19  ;;  %v16706_v6 = vpop.f32.mrb[54].mxu1  ;;  %16730 = vmatmul.mubr.msk.bf16.gmra.mrb[44].mxu0 %vm5993_vm6, %v20652_v47 }
 0x507   : > { %v5983_v23 = vmax.f32 %v5951_v53, 0.0  ;;  %v5952_v61 = vadd.f32 %v16706_v6, %v20578_v34  ;;  %v5846_v29 = vpop.f32.mrb[55].mxu1  ;;  %16733 = vmatprep.mubr.msk.bf16.mxu0 %vm5993_vm6, %v20655_v31 }
 0x508   : > { %v5981_v42 = vmax.f32 %v5949_v16, 0.0  ;;  %v5950_v28 = vadd.f32 %v20578_v34, %v5846_v29  ;;  %v6095_v24 = vld [vmem:[#allocation2 + $0xf1] sm:$0xff] }
 0x509   : > { %6016 = vst.msk [vmem:[#allocation2 + $0x121] sm:$0xff] %vm5993_vm6, %v5983_v23  ;;  %v5984_v63 = vmax.f32 %v5952_v61, 0.0  ;;  %v6093_v20 = vld [vmem:[#allocation2 + $0xd9] sm:$0xff] }
 0x50a   : > { %6014 = vst.msk [vmem:[#allocation2 + $0x109] sm:$0xff] %vm5993_vm6, %v5981_v42  ;;  %v5982_v57 = vmax.f32 %v5950_v28, 0.0  ;;  %v6096_v9 = vld [vmem:[#allocation2 + $0xf9] sm:$0xff] }
 0x50b   : > { %6017 = vst.msk [vmem:[#allocation2 + $0x129] sm:$0xff] %vm5993_vm6, %v5984_v63  ;;  %v6094_v58 = vld [vmem:[#allocation2 + $0xe1] sm:$0xff]  ;;  %v20671_v38 = vpack.c.bf16 %v6096_v9, %v6095_v24 }
 0x50c   : > { %6015 = vst.msk [vmem:[#allocation2 + $0x111] sm:$0xff] %vm5993_vm6, %v5982_v57  ;;  %v16709_v52 = vpop.f32.mrb[56].mxu1  ;;  %v20668_v13 = vpack.c.bf16 %v6094_v58, %v6093_v20  ;;  %v6027_v57 = vld [vmem:[#allocation2 + $0x8] sm:$0xff]  ;;  %v6029_v24 = vld [vmem:[#allocation2 + $0x20] sm:$0xff] }
 0x50d   : > { %v5955_v39 = vadd.f32 %v16709_v52, %v20578_v34  ;;  %v5859_v55 = vpop.f32.mrb[57].mxu1 }
 0x50e   : > { %v5953_v45 = vadd.f32 %v20578_v34, %v5859_v55  ;;  %v16710_v0 = vpop.f32.mrb[58].mxu1  ;;  %16734 = vmatmul.mubr.msk.bf16.gmra.mrb[48].mxu0 %vm5993_vm6, %v20668_v13  ;;  %v6028_v55 = vld [vmem:[#allocation2 + $0x18] sm:$0xff] }
 0x50f   : > { %v5987_v10 = vmax.f32 %v5955_v39, 0.0  ;;  %v5956_v37 = vadd.f32 %v16710_v0, %v20578_v34  ;;  %v5862_v35 = vpop.f32.mrb[59].mxu1  ;;  %16737 = vmatprep.mubr.msk.bf16.mxu0 %vm5993_vm6, %v20671_v38  ;;  %v6031_v39 = vld [vmem:[#allocation2 + $0x38] sm:$0xff]  ;;  %v6649_v0 = vsel %vm6173_vm5, %v20605_v60, 0  ;;  %v6035_v60 = vld [vmem:[#allocation2 + $0x68] sm:$0xff] }
 0x510   : > { %v5985_v2 = vmax.f32 %v5953_v45, 0.0  ;;  %v5954_v54 = vadd.f32 %v20578_v34, %v5862_v35  ;;  %v6099_v56 = vld [vmem:[#allocation2 + $0x121] sm:$0xff]  ;;  %v20713_v45 = vpack.c.bf16 %v6029_v24, %v6028_v55  ;;  %v20722_v35 = vld [vmem:[%s22485_s5 + $0xc] sm:$0xf] }
 0x511   : > { %6020 = vst.msk [vmem:[#allocation2 + $0x151] sm:$0xff] %vm5993_vm6, %v5987_v10  ;;  %v5988_v32 = vmax.f32 %v5956_v37, 0.0  ;;  %v6097_v25 = vld [vmem:[#allocation2 + $0x109] sm:$0xff] }
 0x512   : > { %6018 = vst.msk [vmem:[#allocation2 + $0x139] sm:$0xff] %vm5993_vm6, %v5985_v2  ;;  %v5986_v4 = vmax.f32 %v5954_v54, 0.0  ;;  %v6100_v26 = vld [vmem:[#allocation2 + $0x129] sm:$0xff] }
 0x513   : > { %6021 = vst.msk [vmem:[#allocation2 + $0x159] sm:$0xff] %vm5993_vm6, %v5988_v32  ;;  %v6098_v21 = vld [vmem:[#allocation2 + $0x111] sm:$0xff]  ;;  %v20687_v18 = vpack.c.bf16 %v6100_v26, %v6099_v56  ;;  %v6032_v54 = vld [vmem:[#allocation2 + $0x48] sm:$0xff] }
 0x514   : > { %6019 = vst.msk [vmem:[#allocation2 + $0x141] sm:$0xff] %vm5993_vm6, %v5986_v4  ;;  %v16713_v36 = vpop.f32.mrb[60].mxu1  ;;  %v20684_v40 = vpack.c.bf16 %v6098_v21, %v6097_v25  ;;  %v6030_v10 = vld [vmem:[#allocation2 + $0x30] sm:$0xff]  ;;  %v6034_v4 = vld [vmem:[#allocation2 + $0x60] sm:$0xff]  ;;  %v6039_v21 = vld [vmem:[#allocation2 + $0x98] sm:$0xff] }
 0x515   : > { %v5959_v1 = vadd.f32 %v16713_v36, %v20578_v34  ;;  %v5875_v49 = vpop.f32.mrb[61].mxu1  ;;  %v20717_v37 = vpack.c.bf16 %v6031_v39, %v6030_v10  ;;  %v6033_v2 = vld [vmem:[#allocation2 + $0x50] sm:$0xff]  ;;  %v20732_v26 = vpack.c.bf16 %v6035_v60, %v6034_v4  ;;  %v6037_v25 = vld [vmem:[#allocation2 + $0x80] sm:$0xff]  ;;  %v6036_v36 = vld [vmem:[#allocation2 + $0x78] sm:$0xff] }
 0x516   : > { %v5957_v11 = vadd.f32 %v20578_v34, %v5875_v49  ;;  %v16714_v50 = vpop.f32.mrb[62].mxu1  ;;  %16738 = vmatmul.mubr.msk.bf16.gmra.mrb[52].mxu0 %vm5993_vm6, %v20684_v40  ;;  %v20730_v32 = vpack.c.bf16 %v6033_v2, %v6032_v54  ;;  %v20738_v56 = vpack.c.bf16 %v6037_v25, %v6036_v36  ;;  %v6550_v60 = vld [vmem:[#allocation2 + $0x2] sm:$0xff]  ;;  %v6551_v54 = vld [vmem:[#allocation2 + $0xa] sm:$0xff] }
 0x517   : > { %v5991_v44 = vmax.f32 %v5959_v1, 0.0  ;;  %v5960_v33 = vadd.f32 %v16714_v50, %v20578_v34  ;;  %v5878_v8 = vpop.f32.mrb[63].mxu1  ;;  %16741 = vmatprep.mubr.msk.bf16.mxu0 %vm5993_vm6, %v20687_v18  ;;  %v6038_v1 = vld [vmem:[#allocation2 + $0x90] sm:$0xff]  ;;  %v6043_v50 = vld [vmem:[#allocation2 + $0xc8] sm:$0xff] }
 0x518   : > { %v5989_v53 = vmax.f32 %v5957_v11, 0.0  ;;  %v5958_v19 = vadd.f32 %v20578_v34, %v5878_v8  ;;  %v6103_v28 = vld [vmem:[#allocation2 + $0x151] sm:$0xff]  ;;  %v6026_v34 = vld [vmem:[#allocation2] sm:$0xff]  ;;  %v20740_v49 = vpack.c.bf16 %v6039_v21, %v6038_v1  ;;  %v6582_v21 = vpack.c.bf16 %v6551_v54, %v6550_v60 }
 0x519   : > { %6024 = vst.msk [vmem:[#allocation2 + $0x181] sm:$0xff] %vm5993_vm6, %v5991_v44  ;;  %v5992_v16 = vmax.f32 %v5960_v33, 0.0  ;;  %v6101_v61 = vld [vmem:[#allocation2 + $0x139] sm:$0xff]  ;;  %v6058_v58 = vpack.c.bf16 %v6027_v57, %v6026_v34  ;;  %v6041_v11 = vld [vmem:[#allocation2 + $0xb0] sm:$0xff]  ;;  %v6040_v44 = vld [vmem:[#allocation2 + $0xa8] sm:$0xff] }
 0x51a   : > { %6022 = vst.msk [vmem:[#allocation2 + $0x169] sm:$0xff] %vm5993_vm6, %v5989_v53  ;;  %v5990_v6 = vmax.f32 %v5958_v19, 0.0  ;;  %v6104_v23 = vld [vmem:[#allocation2 + $0x159] sm:$0xff]  ;;  %v20746_v33 = vpack.c.bf16 %v6041_v11, %v6040_v44  ;;  %v6051_v34 = vld [vmem:[#allocation2 + $0x128] sm:$0xff]  ;;  %v6054_v10 = vld [vmem:[#allocation2 + $0x150] sm:$0xff] }
 0x51b   : > { %6025 = vst.msk [vmem:[#allocation2 + $0x189] sm:$0xff] %vm5993_vm6, %v5992_v16  ;;  %v6102_v29 = vld [vmem:[#allocation2 + $0x141] sm:$0xff]  ;;  %v20702_v63 = vpack.c.bf16 %v6104_v23, %v6103_v28  ;;  %v6047_v16 = vld [vmem:[#allocation2 + $0xf8] sm:$0xff]  ;;  %v6049_v28 = vld [vmem:[#allocation2 + $0x110] sm:$0xff] }
 0x51c   : > { %6023 = vst.msk [vmem:[#allocation2 + $0x171] sm:$0xff] %vm5993_vm6, %v5990_v6  ;;  %v20700_v42 = vpack.c.bf16 %v6102_v29, %v6101_v61  ;;  %v6042_v8 = vld [vmem:[#allocation2 + $0xc0] sm:$0xff]  ;;  %v6044_v6 = vld [vmem:[#allocation2 + $0xd8] sm:$0xff]  ;;  %v6046_v61 = vld [vmem:[#allocation2 + $0xf0] sm:$0xff] }
 0x51d   : > { %v20748_v53 = vpack.c.bf16 %v6043_v50, %v6042_v8  ;;  %v6045_v19 = vld [vmem:[#allocation2 + $0xe0] sm:$0xff]  ;;  %v20756_v29 = vpack.c.bf16 %v6047_v16, %v6046_v61  ;;  %v6048_v57 = vld [vmem:[#allocation2 + $0x108] sm:$0xff]  ;;  %v6055_v39 = vld [vmem:[#allocation2 + $0x158] sm:$0xff] }
 0x51e   : > { %16742 = vmatmul.mubr.msk.bf16.gmra.mrb[56].mxu0 %vm5993_vm6, %v20700_v42  ;;  %v20754_v23 = vpack.c.bf16 %v6045_v19, %v6044_v6  ;;  %v6053_v24 = vld [vmem:[#allocation2 + $0x140] sm:$0xff]  ;;  %v6052_v55 = vld [vmem:[#allocation2 + $0x138] sm:$0xff]  ;;  %v20772_v2 = vpack.c.bf16 %v6055_v39, %v6054_v10  ;;  %v6943_v19 = vsel %vm6173_vm5, %v20722_v35, 0  ;;  %v14858_v6 = vld [vmem:[%s22485_s5 + $0x10] sm:$0xf] }
 0x51f   : > { %16745 = vmatprep.mubr.msk.bf16.mxu0 %vm5993_vm6, %v20702_v63  ;;  %v6552_v1 = vld [vmem:[#allocation2 + $0x1a] sm:$0xff]  ;;  %v6553_v11 = vld [vmem:[#allocation2 + $0x22] sm:$0xff]  ;;  %v6554_v50 = vld [vmem:[#allocation2 + $0x32] sm:$0xff] }
 0x520   : > { %v6555_v44 = vld [vmem:[#allocation2 + $0x3a] sm:$0xff]  ;;  %v20783_v8 = vpack.c.bf16 %v6553_v11, %v6552_v1  ;;  %v6556_v61 = vld [vmem:[#allocation2 + $0x4a] sm:$0xff]  ;;  %v6561_v39 = vld [vmem:[#allocation2 + $0x82] sm:$0xff] }
 0x521   : > { %v6105_v9 = vld [vmem:[#allocation2 + $0x169] sm:$0xff]  ;;  %v20787_v16 = vpack.c.bf16 %v6555_v44, %v6554_v50  ;;  %v6563_v10 = vld [vmem:[#allocation2 + $0x9a] sm:$0xff] }
 0x522   : > { %v6056_v25 = vld [vmem:[#allocation2 + $0x168] sm:$0xff]  ;;  %v6568_v44 = vld [vmem:[#allocation2 + $0xda] sm:$0xff] }
 0x523   : > { %v6106_v20 = vld [vmem:[#allocation2 + $0x171] sm:$0xff] }
 0x524   : > { %v20708_v52 = vpack.c.bf16 %v6106_v20, %v6105_v9  ;;  %v20762_v9 = vpack.c.bf16 %v6049_v28, %v6048_v57  ;;  %v6050_v20 = vld [vmem:[#allocation2 + $0x120] sm:$0xff]  ;;  %v6057_v4 = vld [vmem:[#allocation2 + $0x170] sm:$0xff] }
 0x525   : > { %v20778_v36 = vpack.c.bf16 %v6057_v4, %v6056_v25  ;;  %v6557_v28 = vld [vmem:[#allocation2 + $0x52] sm:$0xff]  ;;  %v6559_v57 = vld [vmem:[#allocation2 + $0x6a] sm:$0xff] }
 0x526   : > { %16746 = vmatmul.mubr.msk.bf16.gmra.mrb[60].mxu0 %vm5993_vm6, %v20708_v52  ;;  %v6564_v4 = vld [vmem:[#allocation2 + $0xaa] sm:$0xff]  ;;  %v6565_v25 = vld [vmem:[#allocation2 + $0xb2] sm:$0xff] }
 0x527   : > { %16751 = vmatprep.mubr.msk.bf16.mxu0 %vm5993_vm6, %v6058_v58  ;;  %v20764_v58 = vpack.c.bf16 %v6051_v34, %v6050_v20  ;;  %v6558_v34 = vld [vmem:[#allocation2 + $0x62] sm:$0xff]  ;;  %v6567_v1 = vld [vmem:[#allocation2 + $0xca] sm:$0xff]  ;;  %v20813_v11 = vpack.c.bf16 %v6565_v25, %v6564_v4 }
 0x528   : > { %v20799_v20 = vpack.c.bf16 %v6559_v57, %v6558_v34 }
 0x52e   : > { %16752 = vmatmul.mubr.msk.bf16.vlgmr.msra.gmra.mrb[32].mxu0 %vm5993_vm6, %v20713_v45 }
 0x52f   : > { %16784 = vmatpush3.bf16.msra.mxu0 %v6649_v0  ;;  %16755 = vmatprep.mubr.msk.bf16.mxu0 %vm5993_vm6, %v20717_v37  ;;  %v20770_v0 = vpack.c.bf16 %v6053_v24, %v6052_v55  ;;  %v6560_v24 = vld [vmem:[#allocation2 + $0x7a] sm:$0xff]  ;;  %v6562_v55 = vld [vmem:[#allocation2 + $0x92] sm:$0xff] }
 0x530   : > { %18963 = vmatprep.subr.msk.bf16.mxu0 %vm6173_vm5, %v20722_v35  ;;  %v20797_v35 = vpack.c.bf16 %v6557_v28, %v6556_v61  ;;  %v20805_v60 = vpack.c.bf16 %v6561_v39, %v6560_v24  ;;  %v20807_v54 = vpack.c.bf16 %v6563_v10, %v6562_v55  ;;  %v6570_v61 = vld [vmem:[#allocation2 + $0xf2] sm:$0xff]  ;;  %v6571_v28 = vld [vmem:[#allocation2 + $0xfa] sm:$0xff]  ;;  %v6572_v24 = vld [vmem:[#allocation2 + $0x10a] sm:$0xff] }
 0x531   : > { %v20823_v57 = vpack.c.bf16 %v6571_v28, %v6570_v61  ;;  %v6573_v39 = vld [vmem:[#allocation2 + $0x112] sm:$0xff]  ;;  %v6574_v55 = vld [vmem:[#allocation2 + $0x122] sm:$0xff]  ;;  %v6575_v10 = vld [vmem:[#allocation2 + $0x12a] sm:$0xff] }
 0x532   : > { %v20829_v4 = vpack.c.bf16 %v6573_v39, %v6572_v24  ;;  %v20831_v25 = vpack.c.bf16 %v6575_v10, %v6574_v55  ;;  %v6580_v24 = vld [vmem:[#allocation2 + $0x16a] sm:$0xff]  ;;  %v6581_v39 = vld [vmem:[#allocation2 + $0x172] sm:$0xff]  ;;  %v7237_v10 = vsel %vm6173_vm5, %v14858_v6, 0 }
 0x533   : > { %v20845_v55 = vpack.c.bf16 %v6581_v39, %v6580_v24 }
 0x536   : > { %16756 = vmatmul.mubr.msk.bf16.gmra.mrb[36].mxu0 %vm5993_vm6, %v20730_v32 }
 0x537   : > { %16759 = vmatprep.mubr.msk.bf16.mxu0 %vm5993_vm6, %v20732_v26 }
 0x53e   : > { %16760 = vmatmul.mubr.msk.bf16.gmra.mrb[40].mxu0 %vm5993_vm6, %v20738_v56 }
 0x53f   : > { %16763 = vmatprep.mubr.msk.bf16.mxu0 %vm5993_vm6, %v20740_v49 }
 0x546   : > { %16764 = vmatmul.mubr.msk.bf16.gmra.mrb[44].mxu0 %vm5993_vm6, %v20746_v33 }
 0x547   : > { %16767 = vmatprep.mubr.msk.bf16.mxu0 %vm5993_vm6, %v20748_v53 }
 0x54e   : > { %16768 = vmatmul.mubr.msk.bf16.gmra.mrb[48].mxu0 %vm5993_vm6, %v20754_v23 }
 0x54f   : > { %16771 = vmatprep.mubr.msk.bf16.mxu0 %vm5993_vm6, %v20756_v29 }
 0x556   : > { %16772 = vmatmul.mubr.msk.bf16.gmra.mrb[52].mxu0 %vm5993_vm6, %v20762_v9 }
 0x557   : > { %16775 = vmatprep.mubr.msk.bf16.mxu0 %vm5993_vm6, %v20764_v58 }
 0x55e   : > { %16776 = vmatmul.mubr.msk.bf16.gmra.mrb[56].mxu0 %vm5993_vm6, %v20770_v0 }
 0x55f   : > { %16779 = vmatprep.mubr.msk.bf16.mxu0 %vm5993_vm6, %v20772_v2 }
 0x566   : > { %16780 = vmatmul.mubr.msk.bf16.gmra.mrb[60].mxu0 %vm5993_vm6, %v20778_v36 }
 0x567   : > { %16785 = vmatprep.mubr.msk.bf16.mxu0 %vm5993_vm6, %v6582_v21  ;;  %v6566_v21 = vld [vmem:[#allocation2 + $0xc2] sm:$0xff] }
 0x568   : > { %v20815_v50 = vpack.c.bf16 %v6567_v1, %v6566_v21  ;;  %v6576_v21 = vld [vmem:[#allocation2 + $0x13a] sm:$0xff]  ;;  %v6577_v1 = vld [vmem:[#allocation2 + $0x142] sm:$0xff] }
 0x569   : > { %v20837_v61 = vpack.c.bf16 %v6577_v1, %v6576_v21  ;;  %v14875_v21 = vld [vmem:[%s22485_s5 + $0x14] sm:$0xf] }
 0x56e   : > { %16786 = vmatmul.mubr.msk.bf16.vlgmr.msra.gmra.mrb[32].mxu0 %vm5993_vm6, %v20783_v8 }
 0x56f   : > { %16818 = vmatpush3.bf16.msra.mxu0 %v6943_v19  ;;  %16789 = vmatprep.mubr.msk.bf16.mxu0 %vm5993_vm6, %v20787_v16  ;;  %v6569_v19 = vld [vmem:[#allocation2 + $0xe2] sm:$0xff] }
 0x570   : > { %18964 = vmatprep.subr.msk.bf16.mxu0 %vm6173_vm5, %v14858_v6  ;;  %v20821_v34 = vpack.c.bf16 %v6569_v19, %v6568_v44  ;;  %v6578_v44 = vld [vmem:[#allocation2 + $0x152] sm:$0xff]  ;;  %v6579_v19 = vld [vmem:[#allocation2 + $0x15a] sm:$0xff] }
 0x571   : > { %v20839_v28 = vpack.c.bf16 %v6579_v19, %v6578_v44  ;;  %v6874_v6 = vld [vmem:[#allocation2 + $0x180] sm:$0xff]  ;;  %v7531_v44 = vsel %vm6173_vm5, %v14875_v21, 0  ;;  %v14892_v19 = vld [vmem:[%s22485_s5 + $0x18] sm:$0xf] }
 0x576   : > { %16790 = vmatmul.mubr.msk.bf16.gmra.mrb[36].mxu0 %vm5993_vm6, %v20797_v35 }
 0x577   : > { %16793 = vmatprep.mubr.msk.bf16.mxu0 %vm5993_vm6, %v20799_v20 }
 0x57e   : > { %16794 = vmatmul.mubr.msk.bf16.gmra.mrb[40].mxu0 %vm5993_vm6, %v20805_v60 }
 0x57f   : > { %16797 = vmatprep.mubr.msk.bf16.mxu0 %vm5993_vm6, %v20807_v54 }
 0x586   : > { %16798 = vmatmul.mubr.msk.bf16.gmra.mrb[44].mxu0 %vm5993_vm6, %v20813_v11 }
 0x587   : > { %16801 = vmatprep.mubr.msk.bf16.mxu0 %vm5993_vm6, %v20815_v50 }
 0x58e   : > { %16802 = vmatmul.mubr.msk.bf16.gmra.mrb[48].mxu0 %vm5993_vm6, %v20821_v34 }
 0x58f   : > { %16805 = vmatprep.mubr.msk.bf16.mxu0 %vm5993_vm6, %v20823_v57 }
 0x596   : > { %16806 = vmatmul.mubr.msk.bf16.gmra.mrb[52].mxu0 %vm5993_vm6, %v20829_v4 }
 0x597   : > { %16809 = vmatprep.mubr.msk.bf16.mxu0 %vm5993_vm6, %v20831_v25 }
 0x59e   : > { %16810 = vmatmul.mubr.msk.bf16.gmra.mrb[56].mxu0 %vm5993_vm6, %v20837_v61 }
 0x59f   : > { %16813 = vmatprep.mubr.msk.bf16.mxu0 %vm5993_vm6, %v20839_v28 }
 0x5a6   : > { %16814 = vmatmul.mubr.msk.bf16.gmra.mrb[60].mxu0 %vm5993_vm6, %v20845_v55 }
 0x5a7   : > { %16819 = vmatprep.mubr.msk.bf16.mxu0 %vm5993_vm6, %v20713_v45  ;;  %v6875_v45 = vld [vmem:[#allocation2 + $0x188] sm:$0xff] }
 0x5a8   : > { %v20884_v1 = vpack.c.bf16 %v6875_v45, %v6874_v6  ;;  %v8027_v45 = vld [vmem:[#allocation2 + $0x81] sm:$0xff]  ;;  %v8029_v6 = vld [vmem:[#allocation2 + $0x99] sm:$0xff] }
 0x5ae   : > { %16820 = vmatmul.mubr.msk.bf16.vlgmr.msra.gmra.mrb[32].mxu0 %vm5993_vm6, %v20717_v37 }
 0x5af   : > { %16852 = vmatpush3.bf16.msra.mxu0 %v7237_v10  ;;  %16823 = vmatprep.mubr.msk.bf16.mxu0 %vm5993_vm6, %v20730_v32  ;;  %v14926_v10 = vld [vmem:[%s22485_s5 + $0x20] sm:$0xf] }
 0x5b0   : > { %18965 = vmatprep.subr.msk.bf16.mxu0 %vm6173_vm5, %v14875_v21 }
 0x5b6   : > { %16824 = vmatmul.mubr.msk.bf16.gmra.mrb[36].mxu0 %vm5993_vm6, %v20732_v26 }
 0x5b7   : > { %16827 = vmatprep.mubr.msk.bf16.mxu0 %vm5993_vm6, %v20738_v56 }
 0x5be   : > { %16828 = vmatmul.mubr.msk.bf16.gmra.mrb[40].mxu0 %vm5993_vm6, %v20740_v49 }
 0x5bf   : > { %16831 = vmatprep.mubr.msk.bf16.mxu0 %vm5993_vm6, %v20746_v33 }
 0x5c6   : > { %16832 = vmatmul.mubr.msk.bf16.gmra.mrb[44].mxu0 %vm5993_vm6, %v20748_v53 }
 0x5c7   : > { %16835 = vmatprep.mubr.msk.bf16.mxu0 %vm5993_vm6, %v20754_v23 }
 0x5ce   : > { %16836 = vmatmul.mubr.msk.bf16.gmra.mrb[48].mxu0 %vm5993_vm6, %v20756_v29 }
 0x5cf   : > { %16839 = vmatprep.mubr.msk.bf16.mxu0 %vm5993_vm6, %v20762_v9 }
 0x5d6   : > { %16840 = vmatmul.mubr.msk.bf16.gmra.mrb[52].mxu0 %vm5993_vm6, %v20764_v58 }
 0x5d7   : > { %16843 = vmatprep.mubr.msk.bf16.mxu0 %vm5993_vm6, %v20770_v0 }
 0x5de   : > { %16844 = vmatmul.mubr.msk.bf16.gmra.mrb[56].mxu0 %vm5993_vm6, %v20772_v2 }
 0x5df   : > { %16847 = vmatprep.mubr.msk.bf16.mxu0 %vm5993_vm6, %v20778_v36 }
 0x5e6   : > { %16848 = vmatmul.mubr.msk.bf16.gmra.mrb[60].mxu0 %vm5993_vm6, %v20884_v1 }
 0x5e7   : > { %16853 = vmatprep.mubr.msk.bf16.mxu0 %vm5993_vm6, %v20596_v51  ;;  %v7169_v51 = vld [vmem:[#allocation2 + $0x189] sm:$0xff] }
 0x5ee   : > { %16854 = vmatmul.mubr.msk.bf16.vlgmr.msra.gmra.mrb[32].mxu0 %vm5993_vm6, %v20600_v30  ;;  %v7168_v30 = vld [vmem:[#allocation2 + $0x181] sm:$0xff] }
 0x5ef   : > { %16886 = vmatpush3.bf16.msra.mxu0 %v7531_v44  ;;  %16857 = vmatprep.mubr.msk.bf16.mxu0 %vm5993_vm6, %v20620_v27  ;;  %v20923_v27 = vpack.c.bf16 %v7169_v51, %v7168_v30 }
 0x5f0   : > { %18966 = vmatprep.subr.msk.bf16.mxu0 %vm6173_vm5, %v14892_v19 }
 0x5f6   : > { %16858 = vmatmul.mubr.msk.bf16.gmra.mrb[36].mxu0 %vm5993_vm6, %v20623_v62  ;;  %v7825_v62 = vsel %vm6173_vm5, %v14892_v19, 0  ;;  %v8028_v19 = vld [vmem:[#allocation2 + $0x91] sm:$0xff] }
 0x5f7   : > { %16861 = vmatprep.mubr.msk.bf16.mxu0 %vm5993_vm6, %v20636_v43  ;;  %v14909_v43 = vld [vmem:[%s22485_s5 + $0x1c] sm:$0xf]  ;;  %v8056_v51 = vpack.c.bf16 %v8029_v6, %v8028_v19 }
 0x5f8   : > { %v8119_v39 = vsel %vm6173_vm5, %v14909_v43, 0 }
 0x5fe   : > { %16862 = vmatmul.mubr.msk.bf16.gmra.mrb[40].mxu0 %vm5993_vm6, %v20639_v14  ;;  %v7462_v14 = vld [vmem:[#allocation2 + $0x182] sm:$0xff] }
 0x5ff   : > { %16865 = vmatprep.mubr.msk.bf16.mxu0 %vm5993_vm6, %v20652_v47 }
 0x606   : > { %16866 = vmatmul.mubr.msk.bf16.gmra.mrb[44].mxu0 %vm5993_vm6, %v20655_v31 }
 0x607   : > { %16869 = vmatprep.mubr.msk.bf16.mxu0 %vm5993_vm6, %v20668_v13 }
 0x60e   : > { %16870 = vmatmul.mubr.msk.bf16.gmra.mrb[48].mxu0 %vm5993_vm6, %v20671_v38 }
 0x60f   : > { %16873 = vmatprep.mubr.msk.bf16.mxu0 %vm5993_vm6, %v20684_v40 }
 0x616   : > { %16874 = vmatmul.mubr.msk.bf16.gmra.mrb[52].mxu0 %vm5993_vm6, %v20687_v18 }
 0x617   : > { %16877 = vmatprep.mubr.msk.bf16.mxu0 %vm5993_vm6, %v20700_v42 }
 0x61e   : > { %16878 = vmatmul.mubr.msk.bf16.gmra.mrb[56].mxu0 %vm5993_vm6, %v20702_v63 }
 0x61f   : > { %16881 = vmatprep.mubr.msk.bf16.mxu0 %vm5993_vm6, %v20708_v52 }
 0x626   : > { %16882 = vmatmul.mubr.msk.bf16.gmra.mrb[60].mxu0 %vm5993_vm6, %v20923_v27 }
 0x627   : > { %16887 = vmatprep.mubr.msk.bf16.mxu0 %vm5993_vm6, %v20783_v8  ;;  %v7463_v8 = vld [vmem:[#allocation2 + $0x18a] sm:$0xff] }
 0x628   : > { %v20962_v24 = vpack.c.bf16 %v7463_v8, %v7462_v14 }
 0x62e   : > { %16888 = vmatmul.mubr.msk.bf16.vlgmr.msra.gmra.mrb[32].mxu0 %vm5993_vm6, %v20787_v16 }
 0x62f   : > { %16920 = vmatpush3.bf16.msra.mxu0 %v7825_v62  ;;  %16891 = vmatprep.mubr.msk.bf16.mxu0 %vm5993_vm6, %v20797_v35 }
 0x630   : > { %18967 = vmatprep.subr.msk.bf16.mxu0 %vm6173_vm5, %v14909_v43 }
 0x636   : > { %16892 = vmatmul.mubr.msk.bf16.gmra.mrb[36].mxu0 %vm5993_vm6, %v20799_v20 }
 0x637   : > { %16895 = vmatprep.mubr.msk.bf16.mxu0 %vm5993_vm6, %v20805_v60 }
 0x63e   : > { %16896 = vmatmul.mubr.msk.bf16.gmra.mrb[40].mxu0 %vm5993_vm6, %v20807_v54 }
 0x63f   : > { %16899 = vmatprep.mubr.msk.bf16.mxu0 %vm5993_vm6, %v20813_v11 }
 0x646   : > { %16900 = vmatmul.mubr.msk.bf16.gmra.mrb[44].mxu0 %vm5993_vm6, %v20815_v50 }
 0x647   : > { %16903 = vmatprep.mubr.msk.bf16.mxu0 %vm5993_vm6, %v20821_v34 }
 0x64e   : > { %16904 = vmatmul.mubr.msk.bf16.gmra.mrb[48].mxu0 %vm5993_vm6, %v20823_v57 }
 0x64f   : > { %16907 = vmatprep.mubr.msk.bf16.mxu0 %vm5993_vm6, %v20829_v4 }
 0x656   : > { %16908 = vmatmul.mubr.msk.bf16.gmra.mrb[52].mxu0 %vm5993_vm6, %v20831_v25 }
 0x657   : > { %16911 = vmatprep.mubr.msk.bf16.mxu0 %vm5993_vm6, %v20837_v61 }
 0x65e   : > { %16912 = vmatmul.mubr.msk.bf16.gmra.mrb[56].mxu0 %vm5993_vm6, %v20839_v28 }
 0x65f   : > { %16915 = vmatprep.mubr.msk.bf16.mxu0 %vm5993_vm6, %v20845_v55 }
 0x666   : > { %16916 = vmatmul.mubr.msk.bf16.gmra.mrb[60].mxu0 %vm5993_vm6, %v20962_v24 }
 0x667   : > { %16921 = vmatprep.mubr.msk.bf16.mxu0 %vm5993_vm6, %v20717_v37  ;;  %v7756_v37 = vld [vmem:[#allocation2 + $0x198] sm:$0xff] }
 0x66e   : > { %16922 = vmatmul.mubr.msk.bf16.vlgmr.msra.gmra.mrb[32].mxu0 %vm5993_vm6, %v20730_v32  ;;  %v7757_v32 = vld [vmem:[#allocation2 + $0x1a0] sm:$0xff] }
 0x66f   : > { %16954 = vmatpush3.bf16.msra.mxu0 %v8119_v39  ;;  %16925 = vmatprep.mubr.msk.bf16.mxu0 %vm5993_vm6, %v20732_v26  ;;  %v7773_v26 = vpack.c.bf16 %v7757_v32, %v7756_v37  ;;  %v22634_v37 = vmax.f32 %v19902_v17, 0.0  ;;  %v22637_v17 = vmax.f32 %v19913_v41, 0.0 }
 0x670   : > { %18968 = vmatprep.subr.msk.bf16.mxu0 %vm6173_vm5, %v14926_v10 }
 0x676   : > { %16926 = vmatmul.mubr.msk.bf16.gmra.mrb[36].mxu0 %vm5993_vm6, %v20738_v56  ;;  %v8021_v56 = vld [vmem:[#allocation2 + $0x39] sm:$0xff] }
 0x677   : > { %16929 = vmatprep.mubr.msk.bf16.mxu0 %vm5993_vm6, %v20740_v49  ;;  %v8020_v49 = vld [vmem:[#allocation2 + $0x31] sm:$0xff] }
 0x67e   : > { %16930 = vmatmul.mubr.msk.bf16.gmra.mrb[40].mxu0 %vm5993_vm6, %v20746_v33  ;;  %v8052_v33 = vpack.c.bf16 %v8021_v56, %v8020_v49  ;;  %v22635_v49 = vmax.f32 %v19905_v48, 0.0 }
 0x67f   : > { %16933 = vmatprep.mubr.msk.bf16.mxu0 %vm5993_vm6, %v20748_v53  ;;  %v19038_v53 = vld [vmem:[%s22487_s7 + $0x10] sm:$0xff]  }
 0x680   : > { %17021 = vmatprep.subr.bf16.mxu1 %v19038_v53 }
 0x681   : > { %17022 = vmatpush3.bf16.msra.mxu1 %v19038_v53 }
 0x686   : > { %16934 = vmatmul.mubr.msk.bf16.gmra.mrb[44].mxu0 %vm5993_vm6, %v20754_v23  ;;  %v19039_v23 = vld [vmem:[%s22487_s7 + $0x18] sm:$0xff]  }
 0x687   : > { %16937 = vmatprep.mubr.msk.bf16.mxu0 %vm5993_vm6, %v20756_v29  ;;  %v8023_v29 = vld [vmem:[#allocation2 + $0x51] sm:$0xff]  ;;  %17023 = vmatprep.subr.bf16.mxu1 %v19039_v23 }
 0x688   : > { %17024 = vmatpush3.bf16.msra.mxu1 %v19039_v23 }
 0x68e   : > { %16938 = vmatmul.mubr.msk.bf16.gmra.mrb[48].mxu0 %vm5993_vm6, %v20762_v9  ;;  %v8025_v9 = vld [vmem:[#allocation2 + $0x69] sm:$0xff] }
 0x68f   : > { %16941 = vmatprep.mubr.msk.bf16.mxu0 %vm5993_vm6, %v20764_v58  ;;  %v8022_v58 = vld [vmem:[#allocation2 + $0x49] sm:$0xff] }
 0x696   : > { %16942 = vmatmul.mubr.msk.bf16.gmra.mrb[52].mxu0 %vm5993_vm6, %v20770_v0  ;;  %v8053_v0 = vpack.c.bf16 %v8023_v29, %v8022_v58  ;;  %v22636_v29 = vmax.f32 %v19909_v3, 0.0 }
 0x697   : > { %16945 = vmatprep.mubr.msk.bf16.mxu0 %vm5993_vm6, %v20772_v2  ;;  %v8413_v2 = vsel %vm6173_vm5, %v14926_v10, 0 }
 0x69e   : > { %16946 = vmatmul.mubr.msk.bf16.gmra.mrb[56].mxu0 %vm5993_vm6, %v20778_v36  ;;  %v8024_v36 = vld [vmem:[#allocation2 + $0x61] sm:$0xff] }
 0x69f   : > { %16949 = vmatprep.mubr.msk.bf16.mxu0 %vm5993_vm6, %v20884_v1  ;;  %v8054_v21 = vpack.c.bf16 %v8025_v9, %v8024_v36  ;;  %v8026_v1 = vld [vmem:[#allocation2 + $0x79] sm:$0xff] }
 0x6a0   : > { %v8055_v44 = vpack.c.bf16 %v8027_v45, %v8026_v1 }
 0x6a6   : > { %16950 = vmatmul.mubr.msk.bf16.gmra.mrb[60].mxu0 %vm5993_vm6, %v7773_v26 }
 0x6a7   : > { %16955 = vmatprep.mubr.msk.bf16.mxu0 %vm5993_vm6, %v8052_v33 }
 0x6ae   : > { %16956 = vmatmul.mubr.msk.bf16.vlgmr.msra.gmra.mrb[32].mxu0 %vm5993_vm6, %v8053_v0 }
 0x6af   : > { %16988 = vmatpush3.bf16.msra.mxu0 %v8413_v2  ;;  %16959 = vmatprep.mubr.msk.bf16.mxu0 %vm5993_vm6, %v8054_v21 }
 0x6b6   : > { %16960 = vmatmul.mubr.msk.bf16.gmra.mrb[36].mxu0 %vm5993_vm6, %v8055_v44 }
 0x6b7   : > { %16963 = vmatprep.mubr.msk.bf16.mxu0 %vm5993_vm6, %v8056_v51 }
 0x6be   : > { %16964 = vmatmul.mubr.msk.bf16.gmra.mrb[40].mxu0 %vm5993_vm6, %v20652_v47  ;;  %v8050_v47 = vld [vmem:[#allocation2 + $0x199] sm:$0xff] }
 0x6bf   : > { %16967 = vmatprep.mubr.msk.bf16.mxu0 %vm5993_vm6, %v20655_v31  ;;  %v8051_v31 = vld [vmem:[#allocation2 + $0x1a1] sm:$0xff] }
 0x6c6   : > { %16968 = vmatmul.mubr.msk.bf16.gmra.mrb[44].mxu0 %vm5993_vm6, %v20668_v13  ;;  %v8067_v13 = vpack.c.bf16 %v8051_v31, %v8050_v47  ;;  %v19041_v47 = vld [vmem:[%s22487_s7 + $0x8] sm:$0xff]   ;;  %v22638_v31 = vmax.f32 %v19935_v46, 0.0  ;;  %v22640_v46 = vmax.f32 %v19948_v15, 0.0 }
 0x6c7   : > { %16971 = vmatprep.mubr.msk.bf16.mxu0 %vm5993_vm6, %v20671_v38  ;;  %v8344_v38 = vld [vmem:[#allocation2 + $0x19a] sm:$0xff] }
 0x6ce   : > { %16972 = vmatmul.mubr.msk.bf16.gmra.mrb[48].mxu0 %vm5993_vm6, %v20684_v40  ;;  %v8345_v40 = vld [vmem:[#allocation2 + $0x1a2] sm:$0xff] }
 0x6cf   : > { %16975 = vmatprep.mubr.msk.bf16.mxu0 %vm5993_vm6, %v20687_v18  ;;  %v8361_v18 = vpack.c.bf16 %v8345_v40, %v8344_v38 }
 0x6d6   : > { %16976 = vmatmul.mubr.msk.bf16.gmra.mrb[52].mxu0 %vm5993_vm6, %v20700_v42  ;;  %v8795_v42 = vld [vmem:[#allocation2 + $0x1] sm:$0xff] }
 0x6d7   : > { %16979 = vmatprep.mubr.msk.bf16.mxu0 %vm5993_vm6, %v20702_v63  ;;  %v8796_v63 = vld [vmem:[#allocation2 + $0x9] sm:$0xff] }
 0x6de   : > { %16980 = vmatmul.mubr.msk.bf16.gmra.mrb[56].mxu0 %vm5993_vm6, %v20708_v52  ;;  %v8827_v52 = vpack.c.bf16 %v8796_v63, %v8795_v42  ;;  %v22639_v42 = vmax.f32 %v19941_v12, 0.0 }
 0x6df   : > { %16983 = vmatprep.mubr.msk.bf16.mxu0 %vm5993_vm6, %v20923_v27  ;;  %v22632_v27 = vmax.f32 %v19881_v7, 0.0 }
 0x6e0   : > { %17025 = vmatprep.mubr.msk.bf16.mxu1 %vm439_vm1, %v8827_v52 }
 0x6e6   : > { %16984 = vmatmul.mubr.msk.bf16.gmra.mrb[60].mxu0 %vm5993_vm6, %v8067_v13 }
 0x6e7   : > { %16989 = vmatprep.mubr.msk.bf16.mxu0 %vm5993_vm6, %v20787_v16  ;;  %v21070_v16 = vld [vmem:[%s22487_s7] sm:$0xff]  }
 0x6e8   : > { %17057 = vmatprep.subr.bf16.mxu1 %v21070_v16 }
 0x6ee   : > { %16990 = vmatmul.mubr.msk.bf16.vlgmr.msra.gmra.mrb[32].mxu0 %vm5993_vm6, %v20797_v35  ;;  %v21076_v35 = vld [vmem:[%s22486_s6] ss:$0 sm:$0xff] }
 0x6ef   : > { %16993 = vmatprep.mubr.msk.bf16.mxu0 %vm5993_vm6, %v20799_v20 }
 0x6f6   : > { %16994 = vmatmul.mubr.msk.bf16.gmra.mrb[36].mxu0 %vm5993_vm6, %v20805_v60 }
 0x6f7   : > { %16997 = vmatprep.mubr.msk.bf16.mxu0 %vm5993_vm6, %v20807_v54 }
 0x6fe   : > { %16998 = vmatmul.mubr.msk.bf16.gmra.mrb[40].mxu0 %vm5993_vm6, %v20813_v11 }
 0x6ff   : > { %17001 = vmatprep.mubr.msk.bf16.mxu0 %vm5993_vm6, %v20815_v50 }
 0x706   : > { %17002 = vmatmul.mubr.msk.bf16.gmra.mrb[44].mxu0 %vm5993_vm6, %v20821_v34  ;;  %v22630_v34 = vmax.f32 %v19874_v59, 0.0  ;;  %v22633_v59 = vmax.f32 %v19885_v22, 0.0 }
 0x707   : > { %17005 = vmatprep.mubr.msk.bf16.mxu0 %vm5993_vm6, %v20823_v57 }
 0x70e   : > { %17006 = vmatmul.mubr.msk.bf16.gmra.mrb[48].mxu0 %vm5993_vm6, %v20829_v4 }
 0x70f   : > { %17009 = vmatprep.mubr.msk.bf16.mxu0 %vm5993_vm6, %v20831_v25 }
 0x716   : > { %17010 = vmatmul.mubr.msk.bf16.gmra.mrb[52].mxu0 %vm5993_vm6, %v20837_v61  ;;  %v22631_v61 = vmax.f32 %v19877_v5, 0.0 }
 0x717   : > { %17013 = vmatprep.mubr.msk.bf16.mxu0 %vm5993_vm6, %v20839_v28 }
 0x71e   : > { %17014 = vmatmul.mubr.msk.bf16.gmra.mrb[56].mxu0 %vm5993_vm6, %v20845_v55 }
 0x71f   : > { %17017 = vmatprep.mubr.msk.bf16.mxu0 %vm5993_vm6, %v20962_v24 }
 0x726   : > { %17018 = vmatmul.mubr.msk.bf16.gmra.mrb[60].mxu0 %vm5993_vm6, %v8361_v18 }
 0x7c1   : > { %v16991_v20 = vpop.f32.mrb[32].mxu0 }
 0x7c2   : > { %v8617_v60 = vadd.f32 %v16991_v20, %v21076_v35  ;;  %v8449_v54 = vpop.f32.mrb[33].mxu0 }
 0x7c3   : > { %v8615_v11 = vadd.f32 %v21076_v35, %v8449_v54  ;;  %v16992_v50 = vpop.f32.mrb[34].mxu0  ;;  %v22641_v54 = vld [vmem:[#allocation6_spill] sm:$0xff] }
 0x7c4   : > { %v21082_v57 = vadd.f32 %v8617_v60, %v22630_v34  ;;  %v8618_v4 = vadd.f32 %v16992_v50, %v21076_v35  ;;  %v8452_v25 = vpop.f32.mrb[35].mxu0  ;;  %v21187_v34 = vld [vmem:[%s22487_s7 + $0x20] sm:$0xff]  }
 0x7c5   : > { %v21087_v28 = vadd.f32 %v8615_v11, %v22631_v61  ;;  %v8616_v55 = vadd.f32 %v21076_v35, %v8452_v25  ;;  %v22642_v11 = vmax.f32 %v22641_v54, 0.0 }
 0x7c6   : > { %v22579_v30 = vmax.f32 %v21082_v57, 0.0  ;;  %v21093_v62 = vadd.f32 %v8618_v4, %v22632_v27 }
 0x7c7   : > { %v22578_v43 = vmax.f32 %v21087_v28, 0.0  ;;  %v21098_v14 = vadd.f32 %v8616_v55, %v22633_v59 }
 0x7c8   : > { %8713 = vst.msk [vmem:[#allocation2 + $0x31] sm:$0xff] %vm439_vm1, %v22579_v30  ;;  %v22577_v5 = vmax.f32 %v21093_v62, 0.0 }
 0x7c9   : > { %8711 = vst.msk [vmem:[#allocation2 + $0x19] sm:$0xff] %vm439_vm1, %v22578_v43  ;;  %v22576_v7 = vmax.f32 %v21098_v14, 0.0  ;;  %v16995_v8 = vpop.f32.mrb[36].mxu0 }
 0x7ca   : > { %8714 = vst.msk [vmem:[#allocation2 + $0x39] sm:$0xff] %vm439_vm1, %v22577_v5  ;;  %v8621_v22 = vadd.f32 %v16995_v8, %v21076_v35  ;;  %v8465_v24 = vpop.f32.mrb[37].mxu0 }
 0x7cb   : > { %8712 = vst.msk [vmem:[#allocation2 + $0x21] sm:$0xff] %vm439_vm1, %v22576_v7  ;;  %v8619_v39 = vadd.f32 %v21076_v35, %v8465_v24  ;;  %v16996_v10 = vpop.f32.mrb[38].mxu0 }
 0x7cc   : > { %v21118_v32 = vadd.f32 %v8621_v22, %v22634_v37  ;;  %v8622_v26 = vadd.f32 %v16996_v10, %v21076_v35  ;;  %v8468_v56 = vpop.f32.mrb[39].mxu0  ;;  %v22644_v10 = vld [vmem:[#allocation7_spill] sm:$0xff] }
 0x7cd   : > { %v21123_v33 = vadd.f32 %v8619_v39, %v22635_v49  ;;  %v8620_v53 = vadd.f32 %v21076_v35, %v8468_v56  ;;  %v22645_v37 = vmax.f32 %v22644_v10, 0.0 }
 0x7ce   : > { %v22575_v23 = vmax.f32 %v21118_v32, 0.0  ;;  %v21129_v9 = vadd.f32 %v8622_v26, %v22636_v29  ;;  %v22647_v29 = vld [vmem:[#allocation8_spill] sm:$0xff] }
 0x7cf   : > { %v22569_v58 = vmax.f32 %v21123_v33, 0.0  ;;  %v21134_v0 = vadd.f32 %v8620_v53, %v22637_v17  ;;  %v8799_v51 = vld [vmem:[#allocation2 + $0x31] sm:$0xff]  ;;  %v22648_v17 = vmax.f32 %v22647_v29, 0.0 }
 0x7d0   : > { %8717 = vst.msk [vmem:[#allocation2 + $0x61] sm:$0xff] %vm439_vm1, %v22575_v23  ;;  %v22568_v48 = vmax.f32 %v21129_v9, 0.0  ;;  %v8797_v45 = vld [vmem:[#allocation2 + $0x19] sm:$0xff] }
 0x7d1   : > { %8715 = vst.msk [vmem:[#allocation2 + $0x49] sm:$0xff] %vm439_vm1, %v22569_v58  ;;  %v22567_v3 = vmax.f32 %v21134_v0, 0.0  ;;  %v16999_v2 = vpop.f32.mrb[40].mxu0  ;;  %v8800_v36 = vld [vmem:[#allocation2 + $0x39] sm:$0xff] }
 0x7d2   : > { %8718 = vst.msk [vmem:[#allocation2 + $0x69] sm:$0xff] %vm439_vm1, %v22568_v48  ;;  %v8625_v41 = vadd.f32 %v16999_v2, %v21076_v35  ;;  %v8481_v21 = vpop.f32.mrb[41].mxu0  ;;  %v8798_v6 = vld [vmem:[#allocation2 + $0x21] sm:$0xff]  ;;  %v21162_v18 = vpack.c.bf16 %v8800_v36, %v8799_v51 }
 0x7d3   : > { %8716 = vst.msk [vmem:[#allocation2 + $0x51] sm:$0xff] %vm439_vm1, %v22567_v3  ;;  %v8623_v1 = vadd.f32 %v21076_v35, %v8481_v21  ;;  %v17000_v44 = vpop.f32.mrb[42].mxu0  ;;  %v21152_v19 = vpack.c.bf16 %v8798_v6, %v8797_v45  ;;  %v22650_v21 = vld [vmem:[#allocation9_spill] sm:$0xff]  ;;  %v22695_v3 = vld [vmem:[#allocation24_spill] sm:$0xff] }
 0x7d4   : > { %v21159_v13 = vadd.f32 %v8625_v41, %v22638_v31  ;;  %v8626_v38 = vadd.f32 %v17000_v44, %v21076_v35  ;;  %v8484_v40 = vpop.f32.mrb[43].mxu0  ;;  %v22651_v45 = vmax.f32 %v22650_v21, 0.0  ;;  %v22653_v44 = vld [vmem:[#allocation10_spill] sm:$0xff]  ;;  %v22696_v48 = vmax.f32 %v22695_v3, 0.0 }
 0x7d5   : > { %v21166_v63 = vadd.f32 %v8623_v1, %v22639_v42  ;;  %v8624_v52 = vadd.f32 %v21076_v35, %v8484_v40  ;;  %17026 = vmatmul.mubr.msk.bf16.vlgmr.msra.gmra.mrb[64].mxu1 %vm439_vm1, %v21152_v19  ;;  %v22654_v51 = vmax.f32 %v22653_v44, 0.0 }
 0x7d6   : > { %v22566_v20 = vmax.f32 %v21159_v13, 0.0  ;;  %v21174_v60 = vadd.f32 %v8626_v38, %v22640_v46  ;;  %17058 = vmatpush3.bf16.msra.mxu1 %v21070_v16  ;;  %17029 = vmatprep.mubr.msk.bf16.mxu1 %vm439_vm1, %v21162_v18 }
 0x7d7   : > { %v22564_v12 = vmax.f32 %v21166_v63, 0.0  ;;  %v21182_v50 = vadd.f32 %v8624_v52, %v22642_v11  ;;  %17059 = vmatprep.subr.bf16.mxu1 %v19041_v47  ;;  %v8803_v39 = vld [vmem:[#allocation2 + $0x61] sm:$0xff] }
 0x7d8   : > { %8721 = vst.msk [vmem:[#allocation2 + $0x91] sm:$0xff] %vm439_vm1, %v22566_v20  ;;  %v22563_v15 = vmax.f32 %v21174_v60, 0.0  ;;  %v8801_v27 = vld [vmem:[#allocation2 + $0x49] sm:$0xff] }
 0x7d9   : > { %22643 = vst [vmem:[#allocation6_spill] sm:$0xff] %v21182_v50  ;;  %8719 = vst.msk [vmem:[#allocation2 + $0x79] sm:$0xff] %vm439_vm1, %v22564_v12  ;;  %v22559_v16 = vmax.f32 %v21182_v50, 0.0  ;;  %v17003_v4 = vpop.f32.mrb[44].mxu0  ;;  %v8804_v25 = vld [vmem:[#allocation2 + $0x69] sm:$0xff] }
 0x7da   : > { %8722 = vst.msk [vmem:[#allocation2 + $0x99] sm:$0xff] %vm439_vm1, %v22563_v15  ;;  %v8629_v61 = vadd.f32 %v17003_v4, %v21076_v35  ;;  %v8497_v55 = vpop.f32.mrb[45].mxu0  ;;  %v8802_v59 = vld [vmem:[#allocation2 + $0x51] sm:$0xff]  ;;  %17060 = vmatpush3.bf16.msra.mxu1 %v19041_v47  ;;  %v21213_v53 = vpack.c.bf16 %v8804_v25, %v8803_v39 }
 0x7db   : > { %8720 = vst.msk [vmem:[#allocation2 + $0x81] sm:$0xff] %vm439_vm1, %v22559_v16  ;;  %v8627_v8 = vadd.f32 %v21076_v35, %v8497_v55  ;;  %v17004_v22 = vpop.f32.mrb[46].mxu0  ;;  %v21205_v24 = vpack.c.bf16 %v8802_v59, %v8801_v27  ;;  %17093 = vmatprep.subr.bf16.mxu1 %v21187_v34  ;;  %v22656_v27 = vld [vmem:[#allocation11_spill] sm:$0xff] }
 0x7dc   : > { %v21210_v26 = vadd.f32 %v8629_v61, %v22645_v37  ;;  %v8630_v56 = vadd.f32 %v17004_v22, %v21076_v35  ;;  %v8500_v49 = vpop.f32.mrb[47].mxu0  ;;  %v22657_v59 = vmax.f32 %v22656_v27, 0.0  ;;  %v22659_v37 = vld [vmem:[#allocation12_spill] sm:$0xff] }
 0x7dd   : > { %v21217_v2 = vadd.f32 %v8627_v8, %v22648_v17  ;;  %v8628_v36 = vadd.f32 %v21076_v35, %v8500_v49  ;;  %17030 = vmatmul.mubr.msk.bf16.gmra.mrb[68].mxu1 %vm439_vm1, %v21205_v24 }
 0x7de   : > { %22646 = vst [vmem:[#allocation7_spill] sm:$0xff] %v21210_v26  ;;  %v22558_v41 = vmax.f32 %v21210_v26, 0.0  ;;  %v21225_v6 = vadd.f32 %v8630_v56, %v22651_v45  ;;  %17033 = vmatprep.mubr.msk.bf16.mxu1 %vm439_vm1, %v21213_v53  ;;  %v22660_v56 = vmax.f32 %v22659_v37, 0.0 }
 0x7df   : > { %22649 = vst [vmem:[#allocation8_spill] sm:$0xff] %v21217_v2  ;;  %v22557_v1 = vmax.f32 %v21217_v2, 0.0  ;;  %v21232_v47 = vadd.f32 %v8628_v36, %v22654_v51  ;;  %v8807_v55 = vld [vmem:[#allocation2 + $0x91] sm:$0xff] }
 0x7e0   : > { %22652 = vst [vmem:[#allocation9_spill] sm:$0xff] %v21225_v6  ;;  %8725 = vst.msk [vmem:[#allocation2 + $0xc1] sm:$0xff] %vm439_vm1, %v22558_v41  ;;  %v22556_v31 = vmax.f32 %v21225_v6, 0.0  ;;  %v8805_v54 = vld [vmem:[#allocation2 + $0x79] sm:$0xff]  ;;  %v22662_v36 = vld [vmem:[#allocation13_spill] sm:$0xff] }
 0x7e1   : > { %22655 = vst [vmem:[#allocation10_spill] sm:$0xff] %v21232_v47  ;;  %8723 = vst.msk [vmem:[#allocation2 + $0xa9] sm:$0xff] %vm439_vm1, %v22557_v1  ;;  %v22554_v38 = vmax.f32 %v21232_v47, 0.0  ;;  %v17007_v40 = vpop.f32.mrb[48].mxu0  ;;  %v8808_v42 = vld [vmem:[#allocation2 + $0x99] sm:$0xff]  ;;  %v22663_v21 = vmax.f32 %v22662_v36, 0.0 }
 0x7e2   : > { %8726 = vst.msk [vmem:[#allocation2 + $0xc9] sm:$0xff] %vm439_vm1, %v22556_v31  ;;  %v8633_v52 = vadd.f32 %v17007_v40, %v21076_v35  ;;  %v8513_v46 = vpop.f32.mrb[49].mxu0  ;;  %v8806_v11 = vld [vmem:[#allocation2 + $0x81] sm:$0xff]  ;;  %v21257_v10 = vpack.c.bf16 %v8808_v42, %v8807_v55  ;;  %v22665_v51 = vld [vmem:[#allocation14_spill] sm:$0xff] }
 0x7e3   : > { %8724 = vst.msk [vmem:[#allocation2 + $0xb1] sm:$0xff] %vm439_vm1, %v22554_v38  ;;  %v8631_v4 = vadd.f32 %v21076_v35, %v8513_v46  ;;  %v17008_v25 = vpop.f32.mrb[50].mxu0  ;;  %v21250_v61 = vpack.c.bf16 %v8806_v11, %v8805_v54  ;;  %v22666_v40 = vmax.f32 %v22665_v51, 0.0  ;;  %v22683_v1 = vld [vmem:[#allocation20_spill] sm:$0xff]  ;;  %v8755_v5 = vld [vmem:[#allocation2 + $0x90] sm:$0xff] }
 0x7e4   : > { %v21254_v8 = vadd.f32 %v8633_v52, %v22657_v59  ;;  %v8634_v22 = vadd.f32 %v17008_v25, %v21076_v35  ;;  %v8516_v39 = vpop.f32.mrb[51].mxu0  ;;  %v22684_v41 = vmax.f32 %v22683_v1, 0.0 }
 0x7e5   : > { %v21261_v49 = vadd.f32 %v8631_v4, %v22660_v56  ;;  %v8632_v29 = vadd.f32 %v21076_v35, %v8516_v39  ;;  %17034 = vmatmul.mubr.msk.bf16.gmra.mrb[72].mxu1 %vm439_vm1, %v21250_v61  ;;  %v22668_v56 = vld [vmem:[#allocation15_spill] sm:$0xff] }
 0x7e6   : > { %22658 = vst [vmem:[#allocation11_spill] sm:$0xff] %v21254_v8  ;;  %v22553_v17 = vmax.f32 %v21254_v8, 0.0  ;;  %v21269_v45 = vadd.f32 %v8634_v22, %v22663_v21  ;;  %17037 = vmatprep.mubr.msk.bf16.mxu1 %vm439_vm1, %v21257_v10 }
 0x7e7   : > { %22661 = vst [vmem:[#allocation12_spill] sm:$0xff] %v21261_v49  ;;  %v22549_v44 = vmax.f32 %v21261_v49, 0.0  ;;  %v21276_v42 = vadd.f32 %v8632_v29, %v22666_v40  ;;  %v8811_v37 = vld [vmem:[#allocation2 + $0xc1] sm:$0xff]  ;;  %v22669_v29 = vmax.f32 %v22668_v56, 0.0 }
 0x7e8   : > { %22664 = vst [vmem:[#allocation13_spill] sm:$0xff] %v21269_v45  ;;  %8729 = vst.msk [vmem:[#allocation2 + $0xf1] sm:$0xff] %vm439_vm1, %v22553_v17  ;;  %v22548_v52 = vmax.f32 %v21269_v45, 0.0  ;;  %v8809_v55 = vld [vmem:[#allocation2 + $0xa9] sm:$0xff]  ;;  %v8759_v43 = vld [vmem:[#allocation2 + $0xc0] sm:$0xff] }
 0x7e9   : > { %22667 = vst [vmem:[#allocation14_spill] sm:$0xff] %v21276_v42  ;;  %8727 = vst.msk [vmem:[#allocation2 + $0xd9] sm:$0xff] %vm439_vm1, %v22549_v44  ;;  %v22550_v46 = vmax.f32 %v21276_v42, 0.0  ;;  %v17011_v54 = vpop.f32.mrb[52].mxu0  ;;  %v8812_v11 = vld [vmem:[#allocation2 + $0xc9] sm:$0xff] }
 0x7ea   : > { %8730 = vst.msk [vmem:[#allocation2 + $0xf9] sm:$0xff] %vm439_vm1, %v22548_v52  ;;  %v8637_v4 = vadd.f32 %v17011_v54, %v21076_v35  ;;  %v8529_v25 = vpop.f32.mrb[53].mxu0  ;;  %v8810_v27 = vld [vmem:[#allocation2 + $0xb1] sm:$0xff]  ;;  %v21301_v40 = vpack.c.bf16 %v8812_v11, %v8811_v37  ;;  %v22671_v54 = vld [vmem:[#allocation16_spill] sm:$0xff] }
 0x7eb   : > { %8728 = vst.msk [vmem:[#allocation2 + $0xe1] sm:$0xff] %vm439_vm1, %v22550_v46  ;;  %v8635_v59 = vadd.f32 %v21076_v35, %v8529_v25  ;;  %v17012_v22 = vpop.f32.mrb[54].mxu0  ;;  %v21294_v39 = vpack.c.bf16 %v8810_v27, %v8809_v55  ;;  %v22672_v52 = vmax.f32 %v22671_v54, 0.0  ;;  %v22674_v55 = vld [vmem:[#allocation17_spill] sm:$0xff] }
 0x7ec   : > { %v21298_v36 = vadd.f32 %v8637_v4, %v22669_v29  ;;  %v8638_v21 = vadd.f32 %v17012_v22, %v21076_v35  ;;  %v8532_v51 = vpop.f32.mrb[55].mxu0  ;;  %v22675_v27 = vmax.f32 %v22674_v55, 0.0  ;;  %v22677_v22 = vld [vmem:[#allocation18_spill] sm:$0xff] }
 0x7ed   : > { %v21305_v44 = vadd.f32 %v8635_v59, %v22672_v52  ;;  %v8636_v46 = vadd.f32 %v21076_v35, %v8532_v51  ;;  %17038 = vmatmul.mubr.msk.bf16.gmra.mrb[76].mxu1 %vm439_vm1, %v21294_v39  ;;  %v22678_v37 = vmax.f32 %v22677_v22, 0.0 }
 0x7ee   : > { %22670 = vst [vmem:[#allocation15_spill] sm:$0xff] %v21298_v36  ;;  %v22552_v25 = vmax.f32 %v21298_v36, 0.0  ;;  %v21313_v4 = vadd.f32 %v8638_v21, %v22675_v27  ;;  %17041 = vmatprep.mubr.msk.bf16.mxu1 %vm439_vm1, %v21301_v40  ;;  %v9303_v36 = vld [vmem:[#allocation2 + $0x9a] sm:$0xff] }
 0x7ef   : > { %22673 = vst [vmem:[#allocation16_spill] sm:$0xff] %v21305_v44  ;;  %v22551_v11 = vmax.f32 %v21305_v44, 0.0  ;;  %v21320_v52 = vadd.f32 %v8636_v46, %v22678_v37 }
 0x7f0   : > { %22676 = vst [vmem:[#allocation17_spill] sm:$0xff] %v21313_v4  ;;  %8733 = vst.msk [vmem:[#allocation2 + $0x121] sm:$0xff] %vm439_vm1, %v22552_v25  ;;  %v22555_v59 = vmax.f32 %v21313_v4, 0.0  ;;  %v8813_v54 = vld [vmem:[#allocation2 + $0xd9] sm:$0xff] }
 0x7f1   : > { %22679 = vst [vmem:[#allocation18_spill] sm:$0xff] %v21320_v52  ;;  %8731 = vst.msk [vmem:[#allocation2 + $0x109] sm:$0xff] %vm439_vm1, %v22551_v11  ;;  %v22560_v56 = vmax.f32 %v21320_v52, 0.0  ;;  %v17015_v29 = vpop.f32.mrb[56].mxu0  ;;  %v8816_v21 = vld [vmem:[#allocation2 + $0xf9] sm:$0xff]  ;;  %v8815_v11 = vld [vmem:[#allocation2 + $0xf1] sm:$0xff] }
 0x7f2   : > { %8734 = vst.msk [vmem:[#allocation2 + $0x129] sm:$0xff] %vm439_vm1, %v22555_v59  ;;  %v8641_v46 = vadd.f32 %v17015_v29, %v21076_v35  ;;  %v8545_v51 = vpop.f32.mrb[57].mxu0  ;;  %v8814_v55 = vld [vmem:[#allocation2 + $0xe1] sm:$0xff]  ;;  %v21345_v31 = vpack.c.bf16 %v8816_v21, %v8815_v11  ;;  %v22689_v21 = vld [vmem:[#allocation22_spill] sm:$0xff] }
 0x7f3   : > { %8732 = vst.msk [vmem:[#allocation2 + $0x111] sm:$0xff] %vm439_vm1, %v22560_v56  ;;  %v8639_v27 = vadd.f32 %v21076_v35, %v8545_v51  ;;  %v17016_v22 = vpop.f32.mrb[58].mxu0  ;;  %v21338_v37 = vpack.c.bf16 %v8814_v55, %v8813_v54  ;;  %v22680_v25 = vld [vmem:[#allocation19_spill] sm:$0xff]  ;;  %v22686_v54 = vld [vmem:[#allocation21_spill] sm:$0xff]  ;;  %v22690_v1 = vmax.f32 %v22689_v21, 0.0 }
 0x7f4   : > { %v22681_v17 = vmax.f32 %v22680_v25, 0.0  ;;  %v8642_v59 = vadd.f32 %v17016_v22, %v21076_v35  ;;  %v8548_v29 = vpop.f32.mrb[59].mxu0  ;;  %v22687_v25 = vmax.f32 %v22686_v54, 0.0  ;;  %v19045_v4 = vld [vmem:[%s22487_s7 + $0x38] sm:$0xff]  }
 0x7f5   : > { %v21349_v16 = vadd.f32 %v8639_v27, %v22684_v41  ;;  %v8640_v56 = vadd.f32 %v21076_v35, %v8548_v29  ;;  %17042 = vmatmul.mubr.msk.bf16.gmra.mrb[80].mxu1 %vm439_vm1, %v21338_v37 }
 0x7f6   : > { %v21342_v38 = vadd.f32 %v8641_v46, %v22681_v17  ;;  %v21357_v17 = vadd.f32 %v8642_v59, %v22687_v25  ;;  %17045 = vmatprep.mubr.msk.bf16.mxu1 %vm439_vm1, %v21345_v31 }
 0x7f7   : > { %22685 = vst [vmem:[#allocation20_spill] sm:$0xff] %v21349_v16  ;;  %v22561_v11 = vmax.f32 %v21349_v16, 0.0  ;;  %v21364_v41 = vadd.f32 %v8640_v56, %v22690_v1 }
 0x7f8   : > { %22682 = vst [vmem:[#allocation19_spill] sm:$0xff] %v21342_v38  ;;  %v22562_v51 = vmax.f32 %v21342_v38, 0.0  ;;  %22688 = vst [vmem:[#allocation21_spill] sm:$0xff] %v21357_v17  ;;  %v22565_v46 = vmax.f32 %v21357_v17, 0.0  ;;  %v8817_v29 = vld [vmem:[#allocation2 + $0x109] sm:$0xff] }
 0x7f9   : > { %22691 = vst [vmem:[#allocation22_spill] sm:$0xff] %v21364_v41  ;;  %8735 = vst.msk [vmem:[#allocation2 + $0x139] sm:$0xff] %vm439_vm1, %v22561_v11  ;;  %v22570_v59 = vmax.f32 %v21364_v41, 0.0  ;;  %v17019_v55 = vpop.f32.mrb[60].mxu0  ;;  %v8820_v27 = vld [vmem:[#allocation2 + $0x129] sm:$0xff]  ;;  %v8819_v11 = vld [vmem:[#allocation2 + $0x121] sm:$0xff] }
 0x7fa   : > { %8737 = vst.msk [vmem:[#allocation2 + $0x151] sm:$0xff] %vm439_vm1, %v22562_v51  ;;  %8738 = vst.msk [vmem:[#allocation2 + $0x159] sm:$0xff] %vm439_vm1, %v22565_v46  ;;  %v8645_v56 = vadd.f32 %v17019_v55, %v21076_v35  ;;  %v8561_v22 = vpop.f32.mrb[61].mxu0  ;;  %v8818_v54 = vld [vmem:[#allocation2 + $0x111] sm:$0xff]  ;;  %v22692_v51 = vld [vmem:[#allocation23_spill] sm:$0xff]  ;;  %v21389_v20 = vpack.c.bf16 %v8820_v27, %v8819_v11 }
 0x7fb   : > { %8736 = vst.msk [vmem:[#allocation2 + $0x141] sm:$0xff] %vm439_vm1, %v22570_v59  ;;  %v8643_v25 = vadd.f32 %v21076_v35, %v8561_v22  ;;  %v17020_v21 = vpop.f32.mrb[62].mxu0  ;;  %v21382_v1 = vpack.c.bf16 %v8818_v54, %v8817_v29  ;;  %v22693_v15 = vmax.f32 %v22692_v51, 0.0  ;;  %v22698_v29 = vld [vmem:[#allocation25_spill] sm:$0xff]  ;;  %v22701_v27 = vld [vmem:[#allocation26_spill] sm:$0xff] }
 0x7fc   : > { %v8646_v46 = vadd.f32 %v17020_v21, %v21076_v35  ;;  %v8564_v55 = vpop.f32.mrb[63].mxu0  ;;  %v22699_v51 = vmax.f32 %v22698_v29, 0.0  ;;  %v22702_v3 = vmax.f32 %v22701_v27, 0.0  ;;  %v8743_v29 = vld [vmem:[#allocation2] sm:$0xff] }
 0x7fd   : > { %v21386_v12 = vadd.f32 %v8645_v56, %v22693_v15  ;;  %v21393_v58 = vadd.f32 %v8643_v25, %v22696_v48  ;;  %v8644_v59 = vadd.f32 %v21076_v35, %v8564_v55  ;;  %17046 = vmatmul.mubr.msk.bf16.gmra.mrb[84].mxu1 %vm439_vm1, %v21382_v1 }
 0x7fe   : > { %v21401_v15 = vadd.f32 %v8646_v46, %v22699_v51  ;;  %17049 = vmatprep.mubr.msk.bf16.mxu1 %vm439_vm1, %v21389_v20  ;;  %v8744_v51 = vld [vmem:[#allocation2 + $0x8] sm:$0xff] }
 0x7ff   : > { %22694 = vst [vmem:[#allocation23_spill] sm:$0xff] %v21386_v12  ;;  %22697 = vst [vmem:[#allocation24_spill] sm:$0xff] %v21393_v58  ;;  %v22574_v22 = vmax.f32 %v21386_v12, 0.0  ;;  %v22572_v11 = vmax.f32 %v21393_v58, 0.0  ;;  %v21408_v48 = vadd.f32 %v8644_v59, %v22702_v3  ;;  %v8767_v58 = vld [vmem:[#allocation2 + $0x120] sm:$0xff] }
 0x800   : > { %22700 = vst [vmem:[#allocation25_spill] sm:$0xff] %v21401_v15  ;;  %v22571_v35 = vmax.f32 %v21401_v15, 0.0  ;;  %v8821_v54 = vld [vmem:[#allocation2 + $0x139] sm:$0xff] }
 0x801   : > { %22703 = vst [vmem:[#allocation26_spill] sm:$0xff] %v21408_v48  ;;  %8741 = vst.msk [vmem:[#allocation2 + $0x181] sm:$0xff] %vm439_vm1, %v22574_v22  ;;  %v22573_v46 = vmax.f32 %v21408_v48, 0.0  ;;  %v8824_v56 = vld [vmem:[#allocation2 + $0x159] sm:$0xff]  ;;  %v8823_v21 = vld [vmem:[#allocation2 + $0x151] sm:$0xff] }
 0x802   : > { %8739 = vst.msk [vmem:[#allocation2 + $0x169] sm:$0xff] %vm439_vm1, %v22572_v11  ;;  %8742 = vst.msk [vmem:[#allocation2 + $0x189] sm:$0xff] %vm439_vm1, %v22571_v35  ;;  %v8822_v59 = vld [vmem:[#allocation2 + $0x141] sm:$0xff]  ;;  %v21426_v55 = vpack.c.bf16 %v8824_v56, %v8823_v21  ;;  %v8775_v35 = vpack.c.bf16 %v8744_v51, %v8743_v29  ;;  %v8750_v29 = vld [vmem:[#allocation2 + $0x50] sm:$0xff] }
 0x803   : > { %8740 = vst.msk [vmem:[#allocation2 + $0x171] sm:$0xff] %vm439_vm1, %v22573_v46  ;;  %v21424_v25 = vpack.c.bf16 %v8822_v59, %v8821_v54  ;;  %v8746_v56 = vld [vmem:[#allocation2 + $0x20] sm:$0xff]  ;;  %v8748_v54 = vld [vmem:[#allocation2 + $0x38] sm:$0xff]  ;;  %v8747_v46 = vld [vmem:[#allocation2 + $0x30] sm:$0xff] }
 0x804   : > { %v8745_v59 = vld [vmem:[#allocation2 + $0x18] sm:$0xff]  ;;  %v19043_v22 = vld [vmem:[%s22487_s7 + $0x28] sm:$0xff]   ;;  %v21442_v23 = vpack.c.bf16 %v8748_v54, %v8747_v46  ;;  %v8763_v48 = vld [vmem:[#allocation2 + $0xf0] sm:$0xff] }
 0x805   : > { %17050 = vmatmul.mubr.msk.bf16.gmra.mrb[88].mxu1 %vm439_vm1, %v21424_v25  ;;  %v21437_v21 = vpack.c.bf16 %v8746_v56, %v8745_v59  ;;  %v8752_v51 = vld [vmem:[#allocation2 + $0x68] sm:$0xff]  ;;  %v8756_v54 = vld [vmem:[#allocation2 + $0x98] sm:$0xff]  ;;  %v8771_v41 = vld [vmem:[#allocation2 + $0x150] sm:$0xff] }
 0x806   : > { %17053 = vmatprep.mubr.msk.bf16.mxu1 %vm439_vm1, %v21426_v55  ;;  %v8753_v59 = vld [vmem:[#allocation2 + $0x78] sm:$0xff] }
 0x809   : > { %v8825_v27 = vld [vmem:[#allocation2 + $0x169] sm:$0xff] }
 0x80a   : > { %v8826_v3 = vld [vmem:[#allocation2 + $0x171] sm:$0xff] }
 0x80b   : > { %v21432_v11 = vpack.c.bf16 %v8826_v3, %v8825_v27  ;;  %v8749_v27 = vld [vmem:[#allocation2 + $0x48] sm:$0xff]  ;;  %v8751_v3 = vld [vmem:[#allocation2 + $0x60] sm:$0xff] }
 0x80c   : > { %v21454_v46 = vpack.c.bf16 %v8750_v29, %v8749_v27  ;;  %v21457_v56 = vpack.c.bf16 %v8752_v51, %v8751_v3  ;;  %v8758_v29 = vld [vmem:[#allocation2 + $0xb0] sm:$0xff]  ;;  %v8760_v51 = vld [vmem:[#allocation2 + $0xc8] sm:$0xff] }
 0x80d   : > { %17054 = vmatmul.mubr.msk.bf16.gmra.mrb[92].mxu1 %vm439_vm1, %v21432_v11  ;;  %v8757_v27 = vld [vmem:[#allocation2 + $0xa8] sm:$0xff]  ;;  %v21473_v30 = vpack.c.bf16 %v8760_v51, %v8759_v43  ;;  %v8766_v43 = vld [vmem:[#allocation2 + $0x110] sm:$0xff] }
 0x80e   : > { %17061 = vmatprep.mubr.msk.bf16.mxu1 %vm439_vm1, %v8775_v35  ;;  %v21452_v35 = vld [vmem:[%s22487_s7 + $0x30] sm:$0xff]   ;;  %v21471_v3 = vpack.c.bf16 %v8758_v29, %v8757_v27  ;;  %v8768_v29 = vld [vmem:[#allocation2 + $0x128] sm:$0xff] }
 0x80f   : > { %v8765_v51 = vld [vmem:[#allocation2 + $0x108] sm:$0xff]  ;;  %v21489_v12 = vpack.c.bf16 %v8768_v29, %v8767_v58  ;;  %v8774_v29 = vld [vmem:[#allocation2 + $0x170] sm:$0xff] }
 0x810   : > { %v21487_v27 = vpack.c.bf16 %v8766_v43, %v8765_v51  ;;  %v9290_v58 = vld [vmem:[#allocation2 + $0x2] sm:$0xff]  ;;  %v9291_v43 = vld [vmem:[#allocation2 + $0xa] sm:$0xff] }
 0x811   : > { %v8773_v51 = vld [vmem:[#allocation2 + $0x168] sm:$0xff]  ;;  %v9322_v16 = vpack.c.bf16 %v9291_v43, %v9290_v58  ;;  %v9297_v43 = vld [vmem:[#allocation2 + $0x52] sm:$0xff] }
 0x812   : > { %v21503_v38 = vpack.c.bf16 %v8774_v29, %v8773_v51  ;;  %v9296_v58 = vld [vmem:[#allocation2 + $0x4a] sm:$0xff]  ;;  %v9298_v29 = vld [vmem:[#allocation2 + $0x62] sm:$0xff] }
 0x813   : > { %v9299_v51 = vld [vmem:[#allocation2 + $0x6a] sm:$0xff] }
 0x815   : > { %17062 = vmatmul.mubr.msk.bf16.vlgmr.msra.gmra.mrb[64].mxu1 %vm439_vm1, %v21437_v21 }
 0x816   : > { %17094 = vmatpush3.bf16.msra.mxu1 %v21187_v34  ;;  %17065 = vmatprep.mubr.msk.bf16.mxu1 %vm439_vm1, %v21442_v23  ;;  %v8754_v34 = vld [vmem:[#allocation2 + $0x80] sm:$0xff] }
 0x817   : > { %17095 = vmatprep.subr.bf16.mxu1 %v19043_v22  ;;  %v21463_v7 = vpack.c.bf16 %v8754_v34, %v8753_v59  ;;  %v8764_v34 = vld [vmem:[#allocation2 + $0xf8] sm:$0xff] }
 0x818   : > { %v21481_v15 = vpack.c.bf16 %v8764_v34, %v8763_v48  ;;  %v8770_v48 = vld [vmem:[#allocation2 + $0x140] sm:$0xff]  ;;  %v8769_v34 = vld [vmem:[#allocation2 + $0x138] sm:$0xff] }
 0x81a   : > { %17096 = vmatpush3.bf16.msra.mxu1 %v19043_v22  ;;  %v21465_v22 = vpack.c.bf16 %v8756_v54, %v8755_v5  ;;  %v8762_v5 = vld [vmem:[#allocation2 + $0xe0] sm:$0xff]  ;;  %v8761_v54 = vld [vmem:[#allocation2 + $0xd8] sm:$0xff] }
 0x81b   : > { %17129 = vmatprep.subr.bf16.mxu1 %v21452_v35  ;;  %v21479_v59 = vpack.c.bf16 %v8762_v5, %v8761_v54  ;;  %v8772_v5 = vld [vmem:[#allocation2 + $0x158] sm:$0xff]  ;;  %v21495_v54 = vpack.c.bf16 %v8770_v48, %v8769_v34  ;;  %v9293_v48 = vld [vmem:[#allocation2 + $0x22] sm:$0xff] }
 0x81c   : > { %v21497_v17 = vpack.c.bf16 %v8772_v5, %v8771_v41  ;;  %v9292_v41 = vld [vmem:[#allocation2 + $0x1a] sm:$0xff]  ;;  %v9294_v5 = vld [vmem:[#allocation2 + $0x32] sm:$0xff] }
 0x81d   : > { %17066 = vmatmul.mubr.msk.bf16.gmra.mrb[68].mxu1 %vm439_vm1, %v21454_v46  ;;  %v9295_v34 = vld [vmem:[#allocation2 + $0x3a] sm:$0xff]  ;;  %v21508_v52 = vpack.c.bf16 %v9293_v48, %v9292_v41  ;;  %v21523_v41 = vpack.c.bf16 %v9297_v43, %v9296_v58  ;;  %v21525_v48 = vpack.c.bf16 %v9299_v51, %v9298_v29  ;;  %v9305_v58 = vld [vmem:[#allocation2 + $0xb2] sm:$0xff]  ;;  %v9306_v43 = vld [vmem:[#allocation2 + $0xc2] sm:$0xff] }
 0x81e   : > { %17069 = vmatprep.mubr.msk.bf16.mxu1 %vm439_vm1, %v21457_v56  ;;  %v21513_v44 = vpack.c.bf16 %v9295_v34, %v9294_v5  ;;  %v9301_v5 = vld [vmem:[#allocation2 + $0x82] sm:$0xff]  ;;  %v9302_v34 = vld [vmem:[#allocation2 + $0x92] sm:$0xff]  ;;  %v9307_v29 = vld [vmem:[#allocation2 + $0xca] sm:$0xff] }
 0x81f   : > { %v21533_v45 = vpack.c.bf16 %v9303_v36, %v9302_v34  ;;  %v21541_v49 = vpack.c.bf16 %v9307_v29, %v9306_v43  ;;  %v9308_v36 = vld [vmem:[#allocation2 + $0xda] sm:$0xff]  ;;  %v9314_v43 = vld [vmem:[#allocation2 + $0x122] sm:$0xff]  ;;  %v9315_v29 = vld [vmem:[#allocation2 + $0x12a] sm:$0xff] }
 0x820   : > { %v9311_v34 = vld [vmem:[#allocation2 + $0xfa] sm:$0xff]  ;;  %v21557_v2 = vpack.c.bf16 %v9315_v29, %v9314_v43  ;;  %v19047_v29 = vld [vmem:[%s22487_s7 + $0x48] sm:$0xff]  }
 0x825   : > { %17070 = vmatmul.mubr.msk.bf16.gmra.mrb[72].mxu1 %vm439_vm1, %v21463_v7 }
 0x826   : > { %17073 = vmatprep.mubr.msk.bf16.mxu1 %vm439_vm1, %v21465_v22 }
 0x82d   : > { %17074 = vmatmul.mubr.msk.bf16.gmra.mrb[76].mxu1 %vm439_vm1, %v21471_v3 }
 0x82e   : > { %17077 = vmatprep.mubr.msk.bf16.mxu1 %vm439_vm1, %v21473_v30 }
 0x835   : > { %17078 = vmatmul.mubr.msk.bf16.gmra.mrb[80].mxu1 %vm439_vm1, %v21479_v59 }
 0x836   : > { %17081 = vmatprep.mubr.msk.bf16.mxu1 %vm439_vm1, %v21481_v15 }
 0x83d   : > { %17082 = vmatmul.mubr.msk.bf16.gmra.mrb[84].mxu1 %vm439_vm1, %v21487_v27 }
 0x83e   : > { %17085 = vmatprep.mubr.msk.bf16.mxu1 %vm439_vm1, %v21489_v12 }
 0x845   : > { %17086 = vmatmul.mubr.msk.bf16.gmra.mrb[88].mxu1 %vm439_vm1, %v21495_v54 }
 0x846   : > { %17089 = vmatprep.mubr.msk.bf16.mxu1 %vm439_vm1, %v21497_v17 }
 0x84d   : > { %17090 = vmatmul.mubr.msk.bf16.gmra.mrb[92].mxu1 %vm439_vm1, %v21503_v38 }
 0x84e   : > { %17097 = vmatprep.mubr.msk.bf16.mxu1 %vm439_vm1, %v9322_v16  ;;  %v19046_v16 = vld [vmem:[%s22487_s7 + $0x40] sm:$0xff]  }
 0x855   : > { %17098 = vmatmul.mubr.msk.bf16.vlgmr.msra.gmra.mrb[64].mxu1 %vm439_vm1, %v21508_v52 }
 0x856   : > { %17130 = vmatpush3.bf16.msra.mxu1 %v21452_v35  ;;  %17101 = vmatprep.mubr.msk.bf16.mxu1 %vm439_vm1, %v21513_v44  ;;  %v9300_v35 = vld [vmem:[#allocation2 + $0x7a] sm:$0xff] }
 0x857   : > { %17131 = vmatprep.subr.bf16.mxu1 %v19045_v4  ;;  %v21531_v42 = vpack.c.bf16 %v9301_v5, %v9300_v35  ;;  %v9309_v35 = vld [vmem:[#allocation2 + $0xe2] sm:$0xff]  ;;  %v9310_v5 = vld [vmem:[#allocation2 + $0xf2] sm:$0xff] }
 0x858   : > { %v21547_v8 = vpack.c.bf16 %v9309_v35, %v9308_v36  ;;  %v21549_v47 = vpack.c.bf16 %v9311_v34, %v9310_v5  ;;  %v9316_v36 = vld [vmem:[#allocation2 + $0x13a] sm:$0xff]  ;;  %v9317_v35 = vld [vmem:[#allocation2 + $0x142] sm:$0xff]  ;;  %v9318_v5 = vld [vmem:[#allocation2 + $0x152] sm:$0xff] }
 0x859   : > { %v9319_v34 = vld [vmem:[#allocation2 + $0x15a] sm:$0xff]  ;;  %v21563_v26 = vpack.c.bf16 %v9317_v35, %v9316_v36  ;;  %v19048_v36 = vld [vmem:[%s22487_s7 + $0x50] sm:$0xff]  }
 0x85a   : > { %17132 = vmatpush3.bf16.msra.mxu1 %v19045_v4  ;;  %v9304_v4 = vld [vmem:[#allocation2 + $0xaa] sm:$0xff]  ;;  %v21565_v50 = vpack.c.bf16 %v9319_v34, %v9318_v5  ;;  %v19049_v5 = vld [vmem:[%s22487_s7 + $0x58] sm:$0xff]   ;;  %v19050_v34 = vld [vmem:[%s22487_s7 + $0x60] sm:$0xff]  }
 0x85b   : > { %17165 = vmatprep.subr.bf16.mxu1 %v19046_v16  ;;  %v21539_v51 = vpack.c.bf16 %v9305_v58, %v9304_v4  ;;  %v9312_v4 = vld [vmem:[#allocation2 + $0x10a] sm:$0xff]  ;;  %v9313_v58 = vld [vmem:[#allocation2 + $0x112] sm:$0xff] }
 0x85c   : > { %v21555_v6 = vpack.c.bf16 %v9313_v58, %v9312_v4  ;;  %v9320_v4 = vld [vmem:[#allocation2 + $0x16a] sm:$0xff]  ;;  %v9321_v58 = vld [vmem:[#allocation2 + $0x172] sm:$0xff] }
 0x85d   : > { %17102 = vmatmul.mubr.msk.bf16.gmra.mrb[68].mxu1 %vm439_vm1, %v21523_v41  ;;  %v21571_v43 = vpack.c.bf16 %v9321_v58, %v9320_v4  ;;  %v10827_v4 = vld [vmem:[#allocation2 + $0x81] sm:$0xff]  ;;  %v10829_v58 = vld [vmem:[#allocation2 + $0x99] sm:$0xff] }
 0x85e   : > { %17105 = vmatprep.mubr.msk.bf16.mxu1 %vm439_vm1, %v21525_v48 }
 0x865   : > { %17106 = vmatmul.mubr.msk.bf16.gmra.mrb[72].mxu1 %vm439_vm1, %v21531_v42 }
 0x866   : > { %17109 = vmatprep.mubr.msk.bf16.mxu1 %vm439_vm1, %v21533_v45 }
 0x86d   : > { %17110 = vmatmul.mubr.msk.bf16.gmra.mrb[76].mxu1 %vm439_vm1, %v21539_v51 }
 0x86e   : > { %17113 = vmatprep.mubr.msk.bf16.mxu1 %vm439_vm1, %v21541_v49 }
 0x875   : > { %17114 = vmatmul.mubr.msk.bf16.gmra.mrb[80].mxu1 %vm439_vm1, %v21547_v8 }
 0x876   : > { %17117 = vmatprep.mubr.msk.bf16.mxu1 %vm439_vm1, %v21549_v47 }
 0x87d   : > { %17118 = vmatmul.mubr.msk.bf16.gmra.mrb[84].mxu1 %vm439_vm1, %v21555_v6 }
 0x87e   : > { %17121 = vmatprep.mubr.msk.bf16.mxu1 %vm439_vm1, %v21557_v2 }
 0x885   : > { %17122 = vmatmul.mubr.msk.bf16.gmra.mrb[88].mxu1 %vm439_vm1, %v21563_v26 }
 0x886   : > { %17125 = vmatprep.mubr.msk.bf16.mxu1 %vm439_vm1, %v21565_v50 }
 0x88d   : > { %17126 = vmatmul.mubr.msk.bf16.gmra.mrb[92].mxu1 %vm439_vm1, %v21571_v43 }
 0x88e   : > { %17133 = vmatprep.mubr.msk.bf16.mxu1 %vm439_vm1, %v21437_v21  ;;  %v9627_v21 = vld [vmem:[#allocation2 + $0x188] sm:$0xff] }
 0x895   : > { %17134 = vmatmul.mubr.msk.bf16.vlgmr.msra.gmra.mrb[64].mxu1 %vm439_vm1, %v21442_v23 }
 0x896   : > { %17166 = vmatpush3.bf16.msra.mxu1 %v19046_v16  ;;  %17137 = vmatprep.mubr.msk.bf16.mxu1 %vm439_vm1, %v21454_v46  ;;  %v9626_v16 = vld [vmem:[#allocation2 + $0x180] sm:$0xff] }
 0x897   : > { %17167 = vmatprep.subr.bf16.mxu1 %v19047_v29  ;;  %v21611_v35 = vpack.c.bf16 %v9627_v21, %v9626_v16  ;;  %v10828_v21 = vld [vmem:[#allocation2 + $0x91] sm:$0xff] }
 0x898   : > { %v10856_v16 = vpack.c.bf16 %v10829_v58, %v10828_v21 }
 0x89a   : > { %17168 = vmatpush3.bf16.msra.mxu1 %v19047_v29  ;;  %v10826_v29 = vld [vmem:[#allocation2 + $0x79] sm:$0xff] }
 0x89b   : > { %17201 = vmatprep.subr.bf16.mxu1 %v19048_v36 }
 0x89d   : > { %17138 = vmatmul.mubr.msk.bf16.gmra.mrb[68].mxu1 %vm439_vm1, %v21457_v56 }
 0x89e   : > { %17141 = vmatprep.mubr.msk.bf16.mxu1 %vm439_vm1, %v21463_v7 }
 0x8a5   : > { %17142 = vmatmul.mubr.msk.bf16.gmra.mrb[72].mxu1 %vm439_vm1, %v21465_v22 }
 0x8a6   : > { %17145 = vmatprep.mubr.msk.bf16.mxu1 %vm439_vm1, %v21471_v3 }
 0x8ad   : > { %17146 = vmatmul.mubr.msk.bf16.gmra.mrb[76].mxu1 %vm439_vm1, %v21473_v30 }
 0x8ae   : > { %17149 = vmatprep.mubr.msk.bf16.mxu1 %vm439_vm1, %v21479_v59 }
 0x8b5   : > { %17150 = vmatmul.mubr.msk.bf16.gmra.mrb[80].mxu1 %vm439_vm1, %v21481_v15 }
 0x8b6   : > { %17153 = vmatprep.mubr.msk.bf16.mxu1 %vm439_vm1, %v21487_v27 }
 0x8bd   : > { %17154 = vmatmul.mubr.msk.bf16.gmra.mrb[84].mxu1 %vm439_vm1, %v21489_v12 }
 0x8be   : > { %17157 = vmatprep.mubr.msk.bf16.mxu1 %vm439_vm1, %v21495_v54 }
 0x8c5   : > { %17158 = vmatmul.mubr.msk.bf16.gmra.mrb[88].mxu1 %vm439_vm1, %v21497_v17 }
 0x8c6   : > { %17161 = vmatprep.mubr.msk.bf16.mxu1 %vm439_vm1, %v21503_v38 }
 0x8cd   : > { %17162 = vmatmul.mubr.msk.bf16.gmra.mrb[92].mxu1 %vm439_vm1, %v21611_v35 }
 0x8ce   : > { %17169 = vmatprep.mubr.msk.bf16.mxu1 %vm439_vm1, %v21152_v19  ;;  %v9933_v19 = vld [vmem:[#allocation2 + $0x189] sm:$0xff] }
 0x8d5   : > { %17170 = vmatmul.mubr.msk.bf16.vlgmr.msra.gmra.mrb[64].mxu1 %vm439_vm1, %v21162_v18  ;;  %v9932_v18 = vld [vmem:[#allocation2 + $0x181] sm:$0xff] }
 0x8d6   : > { %17202 = vmatpush3.bf16.msra.mxu1 %v19048_v36  ;;  %17173 = vmatprep.mubr.msk.bf16.mxu1 %vm439_vm1, %v21205_v24  ;;  %v21651_v24 = vpack.c.bf16 %v9933_v19, %v9932_v18  ;;  %v10855_v36 = vpack.c.bf16 %v10827_v4, %v10826_v29  ;;  %v10832_v18 = vld [vmem:[#allocation2 + $0xc1] sm:$0xff] }
 0x8d7   : > { %17203 = vmatprep.subr.bf16.mxu1 %v19049_v5 }
 0x8da   : > { %17204 = vmatpush3.bf16.msra.mxu1 %v19049_v5  ;;  %v10833_v5 = vld [vmem:[#allocation2 + $0xc9] sm:$0xff] }
 0x8db   : > { %17237 = vmatprep.subr.bf16.mxu1 %v19050_v34 }
 0x8dd   : > { %17174 = vmatmul.mubr.msk.bf16.gmra.mrb[68].mxu1 %vm439_vm1, %v21213_v53  ;;  %v19051_v53 = vld [vmem:[%s22487_s7 + $0x68] sm:$0xff]  }
 0x8de   : > { %17177 = vmatprep.mubr.msk.bf16.mxu1 %vm439_vm1, %v21250_v61  ;;  %v10238_v61 = vld [vmem:[#allocation2 + $0x182] sm:$0xff] }
 0x8e5   : > { %17178 = vmatmul.mubr.msk.bf16.gmra.mrb[72].mxu1 %vm439_vm1, %v21257_v10  ;;  %v10239_v10 = vld [vmem:[#allocation2 + $0x18a] sm:$0xff] }
 0x8e6   : > { %17181 = vmatprep.mubr.msk.bf16.mxu1 %vm439_vm1, %v21294_v39  ;;  %v21691_v39 = vpack.c.bf16 %v10239_v10, %v10238_v61  ;;  %v10837_v61 = vld [vmem:[#allocation2 + $0xf9] sm:$0xff] }
 0x8e7   : > { %v10834_v10 = vld [vmem:[#allocation2 + $0xd9] sm:$0xff] }
 0x8ed   : > { %17182 = vmatmul.mubr.msk.bf16.gmra.mrb[76].mxu1 %vm439_vm1, %v21301_v40  ;;  %v19053_v40 = vld [vmem:[%s22487_s7 + $0x78] sm:$0xff]  }
 0x8ee   : > { %17185 = vmatprep.mubr.msk.bf16.mxu1 %vm439_vm1, %v21338_v37  ;;  %v10821_v37 = vld [vmem:[#allocation2 + $0x39] sm:$0xff] }
 0x8f5   : > { %17186 = vmatmul.mubr.msk.bf16.gmra.mrb[80].mxu1 %vm439_vm1, %v21345_v31  ;;  %v19052_v31 = vld [vmem:[%s22487_s7 + $0x70] sm:$0xff]  }
 0x8f6   : > { %17189 = vmatprep.mubr.msk.bf16.mxu1 %vm439_vm1, %v21382_v1 }
 0x8fd   : > { %17190 = vmatmul.mubr.msk.bf16.gmra.mrb[84].mxu1 %vm439_vm1, %v21389_v20 }
 0x8fe   : > { %17193 = vmatprep.mubr.msk.bf16.mxu1 %vm439_vm1, %v21424_v25 }
 0x905   : > { %17194 = vmatmul.mubr.msk.bf16.gmra.mrb[88].mxu1 %vm439_vm1, %v21426_v55 }
 0x906   : > { %17197 = vmatprep.mubr.msk.bf16.mxu1 %vm439_vm1, %v21432_v11 }
 0x90d   : > { %17198 = vmatmul.mubr.msk.bf16.gmra.mrb[92].mxu1 %vm439_vm1, %v21651_v24 }
 0x90e   : > { %17205 = vmatprep.mubr.msk.bf16.mxu1 %vm439_vm1, %v21508_v52  ;;  %v19054_v52 = vld [vmem:[%s22487_s7 + $0x80] sm:$0xff]  }
 0x915   : > { %17206 = vmatmul.mubr.msk.bf16.vlgmr.msra.gmra.mrb[64].mxu1 %vm439_vm1, %v21513_v44 }
 0x916   : > { %17238 = vmatpush3.bf16.msra.mxu1 %v19050_v34  ;;  %17209 = vmatprep.mubr.msk.bf16.mxu1 %vm439_vm1, %v21523_v41  ;;  %v10830_v34 = vld [vmem:[#allocation2 + $0xa9] sm:$0xff] }
 0x917   : > { %17239 = vmatprep.subr.bf16.mxu1 %v19051_v53 }
 0x91a   : > { %17240 = vmatpush3.bf16.msra.mxu1 %v19051_v53  ;;  %v10858_v53 = vpack.c.bf16 %v10833_v5, %v10832_v18  ;;  %v21828_v18 = vld [vmem:[%s22489_s9 + $0x8] sm:$0xf] }
 0x91b   : > { %17273 = vmatprep.subr.bf16.mxu1 %v19052_v31 }
 0x91d   : > { %17210 = vmatmul.mubr.msk.bf16.gmra.mrb[68].mxu1 %vm439_vm1, %v21525_v48 }
 0x91e   : > { %17213 = vmatprep.mubr.msk.bf16.mxu1 %vm439_vm1, %v21531_v42 }
 0x925   : > { %17214 = vmatmul.mubr.msk.bf16.gmra.mrb[72].mxu1 %vm439_vm1, %v21533_v45 }
 0x926   : > { %17217 = vmatprep.mubr.msk.bf16.mxu1 %vm439_vm1, %v21539_v51 }
 0x92d   : > { %17218 = vmatmul.mubr.msk.bf16.gmra.mrb[76].mxu1 %vm439_vm1, %v21541_v49 }
 0x92e   : > { %17221 = vmatprep.mubr.msk.bf16.mxu1 %vm439_vm1, %v21547_v8 }
 0x935   : > { %17222 = vmatmul.mubr.msk.bf16.gmra.mrb[80].mxu1 %vm439_vm1, %v21549_v47 }
 0x936   : > { %17225 = vmatprep.mubr.msk.bf16.mxu1 %vm439_vm1, %v21555_v6 }
 0x93d   : > { %17226 = vmatmul.mubr.msk.bf16.gmra.mrb[84].mxu1 %vm439_vm1, %v21557_v2 }
 0x93e   : > { %17229 = vmatprep.mubr.msk.bf16.mxu1 %vm439_vm1, %v21563_v26 }
 0x945   : > { %17230 = vmatmul.mubr.msk.bf16.gmra.mrb[88].mxu1 %vm439_vm1, %v21565_v50 }
 0x946   : > { %17233 = vmatprep.mubr.msk.bf16.mxu1 %vm439_vm1, %v21571_v43 }
 0x94d   : > { %17234 = vmatmul.mubr.msk.bf16.gmra.mrb[92].mxu1 %vm439_vm1, %v21691_v39 }
 0x94e   : > { %17241 = vmatprep.mubr.msk.bf16.mxu1 %vm439_vm1, %v21442_v23 }
 0x955   : > { %17242 = vmatmul.mubr.msk.bf16.vlgmr.msra.gmra.mrb[64].mxu1 %vm439_vm1, %v21454_v46 }
 0x956   : > { %17274 = vmatpush3.bf16.msra.mxu1 %v19052_v31  ;;  %17245 = vmatprep.mubr.msk.bf16.mxu1 %vm439_vm1, %v21457_v56  ;;  %v10825_v56 = vld [vmem:[#allocation2 + $0x69] sm:$0xff]  ;;  %v10835_v31 = vld [vmem:[#allocation2 + $0xe1] sm:$0xff] }
 0x957   : > { %17275 = vmatprep.subr.bf16.mxu1 %v19053_v40 }
 0x95a   : > { %17276 = vmatpush3.bf16.msra.mxu1 %v19053_v40  ;;  %v10859_v40 = vpack.c.bf16 %v10835_v31, %v10834_v10 }
 0x95b   : > { %17309 = vmatprep.subr.bf16.mxu1 %v19054_v52 }
 0x95d   : > { %17246 = vmatmul.mubr.msk.bf16.gmra.mrb[68].mxu1 %vm439_vm1, %v21463_v7  ;;  %v10545_v7 = vld [vmem:[#allocation2 + $0x1a0] sm:$0xff] }
 0x95e   : > { %17249 = vmatprep.mubr.msk.bf16.mxu1 %vm439_vm1, %v21465_v22  ;;  %v10822_v22 = vld [vmem:[#allocation2 + $0x49] sm:$0xff] }
 0x965   : > { %17250 = vmatmul.mubr.msk.bf16.gmra.mrb[72].mxu1 %vm439_vm1, %v21471_v3 }
 0x966   : > { %17253 = vmatprep.mubr.msk.bf16.mxu1 %vm439_vm1, %v21473_v30  ;;  %v10544_v30 = vld [vmem:[#allocation2 + $0x198] sm:$0xff] }
 0x967   : > { %v10561_v23 = vpack.c.bf16 %v10545_v7, %v10544_v30  ;;  %v10850_v7 = vld [vmem:[#allocation2 + $0x199] sm:$0xff] }
 0x96d   : > { %17254 = vmatmul.mubr.msk.bf16.gmra.mrb[76].mxu1 %vm439_vm1, %v21479_v59  ;;  %v10824_v59 = vld [vmem:[#allocation2 + $0x61] sm:$0xff] }
 0x96e   : > { %17257 = vmatprep.mubr.msk.bf16.mxu1 %vm439_vm1, %v21481_v15  ;;  %v10820_v15 = vld [vmem:[#allocation2 + $0x31] sm:$0xff] }
 0x96f   : > { %v10852_v46 = vpack.c.bf16 %v10821_v37, %v10820_v15 }
 0x975   : > { %17258 = vmatmul.mubr.msk.bf16.gmra.mrb[80].mxu1 %vm439_vm1, %v21487_v27  ;;  %v19055_v27 = vld [vmem:[%s22487_s7 + $0x88] sm:$0xff]  }
 0x976   : > { %17261 = vmatprep.mubr.msk.bf16.mxu1 %vm439_vm1, %v21489_v12  ;;  %v15139_v12 = vld [vmem:[%s22489_s9 + $0x4] sm:$0xf] }
 0x977   : > { %18969 = vmatprep.subr.msk.bf16.mxu0 %vm6173_vm5, %v15139_v12 }
 0x97d   : > { %17262 = vmatmul.mubr.msk.bf16.gmra.mrb[84].mxu1 %vm439_vm1, %v21495_v54  ;;  %v10854_v54 = vpack.c.bf16 %v10825_v56, %v10824_v59 }
 0x97e   : > { %17265 = vmatprep.mubr.msk.bf16.mxu1 %vm439_vm1, %v21497_v17  ;;  %v10823_v17 = vld [vmem:[#allocation2 + $0x51] sm:$0xff] }
 0x97f   : > { %v10853_v3 = vpack.c.bf16 %v10823_v17, %v10822_v22 }
 0x985   : > { %17266 = vmatmul.mubr.msk.bf16.gmra.mrb[88].mxu1 %vm439_vm1, %v21503_v38  ;;  %v11683_v38 = vsel %vm6173_vm5, %v15139_v12, 0 }
 0x986   : > { %17269 = vmatprep.mubr.msk.bf16.mxu1 %vm439_vm1, %v21611_v35  ;;  %17346 = vmatpush3.bf16.msra.mxu0 %v11683_v38  ;;  %v10831_v35 = vld [vmem:[#allocation2 + $0xb1] sm:$0xff] }
 0x987   : > { %v10857_v19 = vpack.c.bf16 %v10831_v35, %v10830_v34 }
 0x98d   : > { %17270 = vmatmul.mubr.msk.bf16.gmra.mrb[92].mxu1 %vm439_vm1, %v10561_v23  ;;  %v10851_v23 = vld [vmem:[#allocation2 + $0x1a1] sm:$0xff] }
 0x98e   : > { %17277 = vmatprep.mubr.msk.bf16.mxu1 %vm439_vm1, %v10852_v46  ;;  %v10867_v37 = vpack.c.bf16 %v10851_v23, %v10850_v7 }
 0x995   : > { %17278 = vmatmul.mubr.msk.bf16.vlgmr.msra.gmra.mrb[64].mxu1 %vm439_vm1, %v10853_v3 }
 0x996   : > { %17310 = vmatpush3.bf16.msra.mxu1 %v19054_v52  ;;  %17281 = vmatprep.mubr.msk.bf16.mxu1 %vm439_vm1, %v10854_v54  ;;  %v10836_v52 = vld [vmem:[#allocation2 + $0xf1] sm:$0xff] }
 0x997   : > { %17311 = vmatprep.subr.bf16.mxu1 %v19055_v27  ;;  %v10860_v30 = vpack.c.bf16 %v10837_v61, %v10836_v52 }
 0x99a   : > { %17312 = vmatpush3.bf16.msra.mxu1 %v19055_v27 }
 0x99d   : > { %17282 = vmatmul.mubr.msk.bf16.gmra.mrb[68].mxu1 %vm439_vm1, %v10855_v36 }
 0x99e   : > { %17285 = vmatprep.mubr.msk.bf16.mxu1 %vm439_vm1, %v10856_v16 }
 0x9a5   : > { %17286 = vmatmul.mubr.msk.bf16.gmra.mrb[72].mxu1 %vm439_vm1, %v10857_v19 }
 0x9a6   : > { %17289 = vmatprep.mubr.msk.bf16.mxu1 %vm439_vm1, %v10858_v53 }
 0x9ad   : > { %17290 = vmatmul.mubr.msk.bf16.gmra.mrb[76].mxu1 %vm439_vm1, %v10859_v40 }
 0x9ae   : > { %17293 = vmatprep.mubr.msk.bf16.mxu1 %vm439_vm1, %v10860_v30 }
 0x9b5   : > { %17294 = vmatmul.mubr.msk.bf16.gmra.mrb[80].mxu1 %vm439_vm1, %v21382_v1 }
 0x9b6   : > { %17297 = vmatprep.mubr.msk.bf16.mxu1 %vm439_vm1, %v21389_v20  ;;  %v11156_v20 = vld [vmem:[#allocation2 + $0x19a] sm:$0xff] }
 0x9bd   : > { %17298 = vmatmul.mubr.msk.bf16.gmra.mrb[84].mxu1 %vm439_vm1, %v21424_v25 }
 0x9be   : > { %17301 = vmatprep.mubr.msk.bf16.mxu1 %vm439_vm1, %v21426_v55 }
 0x9c5   : > { %17302 = vmatmul.mubr.msk.bf16.gmra.mrb[88].mxu1 %vm439_vm1, %v21432_v11 }
 0x9c6   : > { %17305 = vmatprep.mubr.msk.bf16.mxu1 %vm439_vm1, %v21651_v24 }
 0x9cd   : > { %17306 = vmatmul.mubr.msk.bf16.gmra.mrb[92].mxu1 %vm439_vm1, %v10867_v37 }
 0x9ce   : > { %17313 = vmatprep.mubr.msk.bf16.mxu1 %vm439_vm1, %v21513_v44 }
 0x9d5   : > { %17314 = vmatmul.mubr.msk.bf16.vlgmr.msra.gmra.mrb[64].mxu1 %vm439_vm1, %v21523_v41 }
 0x9d6   : > { %17317 = vmatprep.mubr.msk.bf16.mxu1 %vm439_vm1, %v21525_v48 }
 0x9dd   : > { %17318 = vmatmul.mubr.msk.bf16.gmra.mrb[68].mxu1 %vm439_vm1, %v21531_v42 }
 0x9de   : > { %17321 = vmatprep.mubr.msk.bf16.mxu1 %vm439_vm1, %v21533_v45 }
 0x9e5   : > { %17322 = vmatmul.mubr.msk.bf16.gmra.mrb[72].mxu1 %vm439_vm1, %v21539_v51 }
 0x9e6   : > { %17325 = vmatprep.mubr.msk.bf16.mxu1 %vm439_vm1, %v21541_v49  ;;  %v11585_v49 = vld [vmem:[#allocation2 + $0x9] sm:$0xff] }
 0x9ed   : > { %17326 = vmatmul.mubr.msk.bf16.gmra.mrb[76].mxu1 %vm439_vm1, %v21547_v8 }
 0x9ee   : > { %17329 = vmatprep.mubr.msk.bf16.mxu1 %vm439_vm1, %v21549_v47  ;;  %v11157_v47 = vld [vmem:[#allocation2 + $0x1a2] sm:$0xff] }
 0x9ef   : > { %v11173_v8 = vpack.c.bf16 %v11157_v47, %v11156_v20 }
 0x9f5   : > { %17330 = vmatmul.mubr.msk.bf16.gmra.mrb[80].mxu1 %vm439_vm1, %v21555_v6  ;;  %v11584_v6 = vld [vmem:[#allocation2 + $0x1] sm:$0xff] }
 0x9f6   : > { %17333 = vmatprep.mubr.msk.bf16.mxu1 %vm439_vm1, %v21557_v2  ;;  %v11616_v2 = vpack.c.bf16 %v11585_v49, %v11584_v6 }
 0x9f8   : > { %17347 = vmatprep.mubr.msk.bf16.mxu0 %vm5993_vm6, %v11616_v2 }
 0x9fd   : > { %17334 = vmatmul.mubr.msk.bf16.gmra.mrb[84].mxu1 %vm439_vm1, %v21563_v26  ;;  %v21801_v26 = vld [vmem:[%s22488_s8] ss:$0 sm:$0xff] }
 0x9fe   : > { %17337 = vmatprep.mubr.msk.bf16.mxu1 %vm439_vm1, %v21565_v50  ;;  %v11583_v50 = vld [vmem:[%s22489_s9] sm:$0xf] }
 0x9ff   : > { %18970 = vmatprep.subr.msk.bf16.mxu0 %vm6173_vm5, %v11583_v50  ;;  %v11895_v16 = vsel %vm6173_vm5, %v11583_v50, 0 }
 0xa05   : > { %17338 = vmatmul.mubr.msk.bf16.gmra.mrb[88].mxu1 %vm439_vm1, %v21571_v43 }
 0xa06   : > { %17341 = vmatprep.mubr.msk.bf16.mxu1 %vm439_vm1, %v21691_v39 }
 0xa0d   : > { %17342 = vmatmul.mubr.msk.bf16.gmra.mrb[92].mxu1 %vm439_vm1, %v11173_v8 }
 0xaa8   : > { %v17315_v45 = vpop.f32.mrb[64].mxu1 }
 0xaa9   : > { %v11441_v44 = vadd.f32 %v17315_v45, %v21801_v26  ;;  %v11273_v42 = vpop.f32.mrb[65].mxu1 }
 0xaaa   : > { %v11439_v1 = vadd.f32 %v21801_v26, %v11273_v42  ;;  %v17316_v11 = vpop.f32.mrb[66].mxu1 }
 0xaab   : > { %v11473_v25 = vmax.f32 %v11441_v44, 0.0  ;;  %v11442_v55 = vadd.f32 %v17316_v11, %v21801_v26  ;;  %v11276_v41 = vpop.f32.mrb[67].mxu1 }
 0xaac   : > { %v11471_v48 = vmax.f32 %v11439_v1, 0.0  ;;  %v11440_v51 = vadd.f32 %v21801_v26, %v11276_v41 }
 0xaad   : > { %11505 = vst.msk [vmem:[#allocation2 + $0x31] sm:$0xff] %vm5993_vm6, %v11473_v25  ;;  %v11474_v43 = vmax.f32 %v11442_v55, 0.0 }
 0xaae   : > { %11503 = vst.msk [vmem:[#allocation2 + $0x19] sm:$0xff] %vm5993_vm6, %v11471_v48  ;;  %v11472_v24 = vmax.f32 %v11440_v51, 0.0 }
 0xaaf   : > { %11506 = vst.msk [vmem:[#allocation2 + $0x39] sm:$0xff] %vm5993_vm6, %v11474_v43 }
 0xab0   : > { %11504 = vst.msk [vmem:[#allocation2 + $0x21] sm:$0xff] %vm5993_vm6, %v11472_v24  ;;  %v17319_v39 = vpop.f32.mrb[68].mxu1 }
 0xab1   : > { %v11445_v15 = vadd.f32 %v17319_v39, %v21801_v26  ;;  %v11289_v46 = vpop.f32.mrb[69].mxu1 }
 0xab2   : > { %v11443_v12 = vadd.f32 %v21801_v26, %v11289_v46  ;;  %v17320_v38 = vpop.f32.mrb[70].mxu1 }
 0xab3   : > { %v11477_v17 = vmax.f32 %v11445_v15, 0.0  ;;  %v11446_v56 = vadd.f32 %v17320_v38, %v21801_v26  ;;  %v11292_v22 = vpop.f32.mrb[71].mxu1 }
 0xab4   : > { %v11475_v3 = vmax.f32 %v11443_v12, 0.0  ;;  %v11444_v59 = vadd.f32 %v21801_v26, %v11292_v22  ;;  %v11588_v35 = vld [vmem:[#allocation2 + $0x31] sm:$0xff] }
 0xab5   : > { %11509 = vst.msk [vmem:[#allocation2 + $0x61] sm:$0xff] %vm5993_vm6, %v11477_v17  ;;  %v11478_v27 = vmax.f32 %v11446_v56, 0.0  ;;  %v11586_v58 = vld [vmem:[#allocation2 + $0x19] sm:$0xff] }
 0xab6   : > { %11507 = vst.msk [vmem:[#allocation2 + $0x49] sm:$0xff] %vm5993_vm6, %v11475_v3  ;;  %v11476_v54 = vmax.f32 %v11444_v59, 0.0  ;;  %v11589_v4 = vld [vmem:[#allocation2 + $0x39] sm:$0xff] }
 0xab7   : > { %11510 = vst.msk [vmem:[#allocation2 + $0x69] sm:$0xff] %vm5993_vm6, %v11478_v27  ;;  %v11587_v29 = vld [vmem:[#allocation2 + $0x21] sm:$0xff]  ;;  %v21823_v19 = vpack.c.bf16 %v11589_v4, %v11588_v35 }
 0xab8   : > { %11508 = vst.msk [vmem:[#allocation2 + $0x51] sm:$0xff] %vm5993_vm6, %v11476_v54  ;;  %v17323_v36 = vpop.f32.mrb[72].mxu1  ;;  %v21819_v21 = vpack.c.bf16 %v11587_v29, %v11586_v58 }
 0xab9   : > { %v11449_v5 = vadd.f32 %v17323_v36, %v21801_v26  ;;  %v11305_v34 = vpop.f32.mrb[73].mxu1 }
 0xaba   : > { %v11447_v53 = vadd.f32 %v21801_v26, %v11305_v34  ;;  %v17324_v31 = vpop.f32.mrb[74].mxu1  ;;  %17348 = vmatmul.mubr.msk.bf16.vlgmr.msra.gmra.mrb[64].mxu0 %vm5993_vm6, %v21819_v21 }
 0xabb   : > { %v11481_v61 = vmax.f32 %v11449_v5, 0.0  ;;  %v11450_v10 = vadd.f32 %v17324_v31, %v21801_v26  ;;  %17380 = vmatpush3.bf16.msra.mxu0 %v11895_v16  ;;  %v11308_v40 = vpop.f32.mrb[75].mxu1  ;;  %17351 = vmatprep.mubr.msk.bf16.mxu0 %vm5993_vm6, %v21823_v19 }
 0xabc   : > { %v11479_v52 = vmax.f32 %v11447_v53, 0.0  ;;  %v11448_v30 = vadd.f32 %v21801_v26, %v11308_v40  ;;  %18971 = vmatprep.subr.msk.bf16.mxu0 %vm6173_vm5, %v21828_v18  ;;  %v11592_v49 = vld [vmem:[#allocation2 + $0x61] sm:$0xff] }
 0xabd   : > { %11513 = vst.msk [vmem:[#allocation2 + $0x91] sm:$0xff] %vm5993_vm6, %v11481_v61  ;;  %v11482_v7 = vmax.f32 %v11450_v10, 0.0  ;;  %v11590_v20 = vld [vmem:[#allocation2 + $0x49] sm:$0xff] }
 0xabe   : > { %11511 = vst.msk [vmem:[#allocation2 + $0x79] sm:$0xff] %vm5993_vm6, %v11479_v52  ;;  %v11480_v23 = vmax.f32 %v11448_v30, 0.0  ;;  %v11593_v37 = vld [vmem:[#allocation2 + $0x69] sm:$0xff] }
 0xabf   : > { %11514 = vst.msk [vmem:[#allocation2 + $0x99] sm:$0xff] %vm5993_vm6, %v11482_v7  ;;  %v11591_v47 = vld [vmem:[#allocation2 + $0x51] sm:$0xff]  ;;  %v21846_v45 = vpack.c.bf16 %v11593_v37, %v11592_v49 }
 0xac0   : > { %11512 = vst.msk [vmem:[#allocation2 + $0x81] sm:$0xff] %vm5993_vm6, %v11480_v23  ;;  %v17327_v8 = vpop.f32.mrb[76].mxu1  ;;  %v21843_v6 = vpack.c.bf16 %v11591_v47, %v11590_v20 }
 0xac1   : > { %v11453_v2 = vadd.f32 %v17327_v8, %v21801_v26  ;;  %v11321_v50 = vpop.f32.mrb[77].mxu1 }
 0xac2   : > { %v11451_v44 = vadd.f32 %v21801_v26, %v11321_v50  ;;  %v17328_v42 = vpop.f32.mrb[78].mxu1  ;;  %17352 = vmatmul.mubr.msk.bf16.gmra.mrb[68].mxu0 %vm5993_vm6, %v21843_v6 }
 0xac3   : > { %v11485_v1 = vmax.f32 %v11453_v2, 0.0  ;;  %v11454_v11 = vadd.f32 %v17328_v42, %v21801_v26  ;;  %v11324_v25 = vpop.f32.mrb[79].mxu1  ;;  %17355 = vmatprep.mubr.msk.bf16.mxu0 %vm5993_vm6, %v21846_v45 }
 0xac4   : > { %v11483_v55 = vmax.f32 %v11451_v44, 0.0  ;;  %v11452_v41 = vadd.f32 %v21801_v26, %v11324_v25  ;;  %v11596_v12 = vld [vmem:[#allocation2 + $0x91] sm:$0xff] }
 0xac5   : > { %11517 = vst.msk [vmem:[#allocation2 + $0xc1] sm:$0xff] %vm5993_vm6, %v11485_v1  ;;  %v11486_v48 = vmax.f32 %v11454_v11, 0.0  ;;  %v11594_v24 = vld [vmem:[#allocation2 + $0x79] sm:$0xff] }
 0xac6   : > { %11515 = vst.msk [vmem:[#allocation2 + $0xa9] sm:$0xff] %vm5993_vm6, %v11483_v55  ;;  %v11484_v51 = vmax.f32 %v11452_v41, 0.0  ;;  %v11597_v43 = vld [vmem:[#allocation2 + $0x99] sm:$0xff] }
 0xac7   : > { %11518 = vst.msk [vmem:[#allocation2 + $0xc9] sm:$0xff] %vm5993_vm6, %v11486_v48  ;;  %v11595_v39 = vld [vmem:[#allocation2 + $0x81] sm:$0xff]  ;;  %v21862_v56 = vpack.c.bf16 %v11597_v43, %v11596_v12 }
 0xac8   : > { %11516 = vst.msk [vmem:[#allocation2 + $0xb1] sm:$0xff] %vm5993_vm6, %v11484_v51  ;;  %v17331_v15 = vpop.f32.mrb[80].mxu1  ;;  %v21859_v46 = vpack.c.bf16 %v11595_v39, %v11594_v24 }
 0xac9   : > { %v11457_v38 = vadd.f32 %v17331_v15, %v21801_v26  ;;  %v11337_v17 = vpop.f32.mrb[81].mxu1 }
 0xaca   : > { %v11455_v22 = vadd.f32 %v21801_v26, %v11337_v17  ;;  %v17332_v3 = vpop.f32.mrb[82].mxu1  ;;  %17356 = vmatmul.mubr.msk.bf16.gmra.mrb[72].mxu0 %vm5993_vm6, %v21859_v46 }
 0xacb   : > { %v11489_v59 = vmax.f32 %v11457_v38, 0.0  ;;  %v11458_v27 = vadd.f32 %v17332_v3, %v21801_v26  ;;  %v11340_v54 = vpop.f32.mrb[83].mxu1  ;;  %17359 = vmatprep.mubr.msk.bf16.mxu0 %vm5993_vm6, %v21862_v56 }
 0xacc   : > { %v11487_v4 = vmax.f32 %v11455_v22, 0.0  ;;  %v11456_v58 = vadd.f32 %v21801_v26, %v11340_v54  ;;  %v11600_v31 = vld [vmem:[#allocation2 + $0xc1] sm:$0xff] }
 0xacd   : > { %11521 = vst.msk [vmem:[#allocation2 + $0xf1] sm:$0xff] %vm5993_vm6, %v11489_v59  ;;  %v11490_v29 = vmax.f32 %v11458_v27, 0.0  ;;  %v11598_v35 = vld [vmem:[#allocation2 + $0xa9] sm:$0xff] }
 0xace   : > { %11519 = vst.msk [vmem:[#allocation2 + $0xd9] sm:$0xff] %vm5993_vm6, %v11487_v4  ;;  %v11488_v36 = vmax.f32 %v11456_v58, 0.0  ;;  %v11601_v16 = vld [vmem:[#allocation2 + $0xc9] sm:$0xff] }
 0xacf   : > { %11522 = vst.msk [vmem:[#allocation2 + $0xf9] sm:$0xff] %vm5993_vm6, %v11490_v29  ;;  %v11599_v5 = vld [vmem:[#allocation2 + $0xb1] sm:$0xff]  ;;  %v21878_v40 = vpack.c.bf16 %v11601_v16, %v11600_v31 }
 0xad0   : > { %11520 = vst.msk [vmem:[#allocation2 + $0xe1] sm:$0xff] %vm5993_vm6, %v11488_v36  ;;  %v17335_v34 = vpop.f32.mrb[84].mxu1  ;;  %v21875_v53 = vpack.c.bf16 %v11599_v5, %v11598_v35 }
 0xad1   : > { %v11461_v61 = vadd.f32 %v17335_v34, %v21801_v26  ;;  %v11353_v10 = vpop.f32.mrb[85].mxu1 }
 0xad2   : > { %v11459_v52 = vadd.f32 %v21801_v26, %v11353_v10  ;;  %v17336_v30 = vpop.f32.mrb[86].mxu1  ;;  %17360 = vmatmul.mubr.msk.bf16.gmra.mrb[76].mxu0 %vm5993_vm6, %v21875_v53 }
 0xad3   : > { %v11493_v7 = vmax.f32 %v11461_v61, 0.0  ;;  %v11462_v23 = vadd.f32 %v17336_v30, %v21801_v26  ;;  %v11356_v37 = vpop.f32.mrb[87].mxu1  ;;  %17363 = vmatprep.mubr.msk.bf16.mxu0 %vm5993_vm6, %v21878_v40 }
 0xad4   : > { %v11491_v20 = vmax.f32 %v11459_v52, 0.0  ;;  %v11460_v47 = vadd.f32 %v21801_v26, %v11356_v37  ;;  %v11604_v11 = vld [vmem:[#allocation2 + $0xf1] sm:$0xff] }
 0xad5   : > { %11525 = vst.msk [vmem:[#allocation2 + $0x121] sm:$0xff] %vm5993_vm6, %v11493_v7  ;;  %v11494_v8 = vmax.f32 %v11462_v23, 0.0  ;;  %v11602_v50 = vld [vmem:[#allocation2 + $0xd9] sm:$0xff] }
 0xad6   : > { %11523 = vst.msk [vmem:[#allocation2 + $0x109] sm:$0xff] %vm5993_vm6, %v11491_v20  ;;  %v11492_v49 = vmax.f32 %v11460_v47, 0.0  ;;  %v11605_v2 = vld [vmem:[#allocation2 + $0xf9] sm:$0xff] }
 0xad7   : > { %11526 = vst.msk [vmem:[#allocation2 + $0x129] sm:$0xff] %vm5993_vm6, %v11494_v8  ;;  %v11603_v44 = vld [vmem:[#allocation2 + $0xe1] sm:$0xff]  ;;  %v21894_v41 = vpack.c.bf16 %v11605_v2, %v11604_v11 }
 0xad8   : > { %11524 = vst.msk [vmem:[#allocation2 + $0x111] sm:$0xff] %vm5993_vm6, %v11492_v49  ;;  %v17339_v42 = vpop.f32.mrb[88].mxu1  ;;  %v21891_v1 = vpack.c.bf16 %v11603_v44, %v11602_v50  ;;  %v11536_v49 = vld [vmem:[#allocation2 + $0x8] sm:$0xff]  ;;  %v11538_v11 = vld [vmem:[#allocation2 + $0x20] sm:$0xff] }
 0xad9   : > { %v11465_v25 = vadd.f32 %v17339_v42, %v21801_v26  ;;  %v11369_v55 = vpop.f32.mrb[89].mxu1 }
 0xada   : > { %v11463_v48 = vadd.f32 %v21801_v26, %v11369_v55  ;;  %v17340_v51 = vpop.f32.mrb[90].mxu1  ;;  %17364 = vmatmul.mubr.msk.bf16.gmra.mrb[80].mxu0 %vm5993_vm6, %v21891_v1  ;;  %v11537_v55 = vld [vmem:[#allocation2 + $0x18] sm:$0xff] }
 0xadb   : > { %v11497_v43 = vmax.f32 %v11465_v25, 0.0  ;;  %v11466_v24 = vadd.f32 %v17340_v51, %v21801_v26  ;;  %v11372_v39 = vpop.f32.mrb[91].mxu1  ;;  %17367 = vmatprep.mubr.msk.bf16.mxu0 %vm5993_vm6, %v21894_v41  ;;  %v11540_v25 = vld [vmem:[#allocation2 + $0x38] sm:$0xff]  ;;  %v12157_v51 = vsel %vm6173_vm5, %v21828_v18, 0  ;;  %v11544_v18 = vld [vmem:[#allocation2 + $0x68] sm:$0xff] }
 0xadc   : > { %v11495_v15 = vmax.f32 %v11463_v48, 0.0  ;;  %v11464_v12 = vadd.f32 %v21801_v26, %v11372_v39  ;;  %v11608_v4 = vld [vmem:[#allocation2 + $0x121] sm:$0xff]  ;;  %v21936_v48 = vpack.c.bf16 %v11538_v11, %v11537_v55  ;;  %v21945_v39 = vld [vmem:[%s22489_s9 + $0xc] sm:$0xf] }
 0xadd   : > { %11529 = vst.msk [vmem:[#allocation2 + $0x151] sm:$0xff] %vm5993_vm6, %v11497_v43  ;;  %v11498_v38 = vmax.f32 %v11466_v24, 0.0  ;;  %v11606_v3 = vld [vmem:[#allocation2 + $0x109] sm:$0xff] }
 0xade   : > { %11527 = vst.msk [vmem:[#allocation2 + $0x139] sm:$0xff] %vm5993_vm6, %v11495_v15  ;;  %v11496_v17 = vmax.f32 %v11464_v12, 0.0  ;;  %v11609_v22 = vld [vmem:[#allocation2 + $0x129] sm:$0xff] }
 0xadf   : > { %11530 = vst.msk [vmem:[#allocation2 + $0x159] sm:$0xff] %vm5993_vm6, %v11498_v38  ;;  %v11607_v59 = vld [vmem:[#allocation2 + $0x111] sm:$0xff]  ;;  %v21910_v36 = vpack.c.bf16 %v11609_v22, %v11608_v4  ;;  %v11541_v12 = vld [vmem:[#allocation2 + $0x48] sm:$0xff] }
 0xae0   : > { %11528 = vst.msk [vmem:[#allocation2 + $0x141] sm:$0xff] %vm5993_vm6, %v11496_v17  ;;  %v17343_v27 = vpop.f32.mrb[92].mxu1  ;;  %v21907_v54 = vpack.c.bf16 %v11607_v59, %v11606_v3  ;;  %v11539_v43 = vld [vmem:[#allocation2 + $0x30] sm:$0xff]  ;;  %v11543_v17 = vld [vmem:[#allocation2 + $0x60] sm:$0xff]  ;;  %v11548_v59 = vld [vmem:[#allocation2 + $0x98] sm:$0xff] }
 0xae1   : > { %v11469_v58 = vadd.f32 %v17343_v27, %v21801_v26  ;;  %v11385_v29 = vpop.f32.mrb[93].mxu1  ;;  %v21940_v24 = vpack.c.bf16 %v11540_v25, %v11539_v43  ;;  %v11542_v15 = vld [vmem:[#allocation2 + $0x50] sm:$0xff]  ;;  %v21955_v22 = vpack.c.bf16 %v11544_v18, %v11543_v17  ;;  %v11546_v3 = vld [vmem:[#allocation2 + $0x80] sm:$0xff]  ;;  %v11545_v27 = vld [vmem:[#allocation2 + $0x78] sm:$0xff] }
 0xae2   : > { %v11467_v16 = vadd.f32 %v21801_v26, %v11385_v29  ;;  %v17344_v35 = vpop.f32.mrb[94].mxu1  ;;  %17368 = vmatmul.mubr.msk.bf16.gmra.mrb[84].mxu0 %vm5993_vm6, %v21907_v54  ;;  %v21953_v38 = vpack.c.bf16 %v11542_v15, %v11541_v12  ;;  %v21961_v4 = vpack.c.bf16 %v11546_v3, %v11545_v27  ;;  %v12058_v18 = vld [vmem:[#allocation2 + $0x2] sm:$0xff]  ;;  %v12059_v12 = vld [vmem:[#allocation2 + $0xa] sm:$0xff] }
 0xae3   : > { %v11501_v5 = vmax.f32 %v11469_v58, 0.0  ;;  %v11470_v34 = vadd.f32 %v17344_v35, %v21801_v26  ;;  %v11388_v31 = vpop.f32.mrb[95].mxu1  ;;  %17371 = vmatprep.mubr.msk.bf16.mxu0 %vm5993_vm6, %v21910_v36  ;;  %v11547_v58 = vld [vmem:[#allocation2 + $0x90] sm:$0xff]  ;;  %v11552_v35 = vld [vmem:[#allocation2 + $0xc8] sm:$0xff] }
 0xae4   : > { %v11499_v61 = vmax.f32 %v11467_v16, 0.0  ;;  %v11468_v10 = vadd.f32 %v21801_v26, %v11388_v31  ;;  %v11612_v47 = vld [vmem:[#allocation2 + $0x151] sm:$0xff]  ;;  %v11535_v26 = vld [vmem:[#allocation2] sm:$0xff]  ;;  %v21963_v29 = vpack.c.bf16 %v11548_v59, %v11547_v58  ;;  %v12090_v59 = vpack.c.bf16 %v12059_v12, %v12058_v18 }
 0xae5   : > { %11533 = vst.msk [vmem:[#allocation2 + $0x181] sm:$0xff] %vm5993_vm6, %v11501_v5  ;;  %v11502_v52 = vmax.f32 %v11470_v34, 0.0  ;;  %v11610_v23 = vld [vmem:[#allocation2 + $0x139] sm:$0xff]  ;;  %v11567_v44 = vpack.c.bf16 %v11536_v49, %v11535_v26  ;;  %v11550_v16 = vld [vmem:[#allocation2 + $0xb0] sm:$0xff]  ;;  %v11549_v5 = vld [vmem:[#allocation2 + $0xa8] sm:$0xff] }
 0xae6   : > { %11531 = vst.msk [vmem:[#allocation2 + $0x169] sm:$0xff] %vm5993_vm6, %v11499_v61  ;;  %v11500_v30 = vmax.f32 %v11468_v10, 0.0  ;;  %v11613_v7 = vld [vmem:[#allocation2 + $0x159] sm:$0xff]  ;;  %v21969_v34 = vpack.c.bf16 %v11550_v16, %v11549_v5  ;;  %v11560_v26 = vld [vmem:[#allocation2 + $0x128] sm:$0xff]  ;;  %v11563_v43 = vld [vmem:[#allocation2 + $0x150] sm:$0xff] }
 0xae7   : > { %11534 = vst.msk [vmem:[#allocation2 + $0x189] sm:$0xff] %vm5993_vm6, %v11502_v52  ;;  %v11611_v37 = vld [vmem:[#allocation2 + $0x141] sm:$0xff]  ;;  %v21925_v8 = vpack.c.bf16 %v11613_v7, %v11612_v47  ;;  %v11556_v52 = vld [vmem:[#allocation2 + $0xf8] sm:$0xff]  ;;  %v11558_v47 = vld [vmem:[#allocation2 + $0x110] sm:$0xff] }
 0xae8   : > { %11532 = vst.msk [vmem:[#allocation2 + $0x171] sm:$0xff] %vm5993_vm6, %v11500_v30  ;;  %v21923_v20 = vpack.c.bf16 %v11611_v37, %v11610_v23  ;;  %v11551_v31 = vld [vmem:[#allocation2 + $0xc0] sm:$0xff]  ;;  %v11553_v30 = vld [vmem:[#allocation2 + $0xd8] sm:$0xff]  ;;  %v11555_v23 = vld [vmem:[#allocation2 + $0xf0] sm:$0xff] }
 0xae9   : > { %v21971_v61 = vpack.c.bf16 %v11552_v35, %v11551_v31  ;;  %v11554_v10 = vld [vmem:[#allocation2 + $0xe0] sm:$0xff]  ;;  %v21979_v37 = vpack.c.bf16 %v11556_v52, %v11555_v23  ;;  %v11557_v49 = vld [vmem:[#allocation2 + $0x108] sm:$0xff]  ;;  %v11564_v25 = vld [vmem:[#allocation2 + $0x158] sm:$0xff] }
 0xaea   : > { %17372 = vmatmul.mubr.msk.bf16.gmra.mrb[88].mxu0 %vm5993_vm6, %v21923_v20  ;;  %v21977_v7 = vpack.c.bf16 %v11554_v10, %v11553_v30  ;;  %v11562_v11 = vld [vmem:[#allocation2 + $0x140] sm:$0xff]  ;;  %v11561_v55 = vld [vmem:[#allocation2 + $0x138] sm:$0xff]  ;;  %v21995_v15 = vpack.c.bf16 %v11564_v25, %v11563_v43  ;;  %v12451_v10 = vsel %vm6173_vm5, %v21945_v39, 0  ;;  %v15206_v30 = vld [vmem:[%s22489_s9 + $0x10] sm:$0xf] }
 0xaeb   : > { %17375 = vmatprep.mubr.msk.bf16.mxu0 %vm5993_vm6, %v21925_v8  ;;  %v12060_v58 = vld [vmem:[#allocation2 + $0x1a] sm:$0xff]  ;;  %v12061_v16 = vld [vmem:[#allocation2 + $0x22] sm:$0xff]  ;;  %v12062_v35 = vld [vmem:[#allocation2 + $0x32] sm:$0xff] }
 0xaec   : > { %v12063_v5 = vld [vmem:[#allocation2 + $0x3a] sm:$0xff]  ;;  %v22006_v31 = vpack.c.bf16 %v12061_v16, %v12060_v58  ;;  %v12064_v23 = vld [vmem:[#allocation2 + $0x4a] sm:$0xff]  ;;  %v12069_v25 = vld [vmem:[#allocation2 + $0x82] sm:$0xff] }
 0xaed   : > { %v11614_v2 = vld [vmem:[#allocation2 + $0x169] sm:$0xff]  ;;  %v22010_v52 = vpack.c.bf16 %v12063_v5, %v12062_v35  ;;  %v12071_v43 = vld [vmem:[#allocation2 + $0x9a] sm:$0xff] }
 0xaee   : > { %v11565_v3 = vld [vmem:[#allocation2 + $0x168] sm:$0xff]  ;;  %v12076_v5 = vld [vmem:[#allocation2 + $0xda] sm:$0xff] }
 0xaef   : > { %v11615_v50 = vld [vmem:[#allocation2 + $0x171] sm:$0xff] }
 0xaf0   : > { %v21931_v42 = vpack.c.bf16 %v11615_v50, %v11614_v2  ;;  %v21985_v2 = vpack.c.bf16 %v11558_v47, %v11557_v49  ;;  %v11559_v50 = vld [vmem:[#allocation2 + $0x120] sm:$0xff]  ;;  %v11566_v17 = vld [vmem:[#allocation2 + $0x170] sm:$0xff] }
 0xaf1   : > { %v22001_v27 = vpack.c.bf16 %v11566_v17, %v11565_v3  ;;  %v12065_v47 = vld [vmem:[#allocation2 + $0x52] sm:$0xff]  ;;  %v12067_v49 = vld [vmem:[#allocation2 + $0x6a] sm:$0xff] }
 0xaf2   : > { %17376 = vmatmul.mubr.msk.bf16.gmra.mrb[92].mxu0 %vm5993_vm6, %v21931_v42  ;;  %v12072_v17 = vld [vmem:[#allocation2 + $0xaa] sm:$0xff]  ;;  %v12073_v3 = vld [vmem:[#allocation2 + $0xb2] sm:$0xff] }
 0xaf3   : > { %17381 = vmatprep.mubr.msk.bf16.mxu0 %vm5993_vm6, %v11567_v44  ;;  %v21987_v44 = vpack.c.bf16 %v11560_v26, %v11559_v50  ;;  %v12066_v26 = vld [vmem:[#allocation2 + $0x62] sm:$0xff]  ;;  %v12075_v58 = vld [vmem:[#allocation2 + $0xca] sm:$0xff]  ;;  %v22036_v16 = vpack.c.bf16 %v12073_v3, %v12072_v17 }
 0xaf4   : > { %v22022_v50 = vpack.c.bf16 %v12067_v49, %v12066_v26 }
 0xafa   : > { %17382 = vmatmul.mubr.msk.bf16.vlgmr.msra.gmra.mrb[64].mxu0 %vm5993_vm6, %v21936_v48 }
 0xafb   : > { %17414 = vmatpush3.bf16.msra.mxu0 %v12157_v51  ;;  %17385 = vmatprep.mubr.msk.bf16.mxu0 %vm5993_vm6, %v21940_v24  ;;  %v21993_v51 = vpack.c.bf16 %v11562_v11, %v11561_v55  ;;  %v12068_v11 = vld [vmem:[#allocation2 + $0x7a] sm:$0xff]  ;;  %v12070_v55 = vld [vmem:[#allocation2 + $0x92] sm:$0xff] }
 0xafc   : > { %18972 = vmatprep.subr.msk.bf16.mxu0 %vm6173_vm5, %v21945_v39  ;;  %v22020_v39 = vpack.c.bf16 %v12065_v47, %v12064_v23  ;;  %v22028_v18 = vpack.c.bf16 %v12069_v25, %v12068_v11  ;;  %v22030_v12 = vpack.c.bf16 %v12071_v43, %v12070_v55  ;;  %v12078_v23 = vld [vmem:[#allocation2 + $0xf2] sm:$0xff]  ;;  %v12079_v47 = vld [vmem:[#allocation2 + $0xfa] sm:$0xff]  ;;  %v12080_v11 = vld [vmem:[#allocation2 + $0x10a] sm:$0xff] }
 0xafd   : > { %v22046_v49 = vpack.c.bf16 %v12079_v47, %v12078_v23  ;;  %v12081_v25 = vld [vmem:[#allocation2 + $0x112] sm:$0xff]  ;;  %v12082_v55 = vld [vmem:[#allocation2 + $0x122] sm:$0xff]  ;;  %v12083_v43 = vld [vmem:[#allocation2 + $0x12a] sm:$0xff] }
 0xafe   : > { %v22052_v17 = vpack.c.bf16 %v12081_v25, %v12080_v11  ;;  %v22054_v3 = vpack.c.bf16 %v12083_v43, %v12082_v55  ;;  %v12088_v11 = vld [vmem:[#allocation2 + $0x16a] sm:$0xff]  ;;  %v12089_v25 = vld [vmem:[#allocation2 + $0x172] sm:$0xff]  ;;  %v12745_v43 = vsel %vm6173_vm5, %v15206_v30, 0 }
 0xaff   : > { %v22068_v55 = vpack.c.bf16 %v12089_v25, %v12088_v11 }
 0xb02   : > { %17386 = vmatmul.mubr.msk.bf16.gmra.mrb[68].mxu0 %vm5993_vm6, %v21953_v38 }
 0xb03   : > { %17389 = vmatprep.mubr.msk.bf16.mxu0 %vm5993_vm6, %v21955_v22 }
 0xb0a   : > { %17390 = vmatmul.mubr.msk.bf16.gmra.mrb[72].mxu0 %vm5993_vm6, %v21961_v4 }
 0xb0b   : > { %17393 = vmatprep.mubr.msk.bf16.mxu0 %vm5993_vm6, %v21963_v29 }
 0xb12   : > { %17394 = vmatmul.mubr.msk.bf16.gmra.mrb[76].mxu0 %vm5993_vm6, %v21969_v34 }
 0xb13   : > { %17397 = vmatprep.mubr.msk.bf16.mxu0 %vm5993_vm6, %v21971_v61 }
 0xb1a   : > { %17398 = vmatmul.mubr.msk.bf16.gmra.mrb[80].mxu0 %vm5993_vm6, %v21977_v7 }
 0xb1b   : > { %17401 = vmatprep.mubr.msk.bf16.mxu0 %vm5993_vm6, %v21979_v37 }
 0xb22   : > { %17402 = vmatmul.mubr.msk.bf16.gmra.mrb[84].mxu0 %vm5993_vm6, %v21985_v2 }
 0xb23   : > { %17405 = vmatprep.mubr.msk.bf16.mxu0 %vm5993_vm6, %v21987_v44 }
 0xb2a   : > { %17406 = vmatmul.mubr.msk.bf16.gmra.mrb[88].mxu0 %vm5993_vm6, %v21993_v51 }
 0xb2b   : > { %17409 = vmatprep.mubr.msk.bf16.mxu0 %vm5993_vm6, %v21995_v15 }
 0xb32   : > { %17410 = vmatmul.mubr.msk.bf16.gmra.mrb[92].mxu0 %vm5993_vm6, %v22001_v27 }
 0xb33   : > { %17415 = vmatprep.mubr.msk.bf16.mxu0 %vm5993_vm6, %v12090_v59  ;;  %v12074_v59 = vld [vmem:[#allocation2 + $0xc2] sm:$0xff] }
 0xb34   : > { %v22038_v35 = vpack.c.bf16 %v12075_v58, %v12074_v59  ;;  %v12084_v59 = vld [vmem:[#allocation2 + $0x13a] sm:$0xff]  ;;  %v12085_v58 = vld [vmem:[#allocation2 + $0x142] sm:$0xff] }
 0xb35   : > { %v22060_v23 = vpack.c.bf16 %v12085_v58, %v12084_v59  ;;  %v15223_v59 = vld [vmem:[%s22489_s9 + $0x14] sm:$0xf] }
 0xb3a   : > { %17416 = vmatmul.mubr.msk.bf16.vlgmr.msra.gmra.mrb[64].mxu0 %vm5993_vm6, %v22006_v31 }
 0xb3b   : > { %17448 = vmatpush3.bf16.msra.mxu0 %v12451_v10  ;;  %17419 = vmatprep.mubr.msk.bf16.mxu0 %vm5993_vm6, %v22010_v52  ;;  %v12077_v10 = vld [vmem:[#allocation2 + $0xe2] sm:$0xff] }
 0xb3c   : > { %18973 = vmatprep.subr.msk.bf16.mxu0 %vm6173_vm5, %v15206_v30  ;;  %v22044_v26 = vpack.c.bf16 %v12077_v10, %v12076_v5  ;;  %v12086_v5 = vld [vmem:[#allocation2 + $0x152] sm:$0xff]  ;;  %v12087_v10 = vld [vmem:[#allocation2 + $0x15a] sm:$0xff] }
 0xb3d   : > { %v22062_v47 = vpack.c.bf16 %v12087_v10, %v12086_v5  ;;  %v12382_v30 = vld [vmem:[#allocation2 + $0x180] sm:$0xff]  ;;  %v13039_v5 = vsel %vm6173_vm5, %v15223_v59, 0  ;;  %v15240_v10 = vld [vmem:[%s22489_s9 + $0x18] sm:$0xf] }
 0xb42   : > { %17420 = vmatmul.mubr.msk.bf16.gmra.mrb[68].mxu0 %vm5993_vm6, %v22020_v39 }
 0xb43   : > { %17423 = vmatprep.mubr.msk.bf16.mxu0 %vm5993_vm6, %v22022_v50 }
 0xb4a   : > { %17424 = vmatmul.mubr.msk.bf16.gmra.mrb[72].mxu0 %vm5993_vm6, %v22028_v18 }
 0xb4b   : > { %17427 = vmatprep.mubr.msk.bf16.mxu0 %vm5993_vm6, %v22030_v12 }
 0xb52   : > { %17428 = vmatmul.mubr.msk.bf16.gmra.mrb[76].mxu0 %vm5993_vm6, %v22036_v16 }
 0xb53   : > { %17431 = vmatprep.mubr.msk.bf16.mxu0 %vm5993_vm6, %v22038_v35 }
 0xb5a   : > { %17432 = vmatmul.mubr.msk.bf16.gmra.mrb[80].mxu0 %vm5993_vm6, %v22044_v26 }
 0xb5b   : > { %17435 = vmatprep.mubr.msk.bf16.mxu0 %vm5993_vm6, %v22046_v49 }
 0xb62   : > { %17436 = vmatmul.mubr.msk.bf16.gmra.mrb[84].mxu0 %vm5993_vm6, %v22052_v17 }
 0xb63   : > { %17439 = vmatprep.mubr.msk.bf16.mxu0 %vm5993_vm6, %v22054_v3 }
 0xb6a   : > { %17440 = vmatmul.mubr.msk.bf16.gmra.mrb[88].mxu0 %vm5993_vm6, %v22060_v23 }
 0xb6b   : > { %17443 = vmatprep.mubr.msk.bf16.mxu0 %vm5993_vm6, %v22062_v47 }
 0xb72   : > { %17444 = vmatmul.mubr.msk.bf16.gmra.mrb[92].mxu0 %vm5993_vm6, %v22068_v55 }
 0xb73   : > { %17449 = vmatprep.mubr.msk.bf16.mxu0 %vm5993_vm6, %v21936_v48  ;;  %v12383_v48 = vld [vmem:[#allocation2 + $0x188] sm:$0xff] }
 0xb74   : > { %v22107_v58 = vpack.c.bf16 %v12383_v48, %v12382_v30  ;;  %v13534_v48 = vld [vmem:[#allocation2 + $0x79] sm:$0xff] }
 0xb7a   : > { %17450 = vmatmul.mubr.msk.bf16.vlgmr.msra.gmra.mrb[64].mxu0 %vm5993_vm6, %v21940_v24 }
 0xb7b   : > { %17482 = vmatpush3.bf16.msra.mxu0 %v12745_v43  ;;  %17453 = vmatprep.mubr.msk.bf16.mxu0 %vm5993_vm6, %v21953_v38  ;;  %v15274_v43 = vld [vmem:[%s22489_s9 + $0x20] sm:$0xf] }
 0xb7c   : > { %18974 = vmatprep.subr.msk.bf16.mxu0 %vm6173_vm5, %v15223_v59  ;;  %v13537_v59 = vld [vmem:[#allocation2 + $0x99] sm:$0xff] }
 0xb82   : > { %17454 = vmatmul.mubr.msk.bf16.gmra.mrb[68].mxu0 %vm5993_vm6, %v21955_v22 }
 0xb83   : > { %17457 = vmatprep.mubr.msk.bf16.mxu0 %vm5993_vm6, %v21961_v4 }
 0xb8a   : > { %17458 = vmatmul.mubr.msk.bf16.gmra.mrb[72].mxu0 %vm5993_vm6, %v21963_v29 }
 0xb8b   : > { %17461 = vmatprep.mubr.msk.bf16.mxu0 %vm5993_vm6, %v21969_v34 }
 0xb92   : > { %17462 = vmatmul.mubr.msk.bf16.gmra.mrb[76].mxu0 %vm5993_vm6, %v21971_v61 }
 0xb93   : > { %17465 = vmatprep.mubr.msk.bf16.mxu0 %vm5993_vm6, %v21977_v7 }
 0xb9a   : > { %17466 = vmatmul.mubr.msk.bf16.gmra.mrb[80].mxu0 %vm5993_vm6, %v21979_v37 }
 0xb9b   : > { %17469 = vmatprep.mubr.msk.bf16.mxu0 %vm5993_vm6, %v21985_v2 }
 0xba2   : > { %17470 = vmatmul.mubr.msk.bf16.gmra.mrb[84].mxu0 %vm5993_vm6, %v21987_v44 }
 0xba3   : > { %17473 = vmatprep.mubr.msk.bf16.mxu0 %vm5993_vm6, %v21993_v51 }
 0xbaa   : > { %17474 = vmatmul.mubr.msk.bf16.gmra.mrb[88].mxu0 %vm5993_vm6, %v21995_v15 }
 0xbab   : > { %17477 = vmatprep.mubr.msk.bf16.mxu0 %vm5993_vm6, %v22001_v27 }
 0xbb2   : > { %17478 = vmatmul.mubr.msk.bf16.gmra.mrb[92].mxu0 %vm5993_vm6, %v22107_v58 }
 0xbb3   : > { %17483 = vmatprep.mubr.msk.bf16.mxu0 %vm5993_vm6, %v21819_v21  ;;  %v12677_v21 = vld [vmem:[#allocation2 + $0x189] sm:$0xff] }
 0xbba   : > { %17484 = vmatmul.mubr.msk.bf16.vlgmr.msra.gmra.mrb[64].mxu0 %vm5993_vm6, %v21823_v19  ;;  %v12676_v19 = vld [vmem:[#allocation2 + $0x181] sm:$0xff] }
 0xbbb   : > { %17516 = vmatpush3.bf16.msra.mxu0 %v13039_v5  ;;  %17487 = vmatprep.mubr.msk.bf16.mxu0 %vm5993_vm6, %v21843_v6  ;;  %v22146_v6 = vpack.c.bf16 %v12677_v21, %v12676_v19  ;;  %v22706_v21 = vmax.f32 %v21087_v28, 0.0 }
 0xbbc   : > { %18975 = vmatprep.subr.msk.bf16.mxu0 %vm6173_vm5, %v15240_v10 }
 0xbc2   : > { %17488 = vmatmul.mubr.msk.bf16.gmra.mrb[68].mxu0 %vm5993_vm6, %v21846_v45  ;;  %v13333_v45 = vsel %vm6173_vm5, %v15240_v10, 0 }
 0xbc3   : > { %17491 = vmatprep.mubr.msk.bf16.mxu0 %vm5993_vm6, %v21859_v46  ;;  %v15257_v46 = vld [vmem:[%s22489_s9 + $0x1c] sm:$0xf] }
 0xbc4   : > { %v13627_v25 = vsel %vm6173_vm5, %v15257_v46, 0 }
 0xbca   : > { %17492 = vmatmul.mubr.msk.bf16.gmra.mrb[72].mxu0 %vm5993_vm6, %v21862_v56  ;;  %v12970_v56 = vld [vmem:[#allocation2 + $0x182] sm:$0xff] }
 0xbcb   : > { %17495 = vmatprep.mubr.msk.bf16.mxu0 %vm5993_vm6, %v21875_v53 }
 0xbd2   : > { %17496 = vmatmul.mubr.msk.bf16.gmra.mrb[76].mxu0 %vm5993_vm6, %v21878_v40 }
 0xbd3   : > { %17499 = vmatprep.mubr.msk.bf16.mxu0 %vm5993_vm6, %v21891_v1 }
 0xbda   : > { %17500 = vmatmul.mubr.msk.bf16.gmra.mrb[80].mxu0 %vm5993_vm6, %v21894_v41 }
 0xbdb   : > { %17503 = vmatprep.mubr.msk.bf16.mxu0 %vm5993_vm6, %v21907_v54 }
 0xbe2   : > { %17504 = vmatmul.mubr.msk.bf16.gmra.mrb[84].mxu0 %vm5993_vm6, %v21910_v36 }
 0xbe3   : > { %17507 = vmatprep.mubr.msk.bf16.mxu0 %vm5993_vm6, %v21923_v20 }
 0xbea   : > { %17508 = vmatmul.mubr.msk.bf16.gmra.mrb[88].mxu0 %vm5993_vm6, %v21925_v8 }
 0xbeb   : > { %17511 = vmatprep.mubr.msk.bf16.mxu0 %vm5993_vm6, %v21931_v42 }
 0xbf2   : > { %17512 = vmatmul.mubr.msk.bf16.gmra.mrb[92].mxu0 %vm5993_vm6, %v22146_v6 }
 0xbf3   : > { %17517 = vmatprep.mubr.msk.bf16.mxu0 %vm5993_vm6, %v22006_v31  ;;  %v12971_v31 = vld [vmem:[#allocation2 + $0x18a] sm:$0xff] }
 0xbf4   : > { %v22185_v11 = vpack.c.bf16 %v12971_v31, %v12970_v56  ;;  %v22708_v31 = vmax.f32 %v21098_v14, 0.0 }
 0xbfa   : > { %17518 = vmatmul.mubr.msk.bf16.vlgmr.msra.gmra.mrb[64].mxu0 %vm5993_vm6, %v22010_v52 }
 0xbfb   : > { %17550 = vmatpush3.bf16.msra.mxu0 %v13333_v45  ;;  %17521 = vmatprep.mubr.msk.bf16.mxu0 %vm5993_vm6, %v22020_v39 }
 0xbfc   : > { %18976 = vmatprep.subr.msk.bf16.mxu0 %vm6173_vm5, %v15257_v46  ;;  %v22707_v46 = vmax.f32 %v21093_v62, 0.0 }
 0xc02   : > { %17522 = vmatmul.mubr.msk.bf16.gmra.mrb[68].mxu0 %vm5993_vm6, %v22022_v50 }
 0xc03   : > { %17525 = vmatprep.mubr.msk.bf16.mxu0 %vm5993_vm6, %v22028_v18 }
 0xc0a   : > { %17526 = vmatmul.mubr.msk.bf16.gmra.mrb[72].mxu0 %vm5993_vm6, %v22030_v12 }
 0xc0b   : > { %17529 = vmatprep.mubr.msk.bf16.mxu0 %vm5993_vm6, %v22036_v16 }
 0xc12   : > { %17530 = vmatmul.mubr.msk.bf16.gmra.mrb[76].mxu0 %vm5993_vm6, %v22038_v35 }
 0xc13   : > { %17533 = vmatprep.mubr.msk.bf16.mxu0 %vm5993_vm6, %v22044_v26 }
 0xc1a   : > { %17534 = vmatmul.mubr.msk.bf16.gmra.mrb[80].mxu0 %vm5993_vm6, %v22046_v49 }
 0xc1b   : > { %17537 = vmatprep.mubr.msk.bf16.mxu0 %vm5993_vm6, %v22052_v17 }
 0xc22   : > { %17538 = vmatmul.mubr.msk.bf16.gmra.mrb[84].mxu0 %vm5993_vm6, %v22054_v3 }
 0xc23   : > { %17541 = vmatprep.mubr.msk.bf16.mxu0 %vm5993_vm6, %v22060_v23 }
 0xc2a   : > { %17542 = vmatmul.mubr.msk.bf16.gmra.mrb[88].mxu0 %vm5993_vm6, %v22062_v47 }
 0xc2b   : > { %17545 = vmatprep.mubr.msk.bf16.mxu0 %vm5993_vm6, %v22068_v55 }
 0xc32   : > { %17546 = vmatmul.mubr.msk.bf16.gmra.mrb[92].mxu0 %vm5993_vm6, %v22185_v11 }
 0xc33   : > { %17551 = vmatprep.mubr.msk.bf16.mxu0 %vm5993_vm6, %v21940_v24  ;;  %v13264_v24 = vld [vmem:[#allocation2 + $0x198] sm:$0xff] }
 0xc3a   : > { %17552 = vmatmul.mubr.msk.bf16.vlgmr.msra.gmra.mrb[64].mxu0 %vm5993_vm6, %v21953_v38  ;;  %v13265_v38 = vld [vmem:[#allocation2 + $0x1a0] sm:$0xff] }
 0xc3b   : > { %17584 = vmatpush3.bf16.msra.mxu0 %v13627_v25  ;;  %17555 = vmatprep.mubr.msk.bf16.mxu0 %vm5993_vm6, %v21955_v22  ;;  %v13281_v22 = vpack.c.bf16 %v13265_v38, %v13264_v24 }
 0xc3c   : > { %18977 = vmatprep.subr.msk.bf16.mxu0 %vm6173_vm5, %v15274_v43 }
 0xc42   : > { %17556 = vmatmul.mubr.msk.bf16.gmra.mrb[68].mxu0 %vm5993_vm6, %v21961_v4  ;;  %v13529_v4 = vld [vmem:[#allocation2 + $0x39] sm:$0xff] }
 0xc43   : > { %17559 = vmatprep.mubr.msk.bf16.mxu0 %vm5993_vm6, %v21963_v29  ;;  %v13528_v29 = vld [vmem:[#allocation2 + $0x31] sm:$0xff] }
 0xc4a   : > { %17560 = vmatmul.mubr.msk.bf16.gmra.mrb[72].mxu0 %vm5993_vm6, %v21969_v34  ;;  %v13560_v34 = vpack.c.bf16 %v13529_v4, %v13528_v29 }
 0xc4b   : > { %17563 = vmatprep.mubr.msk.bf16.mxu0 %vm5993_vm6, %v21971_v61  ;;  %v13531_v61 = vld [vmem:[#allocation2 + $0x51] sm:$0xff] }
 0xc52   : > { %17564 = vmatmul.mubr.msk.bf16.gmra.mrb[76].mxu0 %vm5993_vm6, %v21977_v7  ;;  %v13533_v7 = vld [vmem:[#allocation2 + $0x69] sm:$0xff] }
 0xc53   : > { %17567 = vmatprep.mubr.msk.bf16.mxu0 %vm5993_vm6, %v21979_v37  ;;  %v13530_v37 = vld [vmem:[#allocation2 + $0x49] sm:$0xff] }
 0xc5a   : > { %17568 = vmatmul.mubr.msk.bf16.gmra.mrb[80].mxu0 %vm5993_vm6, %v21985_v2  ;;  %v13561_v2 = vpack.c.bf16 %v13531_v61, %v13530_v37  ;;  %v22709_v37 = vmax.f32 %v21118_v32, 0.0 }
 0xc5b   : > { %17571 = vmatprep.mubr.msk.bf16.mxu0 %vm5993_vm6, %v21987_v44  ;;  %v13921_v44 = vsel %vm6173_vm5, %v15274_v43, 0 }
 0xc62   : > { %17572 = vmatmul.mubr.msk.bf16.gmra.mrb[84].mxu0 %vm5993_vm6, %v21993_v51  ;;  %v13532_v51 = vld [vmem:[#allocation2 + $0x61] sm:$0xff] }
 0xc63   : > { %17575 = vmatprep.mubr.msk.bf16.mxu0 %vm5993_vm6, %v21995_v15  ;;  %v13562_v15 = vpack.c.bf16 %v13533_v7, %v13532_v51 }
 0xc6a   : > { %17576 = vmatmul.mubr.msk.bf16.gmra.mrb[88].mxu0 %vm5993_vm6, %v22001_v27  ;;  %v13535_v27 = vld [vmem:[#allocation2 + $0x81] sm:$0xff] }
 0xc6b   : > { %17579 = vmatprep.mubr.msk.bf16.mxu0 %vm5993_vm6, %v22107_v58  ;;  %v13563_v30 = vpack.c.bf16 %v13535_v27, %v13534_v48  ;;  %v13536_v58 = vld [vmem:[#allocation2 + $0x91] sm:$0xff] }
 0xc6c   : > { %v13564_v5 = vpack.c.bf16 %v13537_v59, %v13536_v58 }
 0xc72   : > { %17580 = vmatmul.mubr.msk.bf16.gmra.mrb[92].mxu0 %vm5993_vm6, %v13281_v22 }
 0xc73   : > { %17585 = vmatprep.mubr.msk.bf16.mxu0 %vm5993_vm6, %v13560_v34 }
 0xc7a   : > { %17586 = vmatmul.mubr.msk.bf16.vlgmr.msra.gmra.mrb[64].mxu0 %vm5993_vm6, %v13561_v2 }
 0xc7b   : > { %17618 = vmatpush3.bf16.msra.mxu0 %v13921_v44  ;;  %17589 = vmatprep.mubr.msk.bf16.mxu0 %vm5993_vm6, %v13562_v15  ;;  %v22710_v44 = vmax.f32 %v21123_v33, 0.0 }
 0xc82   : > { %17590 = vmatmul.mubr.msk.bf16.gmra.mrb[68].mxu0 %vm5993_vm6, %v13563_v30  ;;  %v22711_v30 = vmax.f32 %v21129_v9, 0.0 }
 0xc83   : > { %17593 = vmatprep.mubr.msk.bf16.mxu0 %vm5993_vm6, %v13564_v5  ;;  %v22712_v5 = vmax.f32 %v21134_v0, 0.0 }
 0xc8a   : > { %17594 = vmatmul.mubr.msk.bf16.gmra.mrb[72].mxu0 %vm5993_vm6, %v21875_v53  ;;  %v13558_v53 = vld [vmem:[#allocation2 + $0x199] sm:$0xff] }
 0xc8b   : > { %17597 = vmatprep.mubr.msk.bf16.mxu0 %vm5993_vm6, %v21878_v40  ;;  %v13559_v40 = vld [vmem:[#allocation2 + $0x1a1] sm:$0xff] }
 0xc92   : > { %17598 = vmatmul.mubr.msk.bf16.gmra.mrb[76].mxu0 %vm5993_vm6, %v21891_v1  ;;  %v13575_v1 = vpack.c.bf16 %v13559_v40, %v13558_v53 }
 0xc93   : > { %17601 = vmatprep.mubr.msk.bf16.mxu0 %vm5993_vm6, %v21894_v41  ;;  %v13852_v41 = vld [vmem:[#allocation2 + $0x19a] sm:$0xff] }
 0xc9a   : > { %17602 = vmatmul.mubr.msk.bf16.gmra.mrb[80].mxu0 %vm5993_vm6, %v21907_v54  ;;  %v13853_v54 = vld [vmem:[#allocation2 + $0x1a2] sm:$0xff] }
 0xc9b   : > { %17605 = vmatprep.mubr.msk.bf16.mxu0 %vm5993_vm6, %v21910_v36  ;;  %v13869_v36 = vpack.c.bf16 %v13853_v54, %v13852_v41 }
 0xca2   : > { %17606 = vmatmul.mubr.msk.bf16.gmra.mrb[84].mxu0 %vm5993_vm6, %v21923_v20  ;;  %v14289_v20 = vld [vmem:[%s22491_s11] sm:$0xff] }
 0xca3   : > { %17609 = vmatprep.mubr.msk.bf16.mxu0 %vm5993_vm6, %v21925_v8  ;;  %v14290_v8 = vld [vmem:[%s22491_s11 + $0x8] sm:$0xff] }
 0xcaa   : > { %17610 = vmatmul.mubr.msk.bf16.gmra.mrb[88].mxu0 %vm5993_vm6, %v21931_v42  ;;  %v19121_v42 = vmov 0.0|0.0  }
 0xcab   : > { %17613 = vmatprep.mubr.msk.bf16.mxu0 %vm5993_vm6, %v22146_v6  ;;  %17662 = vmatprep.subr.bf16.mxu1 %v19121_v42 }
 0xcb2   : > { %17614 = vmatmul.mubr.msk.bf16.gmra.mrb[92].mxu0 %vm5993_vm6, %v13575_v1 }
 0xcb3   : > { %17619 = vmatprep.mubr.msk.bf16.mxu0 %vm5993_vm6, %v22010_v52  ;;  %v17663_v52 = vpack.c.bf16 %v14290_v8, %v14289_v20 }
 0xcb5   : > { %17664 = vmatpush3.bf16.msra.mxu1 %v17663_v52 }
 0xcb6   : > { %17665 = vmatprep.subr.bf16.mxu1 %v19121_v42 }
 0xcba   : > { %17620 = vmatmul.mubr.msk.bf16.vlgmr.msra.gmra.mrb[64].mxu0 %vm5993_vm6, %v22020_v39  ;;  %v14291_v39 = vld [vmem:[%s22491_s11 + $0x10] sm:$0xff] }
 0xcbb   : > { %17623 = vmatprep.mubr.msk.bf16.mxu0 %vm5993_vm6, %v22022_v50  ;;  %v14292_v50 = vld [vmem:[%s22491_s11 + $0x18] sm:$0xff] }
 0xcc2   : > { %17624 = vmatmul.mubr.msk.bf16.gmra.mrb[68].mxu0 %vm5993_vm6, %v22028_v18  ;;  %v17666_v18 = vpack.c.bf16 %v14292_v50, %v14291_v39 }
 0xcc3   : > { %17627 = vmatprep.mubr.msk.bf16.mxu0 %vm5993_vm6, %v22030_v12  ;;  %v22704_v12 = vmov 0.0  }
 0xcc4   : > { %17667 = vmatpush3.bf16.msra.mxu1 %v17666_v18  ;;  %17659 = vmatprep.mubr.msk.f32.mxu1 %vm19122_vm7, %v22704_v12  ;;  %v22713_v12 = vmax.f32 %v21159_v13, 0.0 }
 0xcca   : > { %17628 = vmatmul.mubr.msk.bf16.gmra.mrb[72].mxu0 %vm5993_vm6, %v22036_v16  ;;  %v22299_v16 = vld [vmem:[%s22490_s10] ss:$0 sm:$0xff] }
 0xccb   : > { %17631 = vmatprep.mubr.msk.bf16.mxu0 %vm5993_vm6, %v22038_v35 }
 0xcd2   : > { %17632 = vmatmul.mubr.msk.bf16.gmra.mrb[76].mxu0 %vm5993_vm6, %v22044_v26 }
 0xcd3   : > { %17635 = vmatprep.mubr.msk.bf16.mxu0 %vm5993_vm6, %v22046_v49 }
 0xcda   : > { %17636 = vmatmul.mubr.msk.bf16.gmra.mrb[80].mxu0 %vm5993_vm6, %v22052_v17 }
 0xcdb   : > { %17639 = vmatprep.mubr.msk.bf16.mxu0 %vm5993_vm6, %v22054_v3 }
 0xce2   : > { %17640 = vmatmul.mubr.msk.bf16.gmra.mrb[84].mxu0 %vm5993_vm6, %v22060_v23 }
 0xce3   : > { %17643 = vmatprep.mubr.msk.bf16.mxu0 %vm5993_vm6, %v22062_v47 }
 0xcea   : > { %17644 = vmatmul.mubr.msk.bf16.gmra.mrb[88].mxu0 %vm5993_vm6, %v22068_v55  ;;  %v22705_v55 = vmax.f32 %v21082_v57, 0.0 }
 0xceb   : > { %17647 = vmatprep.mubr.msk.bf16.mxu0 %vm5993_vm6, %v22185_v11 }
 0xcf2   : > { %17648 = vmatmul.mubr.msk.bf16.gmra.mrb[92].mxu0 %vm5993_vm6, %v13869_v36 }
 0xd8d   : > { %v17621_v35 = vpop.f32.mrb[64].mxu0 }
 0xd8e   : > { %v14125_v26 = vadd.f32 %v17621_v35, %v22299_v16  ;;  %v13957_v49 = vpop.f32.mrb[65].mxu0 }
 0xd8f   : > { %v14123_v17 = vadd.f32 %v22299_v16, %v13957_v49  ;;  %v17622_v3 = vpop.f32.mrb[66].mxu0 }
 0xd90   : > { %v14126_v23 = vadd.f32 %v17622_v3, %v22299_v16  ;;  %v13960_v47 = vpop.f32.mrb[67].mxu0  ;;  %v14157_v10 = vadd.f32 %v14125_v26, %v22705_v55  ;;  %v22714_v26 = vmax.f32 %v21166_v63, 0.0  ;;  %v22715_v55 = vmax.f32 %v21174_v60, 0.0 }
 0xd91   : > { %v14155_v19 = vadd.f32 %v14123_v17, %v22706_v21  ;;  %v14124_v6 = vadd.f32 %v22299_v16, %v13960_v47  ;;  %v22716_v21 = vld [vmem:[#allocation6_spill] sm:$0xff] }
 0xd92   : > { %v14158_v56 = vadd.f32 %v14126_v23, %v22707_v46  ;;  %v14189_v25 = vmax.f32 %v14157_v10, 0.0 }
 0xd93   : > { %v14187_v45 = vmax.f32 %v14155_v19, 0.0  ;;  %v14156_v11 = vadd.f32 %v14124_v6, %v22708_v31  ;;  %v22717_v19 = vmax.f32 %v22716_v21, 0.0 }
 0xd94   : > { %v14190_v4 = vmax.f32 %v14158_v56, 0.0  ;;  %v14222_v14 = vsel %vm439_vm1, %v14189_v25, 0.0 }
 0xd95   : > { %v14188_v43 = vmax.f32 %v14156_v11, 0.0  ;;  %v17625_v24 = vpop.f32.mrb[68].mxu0  ;;  %v14219_v57 = vsel %vm439_vm1, %v14187_v45, 0.0 }
 0xd96   : > { %v14129_v38 = vadd.f32 %v17625_v24, %v22299_v16  ;;  %v13973_v22 = vpop.f32.mrb[69].mxu0  ;;  %v14224_v59 = vsel %vm439_vm1, %v14190_v4, 0.0 }
 0xd97   : > { %v14220_v28 = vsel %vm439_vm1, %v14188_v43, 0.0  ;;  %v14127_v29 = vadd.f32 %v22299_v16, %v13973_v22  ;;  %v17626_v34 = vpop.f32.mrb[70].mxu0 }
 0xd98   : > { %v14221_v61 = vadd.f32 %v14220_v28, %v14219_v57  ;;  %v14130_v62 = vadd.f32 %v17626_v34, %v22299_v16  ;;  %v13976_v7 = vpop.f32.mrb[71].mxu0  ;;  %v14161_v2 = vadd.f32 %v14129_v38, %v22709_v37 }
 0xd99   : > { %v14159_v51 = vadd.f32 %v14127_v29, %v22710_v44  ;;  %v14128_v15 = vadd.f32 %v22299_v16, %v13976_v7  ;;  %v22718_v29 = vld [vmem:[#allocation7_spill] sm:$0xff] }
 0xd9a   : > { %v14223_v27 = vadd.f32 %v14222_v14, %v14221_v61  ;;  %v14162_v58 = vadd.f32 %v14130_v62, %v22711_v30  ;;  %v14193_v1 = vmax.f32 %v14161_v2, 0.0  ;;  %v22719_v34 = vmax.f32 %v22718_v29, 0.0  ;;  %v22720_v62 = vld [vmem:[#allocation8_spill] sm:$0xff] }
 0xd9b   : > { %v14191_v48 = vmax.f32 %v14159_v51, 0.0  ;;  %v14160_v53 = vadd.f32 %v14128_v15, %v22712_v5  ;;  %v22721_v7 = vmax.f32 %v22720_v62, 0.0  ;;  %v22722_v15 = vld [vmem:[#allocation9_spill] sm:$0xff] }
 0xd9c   : > { %v14225_v40 = vadd.f32 %v14224_v59, %v14223_v27  ;;  %v14194_v8 = vmax.f32 %v14162_v58, 0.0  ;;  %v14230_v18 = vsel %vm439_vm1, %v14193_v1, 0.0  ;;  %v22723_v27 = vmax.f32 %v22722_v15, 0.0 }
 0xd9d   : > { %v14226_v32 = vsel %vm439_vm1, %v14191_v48, 0.0  ;;  %v14192_v41 = vmax.f32 %v14160_v53, 0.0  ;;  %v17629_v54 = vpop.f32.mrb[72].mxu0  ;;  %v22724_v48 = vld [vmem:[#allocation10_spill] sm:$0xff] }
 0xd9e   : > { %v14227_v33 = vadd.f32 %v14226_v32, %v14225_v40  ;;  %v14133_v36 = vadd.f32 %v17629_v54, %v22299_v16  ;;  %v13989_v20 = vpop.f32.mrb[73].mxu0  ;;  %v14232_v23 = vsel %vm439_vm1, %v14194_v8, 0.0  ;;  %v22725_v30 = vmax.f32 %v22724_v48, 0.0 }
 0xd9f   : > { %v14228_v42 = vsel %vm439_vm1, %v14192_v41, 0.0  ;;  %v14131_v52 = vadd.f32 %v22299_v16, %v13989_v20  ;;  %v17630_v9 = vpop.f32.mrb[74].mxu0 }
 0xda0   : > { %v14229_v39 = vadd.f32 %v14228_v42, %v14227_v33  ;;  %v14134_v0 = vadd.f32 %v17630_v9, %v22299_v16  ;;  %v13992_v50 = vpop.f32.mrb[75].mxu0  ;;  %v14165_v35 = vadd.f32 %v14133_v36, %v22713_v12 }
 0xda1   : > { %v14163_v49 = vadd.f32 %v14131_v52, %v22714_v26  ;;  %v14132_v17 = vadd.f32 %v22299_v16, %v13992_v50  ;;  %v22726_v50 = vld [vmem:[#allocation11_spill] sm:$0xff] }
 0xda2   : > { %v14231_v3 = vadd.f32 %v14230_v18, %v14229_v39  ;;  %v14166_v10 = vadd.f32 %v14134_v0, %v22715_v55  ;;  %v14197_v46 = vmax.f32 %v14165_v35, 0.0  ;;  %v22727_v18 = vmax.f32 %v22726_v50, 0.0  ;;  %v22728_v35 = vld [vmem:[#allocation12_spill] sm:$0xff]  ;;  %v22730_v55 = vld [vmem:[#allocation13_spill] sm:$0xff] }
 0xda3   : > { %v14195_v47 = vmax.f32 %v14163_v49, 0.0  ;;  %v14164_v6 = vadd.f32 %v14132_v17, %v22717_v19  ;;  %v22729_v26 = vmax.f32 %v22728_v35, 0.0  ;;  %v22732_v19 = vld [vmem:[#allocation14_spill] sm:$0xff] }
 0xda4   : > { %v14233_v45 = vadd.f32 %v14232_v23, %v14231_v3  ;;  %v14198_v43 = vmax.f32 %v14166_v10, 0.0  ;;  %v14238_v28 = vsel %vm439_vm1, %v14197_v46, 0.0  ;;  %v22731_v10 = vmax.f32 %v22730_v55, 0.0 }
 0xda5   : > { %v14234_v13 = vsel %vm439_vm1, %v14195_v47, 0.0  ;;  %v14196_v56 = vmax.f32 %v14164_v6, 0.0  ;;  %v17633_v31 = vpop.f32.mrb[76].mxu0  ;;  %v22733_v6 = vmax.f32 %v22732_v19, 0.0 }
 0xda6   : > { %v14235_v63 = vadd.f32 %v14234_v13, %v14233_v45  ;;  %v14137_v11 = vadd.f32 %v17633_v31, %v22299_v16  ;;  %v14005_v25 = vpop.f32.mrb[77].mxu0  ;;  %v14240_v44 = vsel %vm439_vm1, %v14198_v43, 0.0 }
 0xda7   : > { %v14236_v24 = vsel %vm439_vm1, %v14196_v56, 0.0  ;;  %v14135_v38 = vadd.f32 %v22299_v16, %v14005_v25  ;;  %v17634_v60 = vpop.f32.mrb[78].mxu0 }
 0xda8   : > { %v14237_v22 = vadd.f32 %v14236_v24, %v14235_v63  ;;  %v14138_v57 = vadd.f32 %v17634_v60, %v22299_v16  ;;  %v14008_v4 = vpop.f32.mrb[79].mxu0  ;;  %v14169_v61 = vadd.f32 %v14137_v11, %v22719_v34  ;;  %v22734_v34 = vld [vmem:[#allocation15_spill] sm:$0xff] }
 0xda9   : > { %v14167_v14 = vadd.f32 %v14135_v38, %v22721_v7  ;;  %v14136_v37 = vadd.f32 %v22299_v16, %v14008_v4  ;;  %v22736_v7 = vld [vmem:[#allocation16_spill] sm:$0xff] }
 0xdaa   : > { %v14239_v2 = vadd.f32 %v14238_v28, %v14237_v22  ;;  %v14170_v59 = vadd.f32 %v14138_v57, %v22723_v27  ;;  %v14201_v53 = vmax.f32 %v14169_v61, 0.0  ;;  %v22735_v61 = vmax.f32 %v22734_v34, 0.0  ;;  %v22738_v27 = vld [vmem:[#allocation17_spill] sm:$0xff] }
 0xdab   : > { %v14199_v51 = vmax.f32 %v14167_v14, 0.0  ;;  %v14168_v58 = vadd.f32 %v14136_v37, %v22725_v30  ;;  %v22737_v14 = vmax.f32 %v22736_v7, 0.0  ;;  %v22740_v30 = vld [vmem:[#allocation18_spill] sm:$0xff] }
 0xdac   : > { %v14241_v5 = vadd.f32 %v14240_v44, %v14239_v2  ;;  %v14202_v36 = vmax.f32 %v14170_v59, 0.0  ;;  %v14246_v0 = vsel %vm439_vm1, %v14201_v53, 0.0  ;;  %v22739_v59 = vmax.f32 %v22738_v27, 0.0 }
 0xdad   : > { %v14242_v40 = vsel %vm439_vm1, %v14199_v51, 0.0  ;;  %v14200_v1 = vmax.f32 %v14168_v58, 0.0  ;;  %v17637_v32 = vpop.f32.mrb[80].mxu0  ;;  %v22741_v58 = vmax.f32 %v22740_v30, 0.0 }
 0xdae   : > { %v14243_v41 = vadd.f32 %v14242_v40, %v14241_v5  ;;  %v14141_v54 = vadd.f32 %v17637_v32, %v22299_v16  ;;  %v14021_v33 = vpop.f32.mrb[81].mxu0  ;;  %v14248_v23 = vsel %vm439_vm1, %v14202_v36, 0.0 }
 0xdaf   : > { %v14244_v20 = vsel %vm439_vm1, %v14200_v1, 0.0  ;;  %v14139_v8 = vadd.f32 %v22299_v16, %v14021_v33  ;;  %v17638_v42 = vpop.f32.mrb[82].mxu0 }
 0xdb0   : > { %v14245_v52 = vadd.f32 %v14244_v20, %v14243_v41  ;;  %v14142_v9 = vadd.f32 %v17638_v42, %v22299_v16  ;;  %v14024_v39 = vpop.f32.mrb[83].mxu0  ;;  %v14173_v12 = vadd.f32 %v14141_v54, %v22727_v18  ;;  %v22742_v18 = vld [vmem:[#allocation19_spill] sm:$0xff] }
 0xdb1   : > { %v14171_v49 = vadd.f32 %v14139_v8, %v22729_v26  ;;  %v14140_v17 = vadd.f32 %v22299_v16, %v14024_v39  ;;  %v22744_v26 = vld [vmem:[#allocation20_spill] sm:$0xff] }
 0xdb2   : > { %v14247_v3 = vadd.f32 %v14246_v0, %v14245_v52  ;;  %v14174_v21 = vadd.f32 %v14142_v9, %v22731_v10  ;;  %v14205_v13 = vmax.f32 %v14173_v12, 0.0  ;;  %v22743_v12 = vmax.f32 %v22742_v18, 0.0  ;;  %v22746_v10 = vld [vmem:[#allocation21_spill] sm:$0xff] }
 0xdb3   : > { %v14203_v47 = vmax.f32 %v14171_v49, 0.0  ;;  %v14172_v45 = vadd.f32 %v14140_v17, %v22733_v6  ;;  %v22745_v49 = vmax.f32 %v22744_v26, 0.0  ;;  %v22748_v6 = vld [vmem:[#allocation22_spill] sm:$0xff]  ;;  %v14293_v26 = vld [vmem:[%s22492_s12] sm:$0x1] }
 0xdb4   : > { %v14249_v46 = vadd.f32 %v14248_v23, %v14247_v3  ;;  %v14206_v24 = vmax.f32 %v14174_v21, 0.0  ;;  %v14254_v29 = vsel %vm439_vm1, %v14205_v13, 0.0  ;;  %v22747_v21 = vmax.f32 %v22746_v10, 0.0 }
 0xdb5   : > { %v14250_v56 = vsel %vm439_vm1, %v14203_v47, 0.0  ;;  %v14204_v31 = vmax.f32 %v14172_v45, 0.0  ;;  %v17641_v63 = vpop.f32.mrb[84].mxu0  ;;  %v22749_v45 = vmax.f32 %v22748_v6, 0.0 }
 0xdb6   : > { %v14251_v11 = vadd.f32 %v14250_v56, %v14249_v46  ;;  %v14145_v25 = vadd.f32 %v17641_v63, %v22299_v16  ;;  %v14037_v43 = vpop.f32.mrb[85].mxu0  ;;  %v14256_v51 = vsel %vm439_vm1, %v14206_v24, 0.0 }
 0xdb7   : > { %v14252_v38 = vsel %vm439_vm1, %v14204_v31, 0.0  ;;  %v14143_v60 = vadd.f32 %v22299_v16, %v14037_v43  ;;  %v17642_v22 = vpop.f32.mrb[86].mxu0 }
 0xdb8   : > { %v14253_v57 = vadd.f32 %v14252_v38, %v14251_v11  ;;  %v14146_v4 = vadd.f32 %v17642_v22, %v22299_v16  ;;  %v14040_v28 = vpop.f32.mrb[87].mxu0  ;;  %v14177_v62 = vadd.f32 %v14145_v25, %v22735_v61  ;;  %v22750_v61 = vld [vmem:[#allocation23_spill] sm:$0xff] }
 0xdb9   : > { %v14175_v37 = vadd.f32 %v14143_v60, %v22737_v14  ;;  %v14144_v2 = vadd.f32 %v22299_v16, %v14040_v28  ;;  %v22752_v14 = vld [vmem:[#allocation24_spill] sm:$0xff] }
 0xdba   : > { %v14255_v44 = vadd.f32 %v14254_v29, %v14253_v57  ;;  %v14178_v48 = vadd.f32 %v14146_v4, %v22739_v59  ;;  %v14209_v40 = vmax.f32 %v14177_v62, 0.0  ;;  %v22751_v62 = vmax.f32 %v22750_v61, 0.0  ;;  %v22754_v59 = vld [vmem:[#allocation25_spill] sm:$0xff] }
 0xdbb   : > { %v14207_v15 = vmax.f32 %v14175_v37, 0.0  ;;  %v14176_v5 = vadd.f32 %v14144_v2, %v22741_v58  ;;  %v22753_v37 = vmax.f32 %v22752_v14, 0.0  ;;  %v22756_v58 = vld [vmem:[#allocation26_spill] sm:$0xff] }
 0xdbc   : > { %v14257_v53 = vadd.f32 %v14256_v51, %v14255_v44  ;;  %v14210_v20 = vmax.f32 %v14178_v48, 0.0  ;;  %v14262_v50 = vsel %vm439_vm1, %v14209_v40, 0.0  ;;  %v22755_v48 = vmax.f32 %v22754_v59, 0.0 }
 0xdbd   : > { %v14258_v1 = vsel %vm439_vm1, %v14207_v15, 0.0  ;;  %v14208_v32 = vmax.f32 %v14176_v5, 0.0  ;;  %v17645_v41 = vpop.f32.mrb[88].mxu0  ;;  %v22757_v5 = vmax.f32 %v22756_v58, 0.0 }
 0xdbe   : > { %v14259_v54 = vadd.f32 %v14258_v1, %v14257_v53  ;;  %v14149_v33 = vadd.f32 %v17645_v41, %v22299_v16  ;;  %v14053_v36 = vpop.f32.mrb[89].mxu0  ;;  %v14264_v47 = vsel %vm439_vm1, %v14210_v20, 0.0 }
 0xdbf   : > { %v14260_v8 = vsel %vm439_vm1, %v14208_v32, 0.0  ;;  %v14147_v42 = vadd.f32 %v22299_v16, %v14053_v36  ;;  %v17646_v52 = vpop.f32.mrb[90].mxu0 }
 0xdc0   : > { %v14261_v9 = vadd.f32 %v14260_v8, %v14259_v54  ;;  %v14150_v39 = vadd.f32 %v17646_v52, %v22299_v16  ;;  %v14056_v0 = vpop.f32.mrb[91].mxu0  ;;  %v14181_v35 = vadd.f32 %v14149_v33, %v22743_v12 }
 0xdc1   : > { %v14179_v17 = vadd.f32 %v14147_v42, %v22745_v49  ;;  %v14148_v3 = vadd.f32 %v22299_v16, %v14056_v0 }
 0xdc2   : > { %v14263_v23 = vadd.f32 %v14262_v50, %v14261_v9  ;;  %v14182_v19 = vadd.f32 %v14150_v39, %v22747_v21  ;;  %v14213_v56 = vmax.f32 %v14181_v35, 0.0 }
 0xdc3   : > { %v14211_v55 = vmax.f32 %v14179_v17, 0.0  ;;  %v14180_v46 = vadd.f32 %v14148_v3, %v22749_v45 }
 0xdc4   : > { %v14265_v13 = vadd.f32 %v14264_v47, %v14263_v23  ;;  %v14214_v38 = vmax.f32 %v14182_v19, 0.0  ;;  %v14270_v34 = vsel %vm439_vm1, %v14213_v56, 0.0 }
 0xdc5   : > { %v14266_v31 = vsel %vm439_vm1, %v14211_v55, 0.0  ;;  %v14212_v63 = vmax.f32 %v14180_v46, 0.0  ;;  %v17649_v11 = vpop.f32.mrb[92].mxu0 }
 0xdc6   : > { %v14267_v25 = vadd.f32 %v14266_v31, %v14265_v13  ;;  %v14153_v43 = vadd.f32 %v17649_v11, %v22299_v16  ;;  %v14069_v24 = vpop.f32.mrb[93].mxu0  ;;  %v14272_v15 = vsel %vm439_vm1, %v14214_v38, 0.0 }
 0xdc7   : > { %v14268_v60 = vsel %vm439_vm1, %v14212_v63, 0.0  ;;  %v14151_v22 = vadd.f32 %v22299_v16, %v14069_v24  ;;  %v17650_v57 = vpop.f32.mrb[94].mxu0 }
 0xdc8   : > { %v14269_v4 = vadd.f32 %v14268_v60, %v14267_v25  ;;  %v14154_v28 = vadd.f32 %v17650_v57, %v22299_v16  ;;  %v14072_v29 = vpop.f32.mrb[95].mxu0  ;;  %v14185_v7 = vadd.f32 %v14153_v43, %v22751_v62 }
 0xdc9   : > { %v14183_v2 = vadd.f32 %v14151_v22, %v22753_v37  ;;  %v14152_v44 = vadd.f32 %v22299_v16, %v14072_v29 }
 0xdca   : > { %v14271_v51 = vadd.f32 %v14270_v34, %v14269_v4  ;;  %v14186_v30 = vadd.f32 %v14154_v28, %v22755_v48  ;;  %v14217_v1 = vmax.f32 %v14185_v7, 0.0 }
 0xdcb   : > { %v14215_v27 = vmax.f32 %v14183_v2, 0.0  ;;  %v14184_v53 = vadd.f32 %v14152_v44, %v22757_v5 }
 0xdcc   : > { %v14273_v40 = vadd.f32 %v14272_v15, %v14271_v51  ;;  %v14218_v33 = vmax.f32 %v14186_v30, 0.0  ;;  %v14278_v20 = vsel %vm439_vm1, %v14217_v1, 0.0 }
 0xdcd   : > { %v14274_v32 = vsel %vm439_vm1, %v14215_v27, 0.0  ;;  %v14216_v41 = vmax.f32 %v14184_v53, 0.0 }
 0xdce   : > { %v14275_v54 = vadd.f32 %v14274_v32, %v14273_v40  ;;  %v14280_v42 = vsel %vm439_vm1, %v14218_v33, 0.0 }
 0xdcf   : > { %v14276_v16 = vsel %vm439_vm1, %v14216_v41, 0.0 }
 0xdd0   : > { %v14277_v36 = vadd.f32 %v14276_v16, %v14275_v54 }
 0xdd2   : > { %v14279_v8 = vadd.f32 %v14278_v20, %v14277_v36 }
 0xdd4   : > { %v14281_v52 = vadd.f32 %v14280_v42, %v14279_v8 }
 0xdd6   : > { %v14282_v9 = vrot.slane %v14281_v52, 4 }
 0xdd8   : > { %v14283_v39 = vadd.f32 %v14282_v9, %v14281_v52 }
 0xdda   : > { %v14284_v0 = vrot.slane %v14283_v39, 2 }
 0xddc   : > { %v14285_v50 = vadd.f32 %v14284_v0, %v14283_v39 }
 0xdde   : > { %v14286_v18 = vrot.slane %v14285_v50, 1 }
 0xde0   : > { %v14287_v12 = vadd.f32 %v14286_v18, %v14285_v50 }
 0xde2   : > { %v14288_v35 = vmul.f32 0.00390625, %v14287_v12 }
 0xde4   : > { %17660 = vmatmul.mubr.msk.f32.vlgmr.msra.gmra.mrb[96].mxu1 %vm439_vm1, %v14288_v35 }
 0xeb7   : > { %v14363_v49 = vpop.f32.mrb[96].mxu1 }
 0xeb8   : > { %v14364_v17 = vadd.f32 %v14363_v49, %v14293_v26  ;;  %v17661_v3 = vpop.f32.mrb[97].mxu1 }
 0xeba   : > { %14368 = vst.msk [vmem:[%s432_s21] sm:$0x1] %vm14367_vm8, %v14364_v17 }
 0xebb   : > { %19069 = shalt.err (!%p19066_p3)
}
 0xebc   : > { %s19070_s30 = scalar_lea.hbm %s22438_s0, 16  ;;  %s19074_s23 = scalar_lea.hbm %s22493_s13, 32 }
 0xebd   : > { %p19071_p4 = scmp.ne.s32.totalorder %s22438_s0, %s19070_s30  ;;  %p19075_p9 = scmp.lt.u32.totalorder %s22438_s0, %s22493_s13 }
 0xebe   : > { %p19076_p10 = scmp.lt.u32.totalorder %s19074_s23, %s19070_s30  ;;  %p19078_p12 = scmp.lt.u32.totalorder %s19070_s30, %s22438_s0 }
 0xebf   : > { %p19072_p7 = pnand %p19071_p4, %p19232_p5 }
 0xec0   : > { %p19077_p11 = por %p19076_p10, %p19075_p9 }
 0xec1   : > { %p19073_p8 = pneg %p19072_p7 }
 0xec2   : > { %p19079_p13 = por %p19078_p12, %p19077_p11 }
 0xec4   : > { %p19080_p0 = pnand %p19079_p13, %p19073_p8 }
 0xec6   : > { %19083 = shalt.err (!%p19080_p0)
}
 0xec7   : > { %18978 = dma.vmem_to_hbm [thread:$0]  (%p19232_p5), %s22440_s22, 16, %s22438_s0, %s14370_s15  }
 0xec8 PF: > { %p18984_p1 = scmp.ge.s32.totalorder %s19118_s28, 2  ;;  %s14394_s2 = sand.u32 1, %s19106_s25  }
 0xec9   : > { %s14395_s16 = scalar_lea.sflag [#allocation4], %s14394_s2 }
 0xeca   : > { %p18981_p2 = pnand %p18984_p1, %p19236_p6 }
 0xecc   : > { %19101 = dma.done.wait (!%p18981_p2), %s14395_s16, 16  }
 0xecd   : > { %19103 = vsyncadd (!%p18981_p2), %s14395_s16, 4294967280  ;;  %p23_p3 = scmp.ge.s32.totalorder %s19219_s14, 4   ;;  %s22758_s25 = smov %s19110_s26 }
 0xece   : > { %s22759_s26 = smov %s19114_s27  ;;  %s22760_s27 = smov %s19230_s17 }
 0xecf   : > { %s22761_s28 = smov %s19219_s14  ;;  %25 = sbr.rel (!%p23_p3) target bundleno = 7 (0x7), region = 150 }
 0xed6   :  { %14399 = vsyncpa [#allocation4], 1 }
 0xed7   :  { %14401 = vsyncpa [#allocation4 + $0x1], 1 }

</bundles_post_ra>
